<compile_context>
chip_gen: v5e
topology: v5e:2x2
jax: 0.10.0
libtpu: 0.0.40
codegen_flags: <defaults>
</compile_context>

<pallas_src>
import jax
import jax.numpy as jnp
from jax.experimental import pallas as pl
from jax.experimental.pallas import tpu as pltpu

IN_DIM = 768          # fixed by nn.Linear(768, ...)
ADAPTER_DIM = 8       # `dim` in the module
ADAPTER_PAD = 128     # rank-8 dims zero-padded to one full lane width (exact)
UPSCALE_DIM = 1024    # `upscale_dim` in the module


# ----------------------------- kernels ------------------------------------ #

def _affine_kernel(x_ref, w_ref, b_ref, o_ref):
    """Fully folded eval-mode forward: o = x @ W_eff + b_eff."""
    x = x_ref[...].astype(jnp.bfloat16)              # cast on-chip, not in HBM
    acc = jnp.dot(x, w_ref[...], preferred_element_type=jnp.float32)
    o_ref[...] = (acc + b_ref[...]).astype(o_ref.dtype)


def _fused_kernel(x_ref,
                  wdm_ref, bdm_ref,     # adapter_down @ adapter_mid (rank-8, padded to 128)
                  wu_ref, bu_ref,       # adapter_up        : 128(pad of 8) -> 768
                  wusm_ref, busm_ref,   # adapter_upscale @ adapter_mid_upscale : 768 -> 1024
                  wds_ref, bds_ref,     # adapter_downscale : 1024 -> 768
                  o_ref):
    x = x_ref[...].astype(jnp.bfloat16)              # (tm, 768) bf16 on-chip

    # --- low-rank branch (down@mid folded; dropout boundary sits right after) ---
    h = jnp.dot(x, wdm_ref[...], preferred_element_type=jnp.float32) + bdm_ref[...]
    # TODO(synk): nn.Dropout(0.1) is identity in eval mode; training-mode dropout
    # would use pltpu.prng_seed / pltpu.prng_random_bits on `h` and `g` here.
    x_up = jnp.dot(h.astype(jnp.bfloat16), wu_ref[...],
                   preferred_element_type=jnp.float32) + bu_ref[...]

    # --- upscale branch (upscale@mid_upscale folded; dropout boundary after it) ---
    g = jnp.dot(x, wusm_ref[...], preferred_element_type=jnp.float32) + busm_ref[...]
    x_ds = jnp.dot(g.astype(jnp.bfloat16), wds_ref[...],
                   preferred_element_type=jnp.float32) + bds_ref[...]

    o_ref[...] = (x_up + x_ds).astype(o_ref.dtype)


# --------------------------- one-time precompute --------------------------- #

def fold_params(p):
    """Eval-mode fold: one 768x768 weight + 768 bias.  ~3 GFLOP - run ONCE."""
    w_lr = p["wd"] @ p["wm"] @ p["wu"]
    b_lr = (p["bd"] @ p["wm"] + p["bm"]) @ p["wu"] + p["bu"]
    w_us = p["wus"] @ p["wmu"] @ p["wds"]
    b_us = (p["bus"] @ p["wmu"] + p["bmu"]) @ p["wds"] + p["bds"]
    return (w_lr + w_us).astype(jnp.bfloat16), (b_lr + b_us).astype(jnp.float32)


def fuse_params(p):
    """Kernel-ready weights for the 4-matmul fused path.  Run ONCE.

    Folds adjacent linears that have no dropout between them (down@mid and
    upscale@mid_upscale) in f32, zero-pads the rank-8 dims to 128 lanes
    (mathematically exact), and casts matmul operands to bf16.
    """
    wdm = p["wd"] @ p["wm"]                       # (768, 8)
    bdm = p["bd"] @ p["wm"] + p["bm"]             # (1, 8)
    wusm = p["wus"] @ p["wmu"]                    # (768, 1024)
    busm = p["bus"] @ p["wmu"] + p["bmu"]         # (1, 1024)

    wdm_p = jnp.zeros((IN_DIM, ADAPTER_PAD), jnp.float32).at[:, :ADAPTER_DIM].set(wdm)
    bdm_p = jnp.zeros((1, ADAPTER_PAD), jnp.float32).at[:, :ADAPTER_DIM].set(bdm)
    wu_p = jnp.zeros((ADAPTER_PAD, IN_DIM), jnp.float32).at[:ADAPTER_DIM, :].set(p["wu"])

    return (wdm_p.astype(jnp.bfloat16), bdm_p,
            wu_p.astype(jnp.bfloat16), p["bu"].astype(jnp.float32),
            wusm.astype(jnp.bfloat16), busm.astype(jnp.float32),
            p["wds"].astype(jnp.bfloat16), p["bds"].astype(jnp.float32))


# ----------------------------- wrappers ------------------------------------ #

def _round_up(a, b):
    return -(-a // b) * b


def _pick_tm(m, tm_max=1024):
    """Largest DMA/MXU-friendly row tile, but keep >= 2 grid steps (v7x 2-TC split)."""
    if m <= 512:
        return 256
    return min(tm_max, _round_up(pl.cdiv(m, 2), 256))


def _vmem_limit_bytes(tm, prepared, in_itemsize, out_itemsize, folded):
    """Trimmed (but safe) scoped-VMEM request: actual footprint + headroom."""
    act = 2 * tm * IN_DIM * (in_itemsize + out_itemsize)            # x/out double-buffer
    wts = 2 * sum(int(w.size) * w.dtype.itemsize for w in prepared)  # conservative
    inter_cols = IN_DIM if folded else (ADAPTER_PAD + UPSCALE_DIM + 2 * IN_DIM)
    inter = tm * inter_cols * 6                                      # f32 + bf16 temporaries
    return int(min(56 << 20, act + wts + inter + (8 << 20)))


def _row_call(kernel, x2, prepared, *, tm, out_dtype):
    """Tile (M, 768) rows; weights stay resident (constant maps, single buffer)."""
    M, D = x2.shape
    row = lambda i: (i, 0)
    const = lambda i: (0, 0)
    folded = len(prepared) == 2

    flops = 2 * M * sum(w.shape[0] * w.shape[1] for w in prepared[::2])
    out_itemsize = jnp.dtype(out_dtype).itemsize
    bytes_accessed = (M * D * x2.dtype.itemsize
                      + sum(int(w.size) * w.dtype.itemsize for w in prepared)
                      + M * D * out_itemsize)

    return pl.pallas_call(
        kernel,
        out_shape=jax.ShapeDtypeStruct((M, D), out_dtype),
        grid_spec=pltpu.PrefetchScalarGridSpec(
            num_scalar_prefetch=0,
            grid=(pl.cdiv(M, tm),),                 # ragged last tile handled by Pallas
            in_specs=[pl.BlockSpec((tm, D), row)]
                     + [pl.BlockSpec(w.shape, const,
                                     pipeline_mode=pl.Buffered(buffer_count=1))
                        for w in prepared],
            out_specs=pl.BlockSpec((tm, D), row),
        ),
        compiler_params=pltpu.CompilerParams(
            # Row tiles are fully independent -> v7x shards them over its 2 TCs.
            dimension_semantics=("parallel",),
            vmem_limit_bytes=_vmem_limit_bytes(tm, prepared, x2.dtype.itemsize,
                                               out_itemsize, folded),
        ),
        cost_estimate=pl.CostEstimate(flops=flops, transcendentals=0,
                                      bytes_accessed=bytes_accessed),
    )(x2, *prepared)


def bi_direct_adapter(x, prepared, *, tm=None, out_dtype=None):
    """x: (B, N, 768).  prepared: fold_params(...) (2 arrays) or fuse_params(...) (8)."""
    B, N, D = x.shape
    assert D == IN_DIM
    M = B * N
    if tm is None:
        tm = _pick_tm(M)
    if out_dtype is None:
        out_dtype = x.dtype
    x2 = x.reshape(M, D)                            # metadata-only reshape, native dtype
    kernel = _affine_kernel if len(prepared) == 2 else _fused_kernel
    out = _row_call(kernel, x2, prepared, tm=tm, out_dtype=out_dtype)
    return out.reshape(B, N, D)


# --------------------------- params & reference ---------------------------- #

def make_params(zeros=True, key=None):
    """Parameters in (in_features, out_features) layout; biases as (1, out)."""
    shapes = {
        "wd": (IN_DIM, ADAPTER_DIM), "bd": (1, ADAPTER_DIM),
        "wm": (ADAPTER_DIM, ADAPTER_DIM), "bm": (1, ADAPTER_DIM),
        "wu": (ADAPTER_DIM, IN_DIM), "bu": (1, IN_DIM),
        "wus": (IN_DIM, UPSCALE_DIM), "bus": (1, UPSCALE_DIM),
        "wmu": (UPSCALE_DIM, UPSCALE_DIM), "bmu": (1, UPSCALE_DIM),
        "wds": (UPSCALE_DIM, IN_DIM), "bds": (1, IN_DIM),
    }
    if zeros:
        # Matches the module's __init__: every adapter weight/bias is zero-init.
        return {k: jnp.zeros(s, jnp.float32) for k, s in shapes.items()}
    keys = jax.random.split(key, len(shapes))
    return {k: 0.02 * jax.random.normal(kk, s, jnp.float32)
            for (k, s), kk in zip(shapes.items(), keys)}


def reference(x, p):
    """Pure-JAX f32 reference of the PyTorch forward (dropout in eval mode)."""
    x2 = x.reshape(-1, IN_DIM)
    xd = x2 @ p["wd"] + p["bd"]
    xd = xd @ p["wm"] + p["bm"]
    xu = xd @ p["wu"] + p["bu"]
    xs = x2 @ p["wus"] + p["bus"]
    xs = xs @ p["wmu"] + p["bmu"]
    xds = xs @ p["wds"] + p["bds"]
    return (xu + xds).reshape(x.shape)


if __name__ == "__main__":
    key = jax.random.PRNGKey(0)
    kx, kw = jax.random.split(key)

    # ViT-style token count: 2*197 = 394 rows exercises the ragged last tile
    # (394 = 256 + 138) and gives a 2-step grid for the v7x megacore split.
    B, N = 2, 197
    x = jax.random.normal(kx, (B, N, IN_DIM), jnp.float32)

    run = jax.jit(bi_direct_adapter, static_argnames=("tm", "out_dtype"))

    # 1) Exact module semantics: zero-initialized adapters -> output is zero.
    p_zero = make_params(zeros=True)
    for prep in (fold_params(p_zero), fuse_params(p_zero)):
        out_zero = jax.block_until_ready(run(x, prep))
        assert out_zero.shape == x.shape
        assert jnp.allclose(out_zero, jnp.zeros_like(out_zero))

    # 2) Numeric check vs. f32 reference (bf16 matmul operands -> loose tol).
    p_rand = make_params(zeros=False, key=kw)
    ref = reference(x, p_rand)
    folded = fold_params(p_rand)     # one-time precompute (do NOT redo per call)
    fused = fuse_params(p_rand)
    for prep in (folded, fused):
        out = jax.block_until_ready(run(x, prep))
        assert out.dtype == x.dtype
        err = float(jnp.max(jnp.abs(out - ref)))
        assert jnp.allclose(out, ref, atol=2e-2, rtol=2e-2), err

    # 3) bf16-output variant (halves the output HBM stream on the folded path).
    out_bf16 = jax.block_until_ready(run(x, folded, out_dtype=jnp.bfloat16))
    assert out_bf16.dtype == jnp.bfloat16
    assert jnp.allclose(out_bf16.astype(jnp.float32), ref, atol=6e-2, rtol=6e-2)

    print("KERNEL_OK")
</pallas_src>

<mosaic_0001>
module attributes {stable_mosaic.version = 11 : i64} {
  func.func @_affine_kernel(%arg0: i32, %arg1: memref<256x768xf32, #tpu.memory_space<vmem>>, %arg2: memref<768x768xbf16, #tpu.memory_space<vmem>>, %arg3: memref<1x768xf32, #tpu.memory_space<vmem>>, %arg4: memref<256x768xf32, #tpu.memory_space<vmem>>) attributes {dimension_semantics = [#tpu.dimension_semantics<parallel>], iteration_bounds = array<i64: 2>, scalar_prefetch = 0 : i64, scratch_operands = 0 : i64, tpu.core_type = #tpu.core_type<tc>, window_params = [{transform_indices = @transform_0, window_bounds = array<i64: 256, 768>}, {pipeline_mode = #tpu.pipeline_mode<synchronous>, transform_indices = @transform_1, window_bounds = array<i64: 768, 768>}, {pipeline_mode = #tpu.pipeline_mode<synchronous>, transform_indices = @transform_2, window_bounds = array<i64: 1, 768>}, {transform_indices = @transform_3, window_bounds = array<i64: 256, 768>}]} {
    %c0 = arith.constant 0 : index
    %c0_0 = arith.constant 0 : index
    %0 = vector.load %arg1[%c0, %c0_0] : memref<256x768xf32, #tpu.memory_space<vmem>>, vector<256x768xf32>
    %1 = arith.truncf %0 : vector<256x768xf32> to vector<256x768xbf16>
    %c0_1 = arith.constant 0 : index
    %c0_2 = arith.constant 0 : index
    %2 = vector.load %arg2[%c0_1, %c0_2] : memref<768x768xbf16, #tpu.memory_space<vmem>>, vector<768x768xbf16>
    %cst = arith.constant dense<0.000000e+00> : vector<256x768xf32>
    %3 = tpu.matmul %1, %2, %cst {dimension_numbers = #tpu.dot_dimension_numbers<[1], [0], [0], [1], [0, 0, 1, 1], [], []>} : vector<256x768xbf16>, vector<768x768xbf16>, vector<256x768xf32> -> vector<256x768xf32>
    %c0_3 = arith.constant 0 : index
    %c0_4 = arith.constant 0 : index
    %4 = vector.load %arg3[%c0_3, %c0_4] : memref<1x768xf32, #tpu.memory_space<vmem>>, vector<1x768xf32>
    %5 = vector.broadcast %4 : vector<1x768xf32> to vector<256x768xf32>
    %6 = arith.addf %3, %5 : vector<256x768xf32>
    %c0_5 = arith.constant 0 : index
    %c0_6 = arith.constant 0 : index
    %7 = vector.load %arg4[%c0_5, %c0_6] : memref<256x768xf32, #tpu.memory_space<vmem>>, vector<256x768xf32>
    tpu.vector_store %arg4[%c0_5, %c0_6], %6 {strides = array<i32>} : memref<256x768xf32, #tpu.memory_space<vmem>>, vector<256x768xf32>,
    return
  }
  func.func @transform_0(%arg0: i32) -> (i32, i32) {
    %c0_i32 = arith.constant 0 : i32
    %c0_i32_0 = arith.constant 0 : i32
    return %arg0, %c0_i32 : i32, i32
  }
  func.func @transform_1(%arg0: i32) -> (i32, i32) {
    %c0_i32 = arith.constant 0 : i32
    %c0_i32_0 = arith.constant 0 : i32
    %c0_i32_1 = arith.constant 0 : i32
    return %c0_i32, %c0_i32_0 : i32, i32
  }
  func.func @transform_2(%arg0: i32) -> (i32, i32) {
    %c0_i32 = arith.constant 0 : i32
    %c0_i32_0 = arith.constant 0 : i32
    %c0_i32_1 = arith.constant 0 : i32
    return %c0_i32, %c0_i32_0 : i32, i32
  }
  func.func @transform_3(%arg0: i32) -> (i32, i32) {
    %c0_i32 = arith.constant 0 : i32
    %c0_i32_0 = arith.constant 0 : i32
    return %arg0, %c0_i32 : i32, i32
  }
}

</mosaic_0001>

<bundles_post_ra>
// kernel: bi_direct_adapter.1
= control target key start
LH: loop header
LB: loop body
LE: loop exit
PB: predicated region body
PF: predicated region fallthrough
CT: control target
= control target key end

     0   :  { %s7532_s12 = smov 0   ;;  %s7534_s13 = smov 0   ;;  %s11432_s0 = inlined_call_operand.vmem [shape: f32[394,768], index: 0, kind: input, shape index: {}]   ;;  %s11433_s1 = inlined_call_operand.vmem [shape: bf16[768,768], index: 1, kind: input, shape index: {}]   ;;  %s11434_s2 = inlined_call_operand.vmem [shape: f32[1,768], index: 2, kind: input, shape index: {}]   ;;  %s11435_s3 = inlined_call_operand.vmem [shape: f32[394,768], index: 3, kind: output, shape index: {}]  }
   0x1   :  { %s7536_s14 = smov 0  }
   0x2 LB: > { %s7545_s15 = sadd.s32 4294967295, %s7478_s14   ;;  %s7547_s16 = sadd.s32 1, %s7478_s14   ;;  %s7478_s14 = sphi %s7536_s14, %s12112_s14   ;;  %s7474_s13 = sphi %s7534_s13, %s12111_s13   ;;  %s7470_s12 = sphi %s7532_s12, %s12110_s12  }
   0x3   : > { %s85_s17 = ssub.s32 %s7478_s14, %s7547_s16  ;;  %s88_s18 = sadd.s32 1, %s7474_s13 }
   0x4   : > { %p86_p0 = scmp.eq.s32.totalorder %s85_s17, 0  ;;  %p98_p1 = scmp.ne.s32.totalorder %s7474_s13, %s7470_s12 }
   0x5   : > { %p99_p2 = scmp.eq.s32.totalorder %s7545_s15, 1  ;;  %p5867_p3 = scmp.ge.s32.totalorder %s7478_s14, 1 }
   0x6   : > { %s7555_s19 = scalar_select %p86_p0, %s7474_s13, %s88_s18  }
   0x7   : > { %p7557_p4 = por %p99_p2, %p98_p1  ;;  %p149_p5 = scmp.lt.s32.totalorder %s7478_s14, 3 }
   0x9   : > { %p150_p6 = pnand %p5867_p3, %p149_p5 }
   0xb   : > { %153 = sbr.rel (%p150_p6) target bundleno = 2569 (0xa09), region = 32 }
  0x10   : > { %v6040_v0 = vld [vmem:[%s11433_s1 + $0x150] sm:$0xf]  ;;  %v7080_v1 = vld [vmem:[%s11433_s1 + $0x164] sm:$0xf0]  ;;  %v6016_v11 = vld [vmem:[%s11433_s1 + $0x120] sm:$0xf] }
  0x11   : > { %v6232_v2 = vld [vmem:[%s11433_s1 + $0x2d0] sm:$0xf]  ;;  %v6041_v3 = vor.u32 %v7080_v1, %v6040_v0  ;;  %v7128_v4 = vld [vmem:[%s11433_s1 + $0x2e4] sm:$0xf0]  ;;  %v7074_v13 = vld [vmem:[%s11433_s1 + $0x134] sm:$0xf0] }
  0x12   : > { %v6424_v5 = vld [vmem:[%s11433_s1 + $0x450] sm:$0xf]  ;;  %v7176_v6 = vld [vmem:[%s11433_s1 + $0x464] sm:$0xf0]  ;;  %v6233_v7 = vor.u32 %v7128_v4, %v6232_v2  ;;  %v6208_v14 = vld [vmem:[%s11433_s1 + $0x2a0] sm:$0xf]  ;;  %v6017_v16 = vor.u32 %v7074_v13, %v6016_v11 }
  0x13   : > { %v6425_v8 = vor.u32 %v7176_v6, %v6424_v5  ;;  %v6616_v9 = vld [vmem:[%s11433_s1 + $0x5d0] sm:$0xf]  ;;  %v7224_v10 = vld [vmem:[%s11433_s1 + $0x5e4] sm:$0xf0]  ;;  %2231 = vmatpush.bf16.msra.mxu0 %v6041_v3  ;;  %v7122_v15 = vld [vmem:[%s11433_s1 + $0x2b4] sm:$0xf0] }
  0x14   : > { %v6617_v12 = vor.u32 %v7224_v10, %v6616_v9  ;;  %2320 = vmatpush.bf16.msra.mxu1 %v6233_v7  ;;  %v6209_v17 = vor.u32 %v7122_v15, %v6208_v14  ;;  %v6400_v18 = vld [vmem:[%s11433_s1 + $0x420] sm:$0xf]  ;;  %v7170_v19 = vld [vmem:[%s11433_s1 + $0x434] sm:$0xf0]  ;;  %v5992_v23 = vld [vmem:[%s11433_s1 + $0xf0] sm:$0xf] }
  0x15   : > { %2409 = vmatpush.bf16.msra.mxu2 %v6425_v8  ;;  %v6592_v20 = vld [vmem:[%s11433_s1 + $0x5a0] sm:$0xf]  ;;  %v6401_v21 = vor.u32 %v7170_v19, %v6400_v18  ;;  %v7218_v22 = vld [vmem:[%s11433_s1 + $0x5b4] sm:$0xf0]  ;;  %v7068_v24 = vld [vmem:[%s11433_s1 + $0x104] sm:$0xf0] }
  0x16   : > { %2498 = vmatpush.bf16.msra.mxu3 %v6617_v12  ;;  %v6593_v25 = vor.u32 %v7218_v22, %v6592_v20  ;;  %v6184_v26 = vld [vmem:[%s11433_s1 + $0x270] sm:$0xf]  ;;  %v7116_v27 = vld [vmem:[%s11433_s1 + $0x284] sm:$0xf0]  ;;  %v5993_v29 = vor.u32 %v7068_v24, %v5992_v23  ;;  %v5968_v35 = vld [vmem:[%s11433_s1 + $0xc0] sm:$0xf] }
  0x17   : > { %v6376_v28 = vld [vmem:[%s11433_s1 + $0x3f0] sm:$0xf]  ;;  %2232 = vmatpush.bf16.msra.mxu0 %v6017_v16  ;;  %v7164_v30 = vld [vmem:[%s11433_s1 + $0x404] sm:$0xf0]  ;;  %v6185_v33 = vor.u32 %v7116_v27, %v6184_v26  ;;  %v7062_v36 = vld [vmem:[%s11433_s1 + $0xd4] sm:$0xf0] }
  0x18   : > { %v6568_v31 = vld [vmem:[%s11433_s1 + $0x570] sm:$0xf]  ;;  %v7212_v32 = vld [vmem:[%s11433_s1 + $0x584] sm:$0xf0]  ;;  %2321 = vmatpush.bf16.msra.mxu1 %v6209_v17  ;;  %v6377_v34 = vor.u32 %v7164_v30, %v6376_v28  ;;  %v6160_v37 = vld [vmem:[%s11433_s1 + $0x240] sm:$0xf]  ;;  %v5969_v44 = vor.u32 %v7062_v36, %v5968_v35 }
  0x19   : > { %2410 = vmatpush.bf16.msra.mxu2 %v6401_v21  ;;  %v6569_v38 = vor.u32 %v7212_v32, %v6568_v31  ;;  %v7110_v39 = vld [vmem:[%s11433_s1 + $0x254] sm:$0xf0]  ;;  %v6352_v40 = vld [vmem:[%s11433_s1 + $0x3c0] sm:$0xf]  ;;  %v5944_v47 = vld [vmem:[%s11433_s1 + $0x90] sm:$0xf] }
  0x1a   : > { %2499 = vmatpush.bf16.msra.mxu3 %v6593_v25  ;;  %v7158_v41 = vld [vmem:[%s11433_s1 + $0x3d4] sm:$0xf0]  ;;  %v6544_v42 = vld [vmem:[%s11433_s1 + $0x540] sm:$0xf]  ;;  %v6161_v45 = vor.u32 %v7110_v39, %v6160_v37  ;;  %v7056_v48 = vld [vmem:[%s11433_s1 + $0xa4] sm:$0xf0] }
  0x1b   : > { %v7206_v43 = vld [vmem:[%s11433_s1 + $0x554] sm:$0xf0]  ;;  %2233 = vmatpush.bf16.msra.mxu0 %v5993_v29  ;;  %v6353_v46 = vor.u32 %v7158_v41, %v6352_v40  ;;  %v6136_v49 = vld [vmem:[%s11433_s1 + $0x210] sm:$0xf]  ;;  %v7104_v51 = vld [vmem:[%s11433_s1 + $0x224] sm:$0xf0]  ;;  %v5945_v56 = vor.u32 %v7056_v48, %v5944_v47 }
  0x1c   : > { %2322 = vmatpush.bf16.msra.mxu1 %v6185_v33  ;;  %v6545_v50 = vor.u32 %v7206_v43, %v6544_v42  ;;  %v6328_v52 = vld [vmem:[%s11433_s1 + $0x390] sm:$0xf]  ;;  %v7152_v53 = vld [vmem:[%s11433_s1 + $0x3a4] sm:$0xf0]  ;;  %v6137_v57 = vor.u32 %v7104_v51, %v6136_v49  ;;  %v5920_v59 = vld [vmem:[%s11433_s1 + $0x60] sm:$0xf] }
  0x1d   : > { %2411 = vmatpush.bf16.msra.mxu2 %v6377_v34  ;;  %v6520_v54 = vld [vmem:[%s11433_s1 + $0x510] sm:$0xf]  ;;  %v7200_v55 = vld [vmem:[%s11433_s1 + $0x524] sm:$0xf0]  ;;  %v6329_v58 = vor.u32 %v7152_v53, %v6328_v52  ;;  %v7050_v60 = vld [vmem:[%s11433_s1 + $0x74] sm:$0xf0] }
  0x1e   : > { %2500 = vmatpush.bf16.msra.mxu3 %v6569_v38  ;;  %v6112_v61 = vld [vmem:[%s11433_s1 + $0x1e0] sm:$0xf]  ;;  %v6521_v62 = vor.u32 %v7200_v55, %v6520_v54  ;;  %v7098_v63 = vld [vmem:[%s11433_s1 + $0x1f4] sm:$0xf0]  ;;  %v5921_v4 = vor.u32 %v7050_v60, %v5920_v59  ;;  %v5896_v5 = vld [vmem:[%s11433_s1 + $0x30] sm:$0xf] }
  0x1f   : > { %2234 = vmatpush.bf16.msra.mxu0 %v5969_v44  ;;  %v6304_v0 = vld [vmem:[%s11433_s1 + $0x360] sm:$0xf]  ;;  %v7146_v1 = vld [vmem:[%s11433_s1 + $0x374] sm:$0xf0]  ;;  %v6113_v6 = vor.u32 %v7098_v63, %v6112_v61  ;;  %v7044_v8 = vld [vmem:[%s11433_s1 + $0x44] sm:$0xf0] }
  0x20   : > { %2323 = vmatpush.bf16.msra.mxu1 %v6161_v45  ;;  %v6496_v2 = vld [vmem:[%s11433_s1 + $0x4e0] sm:$0xf]  ;;  %v7194_v3 = vld [vmem:[%s11433_s1 + $0x4f4] sm:$0xf0]  ;;  %v6305_v7 = vor.u32 %v7146_v1, %v6304_v0  ;;  %v6088_v9 = vld [vmem:[%s11433_s1 + $0x1b0] sm:$0xf]  ;;  %v5897_v16 = vor.u32 %v7044_v8, %v5896_v5 }
  0x21   : > { %2412 = vmatpush.bf16.msra.mxu2 %v6353_v46  ;;  %v7092_v10 = vld [vmem:[%s11433_s1 + $0x1c4] sm:$0xf0]  ;;  %v6497_v11 = vor.u32 %v7194_v3, %v6496_v2  ;;  %v6280_v12 = vld [vmem:[%s11433_s1 + $0x330] sm:$0xf]  ;;  %s7724_s24 = sshll.u32 %s7545_s15, 5  ;;  %s175_s30 = sand.u32 1, %s7470_s12  }
  0x22   : > { %2501 = vmatpush.bf16.msra.mxu3 %v6545_v50  ;;  %v7140_v13 = vld [vmem:[%s11433_s1 + $0x344] sm:$0xf0]  ;;  %v6472_v14 = vld [vmem:[%s11433_s1 + $0x4b0] sm:$0xf]  ;;  %p184_p7 = scmp.lt.s32.totalorder %s7724_s24, 49  ;;  %v6089_v20 = vor.u32 %v7092_v10, %v6088_v9  ;;  %s7323_s4 = smul.u32 1536, %s175_s30 }
  0x23   : > { %2235 = vmatpush.bf16.msra.mxu0 %v5945_v56  ;;  %v7188_v15 = vld [vmem:[%s11433_s1 + $0x4c4] sm:$0xf0]  ;;  %v5872_v17 = vld [vmem:[%s11433_s1] sm:$0xf]  ;;  %v7038_v18 = vld [vmem:[%s11433_s1 + $0x14] sm:$0xf0]  ;;  %v6281_v21 = vor.u32 %v7140_v13, %v6280_v12 }
  0x24   : > { %2324 = vmatpush.bf16.msra.mxu1 %v6137_v57  ;;  %v6064_v19 = vld [vmem:[%s11433_s1 + $0x180] sm:$0xf]  ;;  %v7086_v22 = vld [vmem:[%s11433_s1 + $0x194] sm:$0xf0]  ;;  %s185_s14 = scalar_select %p184_p7, %s7724_s24, 49  ;;  %v6473_v24 = vor.u32 %v7188_v15, %v6472_v14  ;;  %v5873_v30 = vor.u32 %v7038_v18, %v5872_v17 }
  0x25   : > { %2413 = vmatpush.bf16.msra.mxu2 %v6329_v58  ;;  %v6256_v23 = vld [vmem:[%s11433_s1 + $0x300] sm:$0xf]  ;;  %v7134_v25 = vld [vmem:[%s11433_s1 + $0x314] sm:$0xf0]  ;;  %v7077_v28 = vld [vmem:[%s11433_s1 + $0x154] sm:$0xf]  ;;  %v6065_v34 = vor.u32 %v7086_v22, %v6064_v19 }
  0x26   : > { %2502 = vmatpush.bf16.msra.mxu3 %v6521_v62  ;;  %v6448_v26 = vld [vmem:[%s11433_s1 + $0x480] sm:$0xf]  ;;  %v7182_v27 = vld [vmem:[%s11433_s1 + $0x494] sm:$0xf0]  ;;  %s7324_s26 = smul.u32 48, %s185_s14  ;;  %v6257_v35 = vor.u32 %v7134_v25, %v6256_v23  ;;  %s8610_s6 = scalar_lea.vmem [#allocation2], %s7323_s4  }
  0x27   : > { %2236 = vmatpush.bf16.msra.mxu0 %v5921_v4  ;;  %v6042_v29 = vld [vmem:[%s11433_s1 + $0x168] sm:$0xf0]  ;;  %v6808_v31 = vld [vmem:[%s11433_s1 + $0x750] sm:$0xf]  ;;  %v7125_v32 = vld [vmem:[%s11433_s1 + $0x2d4] sm:$0xf]  ;;  %v6449_v39 = vor.u32 %v7182_v27, %v6448_v26 }
  0x28   : > { %2325 = vmatpush.bf16.msra.mxu1 %v6113_v6  ;;  %v6234_v33 = vld [vmem:[%s11433_s1 + $0x2e8] sm:$0xf0]  ;;  %s7776_s14 = scalar_lea.vmem %s11432_s0, %s7324_s26  ;;  %v7272_v36 = vld [vmem:[%s11433_s1 + $0x764] sm:$0xf0]  ;;  %v7000_v37 = vld [vmem:[%s11433_s1 + $0x8d0] sm:$0xf]  ;;  %v6045_v43 = vor.u32 %v7077_v28, %v6042_v29 }
  0x29   : > { %2414 = vmatpush.bf16.msra.mxu2 %v6305_v7  ;;  %v7320_v38 = vld [vmem:[%s11433_s1 + $0x8e4] sm:$0xf0]  ;;  %v201_v40 = vld [vmem:[%s7776_s14] sm:$0xff]  ;;  %v207_v41 = vld [vmem:[%s7776_s14 + $0x30] sm:$0xff]  ;;  %v6237_v48 = vor.u32 %v7125_v32, %v6234_v33  ;;  %v6809_v54 = vor.u32 %v7272_v36, %v6808_v31  ;;  %s5635_s10 = ssub.s32 (%p7557_p4), 50, %s7724_s24  ;;  %s7325_s11 = smul.u32 (%p7557_p4), 1536, %s7545_s15 }
  0x2a   : > { %2503 = vmatpush.bf16.msra.mxu3 %v6497_v11  ;;  %v202_v42 = vld [vmem:[%s7776_s14 + $0x8] sm:$0xff]  ;;  %v7790_v44 = vpack.c.bf16 %v207_v41, %v201_v40  ;;  %v208_v45 = vld [vmem:[%s7776_s14 + $0x38] sm:$0xff]  ;;  %v203_v46 = vld [vmem:[%s7776_s14 + $0x10] sm:$0xff]  ;;  %v7001_v55 = vor.u32 %v7320_v38, %v7000_v37  ;;  %p5636_p8 = scmp.lt.s32.totalorder (%p7557_p4), %s5635_s10, 32 }
  0x2b   : > { %2237 = vmatpush.bf16.msra.mxu0 %v5897_v16  ;;  %v209_v47 = vld [vmem:[%s7776_s14 + $0x40] sm:$0xff]  ;;  %v7795_v49 = vpack.c.bf16 %v208_v45, %v202_v42  ;;  %v204_v51 = vld [vmem:[%s7776_s14 + $0x18] sm:$0xff]  ;;  %v210_v52 = vld [vmem:[%s7776_s14 + $0x48] sm:$0xff] }
  0x2c   : > { %2326 = vmatpush.bf16.msra.mxu1 %v6089_v20  ;;  %11693 = vst [vmem:[#allocation3_spill] sm:$0xff] %v7790_v44  ;;  %v7797_v50 = vpack.c.bf16 %v209_v47, %v203_v46  ;;  %v7801_v53 = vpack.c.bf16 %v210_v52, %v204_v51  ;;  %v7071_v56 = vld [vmem:[%s11433_s1 + $0x124] sm:$0xf]  ;;  %v6018_v57 = vld [vmem:[%s11433_s1 + $0x138] sm:$0xf0]  ;;  %v219_v5 = vld [vmem:[%s7776_s14 + $0x90] sm:$0xff] }
  0x2d   : > { %2415 = vmatpush.bf16.msra.mxu2 %v6281_v21  ;;  %11694 = vst [vmem:[#allocation4_spill] sm:$0xff] %v7795_v49  ;;  %v6784_v58 = vld [vmem:[%s11433_s1 + $0x720] sm:$0xf]  ;;  %v6021_v59 = vor.u32 %v7071_v56, %v6018_v57  ;;  %v7266_v60 = vld [vmem:[%s11433_s1 + $0x734] sm:$0xf0]  ;;  %v214_v6 = vld [vmem:[%s7776_s14 + $0x68] sm:$0xff] }
  0x2e   : > { %2504 = vmatpush.bf16.msra.mxu3 %v6473_v24  ;;  %11695 = vst [vmem:[#allocation5_spill] sm:$0xff] %v7797_v50  ;;  %v7119_v61 = vld [vmem:[%s11433_s1 + $0x2a4] sm:$0xf]  ;;  %v6210_v62 = vld [vmem:[%s11433_s1 + $0x2b8] sm:$0xf0]  ;;  %v6785_v63 = vor.u32 %v7266_v60, %v6784_v58  ;;  %v215_v8 = vld [vmem:[%s7776_s14 + $0x70] sm:$0xff] }
  0x2f   : > { %2238 = vmatpush.bf16.msra.mxu0 %v5873_v30  ;;  %11696 = vst [vmem:[#allocation6_spill] sm:$0xff] %v7801_v53  ;;  %v6213_v0 = vor.u32 %v7119_v61, %v6210_v62  ;;  %v6976_v1 = vld [vmem:[%s11433_s1 + $0x8a0] sm:$0xf]  ;;  %v7314_v2 = vld [vmem:[%s11433_s1 + $0x8b4] sm:$0xf0]  ;;  %v222_v11 = vld [vmem:[%s7776_s14 + $0xa8] sm:$0xff] }
  0x30   : > { %2327 = vmatpush.bf16.msra.mxu1 %v6065_v34  ;;  %v6977_v3 = vor.u32 %v7314_v2, %v6976_v1  ;;  %v213_v4 = vld [vmem:[%s7776_s14 + $0x60] sm:$0xff]  ;;  %v220_v7 = vld [vmem:[%s7776_s14 + $0x98] sm:$0xff]  ;;  %v231_v17 = vld [vmem:[%s7776_s14 + $0xf0] sm:$0xff] }
  0x31   : > { %2416 = vmatpush.bf16.msra.mxu2 %v6257_v35  ;;  %v221_v9 = vld [vmem:[%s7776_s14 + $0xa0] sm:$0xff]  ;;  %v216_v10 = vld [vmem:[%s7776_s14 + $0x78] sm:$0xff]  ;;  %v7839_v12 = vpack.c.bf16 %v219_v5, %v213_v4  ;;  %v7841_v13 = vpack.c.bf16 %v220_v7, %v214_v6  ;;  %v226_v18 = vld [vmem:[%s7776_s14 + $0xc8] sm:$0xff] }
  0x32   : > { %2505 = vmatpush.bf16.msra.mxu3 %v6449_v39  ;;  %2239 = vmatmul.bf16.vlgmr.msra.gmra.mxu0 %v7790_v44  ;;  %v7843_v14 = vpack.c.bf16 %v221_v9, %v215_v8  ;;  %v7845_v15 = vpack.c.bf16 %v222_v11, %v216_v10  ;;  %v225_v16 = vld [vmem:[%s7776_s14 + $0xc0] sm:$0xff]  ;;  %v232_v19 = vld [vmem:[%s7776_s14 + $0xf8] sm:$0xff]  ;;  %v227_v20 = vld [vmem:[%s7776_s14 + $0xd0] sm:$0xff] }
  0x33   : > { %2328 = vmatmul.bf16.vlgmr.msra.gmra.mxu1 %v7795_v49  ;;  %2587 = vmatpush.bf16.msrb.mxu0 %v6809_v54  ;;  %11697 = vst [vmem:[#allocation7_spill] sm:$0xff] %v7839_v12  ;;  %v233_v21 = vld [vmem:[%s7776_s14 + $0x100] sm:$0xff]  ;;  %v228_v22 = vld [vmem:[%s7776_s14 + $0xd8] sm:$0xff]  ;;  %v234_v23 = vld [vmem:[%s7776_s14 + $0x108] sm:$0xff]  ;;  %v7859_v24 = vpack.c.bf16 %v231_v17, %v225_v16  ;;  %v7861_v25 = vpack.c.bf16 %v232_v19, %v226_v18 }
  0x34   : > { %2417 = vmatmul.bf16.vlgmr.msra.gmra.mxu2 %v7797_v50  ;;  %2676 = vmatpush.bf16.msrb.mxu1 %v7001_v55  ;;  %11698 = vst [vmem:[#allocation8_spill] sm:$0xff] %v7841_v13  ;;  %v7863_v26 = vpack.c.bf16 %v233_v21, %v227_v20  ;;  %v7865_v27 = vpack.c.bf16 %v234_v23, %v228_v22  ;;  %v7065_v28 = vld [vmem:[%s11433_s1 + $0xf4] sm:$0xf]  ;;  %v5994_v29 = vld [vmem:[%s11433_s1 + $0x108] sm:$0xf0]  ;;  %v237_v40 = vld [vmem:[%s7776_s14 + $0x120] sm:$0xff] }
  0x35   : > { %2765 = vmatpush.bf16.msrb.mxu2 %v6045_v43  ;;  %2506 = vmatmul.bf16.vlgmr.msra.gmra.mxu3 %v7801_v53  ;;  %11699 = vst [vmem:[#allocation9_spill] sm:$0xff] %v7843_v14  ;;  %v6760_v30 = vld [vmem:[%s11433_s1 + $0x6f0] sm:$0xf]  ;;  %v5997_v31 = vor.u32 %v7065_v28, %v5994_v29  ;;  %v7260_v32 = vld [vmem:[%s11433_s1 + $0x704] sm:$0xf0]  ;;  %v244_v43 = vld [vmem:[%s7776_s14 + $0x158] sm:$0xff] }
  0x36   : > { %2854 = vmatpush.bf16.msrb.mxu3 %v6237_v48  ;;  %11700 = vst [vmem:[#allocation10_spill] sm:$0xff] %v7845_v15  ;;  %v7113_v33 = vld [vmem:[%s11433_s1 + $0x274] sm:$0xf]  ;;  %v6186_v34 = vld [vmem:[%s11433_s1 + $0x288] sm:$0xf0]  ;;  %v6761_v35 = vor.u32 %v7260_v32, %v6760_v30  ;;  %v245_v46 = vld [vmem:[%s7776_s14 + $0x160] sm:$0xff] }
  0x37   : > { %2588 = vmatpush.bf16.msrb.mxu0 %v6785_v63  ;;  %11701 = vst [vmem:[#allocation11_spill] sm:$0xff] %v7859_v24  ;;  %v6189_v36 = vor.u32 %v7113_v33, %v6186_v34  ;;  %v6952_v37 = vld [vmem:[%s11433_s1 + $0x870] sm:$0xf]  ;;  %v7308_v38 = vld [vmem:[%s11433_s1 + $0x884] sm:$0xf0]  ;;  %v240_v47 = vld [vmem:[%s7776_s14 + $0x138] sm:$0xff] }
  0x38   : > { %2677 = vmatpush.bf16.msrb.mxu1 %v6977_v3  ;;  %11702 = vst [vmem:[#allocation12_spill] sm:$0xff] %v7861_v25  ;;  %v6953_v39 = vor.u32 %v7308_v38, %v6952_v37  ;;  %v243_v41 = vld [vmem:[%s7776_s14 + $0x150] sm:$0xff]  ;;  %v238_v42 = vld [vmem:[%s7776_s14 + $0x128] sm:$0xff]  ;;  %v249_v56 = vld [vmem:[%s7776_s14 + $0x180] sm:$0xff] }
  0x39   : > { %2766 = vmatpush.bf16.msrb.mxu2 %v6021_v59  ;;  %11703 = vst [vmem:[#allocation13_spill] sm:$0xff] %v7863_v26  ;;  %v239_v45 = vld [vmem:[%s7776_s14 + $0x130] sm:$0xff]  ;;  %v246_v48 = vld [vmem:[%s7776_s14 + $0x168] sm:$0xff]  ;;  %v7903_v51 = vpack.c.bf16 %v243_v41, %v237_v40  ;;  %v7905_v52 = vpack.c.bf16 %v244_v43, %v238_v42  ;;  %v256_v59 = vld [vmem:[%s7776_s14 + $0x1b8] sm:$0xff] }
  0x3a   : > { %2855 = vmatpush.bf16.msrb.mxu3 %v6213_v0  ;;  %11704 = vst [vmem:[#allocation14_spill] sm:$0xff] %v7865_v27  ;;  %v7907_v54 = vpack.c.bf16 %v245_v46, %v239_v45  ;;  %v7909_v55 = vpack.c.bf16 %v246_v48, %v240_v47  ;;  %v255_v57 = vld [vmem:[%s7776_s14 + $0x1b0] sm:$0xff]  ;;  %v250_v58 = vld [vmem:[%s7776_s14 + $0x188] sm:$0xff]  ;;  %v257_v61 = vld [vmem:[%s7776_s14 + $0x1c0] sm:$0xff] }
  0x3b   : > { %2589 = vmatpush.bf16.msrb.mxu0 %v6761_v35  ;;  %11705 = vst [vmem:[#allocation15_spill] sm:$0xff] %v7903_v51  ;;  %v251_v60 = vld [vmem:[%s7776_s14 + $0x190] sm:$0xff]  ;;  %v252_v62 = vld [vmem:[%s7776_s14 + $0x198] sm:$0xff]  ;;  %v258_v63 = vld [vmem:[%s7776_s14 + $0x1c8] sm:$0xff]  ;;  %v7923_v0 = vpack.c.bf16 %v255_v57, %v249_v56  ;;  %v7925_v1 = vpack.c.bf16 %v256_v59, %v250_v58 }
  0x3c   : > { %2678 = vmatpush.bf16.msrb.mxu1 %v6953_v39  ;;  %11706 = vst [vmem:[#allocation16_spill] sm:$0xff] %v7905_v52  ;;  %v7927_v2 = vpack.c.bf16 %v257_v61, %v251_v60  ;;  %v7929_v3 = vpack.c.bf16 %v258_v63, %v252_v62  ;;  %v7059_v4 = vld [vmem:[%s11433_s1 + $0xc4] sm:$0xf]  ;;  %v5970_v5 = vld [vmem:[%s11433_s1 + $0xd8] sm:$0xf0]  ;;  %v267_v21 = vld [vmem:[%s7776_s14 + $0x210] sm:$0xff] }
  0x3d   : > { %2767 = vmatpush.bf16.msrb.mxu2 %v5997_v31  ;;  %11707 = vst [vmem:[#allocation17_spill] sm:$0xff] %v7907_v54  ;;  %v6736_v6 = vld [vmem:[%s11433_s1 + $0x6c0] sm:$0xf]  ;;  %v5973_v7 = vor.u32 %v7059_v4, %v5970_v5  ;;  %v7254_v8 = vld [vmem:[%s11433_s1 + $0x6d4] sm:$0xf0]  ;;  %v262_v22 = vld [vmem:[%s7776_s14 + $0x1e8] sm:$0xff] }
  0x3e   : > { %2856 = vmatpush.bf16.msrb.mxu3 %v6189_v36  ;;  %11708 = vst [vmem:[#allocation18_spill] sm:$0xff] %v7909_v55  ;;  %v7107_v9 = vld [vmem:[%s11433_s1 + $0x244] sm:$0xf]  ;;  %v6162_v10 = vld [vmem:[%s11433_s1 + $0x258] sm:$0xf0]  ;;  %v6737_v11 = vor.u32 %v7254_v8, %v6736_v6  ;;  %v263_v28 = vld [vmem:[%s7776_s14 + $0x1f0] sm:$0xff] }
  0x3f   : > { %11709 = vst [vmem:[#allocation19_spill] sm:$0xff] %v7923_v0  ;;  %v6165_v16 = vor.u32 %v7107_v9, %v6162_v10  ;;  %v6928_v17 = vld [vmem:[%s11433_s1 + $0x840] sm:$0xf]  ;;  %v7302_v18 = vld [vmem:[%s11433_s1 + $0x854] sm:$0xf0]  ;;  %v270_v31 = vld [vmem:[%s7776_s14 + $0x228] sm:$0xff] }
  0x40   : > { %11710 = vst [vmem:[#allocation20_spill] sm:$0xff] %v7925_v1  ;;  %v6929_v19 = vor.u32 %v7302_v18, %v6928_v17  ;;  %2590 = vmatpush.bf16.msrb.mxu0 %v6737_v11  ;;  %v261_v20 = vld [vmem:[%s7776_s14 + $0x1e0] sm:$0xff]  ;;  %v268_v23 = vld [vmem:[%s7776_s14 + $0x218] sm:$0xff]  ;;  %v279_v37 = vld [vmem:[%s7776_s14 + $0x270] sm:$0xff] }
  0x41   : > { %11711 = vst [vmem:[#allocation21_spill] sm:$0xff] %v7927_v2  ;;  %2768 = vmatpush.bf16.msrb.mxu2 %v5973_v7  ;;  %v269_v29 = vld [vmem:[%s7776_s14 + $0x220] sm:$0xff]  ;;  %v264_v30 = vld [vmem:[%s7776_s14 + $0x1f8] sm:$0xff]  ;;  %v7967_v32 = vpack.c.bf16 %v267_v21, %v261_v20  ;;  %v7969_v33 = vpack.c.bf16 %v268_v23, %v262_v22  ;;  %v274_v38 = vld [vmem:[%s7776_s14 + $0x248] sm:$0xff] }
  0x42   : > { %2244 = vmatmul.bf16.gmra.mxu0 %v7839_v12  ;;  %11712 = vst [vmem:[#allocation22_spill] sm:$0xff] %v7929_v3  ;;  %2857 = vmatpush.bf16.msrb.mxu3 %v6165_v16  ;;  %v7971_v34 = vpack.c.bf16 %v269_v29, %v263_v28  ;;  %v7973_v35 = vpack.c.bf16 %v270_v31, %v264_v30  ;;  %v273_v36 = vld [vmem:[%s7776_s14 + $0x240] sm:$0xff]  ;;  %v280_v39 = vld [vmem:[%s7776_s14 + $0x278] sm:$0xff]  ;;  %v275_v40 = vld [vmem:[%s7776_s14 + $0x250] sm:$0xff] }
  0x43   : > { %2333 = vmatmul.bf16.gmra.mxu1 %v7841_v13  ;;  %11713 = vst [vmem:[#allocation23_spill] sm:$0xff] %v7967_v32  ;;  %v281_v41 = vld [vmem:[%s7776_s14 + $0x280] sm:$0xff]  ;;  %v276_v42 = vld [vmem:[%s7776_s14 + $0x258] sm:$0xff]  ;;  %v282_v43 = vld [vmem:[%s7776_s14 + $0x288] sm:$0xff]  ;;  %v7987_v45 = vpack.c.bf16 %v279_v37, %v273_v36  ;;  %v7989_v46 = vpack.c.bf16 %v280_v39, %v274_v38 }
  0x44   : > { %2422 = vmatmul.bf16.gmra.mxu2 %v7843_v14  ;;  %2679 = vmatpush.bf16.msrb.mxu1 %v6929_v19  ;;  %11714 = vst [vmem:[#allocation24_spill] sm:$0xff] %v7969_v33  ;;  %v7991_v47 = vpack.c.bf16 %v281_v41, %v275_v40  ;;  %v7993_v48 = vpack.c.bf16 %v282_v43, %v276_v42  ;;  %v7053_v56 = vld [vmem:[%s11433_s1 + $0x94] sm:$0xf]  ;;  %v5946_v57 = vld [vmem:[%s11433_s1 + $0xa8] sm:$0xf0]  ;;  %v285_v8 = vld [vmem:[%s7776_s14 + $0x2a0] sm:$0xff] }
  0x45   : > { %2511 = vmatmul.bf16.gmra.mxu3 %v7845_v15  ;;  %11715 = vst [vmem:[#allocation25_spill] sm:$0xff] %v7971_v34  ;;  %v6712_v58 = vld [vmem:[%s11433_s1 + $0x690] sm:$0xf]  ;;  %v5949_v59 = vor.u32 %v7053_v56, %v5946_v57  ;;  %v7248_v60 = vld [vmem:[%s11433_s1 + $0x6a4] sm:$0xf0]  ;;  %v292_v11 = vld [vmem:[%s7776_s14 + $0x2d8] sm:$0xff] }
  0x46   : > { %11716 = vst [vmem:[#allocation26_spill] sm:$0xff] %v7973_v35  ;;  %v7101_v61 = vld [vmem:[%s11433_s1 + $0x214] sm:$0xf]  ;;  %v6138_v62 = vld [vmem:[%s11433_s1 + $0x228] sm:$0xf0]  ;;  %v6713_v63 = vor.u32 %v7248_v60, %v6712_v58  ;;  %v293_v17 = vld [vmem:[%s7776_s14 + $0x2e0] sm:$0xff] }
  0x47   : > { %11717 = vst [vmem:[#allocation27_spill] sm:$0xff] %v7987_v45  ;;  %v6141_v4 = vor.u32 %v7101_v61, %v6138_v62  ;;  %2769 = vmatpush.bf16.msrb.mxu2 %v5949_v59  ;;  %v6904_v5 = vld [vmem:[%s11433_s1 + $0x810] sm:$0xf]  ;;  %v7296_v6 = vld [vmem:[%s11433_s1 + $0x824] sm:$0xf0]  ;;  %v288_v18 = vld [vmem:[%s7776_s14 + $0x2b8] sm:$0xff] }
  0x48   : > { %11718 = vst [vmem:[#allocation28_spill] sm:$0xff] %v7989_v46  ;;  %2591 = vmatpush.bf16.msrb.mxu0 %v6713_v63  ;;  %v6905_v7 = vor.u32 %v7296_v6, %v6904_v5  ;;  %v291_v9 = vld [vmem:[%s7776_s14 + $0x2d0] sm:$0xff]  ;;  %v286_v10 = vld [vmem:[%s7776_s14 + $0x2a8] sm:$0xff]  ;;  %v777_v28 = vld [vmem:[%s11434_s2] sm:$0x3f] }
  0x49   : > { %11719 = vst [vmem:[#allocation29_spill] sm:$0xff] %v7991_v47  ;;  %2858 = vmatpush.bf16.msrb.mxu3 %v6141_v4  ;;  %v287_v16 = vld [vmem:[%s7776_s14 + $0x2b0] sm:$0xff]  ;;  %v294_v19 = vld [vmem:[%s7776_s14 + $0x2e8] sm:$0xff]  ;;  %v8031_v20 = vpack.c.bf16 %v291_v9, %v285_v8  ;;  %v8033_v21 = vpack.c.bf16 %v292_v11, %v286_v10  ;;  %v297_v29 = vld [vmem:[%s7776_s14 + $0x300] sm:$0xff]  ;;  %v8049_v36 = vperm.slane %v777_v28, 0 }
  0x4a   : > { %11720 = vst [vmem:[#allocation30_spill] sm:$0xff] %v7993_v48  ;;  %2680 = vmatpush.bf16.msrb.mxu1 %v6905_v7  ;;  %v8035_v22 = vpack.c.bf16 %v293_v17, %v287_v16  ;;  %v8037_v23 = vpack.c.bf16 %v294_v19, %v288_v18  ;;  %v303_v30 = vld [vmem:[%s7776_s14 + $0x330] sm:$0xff]  ;;  %v298_v31 = vld [vmem:[%s7776_s14 + $0x308] sm:$0xff]  ;;  %v304_v37 = vld [vmem:[%s7776_s14 + $0x338] sm:$0xff] }
  0x4b   : > { %11721 = vst [vmem:[#allocation31_spill] sm:$0xff] %v8031_v20  ;;  %v299_v38 = vld [vmem:[%s7776_s14 + $0x310] sm:$0xff]  ;;  %v305_v39 = vld [vmem:[%s7776_s14 + $0x340] sm:$0xff]  ;;  %v300_v40 = vld [vmem:[%s7776_s14 + $0x318] sm:$0xff]  ;;  %v8056_v42 = vpack.c.bf16 %v303_v30, %v297_v29  ;;  %v8058_v56 = vpack.c.bf16 %v304_v37, %v298_v31 }
  0x4c   : > { %11722 = vst [vmem:[#allocation32_spill] sm:$0xff] %v8033_v21  ;;  %v306_v41 = vld [vmem:[%s7776_s14 + $0x348] sm:$0xff]  ;;  %v8060_v57 = vpack.c.bf16 %v305_v39, %v299_v38  ;;  %v7047_v62 = vld [vmem:[%s11433_s1 + $0x64] sm:$0xf]  ;;  %v5922_v63 = vld [vmem:[%s11433_s1 + $0x78] sm:$0xf0] }
  0x4d   : > { %11723 = vst [vmem:[#allocation33_spill] sm:$0xff] %v8035_v22  ;;  %v8063_v60 = vpack.c.bf16 %v306_v41, %v300_v40  ;;  %v6688_v4 = vld [vmem:[%s11433_s1 + $0x660] sm:$0xf]  ;;  %v5925_v5 = vor.u32 %v7047_v62, %v5922_v63  ;;  %v7242_v6 = vld [vmem:[%s11433_s1 + $0x674] sm:$0xf0]  ;;  %v315_v40 = vld [vmem:[%s7776_s14 + $0x390] sm:$0xff] }
  0x4e   : > { %11724 = vst [vmem:[#allocation34_spill] sm:$0xff] %v8037_v23  ;;  %v7095_v7 = vld [vmem:[%s11433_s1 + $0x1e4] sm:$0xf]  ;;  %v6114_v8 = vld [vmem:[%s11433_s1 + $0x1f8] sm:$0xf0]  ;;  %v6689_v10 = vor.u32 %v7242_v6, %v6688_v4  ;;  %v310_v41 = vld [vmem:[%s7776_s14 + $0x368] sm:$0xff] }
  0x4f   : > { %11725 = vst [vmem:[#allocation35_spill] sm:$0xff] %v8056_v42  ;;  %v6117_v11 = vor.u32 %v7095_v7, %v6114_v8  ;;  %2770 = vmatpush.bf16.msrb.mxu2 %v5925_v5  ;;  %v6880_v30 = vld [vmem:[%s11433_s1 + $0x7e0] sm:$0xf]  ;;  %v7290_v31 = vld [vmem:[%s11433_s1 + $0x7f4] sm:$0xf0]  ;;  %v318_v62 = vld [vmem:[%s7776_s14 + $0x3a8] sm:$0xff] }
  0x50   : > { %11726 = vst [vmem:[#allocation36_spill] sm:$0xff] %v8058_v56  ;;  %2592 = vmatpush.bf16.msrb.mxu0 %v6689_v10  ;;  %v6881_v38 = vor.u32 %v7290_v31, %v6880_v30  ;;  %v309_v39 = vld [vmem:[%s7776_s14 + $0x360] sm:$0xff] }
  0x51   : > { %11727 = vst [vmem:[#allocation37_spill] sm:$0xff] %v8060_v57  ;;  %2859 = vmatpush.bf16.msrb.mxu3 %v6117_v11  ;;  %v8104_v4 = vpack.c.bf16 %v315_v40, %v309_v39 }
  0x52   : > { %2249 = vmatmul.bf16.gmra.mxu0 %v7859_v24  ;;  %11728 = vst [vmem:[#allocation38_spill] sm:$0xff] %v8063_v60  ;;  %2681 = vmatpush.bf16.msrb.mxu1 %v6881_v38 }
  0x53   : > { %2338 = vmatmul.bf16.gmra.mxu1 %v7861_v25  ;;  %11729 = vst [vmem:[#allocation39_spill] sm:$0xff] %v8104_v4 }
  0x54   : > { %2427 = vmatmul.bf16.gmra.mxu2 %v7863_v26 }
  0x55   : > { %2516 = vmatmul.bf16.gmra.mxu3 %v7865_v27 }
  0x62   : > { %2254 = vmatmul.bf16.gmra.mxu0 %v7903_v51 }
  0x63   : > { %2343 = vmatmul.bf16.gmra.mxu1 %v7905_v52 }
  0x64   : > { %2432 = vmatmul.bf16.gmra.mxu2 %v7907_v54 }
  0x65   : > { %2521 = vmatmul.bf16.gmra.mxu3 %v7909_v55 }
  0x72   : > { %2259 = vmatmul.bf16.gmra.mxu0 %v7923_v0 }
  0x73   : > { %2348 = vmatmul.bf16.gmra.mxu1 %v7925_v1 }
  0x74   : > { %2437 = vmatmul.bf16.gmra.mxu2 %v7927_v2 }
  0x75   : > { %2526 = vmatmul.bf16.gmra.mxu3 %v7929_v3 }
  0x82   : > { %2264 = vmatmul.bf16.gmra.mxu0 %v7967_v32 }
  0x83   : > { %2353 = vmatmul.bf16.gmra.mxu1 %v7969_v33 }
  0x84   : > { %2442 = vmatmul.bf16.gmra.mxu2 %v7971_v34 }
  0x85   : > { %2531 = vmatmul.bf16.gmra.mxu3 %v7973_v35 }
  0x92   : > { %2269 = vmatmul.bf16.gmra.mxu0 %v7987_v45 }
  0x93   : > { %2358 = vmatmul.bf16.gmra.mxu1 %v7989_v46 }
  0x94   : > { %2447 = vmatmul.bf16.gmra.mxu2 %v7991_v47 }
  0x95   : > { %2536 = vmatmul.bf16.gmra.mxu3 %v7993_v48 }
  0xa2   : > { %2274 = vmatmul.bf16.gmra.mxu0 %v8031_v20 }
  0xa3   : > { %2363 = vmatmul.bf16.gmra.mxu1 %v8033_v21 }
  0xa4   : > { %2452 = vmatmul.bf16.gmra.mxu2 %v8035_v22 }
  0xa5   : > { %2541 = vmatmul.bf16.gmra.mxu3 %v8037_v23 }
  0xaf   : > { %v2240_v43 = vpop.f32.mrf.mxu0 }
  0xb0   : > { %v2241_v58 = vadd.f32 %v2240_v43, %v8049_v36  ;;  %v2329_v59 = vpop.f32.mrf.mxu1  ;;  %v316_v43 = vld [vmem:[%s7776_s14 + $0x398] sm:$0xff] }
  0xb1   : > { %v8106_v8 = vpack.c.bf16 %v316_v43, %v310_v41  ;;  %v321_v41 = vld [vmem:[%s7776_s14 + $0x3c0] sm:$0xff]  ;;  %v327_v43 = vld [vmem:[%s7776_s14 + $0x3f0] sm:$0xff] }
  0xb2   : > { %v2330_v61 = vadd.f32 %v2329_v59, %v2241_v58  ;;  %2279 = vmatmul.bf16.gmra.mxu0 %v8056_v42  ;;  %v311_v58 = vld [vmem:[%s7776_s14 + $0x370] sm:$0xff]  ;;  %v317_v59 = vld [vmem:[%s7776_s14 + $0x3a0] sm:$0xff] }
  0xb3   : > { %2368 = vmatmul.bf16.gmra.mxu1 %v8058_v56  ;;  %11730 = vst [vmem:[#allocation40_spill] sm:$0xff] %v8106_v8 }
  0xb4   : > { %2457 = vmatmul.bf16.gmra.mxu2 %v8060_v57 }
  0xb5   : > { %2546 = vmatmul.bf16.gmra.mxu3 %v8063_v60 }
  0xb7   : > { %v2418_v9 = vpop.f32.mrf.mxu2  ;;  %v2242_v18 = vpop.f32.mrf.mxu0 }
  0xb8   : > { %v2419_v16 = vadd.f32 %v2418_v9, %v2330_v61  ;;  %v2507_v17 = vpop.f32.mrf.mxu3  ;;  %v2243_v19 = vadd.f32 %v2242_v18, %v8049_v36  ;;  %v2331_v28 = vpop.f32.mrf.mxu1  ;;  %v312_v61 = vld [vmem:[%s7776_s14 + $0x378] sm:$0xff]  ;;  %v8108_v9 = vpack.c.bf16 %v317_v59, %v311_v58  ;;  %v322_v58 = vld [vmem:[%s7776_s14 + $0x3c8] sm:$0xff] }
  0xb9   : > { %v328_v59 = vld [vmem:[%s7776_s14 + $0x3f8] sm:$0xff] }
  0xba   : > { %v8088_v29 = vadd.f32 %v2507_v17, %v2419_v16  ;;  %v2332_v37 = vadd.f32 %v2331_v28, %v2243_v19  ;;  %11731 = vst [vmem:[#allocation41_spill] sm:$0xff] %v8108_v9  ;;  %v8111_v16 = vpack.c.bf16 %v318_v62, %v312_v61  ;;  %v323_v61 = vld [vmem:[%s7776_s14 + $0x3d0] sm:$0xff]  ;;  %v329_v62 = vld [vmem:[%s7776_s14 + $0x400] sm:$0xff] }
  0xbc   : > { %11732 = vst [vmem:[#allocation42_spill] sm:$0xff] %v8111_v16 }
  0xbf   : > { %v2420_v63 = vpop.f32.mrf.mxu2  ;;  %v2245_v7 = vpop.f32.mrf.mxu0 }
  0xc0   : > { %v2421_v5 = vadd.f32 %v2420_v63, %v2332_v37  ;;  %v2509_v6 = vpop.f32.mrf.mxu3  ;;  %v2246_v10 = vadd.f32 %v2245_v7, %v8049_v36  ;;  %v2334_v11 = vpop.f32.mrf.mxu1  ;;  %v324_v63 = vld [vmem:[%s7776_s14 + $0x3d8] sm:$0xff]  ;;  %v8130_v7 = vpack.c.bf16 %v327_v43, %v321_v41  ;;  %v5898_v41 = vld [vmem:[%s11433_s1 + $0x48] sm:$0xf0]  ;;  %v6664_v43 = vld [vmem:[%s11433_s1 + $0x630] sm:$0xf] }
  0xc2   : > { %v8113_v17 = vadd.f32 %v2509_v6, %v2421_v5  ;;  %v2335_v18 = vadd.f32 %v2334_v11, %v2246_v10  ;;  %2284 = vmatmul.bf16.gmra.mxu0 %v8104_v4  ;;  %v330_v5 = vld [vmem:[%s7776_s14 + $0x408] sm:$0xff]  ;;  %11733 = vst [vmem:[#allocation43_spill] sm:$0xff] %v8130_v7 }
  0xc3   : > { %2373 = vmatmul.bf16.gmra.mxu1 %v8106_v8 }
  0xc4   : > { %2462 = vmatmul.bf16.gmra.mxu2 %v8108_v9 }
  0xc5   : > { %2551 = vmatmul.bf16.gmra.mxu3 %v8111_v16 }
  0xc7   : > { %v2423_v19 = vpop.f32.mrf.mxu2  ;;  %v2247_v31 = vpop.f32.mrf.mxu0 }
  0xc8   : > { %v2424_v28 = vadd.f32 %v2423_v19, %v2335_v18  ;;  %v2512_v30 = vpop.f32.mrf.mxu3  ;;  %v2248_v37 = vadd.f32 %v2247_v31, %v8049_v36  ;;  %v2336_v38 = vpop.f32.mrf.mxu1  ;;  %v8132_v19 = vpack.c.bf16 %v328_v59, %v322_v58  ;;  %v8134_v31 = vpack.c.bf16 %v329_v62, %v323_v61  ;;  %v7236_v59 = vld [vmem:[%s11433_s1 + $0x644] sm:$0xf0]  ;;  %v7089_v61 = vld [vmem:[%s11433_s1 + $0x1b4] sm:$0xf]  ;;  %v6090_v62 = vld [vmem:[%s11433_s1 + $0x1c8] sm:$0xf0] }
  0xca   : > { %v8120_v39 = vadd.f32 %v2512_v30, %v2424_v28  ;;  %v2337_v40 = vadd.f32 %v2336_v38, %v2248_v37  ;;  %11734 = vst [vmem:[#allocation44_spill] sm:$0xff] %v8132_v19  ;;  %v8137_v37 = vpack.c.bf16 %v330_v5, %v324_v63  ;;  %v6665_v5 = vor.u32 %v7236_v59, %v6664_v43 }
  0xcb   : > { %11735 = vst [vmem:[#allocation45_spill] sm:$0xff] %v8134_v31 }
  0xcc   : > { %11736 = vst [vmem:[#allocation46_spill] sm:$0xff] %v8137_v37  ;;  %2593 = vmatpush.bf16.msrb.mxu0 %v6665_v5  ;;  %v336_v5 = vld [vmem:[%s7776_s14 + $0x438] sm:$0xff] }
  0xcf   : > { %v2425_v6 = vpop.f32.mrf.mxu2  ;;  %v2250_v18 = vpop.f32.mrf.mxu0 }
  0xd0   : > { %v2426_v10 = vadd.f32 %v2425_v6, %v2337_v40  ;;  %v2514_v11 = vpop.f32.mrf.mxu3  ;;  %v2251_v28 = vadd.f32 %v2250_v18, %v8049_v36  ;;  %v2339_v30 = vpop.f32.mrf.mxu1  ;;  %v7041_v40 = vld [vmem:[%s11433_s1 + $0x34] sm:$0xf]  ;;  %v6093_v6 = vor.u32 %v7089_v61, %v6090_v62  ;;  %v334_v62 = vld [vmem:[%s7776_s14 + $0x428] sm:$0xff] }
  0xd1   : > { %v5901_v58 = vor.u32 %v7041_v40, %v5898_v41  ;;  %v6856_v41 = vld [vmem:[%s11433_s1 + $0x7b0] sm:$0xf] }
  0xd2   : > { %v8139_v38 = vadd.f32 %v2514_v11, %v2426_v10  ;;  %v2340_v16 = vadd.f32 %v2339_v30, %v2251_v28  ;;  %2289 = vmatmul.bf16.gmra.mxu0 %v8130_v7  ;;  %2860 = vmatpush.bf16.msrb.mxu3 %v6093_v6  ;;  %v339_v61 = vld [vmem:[%s7776_s14 + $0x450] sm:$0xff]  ;;  %v342_v6 = vld [vmem:[%s7776_s14 + $0x468] sm:$0xff] }
  0xd3   : > { %2378 = vmatmul.bf16.gmra.mxu1 %v8132_v19  ;;  %2771 = vmatpush.bf16.msrb.mxu2 %v5901_v58  ;;  %v333_v58 = vld [vmem:[%s7776_s14 + $0x420] sm:$0xff] }
  0xd4   : > { %2467 = vmatmul.bf16.gmra.mxu2 %v8134_v31 }
  0xd5   : > { %2556 = vmatmul.bf16.gmra.mxu3 %v8137_v37  ;;  %v341_v37 = vld [vmem:[%s7776_s14 + $0x460] sm:$0xff] }
  0xd7   : > { %v2428_v63 = vpop.f32.mrf.mxu2  ;;  %v2252_v18 = vpop.f32.mrf.mxu0 }
  0xd8   : > { %v2429_v10 = vadd.f32 %v2428_v63, %v2340_v16  ;;  %v2517_v11 = vpop.f32.mrf.mxu3  ;;  %v2253_v28 = vadd.f32 %v2252_v18, %v8049_v36  ;;  %v2341_v30 = vpop.f32.mrf.mxu1  ;;  %v7284_v16 = vld [vmem:[%s11433_s1 + $0x7c4] sm:$0xf0]  ;;  %v340_v63 = vld [vmem:[%s7776_s14 + $0x458] sm:$0xff]  ;;  %v335_v18 = vld [vmem:[%s7776_s14 + $0x430] sm:$0xff] }
  0xd9   : > { %v6857_v59 = vor.u32 %v7284_v16, %v6856_v41  ;;  %v8182_v57 = vpack.c.bf16 %v340_v63, %v334_v62  ;;  %v8184_v23 = vpack.c.bf16 %v341_v37, %v335_v18  ;;  %v8187_v41 = vpack.c.bf16 %v342_v6, %v336_v5  ;;  %v345_v63 = vld [vmem:[%s7776_s14 + $0x480] sm:$0xff]  ;;  %v351_v18 = vld [vmem:[%s7776_s14 + $0x4b0] sm:$0xff]  ;;  %v346_v5 = vld [vmem:[%s7776_s14 + $0x488] sm:$0xff] }
  0xda   : > { %v8164_v40 = vadd.f32 %v2517_v11, %v2429_v10  ;;  %v2342_v43 = vadd.f32 %v2341_v30, %v2253_v28  ;;  %v8180_v11 = vpack.c.bf16 %v339_v61, %v333_v58  ;;  %v352_v6 = vld [vmem:[%s7776_s14 + $0x4b8] sm:$0xff]  ;;  %v8206_v22 = vpack.c.bf16 %v351_v18, %v345_v63  ;;  %v7083_v18 = vld [vmem:[%s11433_s1 + $0x184] sm:$0xf] }
  0xdb   : > { %2682 = vmatpush.bf16.msrb.mxu1 %v6857_v59  ;;  %11738 = vst [vmem:[#allocation48_spill] sm:$0xff] %v8182_v57  ;;  %v8208_v47 = vpack.c.bf16 %v352_v6, %v346_v5  ;;  %v7230_v63 = vld [vmem:[%s11433_s1 + $0x614] sm:$0xf0]  ;;  %v6066_v5 = vld [vmem:[%s11433_s1 + $0x198] sm:$0xf0] }
  0xdc   : > { %11737 = vst [vmem:[#allocation47_spill] sm:$0xff] %v8180_v11 }
  0xdd   : > { %11739 = vst [vmem:[#allocation49_spill] sm:$0xff] %v8184_v23 }
  0xde   : > { %11740 = vst [vmem:[#allocation50_spill] sm:$0xff] %v8187_v41 }
  0xdf   : > { %v2430_v10 = vpop.f32.mrf.mxu2  ;;  %v2255_v60 = vpop.f32.mrf.mxu0  ;;  %11741 = vst [vmem:[#allocation51_spill] sm:$0xff] %v8206_v22 }
  0xe0   : > { %v2431_v31 = vadd.f32 %v2430_v10, %v2342_v43  ;;  %v2519_v9 = vpop.f32.mrf.mxu3  ;;  %v2256_v28 = vadd.f32 %v2255_v60, %v8049_v36  ;;  %v2344_v30 = vpop.f32.mrf.mxu1  ;;  %v347_v10 = vld [vmem:[%s7776_s14 + $0x490] sm:$0xff]  ;;  %11742 = vst [vmem:[#allocation52_spill] sm:$0xff] %v8208_v47 }
  0xe2   : > { %v8189_v16 = vadd.f32 %v2519_v9, %v2431_v31  ;;  %v2345_v59 = vadd.f32 %v2344_v30, %v2256_v28  ;;  %2294 = vmatmul.bf16.gmra.mxu0 %v8180_v11  ;;  %v353_v28 = vld [vmem:[%s7776_s14 + $0x4c0] sm:$0xff]  ;;  %v348_v30 = vld [vmem:[%s7776_s14 + $0x498] sm:$0xff] }
  0xe3   : > { %2383 = vmatmul.bf16.gmra.mxu1 %v8182_v57 }
  0xe4   : > { %2472 = vmatmul.bf16.gmra.mxu2 %v8184_v23  ;;  %v354_v23 = vld [vmem:[%s7776_s14 + $0x4c8] sm:$0xff] }
  0xe5   : > { %2561 = vmatmul.bf16.gmra.mxu3 %v8187_v41 }
  0xe7   : > { %v2433_v60 = vpop.f32.mrf.mxu2  ;;  %v2257_v9 = vpop.f32.mrf.mxu0 }
  0xe8   : > { %v2434_v37 = vadd.f32 %v2433_v60, %v2345_v59  ;;  %v2522_v43 = vpop.f32.mrf.mxu3  ;;  %v2258_v31 = vadd.f32 %v2257_v9, %v8049_v36  ;;  %v2346_v58 = vpop.f32.mrf.mxu1  ;;  %v8210_v9 = vpack.c.bf16 %v353_v28, %v347_v10  ;;  %v6069_v28 = vor.u32 %v7083_v18, %v6066_v5  ;;  %v363_v18 = vld [vmem:[%s7776_s14 + $0x510] sm:$0xff]  ;;  %v358_v5 = vld [vmem:[%s7776_s14 + $0x4e8] sm:$0xff] }
  0xea   : > { %v8196_v61 = vadd.f32 %v2522_v43, %v2434_v37  ;;  %v2347_v62 = vadd.f32 %v2346_v58, %v2258_v31  ;;  %11743 = vst [vmem:[#allocation53_spill] sm:$0xff] %v8210_v9  ;;  %v8213_v31 = vpack.c.bf16 %v354_v23, %v348_v30  ;;  %v6640_v23 = vld [vmem:[%s11433_s1 + $0x600] sm:$0xf]  ;;  %2861 = vmatpush.bf16.msrb.mxu3 %v6069_v28  ;;  %v366_v28 = vld [vmem:[%s7776_s14 + $0x528] sm:$0xff] }
  0xeb   : > { %v6641_v10 = vor.u32 %v7230_v63, %v6640_v23 }
  0xec   : > { %11744 = vst [vmem:[#allocation54_spill] sm:$0xff] %v8213_v31 }
  0xed   : > { %2594 = vmatpush.bf16.msrb.mxu0 %v6641_v10  ;;  %v360_v10 = vld [vmem:[%s7776_s14 + $0x4f8] sm:$0xff] }
  0xef   : > { %v2435_v41 = vpop.f32.mrf.mxu2  ;;  %v2260_v48 = vpop.f32.mrf.mxu0 }
  0xf0   : > { %v2436_v59 = vadd.f32 %v2435_v41, %v2347_v62  ;;  %v2524_v60 = vpop.f32.mrf.mxu3  ;;  %v2261_v37 = vadd.f32 %v2260_v48, %v8049_v36  ;;  %v2349_v43 = vpop.f32.mrf.mxu1  ;;  %v7035_v41 = vld [vmem:[%s11433_s1 + $0x4] sm:$0xf]  ;;  %v5874_v48 = vld [vmem:[%s11433_s1 + $0x18] sm:$0xf0] }
  0xf1   : > { %v5877_v62 = vor.u32 %v7035_v41, %v5874_v48  ;;  %v6832_v48 = vld [vmem:[%s11433_s1 + $0x780] sm:$0xf] }
  0xf2   : > { %v8215_v58 = vadd.f32 %v2524_v60, %v2436_v59  ;;  %v2350_v35 = vadd.f32 %v2349_v43, %v2261_v37  ;;  %2299 = vmatmul.bf16.gmra.mxu0 %v8206_v22 }
  0xf3   : > { %2388 = vmatmul.bf16.gmra.mxu1 %v8208_v47  ;;  %2772 = vmatpush.bf16.msrb.mxu2 %v5877_v62  ;;  %v357_v62 = vld [vmem:[%s7776_s14 + $0x4e0] sm:$0xff] }
  0xf4   : > { %2477 = vmatmul.bf16.gmra.mxu2 %v8210_v9 }
  0xf5   : > { %2566 = vmatmul.bf16.gmra.mxu3 %v8213_v31  ;;  %v365_v31 = vld [vmem:[%s7776_s14 + $0x520] sm:$0xff] }
  0xf7   : > { %v2438_v6 = vpop.f32.mrf.mxu2  ;;  %v2262_v60 = vpop.f32.mrf.mxu0 }
  0xf8   : > { %v2439_v30 = vadd.f32 %v2438_v6, %v2350_v35  ;;  %v2527_v59 = vpop.f32.mrf.mxu3  ;;  %v2263_v37 = vadd.f32 %v2262_v60, %v8049_v36  ;;  %v2351_v43 = vpop.f32.mrf.mxu1  ;;  %v7278_v35 = vld [vmem:[%s11433_s1 + $0x794] sm:$0xf0]  ;;  %v359_v60 = vld [vmem:[%s7776_s14 + $0x4f0] sm:$0xff] }
  0xf9   : > { %v6833_v63 = vor.u32 %v7278_v35, %v6832_v48  ;;  %v364_v6 = vld [vmem:[%s7776_s14 + $0x518] sm:$0xff]  ;;  %v8260_v55 = vpack.c.bf16 %v365_v31, %v359_v60  ;;  %v8263_v48 = vpack.c.bf16 %v366_v28, %v360_v10  ;;  %v375_v60 = vld [vmem:[%s7776_s14 + $0x570] sm:$0xff]  ;;  %v370_v10 = vld [vmem:[%s7776_s14 + $0x548] sm:$0xff] }
  0xfa   : > { %v8240_v41 = vadd.f32 %v2527_v59, %v2439_v30  ;;  %v2352_v23 = vadd.f32 %v2351_v43, %v2263_v37  ;;  %v8256_v59 = vpack.c.bf16 %v363_v18, %v357_v62  ;;  %v8258_v2 = vpack.c.bf16 %v364_v6, %v358_v5  ;;  %v369_v6 = vld [vmem:[%s7776_s14 + $0x540] sm:$0xff]  ;;  %v376_v28 = vld [vmem:[%s7776_s14 + $0x578] sm:$0xff] }
  0xfb   : > { %2683 = vmatpush.bf16.msrb.mxu1 %v6833_v63  ;;  %11747 = vst [vmem:[#allocation57_spill] sm:$0xff] %v8260_v55  ;;  %v8282_v54 = vpack.c.bf16 %v375_v60, %v369_v6  ;;  %v8284_v26 = vpack.c.bf16 %v376_v28, %v370_v10  ;;  %v6426_v6 = vld [vmem:[%s11433_s1 + $0x468] sm:$0xf0]  ;;  %v7317_v60 = vld [vmem:[%s11433_s1 + $0x8d4] sm:$0xf] }
  0xfc   : > { %11745 = vst [vmem:[#allocation55_spill] sm:$0xff] %v8256_v59  ;;  %v7002_v10 = vld [vmem:[%s11433_s1 + $0x8e8] sm:$0xf0] }
  0xfd   : > { %11746 = vst [vmem:[#allocation56_spill] sm:$0xff] %v8258_v2 }
  0xfe   : > { %11748 = vst [vmem:[#allocation58_spill] sm:$0xff] %v8263_v48 }
  0xff   : > { %v2440_v30 = vpop.f32.mrf.mxu2  ;;  %v2265_v3 = vpop.f32.mrf.mxu0  ;;  %11749 = vst [vmem:[#allocation59_spill] sm:$0xff] %v8282_v54 }
 0x100   : > { %v2441_v9 = vadd.f32 %v2440_v30, %v2352_v23  ;;  %v2529_v34 = vpop.f32.mrf.mxu3  ;;  %v2266_v37 = vadd.f32 %v2265_v3, %v8049_v36  ;;  %v2354_v43 = vpop.f32.mrf.mxu1  ;;  %v371_v30 = vld [vmem:[%s7776_s14 + $0x550] sm:$0xff]  ;;  %11750 = vst [vmem:[#allocation60_spill] sm:$0xff] %v8284_v26 }
 0x102   : > { %v8265_v35 = vadd.f32 %v2529_v34, %v2441_v9  ;;  %v2355_v63 = vadd.f32 %v2354_v43, %v2266_v37  ;;  %2304 = vmatmul.bf16.gmra.mxu0 %v8256_v59  ;;  %v377_v37 = vld [vmem:[%s7776_s14 + $0x580] sm:$0xff]  ;;  %v372_v43 = vld [vmem:[%s7776_s14 + $0x558] sm:$0xff] }
 0x103   : > { %2393 = vmatmul.bf16.gmra.mxu1 %v8258_v2 }
 0x104   : > { %2482 = vmatmul.bf16.gmra.mxu2 %v8260_v55  ;;  %v378_v55 = vld [vmem:[%s7776_s14 + $0x588] sm:$0xff] }
 0x105   : > { %2571 = vmatmul.bf16.gmra.mxu3 %v8263_v48 }
 0x107   : > { %v2443_v3 = vpop.f32.mrf.mxu2  ;;  %v2267_v34 = vpop.f32.mrf.mxu0 }
 0x108   : > { %v2444_v31 = vadd.f32 %v2443_v3, %v2355_v63  ;;  %v2532_v23 = vpop.f32.mrf.mxu3  ;;  %v2268_v9 = vadd.f32 %v2267_v34, %v8049_v36  ;;  %v2356_v62 = vpop.f32.mrf.mxu1  ;;  %v8286_v34 = vpack.c.bf16 %v377_v37, %v371_v30  ;;  %v7005_v37 = vor.u32 %v7317_v60, %v7002_v10  ;;  %v387_v60 = vld [vmem:[%s7776_s14 + $0x5d0] sm:$0xff]  ;;  %v382_v10 = vld [vmem:[%s7776_s14 + $0x5a8] sm:$0xff] }
 0x10a   : > { %v8272_v18 = vadd.f32 %v2532_v23, %v2444_v31  ;;  %v2357_v5 = vadd.f32 %v2356_v62, %v2268_v9  ;;  %11751 = vst [vmem:[#allocation61_spill] sm:$0xff] %v8286_v34  ;;  %v8289_v9 = vpack.c.bf16 %v378_v55, %v372_v43  ;;  %v7173_v55 = vld [vmem:[%s11433_s1 + $0x454] sm:$0xf]  ;;  %3210 = vmatpush.bf16.msra.mxu3 %v7005_v37  ;;  %v390_v37 = vld [vmem:[%s7776_s14 + $0x5e8] sm:$0xff] }
 0x10b   : > { %v6429_v30 = vor.u32 %v7173_v55, %v6426_v6 }
 0x10c   : > { %11752 = vst [vmem:[#allocation62_spill] sm:$0xff] %v8289_v9 }
 0x10d   : > { %2943 = vmatpush.bf16.msra.mxu0 %v6429_v30  ;;  %v384_v30 = vld [vmem:[%s7776_s14 + $0x5b8] sm:$0xff] }
 0x10f   : > { %v2445_v48 = vpop.f32.mrf.mxu2  ;;  %v2270_v27 = vpop.f32.mrf.mxu0 }
 0x110   : > { %v2446_v63 = vadd.f32 %v2445_v48, %v2357_v5  ;;  %v2534_v3 = vpop.f32.mrf.mxu3  ;;  %v2271_v31 = vadd.f32 %v2270_v27, %v8049_v36  ;;  %v2359_v23 = vpop.f32.mrf.mxu1  ;;  %v7269_v48 = vld [vmem:[%s11433_s1 + $0x754] sm:$0xf]  ;;  %v6810_v27 = vld [vmem:[%s11433_s1 + $0x768] sm:$0xf0] }
 0x111   : > { %v6813_v5 = vor.u32 %v7269_v48, %v6810_v27  ;;  %v7221_v27 = vld [vmem:[%s11433_s1 + $0x5d4] sm:$0xf] }
 0x112   : > { %v8291_v62 = vadd.f32 %v2534_v3, %v2446_v63  ;;  %v2360_v15 = vadd.f32 %v2359_v23, %v2271_v31  ;;  %2309 = vmatmul.bf16.gmra.mxu0 %v8282_v54 }
 0x113   : > { %2398 = vmatmul.bf16.gmra.mxu1 %v8284_v26  ;;  %3121 = vmatpush.bf16.msra.mxu2 %v6813_v5  ;;  %v381_v5 = vld [vmem:[%s7776_s14 + $0x5a0] sm:$0xff] }
 0x114   : > { %2487 = vmatmul.bf16.gmra.mxu2 %v8286_v34 }
 0x115   : > { %2576 = vmatmul.bf16.gmra.mxu3 %v8289_v9  ;;  %v389_v9 = vld [vmem:[%s7776_s14 + $0x5e0] sm:$0xff] }
 0x117   : > { %v2448_v28 = vpop.f32.mrf.mxu2  ;;  %v2272_v3 = vpop.f32.mrf.mxu0 }
 0x118   : > { %v2449_v43 = vadd.f32 %v2448_v28, %v2360_v15  ;;  %v2537_v63 = vpop.f32.mrf.mxu3  ;;  %v2273_v31 = vadd.f32 %v2272_v3, %v8049_v36  ;;  %v2361_v23 = vpop.f32.mrf.mxu1  ;;  %v6618_v15 = vld [vmem:[%s11433_s1 + $0x5e8] sm:$0xf0]  ;;  %v388_v28 = vld [vmem:[%s7776_s14 + $0x5d8] sm:$0xff]  ;;  %v383_v3 = vld [vmem:[%s7776_s14 + $0x5b0] sm:$0xff] }
 0x119   : > { %v6621_v6 = vor.u32 %v7221_v27, %v6618_v15  ;;  %v8334_v50 = vpack.c.bf16 %v388_v28, %v382_v10  ;;  %v8336_v26 = vpack.c.bf16 %v389_v9, %v383_v3  ;;  %v8339_v27 = vpack.c.bf16 %v390_v37, %v384_v30  ;;  %v205_v28 = vld [vmem:[%s7776_s14 + $0x20] sm:$0xff]  ;;  %v211_v3 = vld [vmem:[%s7776_s14 + $0x50] sm:$0xff]  ;;  %v206_v30 = vld [vmem:[%s7776_s14 + $0x28] sm:$0xff] }
 0x11a   : > { %v8316_v48 = vadd.f32 %v2537_v63, %v2449_v43  ;;  %v2362_v55 = vadd.f32 %v2361_v23, %v2273_v31  ;;  %v8332_v63 = vpack.c.bf16 %v387_v60, %v381_v5  ;;  %v212_v37 = vld [vmem:[%s7776_s14 + $0x58] sm:$0xff] }
 0x11b   : > { %3032 = vmatpush.bf16.msra.mxu1 %v6621_v6  ;;  %11754 = vst [vmem:[#allocation64_spill] sm:$0xff] %v8334_v50 }
 0x11c   : > { %11753 = vst [vmem:[#allocation63_spill] sm:$0xff] %v8332_v63 }
 0x11d   : > { %11755 = vst [vmem:[#allocation65_spill] sm:$0xff] %v8336_v26 }
 0x11e   : > { %11756 = vst [vmem:[#allocation66_spill] sm:$0xff] %v8339_v27 }
 0x11f   : > { %v2450_v43 = vpop.f32.mrf.mxu2  ;;  %v2275_v53 = vpop.f32.mrf.mxu0 }
 0x120   : > { %v2451_v34 = vadd.f32 %v2450_v43, %v2362_v55  ;;  %v2539_v14 = vpop.f32.mrf.mxu3  ;;  %v2276_v31 = vadd.f32 %v2275_v53, %v8049_v36  ;;  %v2364_v23 = vpop.f32.mrf.mxu1 }
 0x122   : > { %v8341_v15 = vadd.f32 %v2539_v14, %v2451_v34  ;;  %v2365_v6 = vadd.f32 %v2364_v23, %v2276_v31  ;;  %2314 = vmatmul.bf16.gmra.mxu0 %v8332_v63  ;;  %v8354_v31 = vpack.c.bf16 %v211_v3, %v205_v28  ;;  %v6978_v28 = vld [vmem:[%s11433_s1 + $0x8b8] sm:$0xf0] }
 0x123   : > { %2403 = vmatmul.bf16.gmra.mxu1 %v8334_v50  ;;  %v8356_v50 = vpack.c.bf16 %v212_v37, %v206_v30 }
 0x124   : > { %2492 = vmatmul.bf16.gmra.mxu2 %v8336_v26  ;;  %11757 = vst [vmem:[#allocation67_spill] sm:$0xff] %v8354_v31 }
 0x125   : > { %2581 = vmatmul.bf16.gmra.mxu3 %v8339_v27  ;;  %11758 = vst [vmem:[#allocation68_spill] sm:$0xff] %v8356_v50 }
 0x127   : > { %v2453_v9 = vpop.f32.mrf.mxu2  ;;  %v2277_v5 = vpop.f32.mrf.mxu0 }
 0x128   : > { %v2454_v53 = vadd.f32 %v2453_v9, %v2365_v6  ;;  %v2542_v55 = vpop.f32.mrf.mxu3  ;;  %v2278_v60 = vadd.f32 %v2277_v5, %v8049_v36  ;;  %v2366_v10 = vpop.f32.mrf.mxu1 }
 0x12a   : > { %v8348_v14 = vadd.f32 %v2542_v55, %v2454_v53  ;;  %v2367_v34 = vadd.f32 %v2366_v10, %v2278_v60  ;;  %v7263_v55 = vld [vmem:[%s11433_s1 + $0x724] sm:$0xf]  ;;  %v6402_v10 = vld [vmem:[%s11433_s1 + $0x438] sm:$0xf0] }
 0x12f   : > { %v2455_v43 = vpop.f32.mrf.mxu2  ;;  %v2280_v27 = vpop.f32.mrf.mxu0 }
 0x130   : > { %v2456_v23 = vadd.f32 %v2455_v43, %v2367_v34  ;;  %v2544_v26 = vpop.f32.mrf.mxu3  ;;  %v2281_v6 = vadd.f32 %v2280_v27, %v8049_v36  ;;  %v2369_v9 = vpop.f32.mrf.mxu1  ;;  %v6786_v27 = vld [vmem:[%s11433_s1 + $0x738] sm:$0xf0]  ;;  %v7311_v34 = vld [vmem:[%s11433_s1 + $0x8a4] sm:$0xf] }
 0x131   : > { %v6789_v60 = vor.u32 %v7263_v55, %v6786_v27  ;;  %v6981_v37 = vor.u32 %v7311_v34, %v6978_v28  ;;  %v217_v34 = vld [vmem:[%s7776_s14 + $0x80] sm:$0xff]  ;;  %v223_v28 = vld [vmem:[%s7776_s14 + $0xb0] sm:$0xff] }
 0x132   : > { %v8359_v5 = vadd.f32 %v2544_v26, %v2456_v23  ;;  %v2370_v53 = vadd.f32 %v2369_v9, %v2281_v6  ;;  %2595 = vmatmul.bf16.vlgmr.msrb.gmra.mxu0 %v8354_v31  ;;  %v7167_v26 = vld [vmem:[%s11433_s1 + $0x424] sm:$0xf] }
 0x133   : > { %2684 = vmatmul.bf16.vlgmr.msrb.gmra.mxu1 %v8356_v50  ;;  %v6405_v30 = vor.u32 %v7167_v26, %v6402_v10  ;;  %3122 = vmatpush.bf16.msra.mxu2 %v6789_v60  ;;  %v6594_v26 = vld [vmem:[%s11433_s1 + $0x5b8] sm:$0xf0]  ;;  %v218_v60 = vld [vmem:[%s7776_s14 + $0x88] sm:$0xff] }
 0x134   : > { %2773 = vmatmul.bf16.vlgmr.msrb.gmra.mxu2 %v7790_v44  ;;  %3211 = vmatpush.bf16.msra.mxu3 %v6981_v37 }
 0x135   : > { %2862 = vmatmul.bf16.vlgmr.msrb.gmra.mxu3 %v7795_v49  ;;  %2944 = vmatpush.bf16.msra.mxu0 %v6405_v30  ;;  %v7215_v49 = vld [vmem:[%s11433_s1 + $0x5a4] sm:$0xf]  ;;  %v8396_v30 = vpack.c.bf16 %v223_v28, %v217_v34 }
 0x136   : > { %v6597_v10 = vor.u32 %v7215_v49, %v6594_v26 }
 0x137   : > { %v2458_v3 = vpop.f32.mrf.mxu2  ;;  %v2282_v6 = vpop.f32.mrf.mxu0  ;;  %11759 = vst [vmem:[#allocation69_spill] sm:$0xff] %v8396_v30 }
 0x138   : > { %v2459_v43 = vadd.f32 %v2458_v3, %v2370_v53  ;;  %v2547_v23 = vpop.f32.mrf.mxu3  ;;  %v2283_v9 = vadd.f32 %v2282_v6, %v8049_v36  ;;  %v2371_v55 = vpop.f32.mrf.mxu1  ;;  %v224_v3 = vld [vmem:[%s7776_s14 + $0xb8] sm:$0xff]  ;;  %3033 = vmatpush.bf16.msra.mxu1 %v6597_v10 }
 0x139   : > { %v8398_v44 = vpack.c.bf16 %v224_v3, %v218_v60 }
 0x13a   : > { %v8384_v27 = vadd.f32 %v2547_v23, %v2459_v43  ;;  %v2372_v53 = vadd.f32 %v2371_v55, %v2283_v9 }
 0x13b   : > { %11760 = vst [vmem:[#allocation70_spill] sm:$0xff] %v8398_v44 }
 0x13f   : > { %v2460_v6 = vpop.f32.mrf.mxu2  ;;  %v2285_v23 = vpop.f32.mrf.mxu0 }
 0x140   : > { %v2461_v37 = vadd.f32 %v2460_v6, %v2372_v53  ;;  %v2549_v43 = vpop.f32.mrf.mxu3  ;;  %v2286_v50 = vadd.f32 %v2285_v23, %v8049_v36  ;;  %v2374_v31 = vpop.f32.mrf.mxu1  ;;  %v230_v6 = vld [vmem:[%s7776_s14 + $0xe8] sm:$0xff] }
 0x142   : > { %v8401_v9 = vadd.f32 %v2549_v43, %v2461_v37  ;;  %v2375_v49 = vadd.f32 %v2374_v31, %v2286_v50  ;;  %2600 = vmatmul.bf16.gmra.mxu0 %v8396_v30  ;;  %v229_v50 = vld [vmem:[%s7776_s14 + $0xe0] sm:$0xff]  ;;  %v235_v31 = vld [vmem:[%s7776_s14 + $0x110] sm:$0xff]  ;;  %v236_v37 = vld [vmem:[%s7776_s14 + $0x118] sm:$0xff] }
 0x143   : > { %2689 = vmatmul.bf16.gmra.mxu1 %v8398_v44  ;;  %v8414_v23 = vpack.c.bf16 %v235_v31, %v229_v50  ;;  %v8416_v30 = vpack.c.bf16 %v236_v37, %v230_v6 }
 0x144   : > { %2778 = vmatmul.bf16.gmra.mxu2 %v7839_v12 }
 0x145   : > { %2867 = vmatmul.bf16.gmra.mxu3 %v7841_v13  ;;  %11761 = vst [vmem:[#allocation71_spill] sm:$0xff] %v8414_v23 }
 0x146   : > { %11762 = vst [vmem:[#allocation72_spill] sm:$0xff] %v8416_v30 }
 0x147   : > { %v2463_v55 = vpop.f32.mrf.mxu2  ;;  %v2287_v10 = vpop.f32.mrf.mxu0 }
 0x148   : > { %v2464_v26 = vadd.f32 %v2463_v55, %v2375_v49  ;;  %v2552_v53 = vpop.f32.mrf.mxu3  ;;  %v2288_v34 = vadd.f32 %v2287_v10, %v8049_v36  ;;  %v2376_v28 = vpop.f32.mrf.mxu1 }
 0x14a   : > { %v8408_v60 = vadd.f32 %v2552_v53, %v2464_v26  ;;  %v2377_v3 = vadd.f32 %v2376_v28, %v2288_v34  ;;  %v7257_v53 = vld [vmem:[%s11433_s1 + $0x6f4] sm:$0xf]  ;;  %v6378_v34 = vld [vmem:[%s11433_s1 + $0x408] sm:$0xf0] }
 0x14b   : > { %v7305_v28 = vld [vmem:[%s11433_s1 + $0x874] sm:$0xf] }
 0x14f   : > { %v2465_v43 = vpop.f32.mrf.mxu2  ;;  %v2290_v13 = vpop.f32.mrf.mxu0 }
 0x150   : > { %v2466_v12 = vadd.f32 %v2465_v43, %v2377_v3  ;;  %v2554_v44 = vpop.f32.mrf.mxu3  ;;  %v2291_v49 = vadd.f32 %v2290_v13, %v8049_v36  ;;  %v2379_v55 = vpop.f32.mrf.mxu1  ;;  %v6762_v13 = vld [vmem:[%s11433_s1 + $0x708] sm:$0xf0] }
 0x151   : > { %v6954_v3 = vld [vmem:[%s11433_s1 + $0x888] sm:$0xf0] }
 0x152   : > { %v8419_v10 = vadd.f32 %v2554_v44, %v2466_v12  ;;  %v2380_v26 = vadd.f32 %v2379_v55, %v2291_v49  ;;  %2605 = vmatmul.bf16.gmra.mxu0 %v8414_v23  ;;  %v7161_v44 = vld [vmem:[%s11433_s1 + $0x3f4] sm:$0xf]  ;;  %v6765_v12 = vor.u32 %v7257_v53, %v6762_v13  ;;  %v6957_v6 = vor.u32 %v7305_v28, %v6954_v3  ;;  %v241_v28 = vld [vmem:[%s7776_s14 + $0x140] sm:$0xff] }
 0x153   : > { %2694 = vmatmul.bf16.gmra.mxu1 %v8416_v30  ;;  %v6381_v31 = vor.u32 %v7161_v44, %v6378_v34  ;;  %v6570_v44 = vld [vmem:[%s11433_s1 + $0x588] sm:$0xf0]  ;;  %v247_v3 = vld [vmem:[%s7776_s14 + $0x170] sm:$0xff] }
 0x154   : > { %2783 = vmatmul.bf16.gmra.mxu2 %v7859_v24  ;;  %3212 = vmatpush.bf16.msra.mxu3 %v6957_v6 }
 0x155   : > { %2872 = vmatmul.bf16.gmra.mxu3 %v7861_v25  ;;  %3123 = vmatpush.bf16.msra.mxu2 %v6765_v12  ;;  %v7209_v25 = vld [vmem:[%s11433_s1 + $0x574] sm:$0xf]  ;;  %v242_v12 = vld [vmem:[%s7776_s14 + $0x148] sm:$0xff] }
 0x156   : > { %2945 = vmatpush.bf16.msra.mxu0 %v6381_v31  ;;  %v6573_v34 = vor.u32 %v7209_v25, %v6570_v44  ;;  %v8456_v31 = vpack.c.bf16 %v247_v3, %v241_v28 }
 0x157   : > { %v2468_v50 = vpop.f32.mrf.mxu2  ;;  %v2292_v49 = vpop.f32.mrf.mxu0 }
 0x158   : > { %v2469_v37 = vadd.f32 %v2468_v50, %v2380_v26  ;;  %v2557_v43 = vpop.f32.mrf.mxu3  ;;  %v2293_v55 = vadd.f32 %v2292_v49, %v8049_v36  ;;  %v2381_v53 = vpop.f32.mrf.mxu1  ;;  %v248_v50 = vld [vmem:[%s7776_s14 + $0x178] sm:$0xff]  ;;  %3034 = vmatpush.bf16.msra.mxu1 %v6573_v34  ;;  %11763 = vst [vmem:[#allocation73_spill] sm:$0xff] %v8456_v31 }
 0x159   : > { %v8458_v24 = vpack.c.bf16 %v248_v50, %v242_v12 }
 0x15a   : > { %v8444_v13 = vadd.f32 %v2557_v43, %v2469_v37  ;;  %v2382_v26 = vadd.f32 %v2381_v53, %v2293_v55 }
 0x15b   : > { %11764 = vst [vmem:[#allocation74_spill] sm:$0xff] %v8458_v24 }
 0x15f   : > { %v2470_v49 = vpop.f32.mrf.mxu2  ;;  %v2295_v43 = vpop.f32.mrf.mxu0 }
 0x160   : > { %v2471_v6 = vadd.f32 %v2470_v49, %v2382_v26  ;;  %v2559_v37 = vpop.f32.mrf.mxu3  ;;  %v2296_v30 = vadd.f32 %v2295_v43, %v8049_v36  ;;  %v2384_v23 = vpop.f32.mrf.mxu1  ;;  %v254_v49 = vld [vmem:[%s7776_s14 + $0x1a8] sm:$0xff] }
 0x162   : > { %v8461_v55 = vadd.f32 %v2559_v37, %v2471_v6  ;;  %v2385_v25 = vadd.f32 %v2384_v23, %v2296_v30  ;;  %2610 = vmatmul.bf16.gmra.mxu0 %v8456_v31  ;;  %v253_v30 = vld [vmem:[%s7776_s14 + $0x1a0] sm:$0xff]  ;;  %v259_v23 = vld [vmem:[%s7776_s14 + $0x1d0] sm:$0xff]  ;;  %v260_v6 = vld [vmem:[%s7776_s14 + $0x1d8] sm:$0xff] }
 0x163   : > { %2699 = vmatmul.bf16.gmra.mxu1 %v8458_v24  ;;  %v8474_v43 = vpack.c.bf16 %v259_v23, %v253_v30  ;;  %v8476_v31 = vpack.c.bf16 %v260_v6, %v254_v49 }
 0x164   : > { %2788 = vmatmul.bf16.gmra.mxu2 %v7903_v51 }
 0x165   : > { %2877 = vmatmul.bf16.gmra.mxu3 %v7905_v52  ;;  %11765 = vst [vmem:[#allocation75_spill] sm:$0xff] %v8474_v43 }
 0x166   : > { %11766 = vst [vmem:[#allocation76_spill] sm:$0xff] %v8476_v31 }
 0x167   : > { %v2473_v53 = vpop.f32.mrf.mxu2  ;;  %v2297_v34 = vpop.f32.mrf.mxu0 }
 0x168   : > { %v2474_v44 = vadd.f32 %v2473_v53, %v2385_v25  ;;  %v2562_v26 = vpop.f32.mrf.mxu3  ;;  %v2298_v28 = vadd.f32 %v2297_v34, %v8049_v36  ;;  %v2386_v3 = vpop.f32.mrf.mxu1 }
 0x16a   : > { %v8468_v12 = vadd.f32 %v2562_v26, %v2474_v44  ;;  %v2387_v50 = vadd.f32 %v2386_v3, %v2298_v28  ;;  %v7251_v26 = vld [vmem:[%s11433_s1 + $0x6c4] sm:$0xf]  ;;  %v6354_v28 = vld [vmem:[%s11433_s1 + $0x3d8] sm:$0xf0] }
 0x16b   : > { %v7299_v3 = vld [vmem:[%s11433_s1 + $0x844] sm:$0xf] }
 0x16f   : > { %v2475_v37 = vpop.f32.mrf.mxu2  ;;  %v2300_v52 = vpop.f32.mrf.mxu0 }
 0x170   : > { %v2476_v51 = vadd.f32 %v2475_v37, %v2387_v50  ;;  %v2564_v24 = vpop.f32.mrf.mxu3  ;;  %v2301_v25 = vadd.f32 %v2300_v52, %v8049_v36  ;;  %v2389_v53 = vpop.f32.mrf.mxu1  ;;  %v6738_v52 = vld [vmem:[%s11433_s1 + $0x6d8] sm:$0xf0] }
 0x171   : > { %v6930_v50 = vld [vmem:[%s11433_s1 + $0x858] sm:$0xf0] }
 0x172   : > { %v8479_v34 = vadd.f32 %v2564_v24, %v2476_v51  ;;  %v2390_v44 = vadd.f32 %v2389_v53, %v2301_v25  ;;  %2615 = vmatmul.bf16.gmra.mxu0 %v8474_v43  ;;  %v7155_v24 = vld [vmem:[%s11433_s1 + $0x3c4] sm:$0xf]  ;;  %v6741_v51 = vor.u32 %v7251_v26, %v6738_v52  ;;  %v6933_v49 = vor.u32 %v7299_v3, %v6930_v50  ;;  %v271_v50 = vld [vmem:[%s7776_s14 + $0x230] sm:$0xff] }
 0x173   : > { %2704 = vmatmul.bf16.gmra.mxu1 %v8476_v31  ;;  %v6357_v23 = vor.u32 %v7155_v24, %v6354_v28  ;;  %v6546_v24 = vld [vmem:[%s11433_s1 + $0x558] sm:$0xf0]  ;;  %v265_v3 = vld [vmem:[%s7776_s14 + $0x200] sm:$0xff] }
 0x174   : > { %2793 = vmatmul.bf16.gmra.mxu2 %v7923_v0  ;;  %3213 = vmatpush.bf16.msra.mxu3 %v6933_v49 }
 0x175   : > { %2882 = vmatmul.bf16.gmra.mxu3 %v7925_v1  ;;  %3124 = vmatpush.bf16.msra.mxu2 %v6741_v51  ;;  %v7203_v1 = vld [vmem:[%s11433_s1 + $0x544] sm:$0xf]  ;;  %v266_v51 = vld [vmem:[%s7776_s14 + $0x208] sm:$0xff] }
 0x176   : > { %2946 = vmatpush.bf16.msra.mxu0 %v6357_v23  ;;  %v6549_v28 = vor.u32 %v7203_v1, %v6546_v24  ;;  %v8516_v23 = vpack.c.bf16 %v271_v50, %v265_v3 }
 0x177   : > { %v2478_v30 = vpop.f32.mrf.mxu2  ;;  %v2302_v25 = vpop.f32.mrf.mxu0 }
 0x178   : > { %v2479_v6 = vadd.f32 %v2478_v30, %v2390_v44  ;;  %v2567_v37 = vpop.f32.mrf.mxu3  ;;  %v2303_v53 = vadd.f32 %v2302_v25, %v8049_v36  ;;  %v2391_v26 = vpop.f32.mrf.mxu1  ;;  %v272_v30 = vld [vmem:[%s7776_s14 + $0x238] sm:$0xff]  ;;  %3035 = vmatpush.bf16.msra.mxu1 %v6549_v28  ;;  %11767 = vst [vmem:[#allocation77_spill] sm:$0xff] %v8516_v23 }
 0x179   : > { %v8518_v0 = vpack.c.bf16 %v272_v30, %v266_v51 }
 0x17a   : > { %v8504_v52 = vadd.f32 %v2567_v37, %v2479_v6  ;;  %v2392_v44 = vadd.f32 %v2391_v26, %v2303_v53 }
 0x17b   : > { %11768 = vst [vmem:[#allocation78_spill] sm:$0xff] %v8518_v0 }
 0x17f   : > { %v2480_v25 = vpop.f32.mrf.mxu2  ;;  %v2305_v37 = vpop.f32.mrf.mxu0 }
 0x180   : > { %v2481_v49 = vadd.f32 %v2480_v25, %v2392_v44  ;;  %v2569_v6 = vpop.f32.mrf.mxu3  ;;  %v2306_v31 = vadd.f32 %v2305_v37, %v8049_v36  ;;  %v2394_v43 = vpop.f32.mrf.mxu1  ;;  %v278_v25 = vld [vmem:[%s7776_s14 + $0x268] sm:$0xff] }
 0x182   : > { %v8521_v53 = vadd.f32 %v2569_v6, %v2481_v49  ;;  %v2395_v1 = vadd.f32 %v2394_v43, %v2306_v31  ;;  %2620 = vmatmul.bf16.gmra.mxu0 %v8516_v23  ;;  %v277_v31 = vld [vmem:[%s7776_s14 + $0x260] sm:$0xff]  ;;  %v283_v43 = vld [vmem:[%s7776_s14 + $0x290] sm:$0xff]  ;;  %v284_v49 = vld [vmem:[%s7776_s14 + $0x298] sm:$0xff] }
 0x183   : > { %2709 = vmatmul.bf16.gmra.mxu1 %v8518_v0  ;;  %v8534_v37 = vpack.c.bf16 %v283_v43, %v277_v31  ;;  %v8536_v23 = vpack.c.bf16 %v284_v49, %v278_v25 }
 0x184   : > { %2798 = vmatmul.bf16.gmra.mxu2 %v7967_v32 }
 0x185   : > { %2887 = vmatmul.bf16.gmra.mxu3 %v7969_v33  ;;  %11769 = vst [vmem:[#allocation79_spill] sm:$0xff] %v8534_v37 }
 0x186   : > { %11770 = vst [vmem:[#allocation80_spill] sm:$0xff] %v8536_v23 }
 0x187   : > { %v2483_v26 = vpop.f32.mrf.mxu2  ;;  %v2307_v28 = vpop.f32.mrf.mxu0 }
 0x188   : > { %v2484_v24 = vadd.f32 %v2483_v26, %v2395_v1  ;;  %v2572_v44 = vpop.f32.mrf.mxu3  ;;  %v2308_v3 = vadd.f32 %v2307_v28, %v8049_v36  ;;  %v2396_v50 = vpop.f32.mrf.mxu1 }
 0x18a   : > { %v8528_v51 = vadd.f32 %v2572_v44, %v2484_v24  ;;  %v2397_v30 = vadd.f32 %v2396_v50, %v2308_v3  ;;  %v7245_v44 = vld [vmem:[%s11433_s1 + $0x694] sm:$0xf]  ;;  %v6330_v3 = vld [vmem:[%s11433_s1 + $0x3a8] sm:$0xf0] }
 0x18b   : > { %v7293_v50 = vld [vmem:[%s11433_s1 + $0x814] sm:$0xf] }
 0x18f   : > { %v2485_v6 = vpop.f32.mrf.mxu2  ;;  %v2310_v33 = vpop.f32.mrf.mxu0 }
 0x190   : > { %v2486_v32 = vadd.f32 %v2485_v6, %v2397_v30  ;;  %v2574_v0 = vpop.f32.mrf.mxu3  ;;  %v2311_v1 = vadd.f32 %v2310_v33, %v8049_v36  ;;  %v2399_v26 = vpop.f32.mrf.mxu1  ;;  %v6714_v33 = vld [vmem:[%s11433_s1 + $0x6a8] sm:$0xf0] }
 0x191   : > { %v6906_v30 = vld [vmem:[%s11433_s1 + $0x828] sm:$0xf0] }
 0x192   : > { %v8539_v28 = vadd.f32 %v2574_v0, %v2486_v32  ;;  %v2400_v24 = vadd.f32 %v2399_v26, %v2311_v1  ;;  %2625 = vmatmul.bf16.gmra.mxu0 %v8534_v37  ;;  %v7149_v0 = vld [vmem:[%s11433_s1 + $0x394] sm:$0xf]  ;;  %v6717_v32 = vor.u32 %v7245_v44, %v6714_v33  ;;  %v6909_v25 = vor.u32 %v7293_v50, %v6906_v30  ;;  %v289_v50 = vld [vmem:[%s7776_s14 + $0x2c0] sm:$0xff] }
 0x193   : > { %2714 = vmatmul.bf16.gmra.mxu1 %v8536_v23  ;;  %v6333_v43 = vor.u32 %v7149_v0, %v6330_v3  ;;  %v6522_v0 = vld [vmem:[%s11433_s1 + $0x528] sm:$0xf0]  ;;  %v295_v30 = vld [vmem:[%s7776_s14 + $0x2f0] sm:$0xff] }
 0x194   : > { %2803 = vmatmul.bf16.gmra.mxu2 %v7987_v45  ;;  %3214 = vmatpush.bf16.msra.mxu3 %v6909_v25 }
 0x195   : > { %2892 = vmatmul.bf16.gmra.mxu3 %v7989_v46  ;;  %3125 = vmatpush.bf16.msra.mxu2 %v6717_v32  ;;  %v7197_v46 = vld [vmem:[%s11433_s1 + $0x514] sm:$0xf]  ;;  %v290_v32 = vld [vmem:[%s7776_s14 + $0x2c8] sm:$0xff] }
 0x196   : > { %2947 = vmatpush.bf16.msra.mxu0 %v6333_v43  ;;  %v6525_v3 = vor.u32 %v7197_v46, %v6522_v0  ;;  %v8576_v43 = vpack.c.bf16 %v295_v30, %v289_v50 }
 0x197   : > { %v2488_v31 = vpop.f32.mrf.mxu2  ;;  %v2312_v1 = vpop.f32.mrf.mxu0 }
 0x198   : > { %v2489_v49 = vadd.f32 %v2488_v31, %v2400_v24  ;;  %v2577_v6 = vpop.f32.mrf.mxu3  ;;  %v2313_v26 = vadd.f32 %v2312_v1, %v8049_v36  ;;  %v2401_v44 = vpop.f32.mrf.mxu1  ;;  %v296_v31 = vld [vmem:[%s7776_s14 + $0x2f8] sm:$0xff]  ;;  %3036 = vmatpush.bf16.msra.mxu1 %v6525_v3  ;;  %11771 = vst [vmem:[#allocation81_spill] sm:$0xff] %v8576_v43 }
 0x199   : > { %v8578_v45 = vpack.c.bf16 %v296_v31, %v290_v32  ;;  %v307_v31 = vld [vmem:[%s7776_s14 + $0x350] sm:$0xff] }
 0x19a   : > { %v8564_v33 = vadd.f32 %v2577_v6, %v2489_v49  ;;  %v2402_v24 = vadd.f32 %v2401_v44, %v2313_v26 }
 0x19b   : > { %11772 = vst [vmem:[#allocation82_spill] sm:$0xff] %v8578_v45 }
 0x19f   : > { %v2490_v1 = vpop.f32.mrf.mxu2  ;;  %v2315_v6 = vpop.f32.mrf.mxu0 }
 0x1a0   : > { %v2491_v25 = vadd.f32 %v2490_v1, %v2402_v24  ;;  %v2579_v49 = vpop.f32.mrf.mxu3  ;;  %v2316_v23 = vadd.f32 %v2315_v6, %v8049_v36  ;;  %v2404_v37 = vpop.f32.mrf.mxu1  ;;  %v302_v1 = vld [vmem:[%s7776_s14 + $0x328] sm:$0xff] }
 0x1a2   : > { %v8581_v26 = vadd.f32 %v2579_v49, %v2491_v25  ;;  %v2405_v46 = vadd.f32 %v2404_v37, %v2316_v23  ;;  %2630 = vmatmul.bf16.gmra.mxu0 %v8576_v43  ;;  %v301_v37 = vld [vmem:[%s7776_s14 + $0x320] sm:$0xff]  ;;  %v308_v25 = vld [vmem:[%s7776_s14 + $0x358] sm:$0xff] }
 0x1a3   : > { %2719 = vmatmul.bf16.gmra.mxu1 %v8578_v45  ;;  %v8595_v6 = vpack.c.bf16 %v307_v31, %v301_v37  ;;  %v6306_v37 = vld [vmem:[%s11433_s1 + $0x378] sm:$0xf0]  ;;  %v7287_v31 = vld [vmem:[%s11433_s1 + $0x7e4] sm:$0xf] }
 0x1a4   : > { %2808 = vmatmul.bf16.gmra.mxu2 %v8031_v20 }
 0x1a5   : > { %2897 = vmatmul.bf16.gmra.mxu3 %v8033_v21  ;;  %11773 = vst [vmem:[#allocation83_spill] sm:$0xff] %v8595_v6 }
 0x1a7   : > { %v2493_v44 = vpop.f32.mrf.mxu2  ;;  %v2317_v3 = vpop.f32.mrf.mxu0 }
 0x1a8   : > { %v2494_v0 = vadd.f32 %v2493_v44, %v2405_v46  ;;  %v2582_v24 = vpop.f32.mrf.mxu3  ;;  %v2318_v50 = vadd.f32 %v2317_v3, %v8049_v36  ;;  %v2406_v30 = vpop.f32.mrf.mxu1  ;;  %v8597_v44 = vpack.c.bf16 %v308_v25, %v302_v1  ;;  %v6882_v1 = vld [vmem:[%s11433_s1 + $0x7f8] sm:$0xf0] }
 0x1aa   : > { %v8588_v32 = vadd.f32 %v2582_v24, %v2494_v0  ;;  %v2407_v23 = vadd.f32 %v2406_v30, %v2318_v50  ;;  %11774 = vst [vmem:[#allocation84_spill] sm:$0xff] %v8597_v44  ;;  %v7415_v50 = vld [vmem:[%s11434_s2] sm:$0x3f] }
 0x1ab   : > { %v8608_v30 = vperm.slane %v7415_v50, 1 }
 0x1af   : > { %v2495_v49 = vpop.f32.mrf.mxu2  ;;  %v2596_v46 = vpop.f32.mrf.mxu0 }
 0x1b0   : > { %v2496_v21 = vadd.f32 %v2495_v49, %v2407_v23  ;;  %v2584_v20 = vpop.f32.mrf.mxu3  ;;  %v2597_v36 = vadd.f32 %v2596_v46, %v8088_v29  ;;  %v2685_v3 = vpop.f32.mrf.mxu1  ;;  %v7143_v29 = vld [vmem:[%s11433_s1 + $0x364] sm:$0xf]  ;;  %v6885_v46 = vor.u32 %v7287_v31, %v6882_v1 }
 0x1b1   : > { %v6309_v49 = vor.u32 %v7143_v29, %v6306_v37  ;;  %v7191_v29 = vld [vmem:[%s11433_s1 + $0x4e4] sm:$0xf]  ;;  %v6498_v37 = vld [vmem:[%s11433_s1 + $0x4f8] sm:$0xf0] }
 0x1b2   : > { %v8600_v0 = vadd.f32 %v2584_v20, %v2496_v21  ;;  %v2686_v24 = vadd.f32 %v2685_v3, %v2597_v36  ;;  %2635 = vmatmul.bf16.gmra.mxu0 %v8595_v6  ;;  %v7239_v20 = vld [vmem:[%s11433_s1 + $0x664] sm:$0xf]  ;;  %v6690_v21 = vld [vmem:[%s11433_s1 + $0x678] sm:$0xf0]  ;;  %3215 = vmatpush.bf16.msra.mxu3 %v6885_v46  ;;  %v6501_v1 = vor.u32 %v7191_v29, %v6498_v37 }
 0x1b3   : > { %2724 = vmatmul.bf16.gmra.mxu1 %v8597_v44  ;;  %v6693_v23 = vor.u32 %v7239_v20, %v6690_v21  ;;  %2948 = vmatpush.bf16.msra.mxu0 %v6309_v49 }
 0x1b4   : > { %2813 = vmatmul.bf16.gmra.mxu2 %v8056_v42  ;;  %5435 = vst [vmem:[%s8610_s6] sm:$0xff] %v2686_v24  ;;  %3037 = vmatpush.bf16.msra.mxu1 %v6501_v1 }
 0x1b5   : > { %2902 = vmatmul.bf16.gmra.mxu3 %v8058_v56  ;;  %3126 = vmatpush.bf16.msra.mxu2 %v6693_v23  ;;  %v319_v56 = vld [vmem:[%s7776_s14 + $0x3b0] sm:$0xff]  ;;  %v314_v23 = vld [vmem:[%s7776_s14 + $0x388] sm:$0xff] }
 0x1b7   : > { %v2774_v25 = vpop.f32.mrf.mxu2  ;;  %v2598_v24 = vpop.f32.mrf.mxu0 }
 0x1b8   : > { %v2775_v36 = vadd.f32 %v2774_v25, %v8608_v30  ;;  %v2863_v3 = vpop.f32.mrf.mxu3  ;;  %v2599_v50 = vadd.f32 %v2598_v24, %v8113_v17  ;;  %v2687_v20 = vpop.f32.mrf.mxu1  ;;  %v313_v25 = vld [vmem:[%s7776_s14 + $0x380] sm:$0xff]  ;;  %v320_v17 = vld [vmem:[%s7776_s14 + $0x3b8] sm:$0xff] }
 0x1b9   : > { %v8647_v46 = vpack.c.bf16 %v319_v56, %v313_v25  ;;  %v8650_v42 = vpack.c.bf16 %v320_v17, %v314_v23  ;;  %v325_v17 = vld [vmem:[%s7776_s14 + $0x3e0] sm:$0xff] }
 0x1ba   : > { %v8634_v21 = vadd.f32 %v2863_v3, %v2775_v36  ;;  %v2688_v31 = vadd.f32 %v2687_v20, %v2599_v50 }
 0x1bb   : > { %11775 = vst [vmem:[#allocation85_spill] sm:$0xff] %v8647_v46 }
 0x1bc   : > { %5441 = vst [vmem:[%s8610_s6 + $0x30] sm:$0xff] %v2688_v31 }
 0x1bd   : > { %11776 = vst [vmem:[#allocation86_spill] sm:$0xff] %v8650_v42 }
 0x1bf   : > { %v2776_v49 = vpop.f32.mrf.mxu2  ;;  %v2601_v24 = vpop.f32.mrf.mxu0 }
 0x1c0   : > { %v2777_v36 = vadd.f32 %v2776_v49, %v8608_v30  ;;  %v2865_v3 = vpop.f32.mrf.mxu3  ;;  %v2602_v44 = vadd.f32 %v2601_v24, %v8120_v39  ;;  %v2690_v50 = vpop.f32.mrf.mxu1  ;;  %v331_v49 = vld [vmem:[%s7776_s14 + $0x410] sm:$0xff] }
 0x1c2   : > { %v8653_v20 = vadd.f32 %v2865_v3, %v2777_v36  ;;  %v2691_v29 = vadd.f32 %v2690_v50, %v2602_v44  ;;  %2640 = vmatmul.bf16.gmra.mxu0 %v8647_v46  ;;  %v326_v36 = vld [vmem:[%s7776_s14 + $0x3e8] sm:$0xff]  ;;  %v332_v3 = vld [vmem:[%s7776_s14 + $0x418] sm:$0xff]  ;;  %v8669_v50 = vpack.c.bf16 %v331_v49, %v325_v17  ;;  %v7281_v17 = vld [vmem:[%s11433_s1 + $0x7b4] sm:$0xf] }
 0x1c3   : > { %2729 = vmatmul.bf16.gmra.mxu1 %v8650_v42 }
 0x1c4   : > { %2818 = vmatmul.bf16.gmra.mxu2 %v8104_v4  ;;  %5447 = vst [vmem:[%s8610_s6 + $0x60] sm:$0xff] %v2691_v29  ;;  %v8672_v4 = vpack.c.bf16 %v332_v3, %v326_v36  ;;  %v6858_v3 = vld [vmem:[%s11433_s1 + $0x7c8] sm:$0xf0] }
 0x1c5   : > { %2907 = vmatmul.bf16.gmra.mxu3 %v8106_v8 }
 0x1c7   : > { %v2779_v56 = vpop.f32.mrf.mxu2  ;;  %v2603_v31 = vpop.f32.mrf.mxu0 }
 0x1c8   : > { %v2780_v39 = vadd.f32 %v2779_v56, %v8608_v30  ;;  %v2868_v37 = vpop.f32.mrf.mxu3  ;;  %v2604_v1 = vadd.f32 %v2603_v31, %v8139_v38  ;;  %v2692_v44 = vpop.f32.mrf.mxu1 }
 0x1ca   : > { %v8662_v25 = vadd.f32 %v2868_v37, %v2780_v39  ;;  %v2693_v23 = vadd.f32 %v2692_v44, %v2604_v1  ;;  %v7233_v1 = vld [vmem:[%s11433_s1 + $0x634] sm:$0xf] }
 0x1cb   : > { %v7137_v44 = vld [vmem:[%s11433_s1 + $0x334] sm:$0xf] }
 0x1cc   : > { %5453 = vst [vmem:[%s8610_s6 + $0x90] sm:$0xff] %v2693_v23  ;;  %v6282_v23 = vld [vmem:[%s11433_s1 + $0x348] sm:$0xf0] }
 0x1cd   : > { %v6285_v36 = vor.u32 %v7137_v44, %v6282_v23  ;;  %v6474_v44 = vld [vmem:[%s11433_s1 + $0x4c8] sm:$0xf0] }
 0x1cf   : > { %v2781_v24 = vpop.f32.mrf.mxu2  ;;  %v2606_v8 = vpop.f32.mrf.mxu0  ;;  %2949 = vmatpush.bf16.msra.mxu0 %v6285_v36 }
 0x1d0   : > { %v2782_v29 = vadd.f32 %v2781_v24, %v8608_v30  ;;  %v2870_v56 = vpop.f32.mrf.mxu3  ;;  %v2607_v38 = vadd.f32 %v2606_v8, %v8164_v40  ;;  %v2695_v39 = vpop.f32.mrf.mxu1  ;;  %v6666_v8 = vld [vmem:[%s11433_s1 + $0x648] sm:$0xf0] }
 0x1d1   : > { %v6669_v40 = vor.u32 %v7233_v1, %v6666_v8  ;;  %v7185_v8 = vld [vmem:[%s11433_s1 + $0x4b4] sm:$0xf] }
 0x1d2   : > { %v8675_v37 = vadd.f32 %v2870_v56, %v2782_v29  ;;  %v2696_v31 = vadd.f32 %v2695_v39, %v2607_v38  ;;  %2645 = vmatmul.bf16.gmra.mxu0 %v8669_v50  ;;  %v6861_v38 = vor.u32 %v7281_v17, %v6858_v3  ;;  %v338_v17 = vld [vmem:[%s7776_s14 + $0x448] sm:$0xff] }
 0x1d3   : > { %2734 = vmatmul.bf16.gmra.mxu1 %v8672_v4  ;;  %3127 = vmatpush.bf16.msra.mxu2 %v6669_v40  ;;  %v343_v40 = vld [vmem:[%s7776_s14 + $0x470] sm:$0xff] }
 0x1d4   : > { %2823 = vmatmul.bf16.gmra.mxu2 %v8130_v7  ;;  %5459 = vst [vmem:[%s8610_s6 + $0xc0] sm:$0xff] %v2696_v31  ;;  %3216 = vmatpush.bf16.msra.mxu3 %v6861_v38 }
 0x1d5   : > { %2912 = vmatmul.bf16.gmra.mxu3 %v8132_v19  ;;  %v337_v19 = vld [vmem:[%s7776_s14 + $0x440] sm:$0xff] }
 0x1d6   : > { %v8715_v3 = vpack.c.bf16 %v343_v40, %v337_v19 }
 0x1d7   : > { %v2784_v49 = vpop.f32.mrf.mxu2  ;;  %v2608_v56 = vpop.f32.mrf.mxu0 }
 0x1d8   : > { %v2785_v24 = vadd.f32 %v2784_v49, %v8608_v30  ;;  %v2873_v29 = vpop.f32.mrf.mxu3  ;;  %v2609_v39 = vadd.f32 %v2608_v56, %v8189_v16  ;;  %v2697_v31 = vpop.f32.mrf.mxu1  ;;  %v6477_v49 = vor.u32 %v7185_v8, %v6474_v44  ;;  %v344_v16 = vld [vmem:[%s7776_s14 + $0x478] sm:$0xff] }
 0x1d9   : > { %v8718_v38 = vpack.c.bf16 %v344_v16, %v338_v17  ;;  %v349_v16 = vld [vmem:[%s7776_s14 + $0x4a0] sm:$0xff] }
 0x1da   : > { %v8702_v1 = vadd.f32 %v2873_v29, %v2785_v24  ;;  %v2698_v23 = vadd.f32 %v2697_v31, %v2609_v39  ;;  %3038 = vmatpush.bf16.msra.mxu1 %v6477_v49 }
 0x1dc   : > { %5465 = vst [vmem:[%s8610_s6 + $0xf0] sm:$0xff] %v2698_v23 }
 0x1df   : > { %v2786_v36 = vpop.f32.mrf.mxu2  ;;  %v2611_v56 = vpop.f32.mrf.mxu0 }
 0x1e0   : > { %v2787_v24 = vadd.f32 %v2786_v36, %v8608_v30  ;;  %v2875_v29 = vpop.f32.mrf.mxu3  ;;  %v2612_v7 = vadd.f32 %v2611_v56, %v8196_v61  ;;  %v2700_v39 = vpop.f32.mrf.mxu1  ;;  %v355_v36 = vld [vmem:[%s7776_s14 + $0x4d0] sm:$0xff] }
 0x1e2   : > { %v8721_v31 = vadd.f32 %v2875_v29, %v2787_v24  ;;  %v2701_v8 = vadd.f32 %v2700_v39, %v2612_v7  ;;  %2650 = vmatmul.bf16.gmra.mxu0 %v8715_v3  ;;  %v350_v24 = vld [vmem:[%s7776_s14 + $0x4a8] sm:$0xff]  ;;  %v356_v29 = vld [vmem:[%s7776_s14 + $0x4d8] sm:$0xff]  ;;  %v8737_v39 = vpack.c.bf16 %v355_v36, %v349_v16  ;;  %v7275_v16 = vld [vmem:[%s11433_s1 + $0x784] sm:$0xf] }
 0x1e3   : > { %2739 = vmatmul.bf16.gmra.mxu1 %v8718_v38 }
 0x1e4   : > { %2828 = vmatmul.bf16.gmra.mxu2 %v8180_v11  ;;  %5471 = vst [vmem:[%s8610_s6 + $0x120] sm:$0xff] %v2701_v8  ;;  %v8740_v11 = vpack.c.bf16 %v356_v29, %v350_v24  ;;  %v6834_v29 = vld [vmem:[%s11433_s1 + $0x798] sm:$0xf0] }
 0x1e5   : > { %2917 = vmatmul.bf16.gmra.mxu3 %v8182_v57 }
 0x1e6   : > { %11777 = vst [vmem:[#allocation87_spill] sm:$0xff] %v8740_v11 }
 0x1e7   : > { %v2789_v19 = vpop.f32.mrf.mxu2  ;;  %v2613_v23 = vpop.f32.mrf.mxu0 }
 0x1e8   : > { %v2790_v61 = vadd.f32 %v2789_v19, %v8608_v30  ;;  %v2878_v44 = vpop.f32.mrf.mxu3  ;;  %v2614_v49 = vadd.f32 %v2613_v23, %v8215_v58  ;;  %v2702_v7 = vpop.f32.mrf.mxu1 }
 0x1ea   : > { %v8730_v40 = vadd.f32 %v2878_v44, %v2790_v61  ;;  %v2703_v17 = vadd.f32 %v2702_v7, %v2614_v49  ;;  %v7227_v49 = vld [vmem:[%s11433_s1 + $0x604] sm:$0xf] }
 0x1eb   : > { %v7131_v7 = vld [vmem:[%s11433_s1 + $0x304] sm:$0xf] }
 0x1ec   : > { %5477 = vst [vmem:[%s8610_s6 + $0x150] sm:$0xff] %v2703_v17  ;;  %v6258_v17 = vld [vmem:[%s11433_s1 + $0x318] sm:$0xf0] }
 0x1ed   : > { %v6261_v24 = vor.u32 %v7131_v7, %v6258_v17  ;;  %v6450_v7 = vld [vmem:[%s11433_s1 + $0x498] sm:$0xf0] }
 0x1ef   : > { %v2791_v56 = vpop.f32.mrf.mxu2  ;;  %v2616_v57 = vpop.f32.mrf.mxu0  ;;  %2950 = vmatpush.bf16.msra.mxu0 %v6261_v24 }
 0x1f0   : > { %v2792_v8 = vadd.f32 %v2791_v56, %v8608_v30  ;;  %v2880_v19 = vpop.f32.mrf.mxu3  ;;  %v2617_v58 = vadd.f32 %v2616_v57, %v8240_v41  ;;  %v2705_v61 = vpop.f32.mrf.mxu1  ;;  %v6642_v57 = vld [vmem:[%s11433_s1 + $0x618] sm:$0xf0] }
 0x1f1   : > { %v6645_v41 = vor.u32 %v7227_v49, %v6642_v57  ;;  %v7179_v57 = vld [vmem:[%s11433_s1 + $0x484] sm:$0xf] }
 0x1f2   : > { %v8743_v44 = vadd.f32 %v2880_v19, %v2792_v8  ;;  %v2706_v23 = vadd.f32 %v2705_v61, %v2617_v58  ;;  %2655 = vmatmul.bf16.gmra.mxu0 %v8737_v39  ;;  %v6837_v58 = vor.u32 %v7275_v16, %v6834_v29  ;;  %v362_v16 = vld [vmem:[%s7776_s14 + $0x508] sm:$0xff] }
 0x1f3   : > { %2744 = vmatmul.bf16.gmra.mxu1 %v8740_v11  ;;  %3128 = vmatpush.bf16.msra.mxu2 %v6645_v41  ;;  %v367_v41 = vld [vmem:[%s7776_s14 + $0x530] sm:$0xff] }
 0x1f4   : > { %2833 = vmatmul.bf16.gmra.mxu2 %v8206_v22  ;;  %5483 = vst [vmem:[%s8610_s6 + $0x180] sm:$0xff] %v2706_v23  ;;  %3217 = vmatpush.bf16.msra.mxu3 %v6837_v58 }
 0x1f5   : > { %2922 = vmatmul.bf16.gmra.mxu3 %v8208_v47  ;;  %v361_v47 = vld [vmem:[%s7776_s14 + $0x500] sm:$0xff] }
 0x1f6   : > { %v8783_v29 = vpack.c.bf16 %v367_v41, %v361_v47 }
 0x1f7   : > { %v2794_v36 = vpop.f32.mrf.mxu2  ;;  %v2618_v19 = vpop.f32.mrf.mxu0 }
 0x1f8   : > { %v2795_v56 = vadd.f32 %v2794_v36, %v8608_v30  ;;  %v2883_v8 = vpop.f32.mrf.mxu3  ;;  %v2619_v61 = vadd.f32 %v2618_v19, %v8265_v35  ;;  %v2707_v23 = vpop.f32.mrf.mxu1  ;;  %v6453_v36 = vor.u32 %v7179_v57, %v6450_v7  ;;  %v368_v35 = vld [vmem:[%s7776_s14 + $0x538] sm:$0xff]  ;;  %11778 = vst [vmem:[#allocation88_spill] sm:$0xff] %v8783_v29 }
 0x1f9   : > { %v8786_v58 = vpack.c.bf16 %v368_v35, %v362_v16  ;;  %v373_v35 = vld [vmem:[%s7776_s14 + $0x560] sm:$0xff] }
 0x1fa   : > { %v8770_v49 = vadd.f32 %v2883_v8, %v2795_v56  ;;  %v2708_v17 = vadd.f32 %v2707_v23, %v2619_v61  ;;  %3039 = vmatpush.bf16.msra.mxu1 %v6453_v36 }
 0x1fb   : > { %11779 = vst [vmem:[#allocation89_spill] sm:$0xff] %v8786_v58 }
 0x1fc   : > { %5489 = vst [vmem:[%s8610_s6 + $0x1b0] sm:$0xff] %v2708_v17 }
 0x1ff   : > { %v2796_v24 = vpop.f32.mrf.mxu2  ;;  %v2621_v19 = vpop.f32.mrf.mxu0 }
 0x200   : > { %v2797_v56 = vadd.f32 %v2796_v24, %v8608_v30  ;;  %v2885_v8 = vpop.f32.mrf.mxu3  ;;  %v2622_v22 = vadd.f32 %v2621_v19, %v8272_v18  ;;  %v2710_v61 = vpop.f32.mrf.mxu1  ;;  %v379_v24 = vld [vmem:[%s7776_s14 + $0x590] sm:$0xff] }
 0x202   : > { %v8789_v23 = vadd.f32 %v2885_v8, %v2797_v56  ;;  %v2711_v57 = vadd.f32 %v2710_v61, %v2622_v22  ;;  %2660 = vmatmul.bf16.gmra.mxu0 %v8783_v29  ;;  %v374_v56 = vld [vmem:[%s7776_s14 + $0x568] sm:$0xff]  ;;  %v380_v8 = vld [vmem:[%s7776_s14 + $0x598] sm:$0xff]  ;;  %v8805_v61 = vpack.c.bf16 %v379_v24, %v373_v35  ;;  %v7081_v35 = vld [vmem:[%s11433_s1 + $0x16c] sm:$0xf0] }
 0x203   : > { %2749 = vmatmul.bf16.gmra.mxu1 %v8786_v58  ;;  %v6624_v24 = vld [vmem:[%s11433_s1 + $0x5d8] sm:$0xf] }
 0x204   : > { %2838 = vmatmul.bf16.gmra.mxu2 %v8256_v59  ;;  %5495 = vst [vmem:[%s8610_s6 + $0x1e0] sm:$0xff] %v2711_v57  ;;  %v8808_v59 = vpack.c.bf16 %v380_v8, %v374_v56 }
 0x205   : > { %2927 = vmatmul.bf16.gmra.mxu3 %v8258_v2  ;;  %11780 = vst [vmem:[#allocation90_spill] sm:$0xff] %v8805_v61 }
 0x206   : > { %11781 = vst [vmem:[#allocation91_spill] sm:$0xff] %v8808_v59 }
 0x207   : > { %v2799_v47 = vpop.f32.mrf.mxu2  ;;  %v2623_v17 = vpop.f32.mrf.mxu0 }
 0x208   : > { %v2800_v18 = vadd.f32 %v2799_v47, %v8608_v30  ;;  %v2888_v7 = vpop.f32.mrf.mxu3  ;;  %v2624_v36 = vadd.f32 %v2623_v17, %v8291_v62  ;;  %v2712_v22 = vpop.f32.mrf.mxu1 }
 0x20a   : > { %v8798_v41 = vadd.f32 %v2888_v7, %v2800_v18  ;;  %v2713_v16 = vadd.f32 %v2712_v22, %v2624_v36  ;;  %v11782_v36 = vld [vmem:[#allocation60_spill] sm:$0xff]  ;;  %v6432_v22 = vld [vmem:[%s11433_s1 + $0x458] sm:$0xf] }
 0x20c   : > { %5501 = vst [vmem:[%s8610_s6 + $0x210] sm:$0xff] %v2713_v16  ;;  %v6048_v16 = vld [vmem:[%s11433_s1 + $0x158] sm:$0xf] }
 0x20d   : > { %v6049_v8 = vor.u32 %v7081_v35, %v6048_v16  ;;  %v6240_v16 = vld [vmem:[%s11433_s1 + $0x2d8] sm:$0xf]  ;;  %v7129_v35 = vld [vmem:[%s11433_s1 + $0x2ec] sm:$0xf0] }
 0x20f   : > { %v2801_v19 = vpop.f32.mrf.mxu2  ;;  %v2626_v2 = vpop.f32.mrf.mxu0  ;;  %3299 = vmatpush.bf16.msrb.mxu0 %v6049_v8 }
 0x210   : > { %v2802_v57 = vadd.f32 %v2801_v19, %v8608_v30  ;;  %v2890_v47 = vpop.f32.mrf.mxu3  ;;  %v2627_v62 = vadd.f32 %v2626_v2, %v8316_v48  ;;  %v2715_v18 = vpop.f32.mrf.mxu1  ;;  %v7177_v2 = vld [vmem:[%s11433_s1 + $0x46c] sm:$0xf0] }
 0x211   : > { %v6433_v48 = vor.u32 %v7177_v2, %v6432_v22  ;;  %v7225_v19 = vld [vmem:[%s11433_s1 + $0x5ec] sm:$0xf0] }
 0x212   : > { %v8811_v7 = vadd.f32 %v2890_v47, %v2802_v57  ;;  %v2716_v17 = vadd.f32 %v2715_v18, %v2627_v62  ;;  %2665 = vmatmul.bf16.gmra.mxu0 %v8805_v61  ;;  %v6625_v18 = vor.u32 %v7225_v19, %v6624_v24  ;;  %v386_v24 = vld [vmem:[%s7776_s14 + $0x5c8] sm:$0xff] }
 0x213   : > { %2754 = vmatmul.bf16.gmra.mxu1 %v8808_v59  ;;  %3477 = vmatpush.bf16.msrb.mxu2 %v6433_v48  ;;  %v391_v48 = vld [vmem:[%s7776_s14 + $0x5f0] sm:$0xff] }
 0x214   : > { %2843 = vmatmul.bf16.gmra.mxu2 %v8282_v54  ;;  %5507 = vst [vmem:[%s8610_s6 + $0x240] sm:$0xff] %v2716_v17  ;;  %3566 = vmatpush.bf16.msrb.mxu3 %v6625_v18  ;;  %v385_v54 = vld [vmem:[%s7776_s14 + $0x5c0] sm:$0xff] }
 0x215   : > { %2932 = vmatmul.bf16.gmra.mxu3 %v11782_v36  ;;  %v6241_v36 = vor.u32 %v7129_v35, %v6240_v16  ;;  %v8851_v19 = vpack.c.bf16 %v391_v48, %v385_v54  ;;  %v11785_v54 = vld [vmem:[#allocation64_spill] sm:$0xff] }
 0x217   : > { %v2804_v56 = vpop.f32.mrf.mxu2  ;;  %v2628_v62 = vpop.f32.mrf.mxu0  ;;  %3388 = vmatpush.bf16.msrb.mxu1 %v6241_v36  ;;  %11783 = vst [vmem:[#allocation92_spill] sm:$0xff] %v8851_v19 }
 0x218   : > { %v2805_v57 = vadd.f32 %v2804_v56, %v8608_v30  ;;  %v2893_v47 = vpop.f32.mrf.mxu3  ;;  %v2629_v17 = vadd.f32 %v2628_v62, %v8341_v15  ;;  %v2717_v22 = vpop.f32.mrf.mxu1  ;;  %v392_v15 = vld [vmem:[%s7776_s14 + $0x5f8] sm:$0xff]  ;;  %s11261_s14 = scalar_lea.vmem (%p7557_p4), %s11435_s3, %s7325_s11  }
 0x219   : > { %v8854_v18 = vpack.c.bf16 %v392_v15, %v386_v24 }
 0x21a   : > { %v8838_v2 = vadd.f32 %v2893_v47, %v2805_v57  ;;  %v2718_v56 = vadd.f32 %v2717_v22, %v2629_v17 }
 0x21b   : > { %11784 = vst [vmem:[#allocation93_spill] sm:$0xff] %v8854_v18 }
 0x21c   : > { %5513 = vst [vmem:[%s8610_s6 + $0x270] sm:$0xff] %v2718_v56 }
 0x21f   : > { %v2806_v8 = vpop.f32.mrf.mxu2  ;;  %v2631_v62 = vpop.f32.mrf.mxu0 }
 0x220   : > { %v2807_v57 = vadd.f32 %v2806_v8, %v8608_v30  ;;  %v2895_v47 = vpop.f32.mrf.mxu3  ;;  %v2632_v59 = vadd.f32 %v2631_v62, %v8348_v14  ;;  %v2720_v17 = vpop.f32.mrf.mxu1 }
 0x222   : > { %v8857_v22 = vadd.f32 %v2895_v47, %v2807_v57  ;;  %v2721_v16 = vadd.f32 %v2720_v17, %v2632_v59  ;;  %2670 = vmatmul.bf16.gmra.mxu0 %v8851_v19 }
 0x223   : > { %2759 = vmatmul.bf16.gmra.mxu1 %v8854_v18 }
 0x224   : > { %2848 = vmatmul.bf16.gmra.mxu2 %v8332_v63  ;;  %5519 = vst [vmem:[%s8610_s6 + $0x2a0] sm:$0xff] %v2721_v16  ;;  %v11786_v63 = vld [vmem:[#allocation5_spill] sm:$0xff] }
 0x225   : > { %2937 = vmatmul.bf16.gmra.mxu3 %v11785_v54 }
 0x227   : > { %v2809_v36 = vpop.f32.mrf.mxu2  ;;  %v2633_v48 = vpop.f32.mrf.mxu0 }
 0x228   : > { %v2810_v35 = vadd.f32 %v2809_v36, %v8608_v30  ;;  %v2898_v56 = vpop.f32.mrf.mxu3  ;;  %v2634_v14 = vadd.f32 %v2633_v48, %v8359_v5  ;;  %v2722_v24 = vpop.f32.mrf.mxu1  ;;  %v11787_v5 = vld [vmem:[#allocation6_spill] sm:$0xff]  ;;  %v11788_v48 = vld [vmem:[#allocation67_spill] sm:$0xff] }
 0x22a   : > { %v8866_v15 = vadd.f32 %v2898_v56, %v2810_v35  ;;  %v2723_v59 = vadd.f32 %v2722_v24, %v2634_v14  ;;  %v11789_v35 = vld [vmem:[#allocation68_spill] sm:$0xff] }
 0x22b   : > { %v6408_v56 = vld [vmem:[%s11433_s1 + $0x428] sm:$0xf] }
 0x22c   : > { %5525 = vst [vmem:[%s8610_s6 + $0x2d0] sm:$0xff] %v2723_v59  ;;  %v6024_v24 = vld [vmem:[%s11433_s1 + $0x128] sm:$0xf]  ;;  %v7075_v59 = vld [vmem:[%s11433_s1 + $0x13c] sm:$0xf0] }
 0x22f   : > { %v2811_v8 = vpop.f32.mrf.mxu2  ;;  %v2636_v62 = vpop.f32.mrf.mxu0 }
 0x230   : > { %v2812_v57 = vadd.f32 %v2811_v8, %v8608_v30  ;;  %v2900_v47 = vpop.f32.mrf.mxu3  ;;  %v2637_v17 = vadd.f32 %v2636_v62, %v8384_v27  ;;  %v2725_v16 = vpop.f32.mrf.mxu1  ;;  %v7171_v27 = vld [vmem:[%s11433_s1 + $0x43c] sm:$0xf0]  ;;  %v6600_v8 = vld [vmem:[%s11433_s1 + $0x5a8] sm:$0xf] }
 0x231   : > { %v6409_v14 = vor.u32 %v7171_v27, %v6408_v56  ;;  %v7219_v62 = vld [vmem:[%s11433_s1 + $0x5bc] sm:$0xf0] }
 0x232   : > { %v8871_v54 = vadd.f32 %v2900_v47, %v2812_v57  ;;  %v2726_v36 = vadd.f32 %v2725_v16, %v2637_v17  ;;  %2951 = vmatmul.bf16.vlgmr.msra.gmra.mxu0 %v11786_v63  ;;  %v6025_v47 = vor.u32 %v7075_v59, %v6024_v24  ;;  %v6601_v56 = vor.u32 %v7219_v62, %v6600_v8  ;;  %v6216_v24 = vld [vmem:[%s11433_s1 + $0x2a8] sm:$0xf]  ;;  %v7123_v59 = vld [vmem:[%s11433_s1 + $0x2bc] sm:$0xf0]  ;;  %v11791_v63 = vld [vmem:[#allocation10_spill] sm:$0xff] }
 0x233   : > { %3040 = vmatmul.bf16.vlgmr.msra.gmra.mxu1 %v11787_v5  ;;  %3478 = vmatpush.bf16.msrb.mxu2 %v6409_v14  ;;  %v6217_v5 = vor.u32 %v7123_v59, %v6216_v24 }
 0x234   : > { %3129 = vmatmul.bf16.vlgmr.msra.gmra.mxu2 %v11788_v48  ;;  %5531 = vst [vmem:[%s8610_s6 + $0x300] sm:$0xff] %v2726_v36  ;;  %3300 = vmatpush.bf16.msrb.mxu0 %v6025_v47 }
 0x235   : > { %3218 = vmatmul.bf16.vlgmr.msra.gmra.mxu3 %v11789_v35  ;;  %3389 = vmatpush.bf16.msrb.mxu1 %v6217_v5  ;;  %v11793_v5 = vld [vmem:[#allocation70_spill] sm:$0xff] }
 0x236   : > { %3567 = vmatpush.bf16.msrb.mxu3 %v6601_v56  ;;  %v11790_v56 = vld [vmem:[#allocation9_spill] sm:$0xff] }
 0x237   : > { %v2814_v57 = vpop.f32.mrf.mxu2  ;;  %v2638_v36 = vpop.f32.mrf.mxu0 }
 0x238   : > { %v2815_v17 = vadd.f32 %v2814_v57, %v8608_v30  ;;  %v2903_v16 = vpop.f32.mrf.mxu3  ;;  %v2639_v27 = vadd.f32 %v2638_v36, %v8401_v9  ;;  %v2727_v35 = vpop.f32.mrf.mxu1 }
 0x23a   : > { %v8898_v48 = vadd.f32 %v2903_v16, %v2815_v17  ;;  %v2728_v57 = vadd.f32 %v2727_v35, %v2639_v27  ;;  %v11792_v35 = vld [vmem:[#allocation69_spill] sm:$0xff] }
 0x23c   : > { %5537 = vst [vmem:[%s8610_s6 + $0x330] sm:$0xff] %v2728_v57 }
 0x23f   : > { %v2816_v14 = vpop.f32.mrf.mxu2  ;;  %v2641_v47 = vpop.f32.mrf.mxu0 }
 0x240   : > { %v2817_v9 = vadd.f32 %v2816_v14, %v8608_v30  ;;  %v2905_v8 = vpop.f32.mrf.mxu3  ;;  %v2642_v62 = vadd.f32 %v2641_v47, %v8408_v60  ;;  %v2730_v17 = vpop.f32.mrf.mxu1 }
 0x242   : > { %v8909_v16 = vadd.f32 %v2905_v8, %v2817_v9  ;;  %v2731_v36 = vadd.f32 %v2730_v17, %v2642_v62  ;;  %2956 = vmatmul.bf16.gmra.mxu0 %v11790_v56  ;;  %v11794_v56 = vld [vmem:[#allocation13_spill] sm:$0xff] }
 0x243   : > { %3045 = vmatmul.bf16.gmra.mxu1 %v11791_v63 }
 0x244   : > { %3134 = vmatmul.bf16.gmra.mxu2 %v11792_v35  ;;  %5543 = vst [vmem:[%s8610_s6 + $0x360] sm:$0xff] %v2731_v36 }
 0x245   : > { %3223 = vmatmul.bf16.gmra.mxu3 %v11793_v5 }
 0x247   : > { %v2819_v27 = vpop.f32.mrf.mxu2  ;;  %v2643_v57 = vpop.f32.mrf.mxu0 }
 0x248   : > { %v2820_v24 = vadd.f32 %v2819_v27, %v8608_v30  ;;  %v2908_v59 = vpop.f32.mrf.mxu3  ;;  %v2644_v60 = vadd.f32 %v2643_v57, %v8419_v10  ;;  %v2732_v14 = vpop.f32.mrf.mxu1  ;;  %v11795_v10 = vld [vmem:[#allocation14_spill] sm:$0xff]  ;;  %v11796_v57 = vld [vmem:[#allocation71_spill] sm:$0xff] }
 0x24a   : > { %v8918_v9 = vadd.f32 %v2908_v59, %v2820_v24  ;;  %v2733_v8 = vadd.f32 %v2732_v14, %v2644_v60  ;;  %v11797_v24 = vld [vmem:[#allocation72_spill] sm:$0xff]  ;;  %v6384_v59 = vld [vmem:[%s11433_s1 + $0x3f8] sm:$0xf] }
 0x24b   : > { %v6576_v14 = vld [vmem:[%s11433_s1 + $0x578] sm:$0xf] }
 0x24c   : > { %5549 = vst [vmem:[%s8610_s6 + $0x390] sm:$0xff] %v2733_v8 }
 0x24f   : > { %v2821_v47 = vpop.f32.mrf.mxu2  ;;  %v2646_v36 = vpop.f32.mrf.mxu0 }
 0x250   : > { %v2822_v62 = vadd.f32 %v2821_v47, %v8608_v30  ;;  %v2910_v17 = vpop.f32.mrf.mxu3  ;;  %v2647_v5 = vadd.f32 %v2646_v36, %v8444_v13  ;;  %v2735_v35 = vpop.f32.mrf.mxu1  ;;  %v7165_v13 = vld [vmem:[%s11433_s1 + $0x40c] sm:$0xf0] }
 0x251   : > { %v6385_v60 = vor.u32 %v7165_v13, %v6384_v59 }
 0x252   : > { %v8923_v63 = vadd.f32 %v2910_v17, %v2822_v62  ;;  %v2736_v27 = vadd.f32 %v2735_v35, %v2647_v5  ;;  %2961 = vmatmul.bf16.gmra.mxu0 %v11794_v56  ;;  %v6000_v35 = vld [vmem:[%s11433_s1 + $0xf8] sm:$0xf]  ;;  %v7069_v5 = vld [vmem:[%s11433_s1 + $0x10c] sm:$0xf0] }
 0x253   : > { %3050 = vmatmul.bf16.gmra.mxu1 %v11795_v10  ;;  %v6001_v47 = vor.u32 %v7069_v5, %v6000_v35  ;;  %v7213_v62 = vld [vmem:[%s11433_s1 + $0x58c] sm:$0xf0]  ;;  %3479 = vmatpush.bf16.msrb.mxu2 %v6385_v60  ;;  %v6192_v35 = vld [vmem:[%s11433_s1 + $0x278] sm:$0xf] }
 0x254   : > { %3139 = vmatmul.bf16.gmra.mxu2 %v11796_v57  ;;  %5555 = vst [vmem:[%s8610_s6 + $0x3c0] sm:$0xff] %v2736_v27  ;;  %v6577_v59 = vor.u32 %v7213_v62, %v6576_v14  ;;  %v7117_v5 = vld [vmem:[%s11433_s1 + $0x28c] sm:$0xf0]  ;;  %v11799_v56 = vld [vmem:[#allocation18_spill] sm:$0xff] }
 0x255   : > { %3228 = vmatmul.bf16.gmra.mxu3 %v11797_v24  ;;  %3301 = vmatpush.bf16.msrb.mxu0 %v6001_v47  ;;  %v6193_v10 = vor.u32 %v7117_v5, %v6192_v35 }
 0x256   : > { %3568 = vmatpush.bf16.msrb.mxu3 %v6577_v59  ;;  %v11798_v59 = vld [vmem:[#allocation17_spill] sm:$0xff] }
 0x257   : > { %v2824_v8 = vpop.f32.mrf.mxu2  ;;  %v2648_v27 = vpop.f32.mrf.mxu0  ;;  %3390 = vmatpush.bf16.msrb.mxu1 %v6193_v10  ;;  %v11801_v10 = vld [vmem:[#allocation74_spill] sm:$0xff] }
 0x258   : > { %v2825_v17 = vadd.f32 %v2824_v8, %v8608_v30  ;;  %v2913_v36 = vpop.f32.mrf.mxu3  ;;  %v2649_v13 = vadd.f32 %v2648_v27, %v8461_v55  ;;  %v2737_v24 = vpop.f32.mrf.mxu1 }
 0x25a   : > { %v8950_v57 = vadd.f32 %v2913_v36, %v2825_v17  ;;  %v2738_v8 = vadd.f32 %v2737_v24, %v2649_v13  ;;  %v11800_v24 = vld [vmem:[#allocation73_spill] sm:$0xff] }
 0x25c   : > { %5561 = vst [vmem:[%s8610_s6 + $0x3f0] sm:$0xff] %v2738_v8 }
 0x25f   : > { %v2826_v60 = vpop.f32.mrf.mxu2  ;;  %v2651_v47 = vpop.f32.mrf.mxu0 }
 0x260   : > { %v2827_v55 = vadd.f32 %v2826_v60, %v8608_v30  ;;  %v2915_v14 = vpop.f32.mrf.mxu3  ;;  %v2652_v62 = vadd.f32 %v2651_v47, %v8468_v12  ;;  %v2740_v17 = vpop.f32.mrf.mxu1 }
 0x262   : > { %v8961_v36 = vadd.f32 %v2915_v14, %v2827_v55  ;;  %v2741_v27 = vadd.f32 %v2740_v17, %v2652_v62  ;;  %2966 = vmatmul.bf16.gmra.mxu0 %v11798_v59  ;;  %v11802_v59 = vld [vmem:[#allocation21_spill] sm:$0xff] }
 0x263   : > { %3055 = vmatmul.bf16.gmra.mxu1 %v11799_v56 }
 0x264   : > { %3144 = vmatmul.bf16.gmra.mxu2 %v11800_v24  ;;  %5567 = vst [vmem:[%s8610_s6 + $0x420] sm:$0xff] %v2741_v27 }
 0x265   : > { %3233 = vmatmul.bf16.gmra.mxu3 %v11801_v10 }
 0x267   : > { %v2829_v13 = vpop.f32.mrf.mxu2  ;;  %v2653_v8 = vpop.f32.mrf.mxu0 }
 0x268   : > { %v2830_v35 = vadd.f32 %v2829_v13, %v8608_v30  ;;  %v2918_v5 = vpop.f32.mrf.mxu3  ;;  %v2654_v12 = vadd.f32 %v2653_v8, %v8479_v34  ;;  %v2742_v60 = vpop.f32.mrf.mxu1  ;;  %v11803_v34 = vld [vmem:[#allocation22_spill] sm:$0xff]  ;;  %v11804_v8 = vld [vmem:[#allocation75_spill] sm:$0xff] }
 0x26a   : > { %v8970_v55 = vadd.f32 %v2918_v5, %v2830_v35  ;;  %v2743_v14 = vadd.f32 %v2742_v60, %v2654_v12  ;;  %v11805_v35 = vld [vmem:[#allocation76_spill] sm:$0xff] }
 0x26b   : > { %v6360_v5 = vld [vmem:[%s11433_s1 + $0x3c8] sm:$0xf] }
 0x26c   : > { %5573 = vst [vmem:[%s8610_s6 + $0x450] sm:$0xff] %v2743_v14  ;;  %v6552_v60 = vld [vmem:[%s11433_s1 + $0x548] sm:$0xf] }
 0x26f   : > { %v2831_v47 = vpop.f32.mrf.mxu2  ;;  %v2656_v27 = vpop.f32.mrf.mxu0 }
 0x270   : > { %v2832_v62 = vadd.f32 %v2831_v47, %v8608_v30  ;;  %v2920_v17 = vpop.f32.mrf.mxu3  ;;  %v2657_v10 = vadd.f32 %v2656_v27, %v8504_v52  ;;  %v2745_v24 = vpop.f32.mrf.mxu1  ;;  %v7159_v52 = vld [vmem:[%s11433_s1 + $0x3dc] sm:$0xf0] }
 0x271   : > { %v6361_v12 = vor.u32 %v7159_v52, %v6360_v5 }
 0x272   : > { %v8975_v56 = vadd.f32 %v2920_v17, %v2832_v62  ;;  %v2746_v13 = vadd.f32 %v2745_v24, %v2657_v10  ;;  %2971 = vmatmul.bf16.gmra.mxu0 %v11802_v59  ;;  %v5976_v24 = vld [vmem:[%s11433_s1 + $0xc8] sm:$0xf]  ;;  %v7063_v10 = vld [vmem:[%s11433_s1 + $0xdc] sm:$0xf0]  ;;  %v11807_v59 = vld [vmem:[#allocation26_spill] sm:$0xff] }
 0x273   : > { %3060 = vmatmul.bf16.gmra.mxu1 %v11803_v34  ;;  %v5977_v47 = vor.u32 %v7063_v10, %v5976_v24  ;;  %v7207_v62 = vld [vmem:[%s11433_s1 + $0x55c] sm:$0xf0]  ;;  %3480 = vmatpush.bf16.msrb.mxu2 %v6361_v12  ;;  %v6168_v24 = vld [vmem:[%s11433_s1 + $0x248] sm:$0xf] }
 0x274   : > { %3149 = vmatmul.bf16.gmra.mxu2 %v11804_v8  ;;  %5579 = vst [vmem:[%s8610_s6 + $0x480] sm:$0xff] %v2746_v13  ;;  %v6553_v5 = vor.u32 %v7207_v62, %v6552_v60  ;;  %v7111_v10 = vld [vmem:[%s11433_s1 + $0x25c] sm:$0xf0] }
 0x275   : > { %3238 = vmatmul.bf16.gmra.mxu3 %v11805_v35  ;;  %3302 = vmatpush.bf16.msrb.mxu0 %v5977_v47  ;;  %v6169_v34 = vor.u32 %v7111_v10, %v6168_v24 }
 0x276   : > { %3569 = vmatpush.bf16.msrb.mxu3 %v6553_v5  ;;  %v11806_v5 = vld [vmem:[#allocation25_spill] sm:$0xff] }
 0x277   : > { %v2834_v14 = vpop.f32.mrf.mxu2  ;;  %v2658_v13 = vpop.f32.mrf.mxu0  ;;  %3391 = vmatpush.bf16.msrb.mxu1 %v6169_v34  ;;  %v11809_v34 = vld [vmem:[#allocation78_spill] sm:$0xff] }
 0x278   : > { %v2835_v17 = vadd.f32 %v2834_v14, %v8608_v30  ;;  %v2923_v27 = vpop.f32.mrf.mxu3  ;;  %v2659_v52 = vadd.f32 %v2658_v13, %v8521_v53  ;;  %v2747_v35 = vpop.f32.mrf.mxu1 }
 0x27a   : > { %v9002_v8 = vadd.f32 %v2923_v27, %v2835_v17  ;;  %v2748_v14 = vadd.f32 %v2747_v35, %v2659_v52  ;;  %v11808_v35 = vld [vmem:[#allocation77_spill] sm:$0xff] }
 0x27c   : > { %5585 = vst [vmem:[%s8610_s6 + $0x4b0] sm:$0xff] %v2748_v14 }
 0x27f   : > { %v2836_v12 = vpop.f32.mrf.mxu2  ;;  %v2661_v47 = vpop.f32.mrf.mxu0 }
 0x280   : > { %v2837_v53 = vadd.f32 %v2836_v12, %v8608_v30  ;;  %v2925_v60 = vpop.f32.mrf.mxu3  ;;  %v2662_v62 = vadd.f32 %v2661_v47, %v8528_v51  ;;  %v2750_v17 = vpop.f32.mrf.mxu1 }
 0x282   : > { %v9013_v27 = vadd.f32 %v2925_v60, %v2837_v53  ;;  %v2751_v13 = vadd.f32 %v2750_v17, %v2662_v62  ;;  %2976 = vmatmul.bf16.gmra.mxu0 %v11806_v5  ;;  %v11810_v5 = vld [vmem:[#allocation29_spill] sm:$0xff] }
 0x283   : > { %3065 = vmatmul.bf16.gmra.mxu1 %v11807_v59 }
 0x284   : > { %3154 = vmatmul.bf16.gmra.mxu2 %v11808_v35  ;;  %5591 = vst [vmem:[%s8610_s6 + $0x4e0] sm:$0xff] %v2751_v13 }
 0x285   : > { %3243 = vmatmul.bf16.gmra.mxu3 %v11809_v34 }
 0x287   : > { %v2839_v52 = vpop.f32.mrf.mxu2  ;;  %v2663_v14 = vpop.f32.mrf.mxu0 }
 0x288   : > { %v2840_v24 = vadd.f32 %v2839_v52, %v8608_v30  ;;  %v2928_v10 = vpop.f32.mrf.mxu3  ;;  %v2664_v51 = vadd.f32 %v2663_v14, %v8539_v28  ;;  %v2752_v12 = vpop.f32.mrf.mxu1  ;;  %v11811_v28 = vld [vmem:[#allocation30_spill] sm:$0xff]  ;;  %v11812_v14 = vld [vmem:[#allocation79_spill] sm:$0xff] }
 0x28a   : > { %v9022_v53 = vadd.f32 %v2928_v10, %v2840_v24  ;;  %v2753_v60 = vadd.f32 %v2752_v12, %v2664_v51  ;;  %v11813_v24 = vld [vmem:[#allocation80_spill] sm:$0xff]  ;;  %v6336_v10 = vld [vmem:[%s11433_s1 + $0x398] sm:$0xf] }
 0x28b   : > { %v6528_v12 = vld [vmem:[%s11433_s1 + $0x518] sm:$0xf] }
 0x28c   : > { %5597 = vst [vmem:[%s8610_s6 + $0x510] sm:$0xff] %v2753_v60 }
 0x28f   : > { %v2841_v47 = vpop.f32.mrf.mxu2  ;;  %v2666_v13 = vpop.f32.mrf.mxu0 }
 0x290   : > { %v2842_v62 = vadd.f32 %v2841_v47, %v8608_v30  ;;  %v2930_v17 = vpop.f32.mrf.mxu3  ;;  %v2667_v34 = vadd.f32 %v2666_v13, %v8564_v33  ;;  %v2755_v35 = vpop.f32.mrf.mxu1  ;;  %v7153_v33 = vld [vmem:[%s11433_s1 + $0x3ac] sm:$0xf0] }
 0x291   : > { %v6337_v51 = vor.u32 %v7153_v33, %v6336_v10 }
 0x292   : > { %v9027_v59 = vadd.f32 %v2930_v17, %v2842_v62  ;;  %v2756_v52 = vadd.f32 %v2755_v35, %v2667_v34  ;;  %2981 = vmatmul.bf16.gmra.mxu0 %v11810_v5  ;;  %v5952_v35 = vld [vmem:[%s11433_s1 + $0x98] sm:$0xf]  ;;  %v7057_v34 = vld [vmem:[%s11433_s1 + $0xac] sm:$0xf0] }
 0x293   : > { %3070 = vmatmul.bf16.gmra.mxu1 %v11811_v28  ;;  %v5953_v47 = vor.u32 %v7057_v34, %v5952_v35  ;;  %v7201_v62 = vld [vmem:[%s11433_s1 + $0x52c] sm:$0xf0]  ;;  %3481 = vmatpush.bf16.msrb.mxu2 %v6337_v51  ;;  %v6144_v35 = vld [vmem:[%s11433_s1 + $0x218] sm:$0xf] }
 0x294   : > { %3159 = vmatmul.bf16.gmra.mxu2 %v11812_v14  ;;  %5603 = vst [vmem:[%s8610_s6 + $0x540] sm:$0xff] %v2756_v52  ;;  %v6529_v10 = vor.u32 %v7201_v62, %v6528_v12  ;;  %v7105_v34 = vld [vmem:[%s11433_s1 + $0x22c] sm:$0xf0] }
 0x295   : > { %3248 = vmatmul.bf16.gmra.mxu3 %v11813_v24  ;;  %3303 = vmatpush.bf16.msrb.mxu0 %v5953_v47  ;;  %v6145_v51 = vor.u32 %v7105_v34, %v6144_v35 }
 0x296   : > { %3570 = vmatpush.bf16.msrb.mxu3 %v6529_v10  ;;  %v11815_v10 = vld [vmem:[#allocation34_spill] sm:$0xff] }
 0x297   : > { %v2844_v60 = vpop.f32.mrf.mxu2  ;;  %v2668_v52 = vpop.f32.mrf.mxu0  ;;  %3392 = vmatpush.bf16.msrb.mxu1 %v6145_v51 }
 0x298   : > { %v2845_v17 = vadd.f32 %v2844_v60, %v8608_v30  ;;  %v2933_v13 = vpop.f32.mrf.mxu3  ;;  %v2669_v33 = vadd.f32 %v2668_v52, %v8581_v26  ;;  %v2757_v24 = vpop.f32.mrf.mxu1  ;;  %v11814_v52 = vld [vmem:[#allocation33_spill] sm:$0xff] }
 0x29a   : > { %v9054_v14 = vadd.f32 %v2933_v13, %v2845_v17  ;;  %v2758_v28 = vadd.f32 %v2757_v24, %v2669_v33 }
 0x29c   : > { %5609 = vst [vmem:[%s8610_s6 + $0x570] sm:$0xff] %v2758_v28 }
 0x29f   : > { %v2846_v12 = vpop.f32.mrf.mxu2  ;;  %v2671_v47 = vpop.f32.mrf.mxu0 }
 0x2a0   : > { %v2847_v26 = vadd.f32 %v2846_v12, %v8608_v30  ;;  %v2935_v60 = vpop.f32.mrf.mxu3  ;;  %v2672_v62 = vadd.f32 %v2671_v47, %v8588_v32  ;;  %v2760_v24 = vpop.f32.mrf.mxu1 }
 0x2a2   : > { %v9065_v17 = vadd.f32 %v2935_v60, %v2847_v26  ;;  %v2761_v13 = vadd.f32 %v2760_v24, %v2672_v62  ;;  %2986 = vmatmul.bf16.gmra.mxu0 %v11814_v52 }
 0x2a3   : > { %3075 = vmatmul.bf16.gmra.mxu1 %v11815_v10  ;;  %v11817_v10 = vld [vmem:[#allocation38_spill] sm:$0xff] }
 0x2a4   : > { %3164 = vmatmul.bf16.gmra.mxu2 %v8576_v43  ;;  %5615 = vst [vmem:[%s8610_s6 + $0x5a0] sm:$0xff] %v2761_v13 }
 0x2a5   : > { %3253 = vmatmul.bf16.gmra.mxu3 %v8578_v45 }
 0x2a7   : > { %v2849_v28 = vpop.f32.mrf.mxu2  ;;  %v2673_v34 = vpop.f32.mrf.mxu0 }
 0x2a8   : > { %v2850_v33 = vadd.f32 %v2849_v28, %v8608_v30  ;;  %v2938_v35 = vpop.f32.mrf.mxu3  ;;  %v2674_v32 = vadd.f32 %v2673_v34, %v8600_v0  ;;  %v2762_v51 = vpop.f32.mrf.mxu1  ;;  %v11816_v28 = vld [vmem:[#allocation37_spill] sm:$0xff]  ;;  %v11818_v0 = vld [vmem:[#allocation84_spill] sm:$0xff] }
 0x2aa   : > { %v9074_v12 = vadd.f32 %v2938_v35, %v2850_v33  ;;  %v2763_v26 = vadd.f32 %v2762_v51, %v2674_v32  ;;  %v6312_v33 = vld [vmem:[%s11433_s1 + $0x368] sm:$0xf]  ;;  %v7051_v32 = vld [vmem:[%s11433_s1 + $0x7c] sm:$0xf0] }
 0x2ab   : > { %v6504_v51 = vld [vmem:[%s11433_s1 + $0x4e8] sm:$0xf] }
 0x2ac   : > { %5621 = vst [vmem:[%s8610_s6 + $0x5d0] sm:$0xff] %v2763_v26  ;;  %v7195_v26 = vld [vmem:[%s11433_s1 + $0x4fc] sm:$0xf0] }
 0x2af   : > { %v2851_v60 = vpop.f32.mrf.mxu2  ;;  %v2952_v24 = vpop.f32.mrf.mxu0 }
 0x2b0   : > { %v2852_v47 = vadd.f32 %v2851_v60, %v8608_v30  ;;  %v2940_v62 = vpop.f32.mrf.mxu3  ;;  %v3041_v13 = vpop.f32.mrf.mxu1  ;;  %v2953_v45 = vadd.f32 %v2952_v24, %v8634_v21  ;;  %v7147_v30 = vld [vmem:[%s11433_s1 + $0x37c] sm:$0xf0]  ;;  %v5928_v21 = vld [vmem:[%s11433_s1 + $0x68] sm:$0xf] }
 0x2b1   : > { %v6313_v34 = vor.u32 %v7147_v30, %v6312_v33 }
 0x2b2   : > { %v9078_v43 = vadd.f32 %v2940_v62, %v2852_v47  ;;  %2991 = vmatmul.bf16.gmra.mxu0 %v11816_v28  ;;  %v3042_v35 = vadd.f32 %v3041_v13, %v2953_v45  ;;  %v5929_v47 = vor.u32 %v7051_v32, %v5928_v21  ;;  %v6505_v62 = vor.u32 %v7195_v26, %v6504_v51  ;;  %v7099_v21 = vld [vmem:[%s11433_s1 + $0x1fc] sm:$0xf0] }
 0x2b3   : > { %3080 = vmatmul.bf16.gmra.mxu1 %v11817_v10  ;;  %3482 = vmatpush.bf16.msrb.mxu2 %v6313_v34 }
 0x2b4   : > { %3169 = vmatmul.bf16.gmra.mxu2 %v8595_v6  ;;  %3304 = vmatpush.bf16.msrb.mxu0 %v5929_v47  ;;  %v6120_v6 = vld [vmem:[%s11433_s1 + $0x1e8] sm:$0xf] }
 0x2b5   : > { %3258 = vmatmul.bf16.gmra.mxu3 %v11818_v0 }
 0x2b6   : > { %3571 = vmatpush.bf16.msrb.mxu3 %v6505_v62  ;;  %v11819_v62 = vld [vmem:[#allocation41_spill] sm:$0xff] }
 0x2b7   : > { %v3130_v60 = vpop.f32.mrf.mxu2  ;;  %v2954_v45 = vpop.f32.mrf.mxu0 }
 0x2b8   : > { %v3131_v24 = vadd.f32 %v3130_v60, %v3042_v35  ;;  %v3219_v0 = vpop.f32.mrf.mxu3  ;;  %v3043_v13 = vpop.f32.mrf.mxu1  ;;  %v2955_v30 = vadd.f32 %v2954_v45, %v8653_v20  ;;  %v6121_v35 = vor.u32 %v7099_v21, %v6120_v6 }
 0x2ba   : > { %v3220_v33 = vadd.f32 %v3219_v0, %v3131_v24  ;;  %v3044_v32 = vadd.f32 %v3043_v13, %v2955_v30  ;;  %3393 = vmatpush.bf16.msrb.mxu1 %v6121_v35  ;;  %v11820_v24 = vld [vmem:[#allocation42_spill] sm:$0xff] }
 0x2bc   : > { %5436 = vst [vmem:[%s8610_s6 + $0x8] sm:$0xff] %v3220_v33 }
 0x2bf   : > { %v3132_v51 = vpop.f32.mrf.mxu2  ;;  %v2957_v60 = vpop.f32.mrf.mxu0 }
 0x2c0   : > { %v3133_v34 = vadd.f32 %v3132_v51, %v3044_v32  ;;  %v3221_v26 = vpop.f32.mrf.mxu3  ;;  %v3046_v0 = vpop.f32.mrf.mxu1  ;;  %v2958_v20 = vadd.f32 %v2957_v60, %v8662_v25 }
 0x2c2   : > { %v3222_v47 = vadd.f32 %v3221_v26, %v3133_v34  ;;  %2996 = vmatmul.bf16.gmra.mxu0 %v11819_v62  ;;  %v3047_v6 = vadd.f32 %v3046_v0, %v2958_v20  ;;  %v11821_v0 = vld [vmem:[#allocation45_spill] sm:$0xff]  ;;  %v11822_v20 = vld [vmem:[#allocation46_spill] sm:$0xff] }
 0x2c3   : > { %3085 = vmatmul.bf16.gmra.mxu1 %v11820_v24 }
 0x2c4   : > { %5442 = vst [vmem:[%s8610_s6 + $0x38] sm:$0xff] %v3222_v47  ;;  %3174 = vmatmul.bf16.gmra.mxu2 %v8647_v46 }
 0x2c5   : > { %3263 = vmatmul.bf16.gmra.mxu3 %v8650_v42 }
 0x2c7   : > { %v3135_v45 = vpop.f32.mrf.mxu2  ;;  %v2959_v30 = vpop.f32.mrf.mxu0 }
 0x2c8   : > { %v3136_v13 = vadd.f32 %v3135_v45, %v3047_v6  ;;  %v3224_v33 = vpop.f32.mrf.mxu3  ;;  %v3048_v21 = vpop.f32.mrf.mxu1  ;;  %v2960_v32 = vadd.f32 %v2959_v30, %v8675_v37  ;;  %v6288_v37 = vld [vmem:[%s11433_s1 + $0x338] sm:$0xf]  ;;  %v7141_v6 = vld [vmem:[%s11433_s1 + $0x34c] sm:$0xf0] }
 0x2c9   : > { %v7189_v30 = vld [vmem:[%s11433_s1 + $0x4cc] sm:$0xf0] }
 0x2ca   : > { %v3225_v35 = vadd.f32 %v3224_v33, %v3136_v13  ;;  %v3049_v25 = vadd.f32 %v3048_v21, %v2960_v32  ;;  %v7045_v13 = vld [vmem:[%s11433_s1 + $0x4c] sm:$0xf0]  ;;  %v6480_v33 = vld [vmem:[%s11433_s1 + $0x4b8] sm:$0xf] }
 0x2cb   : > { %v6481_v32 = vor.u32 %v7189_v30, %v6480_v33 }
 0x2cc   : > { %5448 = vst [vmem:[%s8610_s6 + $0x68] sm:$0xff] %v3225_v35 }
 0x2cd   : > { %3572 = vmatpush.bf16.msrb.mxu3 %v6481_v32  ;;  %v11824_v32 = vld [vmem:[#allocation50_spill] sm:$0xff] }
 0x2cf   : > { %v3137_v51 = vpop.f32.mrf.mxu2  ;;  %v2962_v60 = vpop.f32.mrf.mxu0 }
 0x2d0   : > { %v3138_v34 = vadd.f32 %v3137_v51, %v3049_v25  ;;  %v3226_v26 = vpop.f32.mrf.mxu3  ;;  %v3051_v47 = vpop.f32.mrf.mxu1  ;;  %v2963_v42 = vadd.f32 %v2962_v60, %v8702_v1  ;;  %v5904_v1 = vld [vmem:[%s11433_s1 + $0x38] sm:$0xf] }
 0x2d1   : > { %v5905_v35 = vor.u32 %v7045_v13, %v5904_v1 }
 0x2d2   : > { %v3227_v46 = vadd.f32 %v3226_v26, %v3138_v34  ;;  %3001 = vmatmul.bf16.gmra.mxu0 %v11821_v0  ;;  %v3052_v45 = vadd.f32 %v3051_v47, %v2963_v42  ;;  %v6096_v47 = vld [vmem:[%s11433_s1 + $0x1b8] sm:$0xf] }
 0x2d3   : > { %3090 = vmatmul.bf16.gmra.mxu1 %v11822_v20  ;;  %3305 = vmatpush.bf16.msrb.mxu0 %v5905_v35  ;;  %v11823_v35 = vld [vmem:[#allocation49_spill] sm:$0xff] }
 0x2d4   : > { %5454 = vst [vmem:[%s8610_s6 + $0x98] sm:$0xff] %v3227_v46  ;;  %3179 = vmatmul.bf16.gmra.mxu2 %v8669_v50  ;;  %v6289_v46 = vor.u32 %v7141_v6, %v6288_v37  ;;  %v7093_v37 = vld [vmem:[%s11433_s1 + $0x1cc] sm:$0xf0] }
 0x2d5   : > { %3268 = vmatmul.bf16.gmra.mxu3 %v8672_v4  ;;  %v6097_v6 = vor.u32 %v7093_v37, %v6096_v47 }
 0x2d6   : > { %3483 = vmatpush.bf16.msrb.mxu2 %v6289_v46 }
 0x2d7   : > { %v3140_v21 = vpop.f32.mrf.mxu2  ;;  %v2964_v42 = vpop.f32.mrf.mxu0  ;;  %3394 = vmatpush.bf16.msrb.mxu1 %v6097_v6 }
 0x2d8   : > { %v3141_v25 = vadd.f32 %v3140_v21, %v3052_v45  ;;  %v3229_v51 = vpop.f32.mrf.mxu3  ;;  %v3053_v34 = vpop.f32.mrf.mxu1  ;;  %v2965_v60 = vadd.f32 %v2964_v42, %v8721_v31 }
 0x2da   : > { %v3230_v26 = vadd.f32 %v3229_v51, %v3141_v25  ;;  %v3054_v1 = vadd.f32 %v3053_v34, %v2965_v60 }
 0x2dc   : > { %5460 = vst [vmem:[%s8610_s6 + $0xc8] sm:$0xff] %v3230_v26 }
 0x2df   : > { %v3142_v45 = vpop.f32.mrf.mxu2  ;;  %v2967_v33 = vpop.f32.mrf.mxu0 }
 0x2e0   : > { %v3143_v46 = vadd.f32 %v3142_v45, %v3054_v1  ;;  %v3231_v13 = vpop.f32.mrf.mxu3  ;;  %v3056_v30 = vpop.f32.mrf.mxu1  ;;  %v2968_v31 = vadd.f32 %v2967_v33, %v8730_v40 }
 0x2e2   : > { %v3232_v21 = vadd.f32 %v3231_v13, %v3143_v46  ;;  %3006 = vmatmul.bf16.gmra.mxu0 %v11823_v35  ;;  %v3057_v25 = vadd.f32 %v3056_v30, %v2968_v31  ;;  %v11825_v30 = vld [vmem:[#allocation53_spill] sm:$0xff]  ;;  %v11826_v31 = vld [vmem:[#allocation54_spill] sm:$0xff] }
 0x2e3   : > { %3095 = vmatmul.bf16.gmra.mxu1 %v11824_v32 }
 0x2e4   : > { %5466 = vst [vmem:[%s8610_s6 + $0xf8] sm:$0xff] %v3232_v21  ;;  %3184 = vmatmul.bf16.gmra.mxu2 %v8715_v3 }
 0x2e5   : > { %3273 = vmatmul.bf16.gmra.mxu3 %v8718_v38 }
 0x2e7   : > { %v3145_v51 = vpop.f32.mrf.mxu2  ;;  %v2969_v26 = vpop.f32.mrf.mxu0 }
 0x2e8   : > { %v3146_v42 = vadd.f32 %v3145_v51, %v3057_v25  ;;  %v3234_v34 = vpop.f32.mrf.mxu3  ;;  %v3058_v60 = vpop.f32.mrf.mxu1  ;;  %v2970_v37 = vadd.f32 %v2969_v26, %v8743_v44  ;;  %v6264_v44 = vld [vmem:[%s11433_s1 + $0x308] sm:$0xf]  ;;  %v7135_v25 = vld [vmem:[%s11433_s1 + $0x31c] sm:$0xf0] }
 0x2e9   : > { %v6456_v26 = vld [vmem:[%s11433_s1 + $0x488] sm:$0xf] }
 0x2ea   : > { %v3235_v47 = vadd.f32 %v3234_v34, %v3146_v42  ;;  %v3059_v40 = vadd.f32 %v3058_v60, %v2970_v37  ;;  %v6265_v42 = vor.u32 %v7135_v25, %v6264_v44  ;;  %v7039_v34 = vld [vmem:[%s11433_s1 + $0x1c] sm:$0xf0] }
 0x2eb   : > { %v7183_v60 = vld [vmem:[%s11433_s1 + $0x49c] sm:$0xf0] }
 0x2ec   : > { %5472 = vst [vmem:[%s8610_s6 + $0x128] sm:$0xff] %v3235_v47  ;;  %3484 = vmatpush.bf16.msrb.mxu2 %v6265_v42  ;;  %v7087_v44 = vld [vmem:[%s11433_s1 + $0x19c] sm:$0xf0] }
 0x2ef   : > { %v3147_v6 = vpop.f32.mrf.mxu2  ;;  %v2972_v46 = vpop.f32.mrf.mxu0 }
 0x2f0   : > { %v3148_v1 = vadd.f32 %v3147_v6, %v3059_v40  ;;  %v3236_v45 = vpop.f32.mrf.mxu3  ;;  %v3061_v13 = vpop.f32.mrf.mxu1  ;;  %v2973_v21 = vadd.f32 %v2972_v46, %v8770_v49  ;;  %v5880_v49 = vld [vmem:[%s11433_s1 + $0x8] sm:$0xf]  ;;  %v6457_v40 = vor.u32 %v7183_v60, %v6456_v26 }
 0x2f1   : > { %v5881_v37 = vor.u32 %v7039_v34, %v5880_v49 }
 0x2f2   : > { %v3237_v33 = vadd.f32 %v3236_v45, %v3148_v1  ;;  %3011 = vmatmul.bf16.gmra.mxu0 %v11825_v30  ;;  %v3062_v51 = vadd.f32 %v3061_v13, %v2973_v21  ;;  %3573 = vmatpush.bf16.msrb.mxu3 %v6457_v40  ;;  %v6072_v21 = vld [vmem:[%s11433_s1 + $0x188] sm:$0xf]  ;;  %v11828_v40 = vld [vmem:[#allocation58_spill] sm:$0xff] }
 0x2f3   : > { %3100 = vmatmul.bf16.gmra.mxu1 %v11826_v31  ;;  %3306 = vmatpush.bf16.msrb.mxu0 %v5881_v37  ;;  %v6073_v25 = vor.u32 %v7087_v44, %v6072_v21  ;;  %v11827_v37 = vld [vmem:[#allocation57_spill] sm:$0xff] }
 0x2f4   : > { %5478 = vst [vmem:[%s8610_s6 + $0x158] sm:$0xff] %v3237_v33  ;;  %3189 = vmatmul.bf16.gmra.mxu2 %v8737_v39 }
 0x2f5   : > { %3278 = vmatmul.bf16.gmra.mxu3 %v8740_v11  ;;  %3395 = vmatpush.bf16.msrb.mxu1 %v6073_v25 }
 0x2f7   : > { %v3150_v47 = vpop.f32.mrf.mxu2  ;;  %v2974_v45 = vpop.f32.mrf.mxu0 }
 0x2f8   : > { %v3151_v6 = vadd.f32 %v3150_v47, %v3062_v51  ;;  %v3239_v1 = vpop.f32.mrf.mxu3  ;;  %v3063_v46 = vpop.f32.mrf.mxu1  ;;  %v2975_v33 = vadd.f32 %v2974_v45, %v8789_v23 }
 0x2fa   : > { %v3240_v13 = vadd.f32 %v3239_v1, %v3151_v6  ;;  %v3064_v49 = vadd.f32 %v3063_v46, %v2975_v33 }
 0x2fc   : > { %5484 = vst [vmem:[%s8610_s6 + $0x188] sm:$0xff] %v3240_v13 }
 0x2ff   : > { %v3152_v51 = vpop.f32.mrf.mxu2  ;;  %v2977_v26 = vpop.f32.mrf.mxu0 }
 0x300   : > { %v3153_v42 = vadd.f32 %v3152_v51, %v3064_v49  ;;  %v3241_v34 = vpop.f32.mrf.mxu3  ;;  %v3066_v60 = vpop.f32.mrf.mxu1  ;;  %v2978_v23 = vadd.f32 %v2977_v26, %v8798_v41 }
 0x302   : > { %v3242_v47 = vadd.f32 %v3241_v34, %v3153_v42  ;;  %3016 = vmatmul.bf16.gmra.mxu0 %v11827_v37  ;;  %v3067_v6 = vadd.f32 %v3066_v60, %v2978_v23  ;;  %v11829_v60 = vld [vmem:[#allocation61_spill] sm:$0xff]  ;;  %v11830_v23 = vld [vmem:[#allocation62_spill] sm:$0xff] }
 0x303   : > { %3105 = vmatmul.bf16.gmra.mxu1 %v11828_v40 }
 0x304   : > { %5490 = vst [vmem:[%s8610_s6 + $0x1b8] sm:$0xff] %v3242_v47  ;;  %3194 = vmatmul.bf16.gmra.mxu2 %v8783_v29  ;;  %v11872_v29 = vld [vmem:[#allocation51_spill] sm:$0xff] }
 0x305   : > { %3283 = vmatmul.bf16.gmra.mxu3 %v8786_v58 }
 0x307   : > { %v3155_v1 = vpop.f32.mrf.mxu2  ;;  %v2979_v13 = vpop.f32.mrf.mxu0 }
 0x308   : > { %v3156_v45 = vadd.f32 %v3155_v1, %v3067_v6  ;;  %v3244_v46 = vpop.f32.mrf.mxu3  ;;  %v3068_v33 = vpop.f32.mrf.mxu1  ;;  %v2980_v44 = vadd.f32 %v2979_v13, %v8811_v7  ;;  %v11831_v6 = vld [vmem:[#allocation91_spill] sm:$0xff]  ;;  %v7078_v7 = vld [vmem:[%s11433_s1 + $0x15c] sm:$0xf]  ;;  %v6050_v1 = vld [vmem:[%s11433_s1 + $0x170] sm:$0xf0] }
 0x309   : > { %v7273_v13 = vld [vmem:[%s11433_s1 + $0x76c] sm:$0xf0] }
 0x30a   : > { %v3245_v21 = vadd.f32 %v3244_v46, %v3156_v45  ;;  %v3069_v41 = vadd.f32 %v3068_v33, %v2980_v44  ;;  %v6053_v46 = vor.u32 %v7078_v7, %v6050_v1  ;;  %v7126_v33 = vld [vmem:[%s11433_s1 + $0x2dc] sm:$0xf]  ;;  %v7008_v7 = vld [vmem:[%s11433_s1 + $0x8d8] sm:$0xf]  ;;  %v7321_v1 = vld [vmem:[%s11433_s1 + $0x8ec] sm:$0xf0] }
 0x30c   : > { %5496 = vst [vmem:[%s8610_s6 + $0x1e8] sm:$0xff] %v3245_v21  ;;  %v6242_v21 = vld [vmem:[%s11433_s1 + $0x2f0] sm:$0xf0]  ;;  %3833 = vmatpush.bf16.msra.mxu2 %v6053_v46 }
 0x30f   : > { %v3157_v25 = vpop.f32.mrf.mxu2  ;;  %v2982_v42 = vpop.f32.mrf.mxu0 }
 0x310   : > { %v3158_v49 = vadd.f32 %v3157_v25, %v3069_v41  ;;  %v3246_v51 = vpop.f32.mrf.mxu3  ;;  %v3071_v34 = vpop.f32.mrf.mxu1  ;;  %v2983_v47 = vadd.f32 %v2982_v42, %v8838_v2  ;;  %v6816_v2 = vld [vmem:[%s11433_s1 + $0x758] sm:$0xf]  ;;  %v6245_v25 = vor.u32 %v7126_v33, %v6242_v21 }
 0x311   : > { %v6817_v41 = vor.u32 %v7273_v13, %v6816_v2  ;;  %v7009_v2 = vor.u32 %v7321_v1, %v7008_v7 }
 0x312   : > { %v3247_v26 = vadd.f32 %v3246_v51, %v3158_v49  ;;  %3021 = vmatmul.bf16.gmra.mxu0 %v11829_v60  ;;  %v3072_v45 = vadd.f32 %v3071_v34, %v2983_v47  ;;  %3922 = vmatpush.bf16.msra.mxu3 %v6245_v25  ;;  %v11832_v25 = vld [vmem:[#allocation65_spill] sm:$0xff] }
 0x313   : > { %3110 = vmatmul.bf16.gmra.mxu1 %v11830_v23  ;;  %3655 = vmatpush.bf16.msra.mxu0 %v6817_v41 }
 0x314   : > { %5502 = vst [vmem:[%s8610_s6 + $0x218] sm:$0xff] %v3247_v26  ;;  %3199 = vmatmul.bf16.gmra.mxu2 %v8805_v61  ;;  %3744 = vmatpush.bf16.msra.mxu1 %v7009_v2 }
 0x315   : > { %3288 = vmatmul.bf16.gmra.mxu3 %v11831_v6  ;;  %v11871_v6 = vld [vmem:[#allocation48_spill] sm:$0xff] }
 0x317   : > { %v3160_v44 = vpop.f32.mrf.mxu2  ;;  %v2984_v42 = vpop.f32.mrf.mxu0 }
 0x318   : > { %v3161_v49 = vadd.f32 %v3160_v44, %v3072_v45  ;;  %v3249_v51 = vpop.f32.mrf.mxu3  ;;  %v3073_v34 = vpop.f32.mrf.mxu1  ;;  %v2985_v47 = vadd.f32 %v2984_v42, %v8857_v22 }
 0x31a   : > { %v3250_v26 = vadd.f32 %v3249_v51, %v3161_v49  ;;  %v3074_v45 = vadd.f32 %v3073_v34, %v2985_v47  ;;  %v11833_v49 = vld [vmem:[#allocation66_spill] sm:$0xff] }
 0x31c   : > { %5508 = vst [vmem:[%s8610_s6 + $0x248] sm:$0xff] %v3250_v26 }
 0x31f   : > { %v3162_v13 = vpop.f32.mrf.mxu2  ;;  %v2987_v21 = vpop.f32.mrf.mxu0 }
 0x320   : > { %v3163_v46 = vadd.f32 %v3162_v13, %v3074_v45  ;;  %v3251_v33 = vpop.f32.mrf.mxu3  ;;  %v3076_v44 = vpop.f32.mrf.mxu1  ;;  %v2988_v22 = vadd.f32 %v2987_v21, %v8866_v15 }
 0x322   : > { %v3252_v41 = vadd.f32 %v3251_v33, %v3163_v46  ;;  %3026 = vmatmul.bf16.gmra.mxu0 %v11832_v25  ;;  %v3077_v51 = vadd.f32 %v3076_v44, %v2988_v22  ;;  %v11834_v44 = vld [vmem:[#allocation3_spill] sm:$0xff]  ;;  %v11835_v22 = vld [vmem:[#allocation4_spill] sm:$0xff] }
 0x323   : > { %3115 = vmatmul.bf16.gmra.mxu1 %v11833_v49 }
 0x324   : > { %5514 = vst [vmem:[%s8610_s6 + $0x278] sm:$0xff] %v3252_v41  ;;  %3204 = vmatmul.bf16.gmra.mxu2 %v8851_v19  ;;  %v11868_v19 = vld [vmem:[#allocation43_spill] sm:$0xff] }
 0x325   : > { %3293 = vmatmul.bf16.gmra.mxu3 %v8854_v18 }
 0x327   : > { %v3165_v42 = vpop.f32.mrf.mxu2  ;;  %v2989_v47 = vpop.f32.mrf.mxu0 }
 0x328   : > { %v3166_v34 = vadd.f32 %v3165_v42, %v3077_v51  ;;  %v3254_v26 = vpop.f32.mrf.mxu3  ;;  %v3078_v7 = vpop.f32.mrf.mxu1  ;;  %v2990_v2 = vadd.f32 %v2989_v47, %v8871_v54  ;;  %v11836_v51 = vld [vmem:[#allocation5_spill] sm:$0xff]  ;;  %v11837_v42 = vld [vmem:[#allocation6_spill] sm:$0xff]  ;;  %v7072_v54 = vld [vmem:[%s11433_s1 + $0x12c] sm:$0xf] }
 0x32a   : > { %v3255_v1 = vadd.f32 %v3254_v26, %v3166_v34  ;;  %v3079_v15 = vadd.f32 %v3078_v7, %v2990_v2  ;;  %v6026_v34 = vld [vmem:[%s11433_s1 + $0x140] sm:$0xf0]  ;;  %v7267_v7 = vld [vmem:[%s11433_s1 + $0x73c] sm:$0xf0] }
 0x32b   : > { %v6029_v47 = vor.u32 %v7072_v54, %v6026_v34  ;;  %v6218_v2 = vld [vmem:[%s11433_s1 + $0x2c0] sm:$0xf0]  ;;  %v6984_v34 = vld [vmem:[%s11433_s1 + $0x8a8] sm:$0xf] }
 0x32c   : > { %5520 = vst [vmem:[%s8610_s6 + $0x2a8] sm:$0xff] %v3255_v1  ;;  %v7120_v1 = vld [vmem:[%s11433_s1 + $0x2ac] sm:$0xf] }
 0x32d   : > { %3834 = vmatpush.bf16.msra.mxu2 %v6029_v47 }
 0x32f   : > { %v3167_v45 = vpop.f32.mrf.mxu2  ;;  %v2992_v33 = vpop.f32.mrf.mxu0 }
 0x330   : > { %v3168_v13 = vadd.f32 %v3167_v45, %v3079_v15  ;;  %v3256_v46 = vpop.f32.mrf.mxu3  ;;  %v3081_v21 = vpop.f32.mrf.mxu1  ;;  %v2993_v18 = vadd.f32 %v2992_v33, %v8898_v48  ;;  %v6792_v48 = vld [vmem:[%s11433_s1 + $0x728] sm:$0xf] }
 0x331   : > { %v6793_v45 = vor.u32 %v7267_v7, %v6792_v48  ;;  %v7315_v48 = vld [vmem:[%s11433_s1 + $0x8bc] sm:$0xf0] }
 0x332   : > { %v3257_v41 = vadd.f32 %v3256_v46, %v3168_v13  ;;  %3307 = vmatmul.bf16.vlgmr.msrb.gmra.mxu0 %v11834_v44  ;;  %v3082_v26 = vadd.f32 %v3081_v21, %v2993_v18  ;;  %v6221_v13 = vor.u32 %v7120_v1, %v6218_v2 }
 0x333   : > { %3396 = vmatmul.bf16.vlgmr.msrb.gmra.mxu1 %v11835_v22  ;;  %3656 = vmatpush.bf16.msra.mxu0 %v6793_v45 }
 0x334   : > { %5526 = vst [vmem:[%s8610_s6 + $0x2d8] sm:$0xff] %v3257_v41  ;;  %3485 = vmatmul.bf16.vlgmr.msrb.gmra.mxu2 %v11836_v51  ;;  %3923 = vmatpush.bf16.msra.mxu3 %v6221_v13 }
 0x335   : > { %3574 = vmatmul.bf16.vlgmr.msrb.gmra.mxu3 %v11837_v42 }
 0x337   : > { %v3170_v15 = vpop.f32.mrf.mxu2  ;;  %v2994_v18 = vpop.f32.mrf.mxu0 }
 0x338   : > { %v3171_v46 = vadd.f32 %v3170_v15, %v3082_v26  ;;  %v3259_v33 = vpop.f32.mrf.mxu3  ;;  %v3083_v21 = vpop.f32.mrf.mxu1  ;;  %v2995_v54 = vadd.f32 %v2994_v18, %v8909_v16  ;;  %v6985_v26 = vor.u32 %v7315_v48, %v6984_v34  ;;  %v11840_v18 = vld [vmem:[#allocation9_spill] sm:$0xff] }
 0x33a   : > { %v3260_v41 = vadd.f32 %v3259_v33, %v3171_v46  ;;  %v3084_v7 = vadd.f32 %v3083_v21, %v2995_v54  ;;  %3745 = vmatpush.bf16.msra.mxu1 %v6985_v26  ;;  %v11838_v46 = vld [vmem:[#allocation7_spill] sm:$0xff]  ;;  %v11839_v33 = vld [vmem:[#allocation8_spill] sm:$0xff] }
 0x33c   : > { %5532 = vst [vmem:[%s8610_s6 + $0x308] sm:$0xff] %v3260_v41  ;;  %v11841_v41 = vld [vmem:[#allocation10_spill] sm:$0xff] }
 0x33f   : > { %v3172_v1 = vpop.f32.mrf.mxu2  ;;  %v2997_v15 = vpop.f32.mrf.mxu0 }
 0x340   : > { %v3173_v47 = vadd.f32 %v3172_v1, %v3084_v7  ;;  %v3261_v2 = vpop.f32.mrf.mxu3  ;;  %v3086_v45 = vpop.f32.mrf.mxu1  ;;  %v2998_v16 = vadd.f32 %v2997_v15, %v8918_v9 }
 0x342   : > { %v3262_v13 = vadd.f32 %v3261_v2, %v3173_v47  ;;  %3312 = vmatmul.bf16.gmra.mxu0 %v11838_v46  ;;  %v3087_v21 = vadd.f32 %v3086_v45, %v2998_v16  ;;  %v11842_v45 = vld [vmem:[#allocation11_spill] sm:$0xff]  ;;  %v11843_v16 = vld [vmem:[#allocation12_spill] sm:$0xff] }
 0x343   : > { %3401 = vmatmul.bf16.gmra.mxu1 %v11839_v33 }
 0x344   : > { %5538 = vst [vmem:[%s8610_s6 + $0x338] sm:$0xff] %v3262_v13  ;;  %3490 = vmatmul.bf16.gmra.mxu2 %v11840_v18 }
 0x345   : > { %3579 = vmatmul.bf16.gmra.mxu3 %v11841_v41 }
 0x347   : > { %v3175_v54 = vpop.f32.mrf.mxu2  ;;  %v2999_v26 = vpop.f32.mrf.mxu0 }
 0x348   : > { %v3176_v34 = vadd.f32 %v3175_v54, %v3087_v21  ;;  %v3264_v48 = vpop.f32.mrf.mxu3  ;;  %v3088_v7 = vpop.f32.mrf.mxu1  ;;  %v3000_v47 = vadd.f32 %v2999_v26, %v8923_v63  ;;  %v11844_v21 = vld [vmem:[#allocation13_spill] sm:$0xff]  ;;  %v11845_v54 = vld [vmem:[#allocation14_spill] sm:$0xff] }
 0x349   : > { %v7066_v63 = vld [vmem:[%s11433_s1 + $0xfc] sm:$0xf] }
 0x34a   : > { %v3265_v1 = vadd.f32 %v3264_v48, %v3176_v34  ;;  %v3089_v9 = vadd.f32 %v3088_v7, %v3000_v47  ;;  %v6002_v34 = vld [vmem:[%s11433_s1 + $0x110] sm:$0xf0]  ;;  %v7261_v48 = vld [vmem:[%s11433_s1 + $0x70c] sm:$0xf0]  ;;  %v7114_v26 = vld [vmem:[%s11433_s1 + $0x27c] sm:$0xf] }
 0x34b   : > { %v6194_v7 = vld [vmem:[%s11433_s1 + $0x290] sm:$0xf0] }
 0x34c   : > { %5544 = vst [vmem:[%s8610_s6 + $0x368] sm:$0xff] %v3265_v1 }
 0x34f   : > { %v3177_v2 = vpop.f32.mrf.mxu2  ;;  %v3002_v42 = vpop.f32.mrf.mxu0 }
 0x350   : > { %v3178_v15 = vadd.f32 %v3177_v2, %v3089_v9  ;;  %v3266_v13 = vpop.f32.mrf.mxu3  ;;  %v3091_v51 = vpop.f32.mrf.mxu1  ;;  %v3003_v41 = vadd.f32 %v3002_v42, %v8950_v57  ;;  %v6768_v57 = vld [vmem:[%s11433_s1 + $0x6f8] sm:$0xf]  ;;  %v6197_v9 = vor.u32 %v7114_v26, %v6194_v7 }
 0x351   : > { %v6769_v47 = vor.u32 %v7261_v48, %v6768_v57  ;;  %v7309_v57 = vld [vmem:[%s11433_s1 + $0x88c] sm:$0xf0] }
 0x352   : > { %v3267_v18 = vadd.f32 %v3266_v13, %v3178_v15  ;;  %3317 = vmatmul.bf16.gmra.mxu0 %v11842_v45  ;;  %v3092_v42 = vadd.f32 %v3091_v51, %v3003_v41  ;;  %3924 = vmatpush.bf16.msra.mxu3 %v6197_v9 }
 0x353   : > { %3406 = vmatmul.bf16.gmra.mxu1 %v11843_v16  ;;  %3657 = vmatpush.bf16.msra.mxu0 %v6769_v47 }
 0x354   : > { %5550 = vst [vmem:[%s8610_s6 + $0x398] sm:$0xff] %v3267_v18  ;;  %3495 = vmatmul.bf16.gmra.mxu2 %v11844_v21  ;;  %v6005_v18 = vor.u32 %v7066_v63, %v6002_v34  ;;  %v6960_v34 = vld [vmem:[%s11433_s1 + $0x878] sm:$0xf] }
 0x355   : > { %3584 = vmatmul.bf16.gmra.mxu3 %v11845_v54 }
 0x356   : > { %3835 = vmatpush.bf16.msra.mxu2 %v6005_v18 }
 0x357   : > { %v3180_v1 = vpop.f32.mrf.mxu2  ;;  %v3004_v51 = vpop.f32.mrf.mxu0 }
 0x358   : > { %v3181_v2 = vadd.f32 %v3180_v1, %v3092_v42  ;;  %v3269_v15 = vpop.f32.mrf.mxu3  ;;  %v3093_v41 = vpop.f32.mrf.mxu1  ;;  %v3005_v63 = vadd.f32 %v3004_v51, %v8961_v36  ;;  %v6961_v42 = vor.u32 %v7309_v57, %v6960_v34  ;;  %v11848_v51 = vld [vmem:[#allocation17_spill] sm:$0xff] }
 0x35a   : > { %v3270_v13 = vadd.f32 %v3269_v15, %v3181_v2  ;;  %v3094_v48 = vadd.f32 %v3093_v41, %v3005_v63  ;;  %3746 = vmatpush.bf16.msra.mxu1 %v6961_v42  ;;  %v11846_v2 = vld [vmem:[#allocation15_spill] sm:$0xff]  ;;  %v11847_v15 = vld [vmem:[#allocation16_spill] sm:$0xff] }
 0x35c   : > { %5556 = vst [vmem:[%s8610_s6 + $0x3c8] sm:$0xff] %v3270_v13  ;;  %v11849_v13 = vld [vmem:[#allocation18_spill] sm:$0xff] }
 0x35f   : > { %v3182_v26 = vpop.f32.mrf.mxu2  ;;  %v3007_v1 = vpop.f32.mrf.mxu0 }
 0x360   : > { %v3183_v18 = vadd.f32 %v3182_v26, %v3094_v48  ;;  %v3271_v7 = vpop.f32.mrf.mxu3  ;;  %v3096_v47 = vpop.f32.mrf.mxu1  ;;  %v3008_v36 = vadd.f32 %v3007_v1, %v8970_v55 }
 0x362   : > { %v3272_v9 = vadd.f32 %v3271_v7, %v3183_v18  ;;  %3322 = vmatmul.bf16.gmra.mxu0 %v11846_v2  ;;  %v3097_v41 = vadd.f32 %v3096_v47, %v3008_v36  ;;  %v11850_v47 = vld [vmem:[#allocation19_spill] sm:$0xff]  ;;  %v11851_v36 = vld [vmem:[#allocation20_spill] sm:$0xff] }
 0x363   : > { %3411 = vmatmul.bf16.gmra.mxu1 %v11847_v15 }
 0x364   : > { %5562 = vst [vmem:[%s8610_s6 + $0x3f8] sm:$0xff] %v3272_v9  ;;  %3500 = vmatmul.bf16.gmra.mxu2 %v11848_v51 }
 0x365   : > { %3589 = vmatmul.bf16.gmra.mxu3 %v11849_v13 }
 0x367   : > { %v3185_v63 = vpop.f32.mrf.mxu2  ;;  %v3009_v42 = vpop.f32.mrf.mxu0 }
 0x368   : > { %v3186_v34 = vadd.f32 %v3185_v63, %v3097_v41  ;;  %v3274_v57 = vpop.f32.mrf.mxu3  ;;  %v3098_v48 = vpop.f32.mrf.mxu1  ;;  %v3010_v18 = vadd.f32 %v3009_v42, %v8975_v56  ;;  %v11852_v41 = vld [vmem:[#allocation21_spill] sm:$0xff]  ;;  %v11853_v63 = vld [vmem:[#allocation22_spill] sm:$0xff]  ;;  %v7060_v56 = vld [vmem:[%s11433_s1 + $0xcc] sm:$0xf] }
 0x369   : > { %v7108_v42 = vld [vmem:[%s11433_s1 + $0x24c] sm:$0xf] }
 0x36a   : > { %v3275_v26 = vadd.f32 %v3274_v57, %v3186_v34  ;;  %v3099_v55 = vadd.f32 %v3098_v48, %v3010_v18  ;;  %v5978_v34 = vld [vmem:[%s11433_s1 + $0xe0] sm:$0xf0]  ;;  %v7255_v57 = vld [vmem:[%s11433_s1 + $0x6dc] sm:$0xf0] }
 0x36b   : > { %v6170_v48 = vld [vmem:[%s11433_s1 + $0x260] sm:$0xf0] }
 0x36c   : > { %5568 = vst [vmem:[%s8610_s6 + $0x428] sm:$0xff] %v3275_v26 }
 0x36f   : > { %v3187_v7 = vpop.f32.mrf.mxu2  ;;  %v3012_v54 = vpop.f32.mrf.mxu0 }
 0x370   : > { %v3188_v1 = vadd.f32 %v3187_v7, %v3099_v55  ;;  %v3276_v9 = vpop.f32.mrf.mxu3  ;;  %v3101_v21 = vpop.f32.mrf.mxu1  ;;  %v3013_v13 = vadd.f32 %v3012_v54, %v9002_v8  ;;  %v6744_v8 = vld [vmem:[%s11433_s1 + $0x6c8] sm:$0xf]  ;;  %v6173_v55 = vor.u32 %v7108_v42, %v6170_v48 }
 0x371   : > { %v6745_v18 = vor.u32 %v7255_v57, %v6744_v8  ;;  %v7303_v8 = vld [vmem:[%s11433_s1 + $0x85c] sm:$0xf0] }
 0x372   : > { %v3277_v51 = vadd.f32 %v3276_v9, %v3188_v1  ;;  %3327 = vmatmul.bf16.gmra.mxu0 %v11850_v47  ;;  %v3102_v54 = vadd.f32 %v3101_v21, %v3013_v13  ;;  %3925 = vmatpush.bf16.msra.mxu3 %v6173_v55 }
 0x373   : > { %3416 = vmatmul.bf16.gmra.mxu1 %v11851_v36  ;;  %3658 = vmatpush.bf16.msra.mxu0 %v6745_v18 }
 0x374   : > { %5574 = vst [vmem:[%s8610_s6 + $0x458] sm:$0xff] %v3277_v51  ;;  %3505 = vmatmul.bf16.gmra.mxu2 %v11852_v41  ;;  %v5981_v51 = vor.u32 %v7060_v56, %v5978_v34  ;;  %v6936_v34 = vld [vmem:[%s11433_s1 + $0x848] sm:$0xf] }
 0x375   : > { %3594 = vmatmul.bf16.gmra.mxu3 %v11853_v63 }
 0x376   : > { %3836 = vmatpush.bf16.msra.mxu2 %v5981_v51 }
 0x377   : > { %v3190_v26 = vpop.f32.mrf.mxu2  ;;  %v3014_v21 = vpop.f32.mrf.mxu0 }
 0x378   : > { %v3191_v7 = vadd.f32 %v3190_v26, %v3102_v54  ;;  %v3279_v1 = vpop.f32.mrf.mxu3  ;;  %v3103_v13 = vpop.f32.mrf.mxu1  ;;  %v3015_v56 = vadd.f32 %v3014_v21, %v9013_v27  ;;  %v6937_v54 = vor.u32 %v7303_v8, %v6936_v34  ;;  %v11856_v21 = vld [vmem:[#allocation25_spill] sm:$0xff] }
 0x37a   : > { %v3280_v9 = vadd.f32 %v3279_v1, %v3191_v7  ;;  %v3104_v57 = vadd.f32 %v3103_v13, %v3015_v56  ;;  %3747 = vmatpush.bf16.msra.mxu1 %v6937_v54  ;;  %v11854_v7 = vld [vmem:[#allocation23_spill] sm:$0xff]  ;;  %v11855_v1 = vld [vmem:[#allocation24_spill] sm:$0xff] }
 0x37c   : > { %5580 = vst [vmem:[%s8610_s6 + $0x488] sm:$0xff] %v3280_v9  ;;  %v11857_v9 = vld [vmem:[#allocation26_spill] sm:$0xff] }
 0x37f   : > { %v3192_v42 = vpop.f32.mrf.mxu2  ;;  %v3017_v26 = vpop.f32.mrf.mxu0 }
 0x380   : > { %v3193_v51 = vadd.f32 %v3192_v42, %v3104_v57  ;;  %v3281_v48 = vpop.f32.mrf.mxu3  ;;  %v3106_v18 = vpop.f32.mrf.mxu1  ;;  %v3018_v27 = vadd.f32 %v3017_v26, %v9022_v53 }
 0x382   : > { %v3282_v55 = vadd.f32 %v3281_v48, %v3193_v51  ;;  %3332 = vmatmul.bf16.gmra.mxu0 %v11854_v7  ;;  %v3107_v13 = vadd.f32 %v3106_v18, %v3018_v27  ;;  %v11858_v18 = vld [vmem:[#allocation27_spill] sm:$0xff]  ;;  %v11859_v27 = vld [vmem:[#allocation28_spill] sm:$0xff] }
 0x383   : > { %3421 = vmatmul.bf16.gmra.mxu1 %v11855_v1 }
 0x384   : > { %5586 = vst [vmem:[%s8610_s6 + $0x4b8] sm:$0xff] %v3282_v55  ;;  %3510 = vmatmul.bf16.gmra.mxu2 %v11856_v21 }
 0x385   : > { %3599 = vmatmul.bf16.gmra.mxu3 %v11857_v9 }
 0x387   : > { %v3195_v56 = vpop.f32.mrf.mxu2  ;;  %v3019_v54 = vpop.f32.mrf.mxu0 }
 0x388   : > { %v3196_v34 = vadd.f32 %v3195_v56, %v3107_v13  ;;  %v3284_v8 = vpop.f32.mrf.mxu3  ;;  %v3108_v57 = vpop.f32.mrf.mxu1  ;;  %v3020_v51 = vadd.f32 %v3019_v54, %v9027_v59  ;;  %v11860_v13 = vld [vmem:[#allocation30_spill] sm:$0xff]  ;;  %v5954_v56 = vld [vmem:[%s11433_s1 + $0xb0] sm:$0xf0] }
 0x389   : > { %v7054_v59 = vld [vmem:[%s11433_s1 + $0x9c] sm:$0xf]  ;;  %v6146_v54 = vld [vmem:[%s11433_s1 + $0x230] sm:$0xf0] }
 0x38a   : > { %v3285_v42 = vadd.f32 %v3284_v8, %v3196_v34  ;;  %v3109_v53 = vadd.f32 %v3108_v57, %v3020_v51  ;;  %v7249_v34 = vld [vmem:[%s11433_s1 + $0x6ac] sm:$0xf0]  ;;  %v7102_v8 = vld [vmem:[%s11433_s1 + $0x21c] sm:$0xf] }
 0x38b   : > { %v6149_v51 = vor.u32 %v7102_v8, %v6146_v54 }
 0x38c   : > { %5592 = vst [vmem:[%s8610_s6 + $0x4e8] sm:$0xff] %v3285_v42 }
 0x38d   : > { %3926 = vmatpush.bf16.msra.mxu3 %v6149_v51  ;;  %v11861_v51 = vld [vmem:[#allocation31_spill] sm:$0xff] }
 0x38f   : > { %v3197_v48 = vpop.f32.mrf.mxu2  ;;  %v3022_v63 = vpop.f32.mrf.mxu0 }
 0x390   : > { %v3198_v26 = vadd.f32 %v3197_v48, %v3109_v53  ;;  %v3286_v55 = vpop.f32.mrf.mxu3  ;;  %v3111_v41 = vpop.f32.mrf.mxu1  ;;  %v3023_v9 = vadd.f32 %v3022_v63, %v9054_v14  ;;  %v6720_v14 = vld [vmem:[%s11433_s1 + $0x698] sm:$0xf] }
 0x391   : > { %v6721_v42 = vor.u32 %v7249_v34, %v6720_v14 }
 0x392   : > { %v3287_v21 = vadd.f32 %v3286_v55, %v3198_v26  ;;  %3337 = vmatmul.bf16.gmra.mxu0 %v11858_v18  ;;  %v3112_v63 = vadd.f32 %v3111_v41, %v3023_v9 }
 0x393   : > { %3426 = vmatmul.bf16.gmra.mxu1 %v11859_v27  ;;  %3659 = vmatpush.bf16.msra.mxu0 %v6721_v42 }
 0x394   : > { %5598 = vst [vmem:[%s8610_s6 + $0x518] sm:$0xff] %v3287_v21  ;;  %3515 = vmatmul.bf16.gmra.mxu2 %v11810_v5  ;;  %v5957_v21 = vor.u32 %v7054_v59, %v5954_v56  ;;  %v6912_v59 = vld [vmem:[%s11433_s1 + $0x818] sm:$0xf]  ;;  %v7297_v56 = vld [vmem:[%s11433_s1 + $0x82c] sm:$0xf0] }
 0x395   : > { %3604 = vmatmul.bf16.gmra.mxu3 %v11860_v13  ;;  %v6913_v14 = vor.u32 %v7297_v56, %v6912_v59 }
 0x396   : > { %3837 = vmatpush.bf16.msra.mxu2 %v5957_v21 }
 0x397   : > { %v3200_v57 = vpop.f32.mrf.mxu2  ;;  %v3024_v41 = vpop.f32.mrf.mxu0  ;;  %3748 = vmatpush.bf16.msra.mxu1 %v6913_v14 }
 0x398   : > { %v3201_v53 = vadd.f32 %v3200_v57, %v3112_v63  ;;  %v3289_v48 = vpop.f32.mrf.mxu3  ;;  %v3113_v9 = vpop.f32.mrf.mxu1  ;;  %v3025_v55 = vadd.f32 %v3024_v41, %v9065_v17 }
 0x39a   : > { %v3290_v26 = vadd.f32 %v3289_v48, %v3201_v53  ;;  %v3114_v63 = vadd.f32 %v3113_v9, %v3025_v55  ;;  %v11862_v53 = vld [vmem:[#allocation32_spill] sm:$0xff]  ;;  %v11863_v48 = vld [vmem:[#allocation34_spill] sm:$0xff] }
 0x39c   : > { %5604 = vst [vmem:[%s8610_s6 + $0x548] sm:$0xff] %v3290_v26 }
 0x39f   : > { %v3202_v21 = vpop.f32.mrf.mxu2  ;;  %v3027_v54 = vpop.f32.mrf.mxu0 }
 0x3a0   : > { %v3203_v34 = vadd.f32 %v3202_v21, %v3114_v63  ;;  %v3291_v8 = vpop.f32.mrf.mxu3  ;;  %v3116_v57 = vpop.f32.mrf.mxu1  ;;  %v3028_v17 = vadd.f32 %v3027_v54, %v9074_v12  ;;  %v9402_v12 = vld [vmem:[%s11434_s2] sm:$0x3f] }
 0x3a1   : > { %v9405_v21 = vperm.slane %v9402_v12, 2 }
 0x3a2   : > { %v3292_v42 = vadd.f32 %v3291_v8, %v3203_v34  ;;  %3342 = vmatmul.bf16.gmra.mxu0 %v11861_v51  ;;  %v3117_v41 = vadd.f32 %v3116_v57, %v3028_v17 }
 0x3a3   : > { %3431 = vmatmul.bf16.gmra.mxu1 %v11862_v53 }
 0x3a4   : > { %5610 = vst [vmem:[%s8610_s6 + $0x578] sm:$0xff] %v3292_v42  ;;  %3520 = vmatmul.bf16.gmra.mxu2 %v11814_v52  ;;  %v11867_v52 = vld [vmem:[#allocation40_spill] sm:$0xff] }
 0x3a5   : > { %3609 = vmatmul.bf16.gmra.mxu3 %v11863_v48  ;;  %v6888_v48 = vld [vmem:[%s11433_s1 + $0x7e8] sm:$0xf] }
 0x3a7   : > { %v3205_v9 = vpop.f32.mrf.mxu2  ;;  %v3029_v59 = vpop.f32.mrf.mxu0 }
 0x3a8   : > { %v3206_v26 = vadd.f32 %v3205_v9, %v3117_v41  ;;  %v3294_v55 = vpop.f32.mrf.mxu3  ;;  %v3118_v56 = vpop.f32.mrf.mxu1  ;;  %v3030_v63 = vadd.f32 %v3029_v59, %v9078_v43  ;;  %v11864_v43 = vld [vmem:[#allocation35_spill] sm:$0xff]  ;;  %v7048_v59 = vld [vmem:[%s11433_s1 + $0x6c] sm:$0xf] }
 0x3aa   : > { %v3295_v14 = vadd.f32 %v3294_v55, %v3206_v26  ;;  %v3119_v34 = vadd.f32 %v3118_v56, %v3030_v63  ;;  %v11865_v55 = vld [vmem:[#allocation36_spill] sm:$0xff]  ;;  %v5930_v56 = vld [vmem:[%s11433_s1 + $0x80] sm:$0xf0] }
 0x3ab   : > { %v5933_v63 = vor.u32 %v7048_v59, %v5930_v56 }
 0x3ac   : > { %5616 = vst [vmem:[%s8610_s6 + $0x5a8] sm:$0xff] %v3295_v14  ;;  %v6696_v14 = vld [vmem:[%s11433_s1 + $0x668] sm:$0xf] }
 0x3ad   : > { %3838 = vmatpush.bf16.msra.mxu2 %v5933_v63 }
 0x3af   : > { %v3207_v8 = vpop.f32.mrf.mxu2  ;;  %v3308_v42 = vpop.f32.mrf.mxu0 }
 0x3b0   : > { %v3208_v54 = vadd.f32 %v3207_v8, %v3119_v34  ;;  %v3296_v57 = vpop.f32.mrf.mxu3  ;;  %v3309_v17 = vadd.f32 %v3308_v42, %v9405_v21  ;;  %v3397_v41 = vpop.f32.mrf.mxu1  ;;  %v7243_v34 = vld [vmem:[%s11433_s1 + $0x67c] sm:$0xf0]  ;;  %v7096_v8 = vld [vmem:[%s11433_s1 + $0x1ec] sm:$0xf] }
 0x3b1   : > { %v6697_v42 = vor.u32 %v7243_v34, %v6696_v14  ;;  %v7291_v14 = vld [vmem:[%s11433_s1 + $0x7fc] sm:$0xf0] }
 0x3b2   : > { %v3297_v9 = vadd.f32 %v3296_v57, %v3208_v54  ;;  %v3398_v26 = vadd.f32 %v3397_v41, %v3309_v17  ;;  %3347 = vmatmul.bf16.gmra.mxu0 %v11864_v43  ;;  %v6122_v54 = vld [vmem:[%s11433_s1 + $0x200] sm:$0xf0] }
 0x3b3   : > { %3436 = vmatmul.bf16.gmra.mxu1 %v11865_v55  ;;  %v6125_v17 = vor.u32 %v7096_v8, %v6122_v54  ;;  %3660 = vmatpush.bf16.msra.mxu0 %v6697_v42 }
 0x3b4   : > { %5622 = vst [vmem:[%s8610_s6 + $0x5d8] sm:$0xff] %v3297_v9  ;;  %3525 = vmatmul.bf16.gmra.mxu2 %v11816_v28 }
 0x3b5   : > { %3614 = vmatmul.bf16.gmra.mxu3 %v11817_v10 }
 0x3b6   : > { %3927 = vmatpush.bf16.msra.mxu3 %v6125_v17 }
 0x3b7   : > { %v3486_v57 = vpop.f32.mrf.mxu2  ;;  %v3310_v10 = vpop.f32.mrf.mxu0 }
 0x3b8   : > { %v3487_v41 = vadd.f32 %v3486_v57, %v3398_v26  ;;  %v3575_v9 = vpop.f32.mrf.mxu3  ;;  %v3311_v59 = vadd.f32 %v3310_v10, %v9405_v21  ;;  %v3399_v56 = vpop.f32.mrf.mxu1  ;;  %v6889_v26 = vor.u32 %v7291_v14, %v6888_v48 }
 0x3ba   : > { %v9432_v28 = vadd.f32 %v3575_v9, %v3487_v41  ;;  %v3400_v34 = vadd.f32 %v3399_v56, %v3311_v59  ;;  %3749 = vmatpush.bf16.msra.mxu1 %v6889_v26  ;;  %v11866_v9 = vld [vmem:[#allocation39_spill] sm:$0xff] }
 0x3bf   : > { %v3488_v8 = vpop.f32.mrf.mxu2  ;;  %v3313_v10 = vpop.f32.mrf.mxu0 }
 0x3c0   : > { %v3489_v63 = vadd.f32 %v3488_v8, %v3400_v34  ;;  %v3577_v54 = vpop.f32.mrf.mxu3  ;;  %v3314_v57 = vadd.f32 %v3313_v10, %v9405_v21  ;;  %v3402_v42 = vpop.f32.mrf.mxu1 }
 0x3c2   : > { %v9441_v17 = vadd.f32 %v3577_v54, %v3489_v63  ;;  %v3403_v41 = vadd.f32 %v3402_v42, %v3314_v57  ;;  %3352 = vmatmul.bf16.gmra.mxu0 %v11866_v9 }
 0x3c3   : > { %3441 = vmatmul.bf16.gmra.mxu1 %v11867_v52 }
 0x3c4   : > { %3530 = vmatmul.bf16.gmra.mxu2 %v11819_v62 }
 0x3c5   : > { %3619 = vmatmul.bf16.gmra.mxu3 %v11820_v24 }
 0x3c7   : > { %v3491_v48 = vpop.f32.mrf.mxu2  ;;  %v3315_v14 = vpop.f32.mrf.mxu0 }
 0x3c8   : > { %v3492_v59 = vadd.f32 %v3491_v48, %v3403_v41  ;;  %v3580_v56 = vpop.f32.mrf.mxu3  ;;  %v3316_v34 = vadd.f32 %v3315_v14, %v9405_v21  ;;  %v3404_v26 = vpop.f32.mrf.mxu1  ;;  %v11869_v41 = vld [vmem:[#allocation44_spill] sm:$0xff]  ;;  %v7042_v48 = vld [vmem:[%s11433_s1 + $0x3c] sm:$0xf] }
 0x3c9   : > { %v7090_v14 = vld [vmem:[%s11433_s1 + $0x1bc] sm:$0xf] }
 0x3ca   : > { %v9448_v8 = vadd.f32 %v3580_v56, %v3492_v59  ;;  %v3405_v63 = vadd.f32 %v3404_v26, %v3316_v34  ;;  %v5906_v59 = vld [vmem:[%s11433_s1 + $0x50] sm:$0xf0]  ;;  %v7237_v56 = vld [vmem:[%s11433_s1 + $0x64c] sm:$0xf0] }
 0x3cb   : > { %v6098_v34 = vld [vmem:[%s11433_s1 + $0x1d0] sm:$0xf0] }
 0x3cf   : > { %v3493_v54 = vpop.f32.mrf.mxu2  ;;  %v3318_v42 = vpop.f32.mrf.mxu0 }
 0x3d0   : > { %v3494_v10 = vadd.f32 %v3493_v54, %v3405_v63  ;;  %v3582_v57 = vpop.f32.mrf.mxu3  ;;  %v3319_v13 = vadd.f32 %v3318_v42, %v9405_v21  ;;  %v3407_v5 = vpop.f32.mrf.mxu1  ;;  %v6101_v54 = vor.u32 %v7090_v14, %v6098_v34 }
 0x3d2   : > { %v9451_v62 = vadd.f32 %v3582_v57, %v3494_v10  ;;  %v3408_v24 = vadd.f32 %v3407_v5, %v3319_v13  ;;  %3357 = vmatmul.bf16.gmra.mxu0 %v11868_v19  ;;  %v6672_v5 = vld [vmem:[%s11433_s1 + $0x638] sm:$0xf]  ;;  %v5909_v13 = vor.u32 %v7042_v48, %v5906_v59  ;;  %3928 = vmatpush.bf16.msra.mxu3 %v6101_v54 }
 0x3d3   : > { %3446 = vmatmul.bf16.gmra.mxu1 %v11869_v41  ;;  %v6673_v63 = vor.u32 %v7237_v56, %v6672_v5  ;;  %v7285_v5 = vld [vmem:[%s11433_s1 + $0x7cc] sm:$0xf0] }
 0x3d4   : > { %3535 = vmatmul.bf16.gmra.mxu2 %v11821_v0  ;;  %v6864_v0 = vld [vmem:[%s11433_s1 + $0x7b8] sm:$0xf] }
 0x3d5   : > { %3624 = vmatmul.bf16.gmra.mxu3 %v11822_v20  ;;  %3839 = vmatpush.bf16.msra.mxu2 %v5909_v13 }
 0x3d6   : > { %3661 = vmatpush.bf16.msra.mxu0 %v6673_v63 }
 0x3d7   : > { %v3496_v26 = vpop.f32.mrf.mxu2  ;;  %v3320_v42 = vpop.f32.mrf.mxu0 }
 0x3d8   : > { %v3497_v10 = vadd.f32 %v3496_v26, %v3408_v24  ;;  %v3585_v57 = vpop.f32.mrf.mxu3  ;;  %v3321_v48 = vadd.f32 %v3320_v42, %v9405_v21  ;;  %v3409_v59 = vpop.f32.mrf.mxu1  ;;  %v6865_v24 = vor.u32 %v7285_v5, %v6864_v0  ;;  %v11870_v42 = vld [vmem:[#allocation47_spill] sm:$0xff] }
 0x3da   : > { %v9476_v20 = vadd.f32 %v3585_v57, %v3497_v10  ;;  %v3410_v56 = vadd.f32 %v3409_v59, %v3321_v48  ;;  %3750 = vmatpush.bf16.msra.mxu1 %v6865_v24 }
 0x3df   : > { %v3498_v14 = vpop.f32.mrf.mxu2  ;;  %v3323_v26 = vpop.f32.mrf.mxu0 }
 0x3e0   : > { %v3499_v13 = vadd.f32 %v3498_v14, %v3410_v56  ;;  %v3587_v34 = vpop.f32.mrf.mxu3  ;;  %v3324_v63 = vadd.f32 %v3323_v26, %v9405_v21  ;;  %v3412_v54 = vpop.f32.mrf.mxu1 }
 0x3e2   : > { %v9485_v10 = vadd.f32 %v3587_v34, %v3499_v13  ;;  %v3413_v57 = vadd.f32 %v3412_v54, %v3324_v63  ;;  %3362 = vmatmul.bf16.gmra.mxu0 %v11870_v42 }
 0x3e3   : > { %3451 = vmatmul.bf16.gmra.mxu1 %v11871_v6 }
 0x3e4   : > { %3540 = vmatmul.bf16.gmra.mxu2 %v11823_v35 }
 0x3e5   : > { %3629 = vmatmul.bf16.gmra.mxu3 %v11824_v32 }
 0x3e7   : > { %v3501_v0 = vpop.f32.mrf.mxu2  ;;  %v3325_v5 = vpop.f32.mrf.mxu0 }
 0x3e8   : > { %v3502_v48 = vadd.f32 %v3501_v0, %v3413_v57  ;;  %v3590_v59 = vpop.f32.mrf.mxu3  ;;  %v3326_v56 = vadd.f32 %v3325_v5, %v9405_v21  ;;  %v3414_v24 = vpop.f32.mrf.mxu1  ;;  %v11873_v57 = vld [vmem:[#allocation52_spill] sm:$0xff] }
 0x3e9   : > { %v7036_v0 = vld [vmem:[%s11433_s1 + $0xc] sm:$0xf] }
 0x3ea   : > { %v9492_v14 = vadd.f32 %v3590_v59, %v3502_v48  ;;  %v3415_v13 = vadd.f32 %v3414_v24, %v3326_v56  ;;  %v5882_v48 = vld [vmem:[%s11433_s1 + $0x20] sm:$0xf0]  ;;  %v7231_v59 = vld [vmem:[%s11433_s1 + $0x61c] sm:$0xf0]  ;;  %v7084_v5 = vld [vmem:[%s11433_s1 + $0x18c] sm:$0xf] }
 0x3eb   : > { %v6074_v56 = vld [vmem:[%s11433_s1 + $0x1a0] sm:$0xf0] }
 0x3ef   : > { %v3503_v34 = vpop.f32.mrf.mxu2  ;;  %v3328_v54 = vpop.f32.mrf.mxu0 }
 0x3f0   : > { %v3504_v26 = vadd.f32 %v3503_v34, %v3415_v13  ;;  %v3592_v63 = vpop.f32.mrf.mxu3  ;;  %v3329_v61 = vadd.f32 %v3328_v54, %v9405_v21  ;;  %v3417_v58 = vpop.f32.mrf.mxu1  ;;  %v6077_v34 = vor.u32 %v7084_v5, %v6074_v56 }
 0x3f2   : > { %v9495_v35 = vadd.f32 %v3592_v63, %v3504_v26  ;;  %v3418_v32 = vadd.f32 %v3417_v58, %v3329_v61  ;;  %3367 = vmatmul.bf16.gmra.mxu0 %v11872_v29  ;;  %v6648_v58 = vld [vmem:[%s11433_s1 + $0x608] sm:$0xf]  ;;  %v5885_v61 = vor.u32 %v7036_v0, %v5882_v48  ;;  %3929 = vmatpush.bf16.msra.mxu3 %v6077_v34 }
 0x3f3   : > { %3456 = vmatmul.bf16.gmra.mxu1 %v11873_v57  ;;  %v6649_v13 = vor.u32 %v7231_v59, %v6648_v58  ;;  %v7279_v58 = vld [vmem:[%s11433_s1 + $0x79c] sm:$0xf0]  ;;  %v11876_v57 = vld [vmem:[#allocation56_spill] sm:$0xff] }
 0x3f4   : > { %3545 = vmatmul.bf16.gmra.mxu2 %v11825_v30  ;;  %v6840_v30 = vld [vmem:[%s11433_s1 + $0x788] sm:$0xf] }
 0x3f5   : > { %3634 = vmatmul.bf16.gmra.mxu3 %v11826_v31  ;;  %3840 = vmatpush.bf16.msra.mxu2 %v5885_v61 }
 0x3f6   : > { %3662 = vmatpush.bf16.msra.mxu0 %v6649_v13 }
 0x3f7   : > { %v3506_v24 = vpop.f32.mrf.mxu2  ;;  %v3330_v54 = vpop.f32.mrf.mxu0 }
 0x3f8   : > { %v3507_v26 = vadd.f32 %v3506_v24, %v3418_v32  ;;  %v3595_v63 = vpop.f32.mrf.mxu3  ;;  %v3331_v0 = vadd.f32 %v3330_v54, %v9405_v21  ;;  %v3419_v48 = vpop.f32.mrf.mxu1  ;;  %v6841_v32 = vor.u32 %v7279_v58, %v6840_v30  ;;  %v11875_v54 = vld [vmem:[#allocation55_spill] sm:$0xff] }
 0x3fa   : > { %v9520_v31 = vadd.f32 %v3595_v63, %v3507_v26  ;;  %v3420_v59 = vadd.f32 %v3419_v48, %v3331_v0  ;;  %3751 = vmatpush.bf16.msra.mxu1 %v6841_v32 }
 0x3ff   : > { %v3508_v5 = vpop.f32.mrf.mxu2  ;;  %v3333_v24 = vpop.f32.mrf.mxu0 }
 0x400   : > { %v3509_v61 = vadd.f32 %v3508_v5, %v3420_v59  ;;  %v3597_v56 = vpop.f32.mrf.mxu3  ;;  %v3334_v13 = vadd.f32 %v3333_v24, %v9405_v21  ;;  %v3422_v34 = vpop.f32.mrf.mxu1 }
 0x402   : > { %v9529_v26 = vadd.f32 %v3597_v56, %v3509_v61  ;;  %v3423_v63 = vadd.f32 %v3422_v34, %v3334_v13  ;;  %3372 = vmatmul.bf16.gmra.mxu0 %v11875_v54 }
 0x403   : > { %3461 = vmatmul.bf16.gmra.mxu1 %v11876_v57 }
 0x404   : > { %11874 = vst [vmem:[#allocation94_spill] sm:$0xff] %v9529_v26  ;;  %3550 = vmatmul.bf16.gmra.mxu2 %v11827_v37  ;;  %v11877_v26 = vld [vmem:[#allocation59_spill] sm:$0xff] }
 0x405   : > { %3639 = vmatmul.bf16.gmra.mxu3 %v11828_v40 }
 0x407   : > { %v3511_v30 = vpop.f32.mrf.mxu2  ;;  %v3335_v58 = vpop.f32.mrf.mxu0 }
 0x408   : > { %v3512_v0 = vadd.f32 %v3511_v30, %v3423_v63  ;;  %v3600_v48 = vpop.f32.mrf.mxu3  ;;  %v3336_v59 = vadd.f32 %v3335_v58, %v9405_v21  ;;  %v3424_v32 = vpop.f32.mrf.mxu1  ;;  %v11878_v63 = vld [vmem:[#allocation60_spill] sm:$0xff]  ;;  %v7270_v30 = vld [vmem:[%s11433_s1 + $0x75c] sm:$0xf] }
 0x409   : > { %v7318_v58 = vld [vmem:[%s11433_s1 + $0x8dc] sm:$0xf] }
 0x40a   : > { %v9536_v5 = vadd.f32 %v3600_v48, %v3512_v0  ;;  %v3425_v61 = vadd.f32 %v3424_v32, %v3336_v59  ;;  %v6818_v0 = vld [vmem:[%s11433_s1 + $0x770] sm:$0xf0] }
 0x40b   : > { %v6434_v48 = vld [vmem:[%s11433_s1 + $0x470] sm:$0xf0] }
 0x40c   : > { %v7010_v59 = vld [vmem:[%s11433_s1 + $0x8f0] sm:$0xf0] }
 0x40f   : > { %v3513_v56 = vpop.f32.mrf.mxu2  ;;  %v3338_v34 = vpop.f32.mrf.mxu0 }
 0x410   : > { %v3514_v24 = vadd.f32 %v3513_v56, %v3425_v61  ;;  %v3602_v13 = vpop.f32.mrf.mxu3  ;;  %v3339_v57 = vadd.f32 %v3338_v34, %v9405_v21  ;;  %v3427_v54 = vpop.f32.mrf.mxu1  ;;  %v7013_v56 = vor.u32 %v7318_v58, %v7010_v59 }
 0x412   : > { %v9539_v37 = vadd.f32 %v3602_v13, %v3514_v24  ;;  %v3428_v40 = vadd.f32 %v3427_v54, %v3339_v57  ;;  %3377 = vmatmul.bf16.gmra.mxu0 %v11877_v26  ;;  %v7174_v57 = vld [vmem:[%s11433_s1 + $0x45c] sm:$0xf]  ;;  %v6821_v54 = vor.u32 %v7270_v30, %v6818_v0  ;;  %4278 = vmatpush.bf16.msrb.mxu3 %v7013_v56 }
 0x413   : > { %3466 = vmatmul.bf16.gmra.mxu1 %v11878_v63  ;;  %v6437_v61 = vor.u32 %v7174_v57, %v6434_v48  ;;  %v6626_v57 = vld [vmem:[%s11433_s1 + $0x5f0] sm:$0xf0]  ;;  %v11881_v63 = vld [vmem:[#allocation64_spill] sm:$0xff] }
 0x414   : > { %3555 = vmatmul.bf16.gmra.mxu2 %v11829_v60  ;;  %v7222_v60 = vld [vmem:[%s11433_s1 + $0x5dc] sm:$0xf] }
 0x415   : > { %3644 = vmatmul.bf16.gmra.mxu3 %v11830_v23  ;;  %4189 = vmatpush.bf16.msrb.mxu2 %v6821_v54 }
 0x416   : > { %4011 = vmatpush.bf16.msrb.mxu0 %v6437_v61 }
 0x417   : > { %v3516_v32 = vpop.f32.mrf.mxu2  ;;  %v3340_v34 = vpop.f32.mrf.mxu0 }
 0x418   : > { %v3517_v24 = vadd.f32 %v3516_v32, %v3428_v40  ;;  %v3605_v13 = vpop.f32.mrf.mxu3  ;;  %v3341_v30 = vadd.f32 %v3340_v34, %v9405_v21  ;;  %v3429_v0 = vpop.f32.mrf.mxu1  ;;  %v6629_v40 = vor.u32 %v7222_v60, %v6626_v57  ;;  %v11880_v34 = vld [vmem:[#allocation63_spill] sm:$0xff] }
 0x41a   : > { %v9564_v23 = vadd.f32 %v3605_v13, %v3517_v24  ;;  %v3430_v48 = vadd.f32 %v3429_v0, %v3341_v30  ;;  %4100 = vmatpush.bf16.msrb.mxu1 %v6629_v40 }
 0x41f   : > { %v3518_v58 = vpop.f32.mrf.mxu2  ;;  %v3343_v32 = vpop.f32.mrf.mxu0 }
 0x420   : > { %v3519_v54 = vadd.f32 %v3518_v58, %v3430_v48  ;;  %v3607_v59 = vpop.f32.mrf.mxu3  ;;  %v3344_v61 = vadd.f32 %v3343_v32, %v9405_v21  ;;  %v3432_v56 = vpop.f32.mrf.mxu1 }
 0x422   : > { %v9573_v24 = vadd.f32 %v3607_v59, %v3519_v54  ;;  %v3433_v13 = vadd.f32 %v3432_v56, %v3344_v61  ;;  %3382 = vmatmul.bf16.gmra.mxu0 %v11880_v34 }
 0x423   : > { %3471 = vmatmul.bf16.gmra.mxu1 %v11881_v63 }
 0x424   : > { %11879 = vst [vmem:[#allocation95_spill] sm:$0xff] %v9573_v24  ;;  %3560 = vmatmul.bf16.gmra.mxu2 %v11832_v25  ;;  %v11882_v24 = vld [vmem:[#allocation67_spill] sm:$0xff] }
 0x425   : > { %3649 = vmatmul.bf16.gmra.mxu3 %v11833_v49 }
 0x427   : > { %v3521_v60 = vpop.f32.mrf.mxu2  ;;  %v3345_v57 = vpop.f32.mrf.mxu0 }
 0x428   : > { %v3522_v30 = vadd.f32 %v3521_v60, %v3433_v13  ;;  %v3610_v0 = vpop.f32.mrf.mxu3  ;;  %v3346_v48 = vadd.f32 %v3345_v57, %v9405_v21  ;;  %v3434_v40 = vpop.f32.mrf.mxu1  ;;  %v11883_v13 = vld [vmem:[#allocation68_spill] sm:$0xff] }
 0x429   : > { %v7264_v60 = vld [vmem:[%s11433_s1 + $0x72c] sm:$0xf] }
 0x42a   : > { %v9580_v58 = vadd.f32 %v3610_v0, %v3522_v30  ;;  %v3435_v54 = vadd.f32 %v3434_v40, %v3346_v48  ;;  %v6794_v30 = vld [vmem:[%s11433_s1 + $0x740] sm:$0xf0]  ;;  %v7312_v57 = vld [vmem:[%s11433_s1 + $0x8ac] sm:$0xf] }
 0x42b   : > { %v6410_v0 = vld [vmem:[%s11433_s1 + $0x440] sm:$0xf0] }
 0x42c   : > { %v6986_v48 = vld [vmem:[%s11433_s1 + $0x8c0] sm:$0xf0] }
 0x42f   : > { %v3523_v59 = vpop.f32.mrf.mxu2  ;;  %v3348_v56 = vpop.f32.mrf.mxu0 }
 0x430   : > { %v3524_v32 = vadd.f32 %v3523_v59, %v3435_v54  ;;  %v3612_v61 = vpop.f32.mrf.mxu3  ;;  %v3349_v63 = vadd.f32 %v3348_v56, %v9405_v21  ;;  %v3437_v34 = vpop.f32.mrf.mxu1  ;;  %v6989_v59 = vor.u32 %v7312_v57, %v6986_v48 }
 0x432   : > { %v9583_v25 = vadd.f32 %v3612_v61, %v3524_v32  ;;  %v3438_v49 = vadd.f32 %v3437_v34, %v3349_v63  ;;  %3663 = vmatmul.bf16.vlgmr.msra.gmra.mxu0 %v11882_v24  ;;  %v7168_v63 = vld [vmem:[%s11433_s1 + $0x42c] sm:$0xf]  ;;  %v6797_v34 = vor.u32 %v7264_v60, %v6794_v30  ;;  %4279 = vmatpush.bf16.msrb.mxu3 %v6989_v59 }
 0x433   : > { %3752 = vmatmul.bf16.vlgmr.msra.gmra.mxu1 %v11883_v13  ;;  %v6413_v54 = vor.u32 %v7168_v63, %v6410_v0  ;;  %v6602_v63 = vld [vmem:[%s11433_s1 + $0x5c0] sm:$0xf0]  ;;  %v11886_v13 = vld [vmem:[#allocation70_spill] sm:$0xff] }
 0x434   : > { %3841 = vmatmul.bf16.vlgmr.msra.gmra.mxu2 %v11834_v44  ;;  %v7216_v44 = vld [vmem:[%s11433_s1 + $0x5ac] sm:$0xf] }
 0x435   : > { %3930 = vmatmul.bf16.vlgmr.msra.gmra.mxu3 %v11835_v22  ;;  %4190 = vmatpush.bf16.msrb.mxu2 %v6797_v34 }
 0x436   : > { %4012 = vmatpush.bf16.msrb.mxu0 %v6413_v54 }
 0x437   : > { %v3526_v40 = vpop.f32.mrf.mxu2  ;;  %v3350_v56 = vpop.f32.mrf.mxu0 }
 0x438   : > { %v3527_v32 = vadd.f32 %v3526_v40, %v3438_v49  ;;  %v3615_v61 = vpop.f32.mrf.mxu3  ;;  %v3351_v60 = vadd.f32 %v3350_v56, %v9405_v21  ;;  %v3439_v30 = vpop.f32.mrf.mxu1  ;;  %v6605_v49 = vor.u32 %v7216_v44, %v6602_v63  ;;  %v11885_v56 = vld [vmem:[#allocation69_spill] sm:$0xff] }
 0x43a   : > { %v9608_v22 = vadd.f32 %v3615_v61, %v3527_v32  ;;  %v3440_v0 = vadd.f32 %v3439_v30, %v3351_v60  ;;  %4101 = vmatpush.bf16.msrb.mxu1 %v6605_v49 }
 0x43f   : > { %v3528_v57 = vpop.f32.mrf.mxu2  ;;  %v3353_v40 = vpop.f32.mrf.mxu0 }
 0x440   : > { %v3529_v34 = vadd.f32 %v3528_v57, %v3440_v0  ;;  %v3617_v48 = vpop.f32.mrf.mxu3  ;;  %v3354_v54 = vadd.f32 %v3353_v40, %v9405_v21  ;;  %v3442_v59 = vpop.f32.mrf.mxu1 }
 0x442   : > { %v9617_v32 = vadd.f32 %v3617_v48, %v3529_v34  ;;  %v3443_v61 = vadd.f32 %v3442_v59, %v3354_v54  ;;  %3668 = vmatmul.bf16.gmra.mxu0 %v11885_v56 }
 0x443   : > { %3757 = vmatmul.bf16.gmra.mxu1 %v11886_v13 }
 0x444   : > { %11884 = vst [vmem:[#allocation96_spill] sm:$0xff] %v9617_v32  ;;  %3846 = vmatmul.bf16.gmra.mxu2 %v11838_v46  ;;  %v11887_v32 = vld [vmem:[#allocation71_spill] sm:$0xff] }
 0x445   : > { %3935 = vmatmul.bf16.gmra.mxu3 %v11839_v33 }
 0x447   : > { %v3531_v44 = vpop.f32.mrf.mxu2  ;;  %v3355_v63 = vpop.f32.mrf.mxu0 }
 0x448   : > { %v3532_v60 = vadd.f32 %v3531_v44, %v3443_v61  ;;  %v3620_v30 = vpop.f32.mrf.mxu3  ;;  %v3356_v0 = vadd.f32 %v3355_v63, %v9405_v21  ;;  %v3444_v49 = vpop.f32.mrf.mxu1  ;;  %v11888_v61 = vld [vmem:[#allocation72_spill] sm:$0xff]  ;;  %v7258_v44 = vld [vmem:[%s11433_s1 + $0x6fc] sm:$0xf] }
 0x449   : > { %v7306_v63 = vld [vmem:[%s11433_s1 + $0x87c] sm:$0xf] }
 0x44a   : > { %v9624_v57 = vadd.f32 %v3620_v30, %v3532_v60  ;;  %v3445_v34 = vadd.f32 %v3444_v49, %v3356_v0  ;;  %v6770_v60 = vld [vmem:[%s11433_s1 + $0x710] sm:$0xf0] }
 0x44b   : > { %v6386_v30 = vld [vmem:[%s11433_s1 + $0x410] sm:$0xf0] }
 0x44c   : > { %v6962_v0 = vld [vmem:[%s11433_s1 + $0x890] sm:$0xf0] }
 0x44f   : > { %v3533_v48 = vpop.f32.mrf.mxu2  ;;  %v3358_v59 = vpop.f32.mrf.mxu0 }
 0x450   : > { %v3534_v40 = vadd.f32 %v3533_v48, %v3445_v34  ;;  %v3622_v54 = vpop.f32.mrf.mxu3  ;;  %v3359_v13 = vadd.f32 %v3358_v59, %v9405_v21  ;;  %v3447_v56 = vpop.f32.mrf.mxu1  ;;  %v6965_v48 = vor.u32 %v7306_v63, %v6962_v0 }
 0x452   : > { %v9627_v46 = vadd.f32 %v3622_v54, %v3534_v40  ;;  %v3448_v33 = vadd.f32 %v3447_v56, %v3359_v13  ;;  %3673 = vmatmul.bf16.gmra.mxu0 %v11887_v32  ;;  %v7162_v13 = vld [vmem:[%s11433_s1 + $0x3fc] sm:$0xf]  ;;  %v6773_v56 = vor.u32 %v7258_v44, %v6770_v60  ;;  %4280 = vmatpush.bf16.msrb.mxu3 %v6965_v48 }
 0x453   : > { %3762 = vmatmul.bf16.gmra.mxu1 %v11888_v61  ;;  %v6389_v34 = vor.u32 %v7162_v13, %v6386_v30  ;;  %v6578_v13 = vld [vmem:[%s11433_s1 + $0x590] sm:$0xf0]  ;;  %v11891_v61 = vld [vmem:[#allocation74_spill] sm:$0xff] }
 0x454   : > { %3851 = vmatmul.bf16.gmra.mxu2 %v11842_v45  ;;  %v7210_v45 = vld [vmem:[%s11433_s1 + $0x57c] sm:$0xf] }
 0x455   : > { %3940 = vmatmul.bf16.gmra.mxu3 %v11843_v16  ;;  %4191 = vmatpush.bf16.msrb.mxu2 %v6773_v56 }
 0x456   : > { %4013 = vmatpush.bf16.msrb.mxu0 %v6389_v34 }
 0x457   : > { %v3536_v49 = vpop.f32.mrf.mxu2  ;;  %v3360_v59 = vpop.f32.mrf.mxu0 }
 0x458   : > { %v3537_v40 = vadd.f32 %v3536_v49, %v3448_v33  ;;  %v3625_v54 = vpop.f32.mrf.mxu3  ;;  %v3361_v44 = vadd.f32 %v3360_v59, %v9405_v21  ;;  %v3449_v60 = vpop.f32.mrf.mxu1  ;;  %v6581_v33 = vor.u32 %v7210_v45, %v6578_v13  ;;  %v11890_v59 = vld [vmem:[#allocation73_spill] sm:$0xff] }
 0x45a   : > { %v9652_v16 = vadd.f32 %v3625_v54, %v3537_v40  ;;  %v3450_v30 = vadd.f32 %v3449_v60, %v3361_v44  ;;  %4102 = vmatpush.bf16.msrb.mxu1 %v6581_v33 }
 0x45f   : > { %v3538_v63 = vpop.f32.mrf.mxu2  ;;  %v3363_v49 = vpop.f32.mrf.mxu0 }
 0x460   : > { %v3539_v56 = vadd.f32 %v3538_v63, %v3450_v30  ;;  %v3627_v0 = vpop.f32.mrf.mxu3  ;;  %v3364_v34 = vadd.f32 %v3363_v49, %v9405_v21  ;;  %v3452_v48 = vpop.f32.mrf.mxu1 }
 0x462   : > { %v9661_v40 = vadd.f32 %v3627_v0, %v3539_v56  ;;  %v3453_v54 = vadd.f32 %v3452_v48, %v3364_v34  ;;  %3678 = vmatmul.bf16.gmra.mxu0 %v11890_v59 }
 0x463   : > { %3767 = vmatmul.bf16.gmra.mxu1 %v11891_v61 }
 0x464   : > { %11889 = vst [vmem:[#allocation97_spill] sm:$0xff] %v9661_v40  ;;  %3856 = vmatmul.bf16.gmra.mxu2 %v11846_v2  ;;  %v11892_v40 = vld [vmem:[#allocation75_spill] sm:$0xff] }
 0x465   : > { %3945 = vmatmul.bf16.gmra.mxu3 %v11847_v15 }
 0x467   : > { %v3541_v45 = vpop.f32.mrf.mxu2  ;;  %v3365_v13 = vpop.f32.mrf.mxu0 }
 0x468   : > { %v3542_v44 = vadd.f32 %v3541_v45, %v3453_v54  ;;  %v3630_v60 = vpop.f32.mrf.mxu3  ;;  %v3366_v30 = vadd.f32 %v3365_v13, %v9405_v21  ;;  %v3454_v33 = vpop.f32.mrf.mxu1  ;;  %v11893_v54 = vld [vmem:[#allocation76_spill] sm:$0xff] }
 0x469   : > { %v7252_v45 = vld [vmem:[%s11433_s1 + $0x6cc] sm:$0xf] }
 0x46a   : > { %v9668_v63 = vadd.f32 %v3630_v60, %v3542_v44  ;;  %v3455_v56 = vadd.f32 %v3454_v33, %v3366_v30  ;;  %v6746_v44 = vld [vmem:[%s11433_s1 + $0x6e0] sm:$0xf0]  ;;  %v7300_v13 = vld [vmem:[%s11433_s1 + $0x84c] sm:$0xf] }
 0x46b   : > { %v6362_v60 = vld [vmem:[%s11433_s1 + $0x3e0] sm:$0xf0] }
 0x46c   : > { %v6938_v30 = vld [vmem:[%s11433_s1 + $0x860] sm:$0xf0] }
 0x46f   : > { %v3543_v0 = vpop.f32.mrf.mxu2  ;;  %v3368_v48 = vpop.f32.mrf.mxu0 }
 0x470   : > { %v3544_v49 = vadd.f32 %v3543_v0, %v3455_v56  ;;  %v3632_v34 = vpop.f32.mrf.mxu3  ;;  %v3369_v61 = vadd.f32 %v3368_v48, %v9405_v21  ;;  %v3457_v59 = vpop.f32.mrf.mxu1  ;;  %v6941_v0 = vor.u32 %v7300_v13, %v6938_v30 }
 0x472   : > { %v9671_v2 = vadd.f32 %v3632_v34, %v3544_v49  ;;  %v3458_v15 = vadd.f32 %v3457_v59, %v3369_v61  ;;  %3683 = vmatmul.bf16.gmra.mxu0 %v11892_v40  ;;  %v7156_v61 = vld [vmem:[%s11433_s1 + $0x3cc] sm:$0xf]  ;;  %v6749_v59 = vor.u32 %v7252_v45, %v6746_v44  ;;  %4281 = vmatpush.bf16.msrb.mxu3 %v6941_v0 }
 0x473   : > { %3772 = vmatmul.bf16.gmra.mxu1 %v11893_v54  ;;  %v6365_v56 = vor.u32 %v7156_v61, %v6362_v60  ;;  %v6554_v61 = vld [vmem:[%s11433_s1 + $0x560] sm:$0xf0]  ;;  %v11896_v54 = vld [vmem:[#allocation78_spill] sm:$0xff] }
 0x474   : > { %3861 = vmatmul.bf16.gmra.mxu2 %v11850_v47  ;;  %v7204_v47 = vld [vmem:[%s11433_s1 + $0x54c] sm:$0xf] }
 0x475   : > { %3950 = vmatmul.bf16.gmra.mxu3 %v11851_v36  ;;  %4192 = vmatpush.bf16.msrb.mxu2 %v6749_v59 }
 0x476   : > { %4014 = vmatpush.bf16.msrb.mxu0 %v6365_v56 }
 0x477   : > { %v3546_v33 = vpop.f32.mrf.mxu2  ;;  %v3370_v48 = vpop.f32.mrf.mxu0 }
 0x478   : > { %v3547_v49 = vadd.f32 %v3546_v33, %v3458_v15  ;;  %v3635_v34 = vpop.f32.mrf.mxu3  ;;  %v3371_v45 = vadd.f32 %v3370_v48, %v9405_v21  ;;  %v3459_v44 = vpop.f32.mrf.mxu1  ;;  %v6557_v15 = vor.u32 %v7204_v47, %v6554_v61  ;;  %v11895_v48 = vld [vmem:[#allocation77_spill] sm:$0xff] }
 0x47a   : > { %v9696_v36 = vadd.f32 %v3635_v34, %v3547_v49  ;;  %v3460_v60 = vadd.f32 %v3459_v44, %v3371_v45  ;;  %4103 = vmatpush.bf16.msrb.mxu1 %v6557_v15 }
 0x47f   : > { %v3548_v13 = vpop.f32.mrf.mxu2  ;;  %v3373_v33 = vpop.f32.mrf.mxu0 }
 0x480   : > { %v3549_v59 = vadd.f32 %v3548_v13, %v3460_v60  ;;  %v3637_v30 = vpop.f32.mrf.mxu3  ;;  %v3374_v56 = vadd.f32 %v3373_v33, %v9405_v21  ;;  %v3462_v0 = vpop.f32.mrf.mxu1 }
 0x482   : > { %v9705_v49 = vadd.f32 %v3637_v30, %v3549_v59  ;;  %v3463_v34 = vadd.f32 %v3462_v0, %v3374_v56  ;;  %3688 = vmatmul.bf16.gmra.mxu0 %v11895_v48 }
 0x483   : > { %3777 = vmatmul.bf16.gmra.mxu1 %v11896_v54 }
 0x484   : > { %11894 = vst [vmem:[#allocation98_spill] sm:$0xff] %v9705_v49  ;;  %3866 = vmatmul.bf16.gmra.mxu2 %v11854_v7  ;;  %v11897_v49 = vld [vmem:[#allocation79_spill] sm:$0xff] }
 0x485   : > { %3955 = vmatmul.bf16.gmra.mxu3 %v11855_v1 }
 0x487   : > { %v3551_v47 = vpop.f32.mrf.mxu2  ;;  %v3375_v61 = vpop.f32.mrf.mxu0 }
 0x488   : > { %v3552_v45 = vadd.f32 %v3551_v47, %v3463_v34  ;;  %v3640_v44 = vpop.f32.mrf.mxu3  ;;  %v3376_v60 = vadd.f32 %v3375_v61, %v9405_v21  ;;  %v3464_v15 = vpop.f32.mrf.mxu1  ;;  %v11898_v34 = vld [vmem:[#allocation80_spill] sm:$0xff]  ;;  %v7246_v47 = vld [vmem:[%s11433_s1 + $0x69c] sm:$0xf] }
 0x489   : > { %v7294_v61 = vld [vmem:[%s11433_s1 + $0x81c] sm:$0xf] }
 0x48a   : > { %v9712_v13 = vadd.f32 %v3640_v44, %v3552_v45  ;;  %v3465_v59 = vadd.f32 %v3464_v15, %v3376_v60  ;;  %v6722_v45 = vld [vmem:[%s11433_s1 + $0x6b0] sm:$0xf0] }
 0x48b   : > { %v6338_v44 = vld [vmem:[%s11433_s1 + $0x3b0] sm:$0xf0] }
 0x48c   : > { %v6914_v60 = vld [vmem:[%s11433_s1 + $0x830] sm:$0xf0] }
 0x48f   : > { %v3553_v30 = vpop.f32.mrf.mxu2  ;;  %v3378_v0 = vpop.f32.mrf.mxu0 }
 0x490   : > { %v3554_v33 = vadd.f32 %v3553_v30, %v3465_v59  ;;  %v3642_v56 = vpop.f32.mrf.mxu3  ;;  %v3379_v54 = vadd.f32 %v3378_v0, %v9405_v21  ;;  %v3467_v48 = vpop.f32.mrf.mxu1  ;;  %v6917_v30 = vor.u32 %v7294_v61, %v6914_v60 }
 0x492   : > { %v9715_v7 = vadd.f32 %v3642_v56, %v3554_v33  ;;  %v3468_v1 = vadd.f32 %v3467_v48, %v3379_v54  ;;  %3693 = vmatmul.bf16.gmra.mxu0 %v11897_v49  ;;  %v7150_v54 = vld [vmem:[%s11433_s1 + $0x39c] sm:$0xf]  ;;  %v6725_v48 = vor.u32 %v7246_v47, %v6722_v45  ;;  %4282 = vmatpush.bf16.msrb.mxu3 %v6917_v30 }
 0x493   : > { %3782 = vmatmul.bf16.gmra.mxu1 %v11898_v34  ;;  %v6341_v59 = vor.u32 %v7150_v54, %v6338_v44  ;;  %v6530_v54 = vld [vmem:[%s11433_s1 + $0x530] sm:$0xf0]  ;;  %v11900_v34 = vld [vmem:[#allocation82_spill] sm:$0xff] }
 0x494   : > { %3871 = vmatmul.bf16.gmra.mxu2 %v11858_v18  ;;  %v7198_v18 = vld [vmem:[%s11433_s1 + $0x51c] sm:$0xf] }
 0x495   : > { %3960 = vmatmul.bf16.gmra.mxu3 %v11859_v27  ;;  %4193 = vmatpush.bf16.msrb.mxu2 %v6725_v48 }
 0x496   : > { %4015 = vmatpush.bf16.msrb.mxu0 %v6341_v59 }
 0x497   : > { %v3556_v15 = vpop.f32.mrf.mxu2  ;;  %v3380_v0 = vpop.f32.mrf.mxu0 }
 0x498   : > { %v3557_v33 = vadd.f32 %v3556_v15, %v3468_v1  ;;  %v3645_v56 = vpop.f32.mrf.mxu3  ;;  %v3381_v47 = vadd.f32 %v3380_v0, %v9405_v21  ;;  %v3469_v45 = vpop.f32.mrf.mxu1  ;;  %v6533_v1 = vor.u32 %v7198_v18, %v6530_v54  ;;  %v11899_v0 = vld [vmem:[#allocation81_spill] sm:$0xff] }
 0x49a   : > { %v9740_v27 = vadd.f32 %v3645_v56, %v3557_v33  ;;  %v3470_v44 = vadd.f32 %v3469_v45, %v3381_v47  ;;  %4104 = vmatpush.bf16.msrb.mxu1 %v6533_v1 }
 0x49f   : > { %v3558_v61 = vpop.f32.mrf.mxu2  ;;  %v3383_v15 = vpop.f32.mrf.mxu0 }
 0x4a0   : > { %v3559_v48 = vadd.f32 %v3558_v61, %v3470_v44  ;;  %v3647_v60 = vpop.f32.mrf.mxu3  ;;  %v3384_v59 = vadd.f32 %v3383_v15, %v9405_v21  ;;  %v3472_v30 = vpop.f32.mrf.mxu1 }
 0x4a2   : > { %v9749_v33 = vadd.f32 %v3647_v60, %v3559_v48  ;;  %v3473_v56 = vadd.f32 %v3472_v30, %v3384_v59  ;;  %3698 = vmatmul.bf16.gmra.mxu0 %v11899_v0 }
 0x4a3   : > { %3787 = vmatmul.bf16.gmra.mxu1 %v11900_v34 }
 0x4a4   : > { %3876 = vmatmul.bf16.gmra.mxu2 %v11861_v51 }
 0x4a5   : > { %3965 = vmatmul.bf16.gmra.mxu3 %v11862_v53 }
 0x4a7   : > { %v3561_v18 = vpop.f32.mrf.mxu2  ;;  %v3385_v54 = vpop.f32.mrf.mxu0 }
 0x4a8   : > { %v3562_v47 = vadd.f32 %v3561_v18, %v3473_v56  ;;  %v3650_v45 = vpop.f32.mrf.mxu3  ;;  %v3386_v44 = vadd.f32 %v3385_v54, %v9405_v21  ;;  %v3474_v1 = vpop.f32.mrf.mxu1  ;;  %v11901_v56 = vld [vmem:[#allocation83_spill] sm:$0xff]  ;;  %v11902_v18 = vld [vmem:[#allocation84_spill] sm:$0xff]  ;;  %v9765_v21 = vperm.slane %v9402_v12, 3 }
 0x4a9   : > { %v6314_v12 = vld [vmem:[%s11433_s1 + $0x380] sm:$0xf0] }
 0x4aa   : > { %v9756_v61 = vadd.f32 %v3650_v45, %v3562_v47  ;;  %v3475_v48 = vadd.f32 %v3474_v1, %v3386_v44  ;;  %v7144_v47 = vld [vmem:[%s11433_s1 + $0x36c] sm:$0xf]  ;;  %v6890_v44 = vld [vmem:[%s11433_s1 + $0x800] sm:$0xf0] }
 0x4ab   : > { %v6317_v54 = vor.u32 %v7144_v47, %v6314_v12  ;;  %v6506_v47 = vld [vmem:[%s11433_s1 + $0x500] sm:$0xf0] }
 0x4ad   : > { %4016 = vmatpush.bf16.msrb.mxu0 %v6317_v54 }
 0x4af   : > { %v3563_v60 = vpop.f32.mrf.mxu2  ;;  %v3664_v30 = vpop.f32.mrf.mxu0 }
 0x4b0   : > { %v3564_v15 = vadd.f32 %v3563_v60, %v3475_v48  ;;  %v3652_v59 = vpop.f32.mrf.mxu3  ;;  %v3665_v34 = vadd.f32 %v3664_v30, %v9432_v28  ;;  %v3753_v51 = vpop.f32.mrf.mxu1  ;;  %v7240_v28 = vld [vmem:[%s11433_s1 + $0x66c] sm:$0xf] }
 0x4b2   : > { %v9759_v0 = vadd.f32 %v3652_v59, %v3564_v15  ;;  %v3754_v53 = vadd.f32 %v3753_v51, %v3665_v34  ;;  %3703 = vmatmul.bf16.gmra.mxu0 %v11901_v56  ;;  %v6698_v51 = vld [vmem:[%s11433_s1 + $0x680] sm:$0xf0] }
 0x4b3   : > { %3792 = vmatmul.bf16.gmra.mxu1 %v11902_v18  ;;  %v6701_v34 = vor.u32 %v7240_v28, %v6698_v51  ;;  %v7192_v51 = vld [vmem:[%s11433_s1 + $0x4ec] sm:$0xf] }
 0x4b4   : > { %3881 = vmatmul.bf16.gmra.mxu2 %v11864_v43  ;;  %5437 = vst [vmem:[%s8610_s6 + $0x10] sm:$0xff] %v3754_v53  ;;  %v7288_v53 = vld [vmem:[%s11433_s1 + $0x7ec] sm:$0xf] }
 0x4b5   : > { %3970 = vmatmul.bf16.gmra.mxu3 %v11865_v55  ;;  %4194 = vmatpush.bf16.msrb.mxu2 %v6701_v34  ;;  %v6893_v15 = vor.u32 %v7288_v53, %v6890_v44  ;;  %v11904_v55 = vld [vmem:[#allocation86_spill] sm:$0xff] }
 0x4b7   : > { %v3842_v45 = vpop.f32.mrf.mxu2  ;;  %v3666_v60 = vpop.f32.mrf.mxu0  ;;  %4283 = vmatpush.bf16.msrb.mxu3 %v6893_v15  ;;  %v11903_v15 = vld [vmem:[#allocation85_spill] sm:$0xff] }
 0x4b8   : > { %v3843_v1 = vadd.f32 %v3842_v45, %v9765_v21  ;;  %v3931_v48 = vpop.f32.mrf.mxu3  ;;  %v3667_v59 = vadd.f32 %v3666_v60, %v9441_v17  ;;  %v3755_v30 = vpop.f32.mrf.mxu1  ;;  %v6509_v45 = vor.u32 %v7192_v51, %v6506_v47 }
 0x4ba   : > { %v9789_v28 = vadd.f32 %v3931_v48, %v3843_v1  ;;  %v3756_v12 = vadd.f32 %v3755_v30, %v3667_v59  ;;  %4105 = vmatpush.bf16.msrb.mxu1 %v6509_v45 }
 0x4bc   : > { %5443 = vst [vmem:[%s8610_s6 + $0x40] sm:$0xff] %v3756_v12 }
 0x4bf   : > { %v3844_v34 = vpop.f32.mrf.mxu2  ;;  %v3669_v54 = vpop.f32.mrf.mxu0 }
 0x4c0   : > { %v3845_v17 = vadd.f32 %v3844_v34, %v9765_v21  ;;  %v3933_v53 = vpop.f32.mrf.mxu3  ;;  %v3670_v44 = vadd.f32 %v3669_v54, %v9448_v8  ;;  %v3758_v1 = vpop.f32.mrf.mxu1 }
 0x4c2   : > { %v9800_v48 = vadd.f32 %v3933_v53, %v3845_v17  ;;  %v3759_v60 = vadd.f32 %v3758_v1, %v3670_v44  ;;  %3708 = vmatmul.bf16.gmra.mxu0 %v11903_v15 }
 0x4c3   : > { %3797 = vmatmul.bf16.gmra.mxu1 %v11904_v55 }
 0x4c4   : > { %3886 = vmatmul.bf16.gmra.mxu2 %v11866_v9  ;;  %5449 = vst [vmem:[%s8610_s6 + $0x70] sm:$0xff] %v3759_v60  ;;  %v11916_v9 = vld [vmem:[#allocation93_spill] sm:$0xff] }
 0x4c5   : > { %3975 = vmatmul.bf16.gmra.mxu3 %v11867_v52 }
 0x4c7   : > { %v3847_v59 = vpop.f32.mrf.mxu2  ;;  %v3671_v47 = vpop.f32.mrf.mxu0 }
 0x4c8   : > { %v3848_v30 = vadd.f32 %v3847_v59, %v9765_v21  ;;  %v3936_v51 = vpop.f32.mrf.mxu3  ;;  %v3672_v8 = vadd.f32 %v3671_v47, %v9451_v62  ;;  %v3760_v12 = vpop.f32.mrf.mxu1  ;;  %v7234_v62 = vld [vmem:[%s11433_s1 + $0x63c] sm:$0xf]  ;;  %v6290_v47 = vld [vmem:[%s11433_s1 + $0x350] sm:$0xf0] }
 0x4ca   : > { %v9809_v45 = vadd.f32 %v3936_v51, %v3848_v30  ;;  %v3761_v34 = vadd.f32 %v3760_v12, %v3672_v8  ;;  %v7138_v51 = vld [vmem:[%s11433_s1 + $0x33c] sm:$0xf] }
 0x4cb   : > { %v7282_v8 = vld [vmem:[%s11433_s1 + $0x7bc] sm:$0xf] }
 0x4cc   : > { %5455 = vst [vmem:[%s8610_s6 + $0xa0] sm:$0xff] %v3761_v34  ;;  %v6293_v34 = vor.u32 %v7138_v51, %v6290_v47  ;;  %v6482_v51 = vld [vmem:[%s11433_s1 + $0x4d0] sm:$0xf0] }
 0x4ce   : > { %4017 = vmatpush.bf16.msrb.mxu0 %v6293_v34 }
 0x4cf   : > { %v3849_v17 = vpop.f32.mrf.mxu2  ;;  %v3674_v44 = vpop.f32.mrf.mxu0 }
 0x4d0   : > { %v3850_v53 = vadd.f32 %v3849_v17, %v9765_v21  ;;  %v3938_v54 = vpop.f32.mrf.mxu3  ;;  %v3675_v1 = vadd.f32 %v3674_v44, %v9476_v20  ;;  %v3763_v60 = vpop.f32.mrf.mxu1  ;;  %v6674_v20 = vld [vmem:[%s11433_s1 + $0x650] sm:$0xf0] }
 0x4d1   : > { %v6677_v30 = vor.u32 %v7234_v62, %v6674_v20  ;;  %v6866_v17 = vld [vmem:[%s11433_s1 + $0x7d0] sm:$0xf0]  ;;  %v7186_v20 = vld [vmem:[%s11433_s1 + $0x4bc] sm:$0xf] }
 0x4d2   : > { %v9814_v52 = vadd.f32 %v3938_v54, %v3850_v53  ;;  %v3764_v59 = vadd.f32 %v3763_v60, %v3675_v1  ;;  %3713 = vmatmul.bf16.gmra.mxu0 %v8669_v50  ;;  %v6869_v1 = vor.u32 %v7282_v8, %v6866_v17 }
 0x4d3   : > { %3802 = vmatmul.bf16.gmra.mxu1 %v8672_v4  ;;  %4195 = vmatpush.bf16.msrb.mxu2 %v6677_v30 }
 0x4d4   : > { %3891 = vmatmul.bf16.gmra.mxu2 %v11868_v19  ;;  %5461 = vst [vmem:[%s8610_s6 + $0xd0] sm:$0xff] %v3764_v59  ;;  %4284 = vmatpush.bf16.msrb.mxu3 %v6869_v1 }
 0x4d5   : > { %3980 = vmatmul.bf16.gmra.mxu3 %v11869_v41  ;;  %v11911_v41 = vld [vmem:[#allocation90_spill] sm:$0xff] }
 0x4d7   : > { %v3852_v12 = vpop.f32.mrf.mxu2  ;;  %v3676_v44 = vpop.f32.mrf.mxu0 }
 0x4d8   : > { %v3853_v53 = vadd.f32 %v3852_v12, %v9765_v21  ;;  %v3941_v54 = vpop.f32.mrf.mxu3  ;;  %v3677_v60 = vadd.f32 %v3676_v44, %v9485_v10  ;;  %v3765_v59 = vpop.f32.mrf.mxu1  ;;  %v6485_v12 = vor.u32 %v7186_v20, %v6482_v51 }
 0x4da   : > { %v9841_v62 = vadd.f32 %v3941_v54, %v3853_v53  ;;  %v3766_v47 = vadd.f32 %v3765_v59, %v3677_v60  ;;  %4106 = vmatpush.bf16.msrb.mxu1 %v6485_v12 }
 0x4dc   : > { %5467 = vst [vmem:[%s8610_s6 + $0x100] sm:$0xff] %v3766_v47 }
 0x4df   : > { %v3854_v30 = vpop.f32.mrf.mxu2  ;;  %v3679_v34 = vpop.f32.mrf.mxu0 }
 0x4e0   : > { %v3855_v10 = vadd.f32 %v3854_v30, %v9765_v21  ;;  %v3943_v8 = vpop.f32.mrf.mxu3  ;;  %v3680_v17 = vadd.f32 %v3679_v34, %v9492_v14  ;;  %v3768_v53 = vpop.f32.mrf.mxu1 }
 0x4e2   : > { %v9852_v54 = vadd.f32 %v3943_v8, %v3855_v10  ;;  %v3769_v44 = vadd.f32 %v3768_v53, %v3680_v17  ;;  %3718 = vmatmul.bf16.gmra.mxu0 %v8715_v3 }
 0x4e3   : > { %3807 = vmatmul.bf16.gmra.mxu1 %v8718_v38 }
 0x4e4   : > { %3896 = vmatmul.bf16.gmra.mxu2 %v11870_v42  ;;  %5473 = vst [vmem:[%s8610_s6 + $0x130] sm:$0xff] %v3769_v44 }
 0x4e5   : > { %3985 = vmatmul.bf16.gmra.mxu3 %v11871_v6  ;;  %v11908_v6 = vld [vmem:[#allocation89_spill] sm:$0xff] }
 0x4e7   : > { %v3857_v1 = vpop.f32.mrf.mxu2  ;;  %v3681_v20 = vpop.f32.mrf.mxu0 }
 0x4e8   : > { %v3858_v60 = vadd.f32 %v3857_v1, %v9765_v21  ;;  %v3946_v59 = vpop.f32.mrf.mxu3  ;;  %v3682_v14 = vadd.f32 %v3681_v20, %v9495_v35  ;;  %v3770_v51 = vpop.f32.mrf.mxu1  ;;  %v11905_v35 = vld [vmem:[#allocation52_spill] sm:$0xff] }
 0x4e9   : > { %v7132_v20 = vld [vmem:[%s11433_s1 + $0x30c] sm:$0xf] }
 0x4ea   : > { %v9861_v47 = vadd.f32 %v3946_v59, %v3858_v60  ;;  %v3771_v12 = vadd.f32 %v3770_v51, %v3682_v14  ;;  %v7228_v60 = vld [vmem:[%s11433_s1 + $0x60c] sm:$0xf]  ;;  %v6266_v14 = vld [vmem:[%s11433_s1 + $0x320] sm:$0xf0] }
 0x4eb   : > { %v7276_v51 = vld [vmem:[%s11433_s1 + $0x78c] sm:$0xf] }
 0x4ec   : > { %5479 = vst [vmem:[%s8610_s6 + $0x160] sm:$0xff] %v3771_v12 }
 0x4ef   : > { %v3859_v30 = vpop.f32.mrf.mxu2  ;;  %v3684_v34 = vpop.f32.mrf.mxu0 }
 0x4f0   : > { %v3860_v10 = vadd.f32 %v3859_v30, %v9765_v21  ;;  %v3948_v8 = vpop.f32.mrf.mxu3  ;;  %v3685_v17 = vadd.f32 %v3684_v34, %v9520_v31  ;;  %v3773_v53 = vpop.f32.mrf.mxu1  ;;  %v6650_v31 = vld [vmem:[%s11433_s1 + $0x620] sm:$0xf0]  ;;  %v6269_v30 = vor.u32 %v7132_v20, %v6266_v14  ;;  %v7180_v20 = vld [vmem:[%s11433_s1 + $0x48c] sm:$0xf] }
 0x4f1   : > { %v6653_v59 = vor.u32 %v7228_v60, %v6650_v31  ;;  %v6458_v14 = vld [vmem:[%s11433_s1 + $0x4a0] sm:$0xf0] }
 0x4f2   : > { %v9866_v44 = vadd.f32 %v3948_v8, %v3860_v10  ;;  %v3774_v1 = vadd.f32 %v3773_v53, %v3685_v17  ;;  %3723 = vmatmul.bf16.gmra.mxu0 %v8737_v39  ;;  %v6842_v10 = vld [vmem:[%s11433_s1 + $0x7a0] sm:$0xf0] }
 0x4f3   : > { %3812 = vmatmul.bf16.gmra.mxu1 %v8740_v11  ;;  %4196 = vmatpush.bf16.msrb.mxu2 %v6653_v59  ;;  %v6845_v53 = vor.u32 %v7276_v51, %v6842_v10 }
 0x4f4   : > { %3901 = vmatmul.bf16.gmra.mxu2 %v11872_v29  ;;  %5485 = vst [vmem:[%s8610_s6 + $0x190] sm:$0xff] %v3774_v1  ;;  %v11906_v1 = vld [vmem:[#allocation94_spill] sm:$0xff]  ;;  %4018 = vmatpush.bf16.msrb.mxu0 %v6269_v30  ;;  %v6461_v29 = vor.u32 %v7180_v20, %v6458_v14 }
 0x4f5   : > { %3990 = vmatmul.bf16.gmra.mxu3 %v11905_v35 }
 0x4f6   : > { %4285 = vmatpush.bf16.msrb.mxu3 %v6845_v53  ;;  %4107 = vmatpush.bf16.msrb.mxu1 %v6461_v29  ;;  %v11910_v29 = vld [vmem:[#allocation56_spill] sm:$0xff] }
 0x4f7   : > { %v3862_v12 = vpop.f32.mrf.mxu2  ;;  %v3686_v17 = vpop.f32.mrf.mxu0 }
 0x4f8   : > { %v3863_v8 = vadd.f32 %v3862_v12, %v9765_v21  ;;  %v3951_v34 = vpop.f32.mrf.mxu3  ;;  %v3687_v60 = vadd.f32 %v3686_v17, %v11906_v1  ;;  %v3775_v31 = vpop.f32.mrf.mxu1  ;;  %v11907_v1 = vld [vmem:[#allocation88_spill] sm:$0xff] }
 0x4fa   : > { %v9893_v35 = vadd.f32 %v3951_v34, %v3863_v8  ;;  %v3776_v12 = vadd.f32 %v3775_v31, %v3687_v60  ;;  %v11909_v60 = vld [vmem:[#allocation55_spill] sm:$0xff] }
 0x4fc   : > { %5491 = vst [vmem:[%s8610_s6 + $0x1c0] sm:$0xff] %v3776_v12 }
 0x4ff   : > { %v3864_v59 = vpop.f32.mrf.mxu2  ;;  %v3689_v10 = vpop.f32.mrf.mxu0 }
 0x500   : > { %v3865_v51 = vadd.f32 %v3864_v59, %v9765_v21  ;;  %v3953_v30 = vpop.f32.mrf.mxu3  ;;  %v3690_v8 = vadd.f32 %v3689_v10, %v9536_v5  ;;  %v3778_v34 = vpop.f32.mrf.mxu1 }
 0x502   : > { %v9904_v17 = vadd.f32 %v3953_v30, %v3865_v51  ;;  %v3779_v53 = vadd.f32 %v3778_v34, %v3690_v8  ;;  %3728 = vmatmul.bf16.gmra.mxu0 %v11907_v1 }
 0x503   : > { %3817 = vmatmul.bf16.gmra.mxu1 %v11908_v6 }
 0x504   : > { %3906 = vmatmul.bf16.gmra.mxu2 %v11909_v60  ;;  %5497 = vst [vmem:[%s8610_s6 + $0x1f0] sm:$0xff] %v3779_v53 }
 0x505   : > { %3995 = vmatmul.bf16.gmra.mxu3 %v11910_v29 }
 0x507   : > { %v3867_v31 = vpop.f32.mrf.mxu2  ;;  %v3691_v12 = vpop.f32.mrf.mxu0 }
 0x508   : > { %v3868_v20 = vadd.f32 %v3867_v31, %v9765_v21  ;;  %v3956_v14 = vpop.f32.mrf.mxu3  ;;  %v3692_v5 = vadd.f32 %v3691_v12, %v9539_v37  ;;  %v3780_v59 = vpop.f32.mrf.mxu1  ;;  %v11912_v37 = vld [vmem:[#allocation91_spill] sm:$0xff] }
 0x50a   : > { %v9913_v51 = vadd.f32 %v3956_v14, %v3868_v20  ;;  %v3781_v30 = vadd.f32 %v3780_v59, %v3692_v5  ;;  %v11913_v20 = vld [vmem:[#allocation60_spill] sm:$0xff]  ;;  %v6440_v14 = vld [vmem:[%s11433_s1 + $0x460] sm:$0xf] }
 0x50b   : > { %v6632_v5 = vld [vmem:[%s11433_s1 + $0x5e0] sm:$0xf] }
 0x50c   : > { %5503 = vst [vmem:[%s8610_s6 + $0x220] sm:$0xff] %v3781_v30 }
 0x50f   : > { %v3869_v10 = vpop.f32.mrf.mxu2  ;;  %v3694_v53 = vpop.f32.mrf.mxu0 }
 0x510   : > { %v3870_v8 = vadd.f32 %v3869_v10, %v9765_v21  ;;  %v3958_v34 = vpop.f32.mrf.mxu3  ;;  %v3695_v29 = vadd.f32 %v3694_v53, %v9564_v23  ;;  %v3783_v60 = vpop.f32.mrf.mxu1  ;;  %v7178_v23 = vld [vmem:[%s11433_s1 + $0x474] sm:$0xf0] }
 0x511   : > { %v6441_v12 = vor.u32 %v7178_v23, %v6440_v14  ;;  %v7226_v10 = vld [vmem:[%s11433_s1 + $0x5f4] sm:$0xf0]  ;;  %v11914_v14 = vld [vmem:[#allocation95_spill] sm:$0xff] }
 0x512   : > { %v9918_v42 = vadd.f32 %v3958_v34, %v3870_v8  ;;  %v3784_v31 = vadd.f32 %v3783_v60, %v3695_v29  ;;  %3733 = vmatmul.bf16.gmra.mxu0 %v11911_v41  ;;  %v6056_v60 = vld [vmem:[%s11433_s1 + $0x160] sm:$0xf]  ;;  %v7082_v29 = vld [vmem:[%s11433_s1 + $0x174] sm:$0xf0] }
 0x513   : > { %3822 = vmatmul.bf16.gmra.mxu1 %v11912_v37  ;;  %v6057_v30 = vor.u32 %v7082_v29, %v6056_v60  ;;  %4545 = vmatpush.bf16.msra.mxu2 %v6441_v12  ;;  %v6248_v60 = vld [vmem:[%s11433_s1 + $0x2e0] sm:$0xf]  ;;  %v7130_v29 = vld [vmem:[%s11433_s1 + $0x2f4] sm:$0xf0] }
 0x514   : > { %3911 = vmatmul.bf16.gmra.mxu2 %v11877_v26  ;;  %5509 = vst [vmem:[%s8610_s6 + $0x250] sm:$0xff] %v3784_v31  ;;  %v6633_v31 = vor.u32 %v7226_v10, %v6632_v5  ;;  %v6249_v19 = vor.u32 %v7130_v29, %v6248_v60 }
 0x515   : > { %4000 = vmatmul.bf16.gmra.mxu3 %v11913_v20  ;;  %4367 = vmatpush.bf16.msra.mxu0 %v6057_v30 }
 0x516   : > { %4634 = vmatpush.bf16.msra.mxu3 %v6633_v31  ;;  %4456 = vmatpush.bf16.msra.mxu1 %v6249_v19  ;;  %v11918_v19 = vld [vmem:[#allocation64_spill] sm:$0xff] }
 0x517   : > { %v3872_v59 = vpop.f32.mrf.mxu2  ;;  %v3696_v53 = vpop.f32.mrf.mxu0 }
 0x518   : > { %v3873_v8 = vadd.f32 %v3872_v59, %v9765_v21  ;;  %v3961_v34 = vpop.f32.mrf.mxu3  ;;  %v3697_v23 = vadd.f32 %v3696_v53, %v11914_v14  ;;  %v3785_v20 = vpop.f32.mrf.mxu1  ;;  %v11915_v14 = vld [vmem:[#allocation92_spill] sm:$0xff] }
 0x51a   : > { %v9945_v26 = vadd.f32 %v3961_v34, %v3873_v8  ;;  %v3786_v59 = vadd.f32 %v3785_v20, %v3697_v23  ;;  %v11917_v20 = vld [vmem:[#allocation63_spill] sm:$0xff] }
 0x51c   : > { %5515 = vst [vmem:[%s8610_s6 + $0x280] sm:$0xff] %v3786_v59 }
 0x51f   : > { %v3874_v12 = vpop.f32.mrf.mxu2  ;;  %v3699_v10 = vpop.f32.mrf.mxu0 }
 0x520   : > { %v3875_v5 = vadd.f32 %v3874_v12, %v9765_v21  ;;  %v3963_v30 = vpop.f32.mrf.mxu3  ;;  %v3700_v8 = vadd.f32 %v3699_v10, %v9580_v58  ;;  %v3788_v34 = vpop.f32.mrf.mxu1 }
 0x522   : > { %v9956_v53 = vadd.f32 %v3963_v30, %v3875_v5  ;;  %v3789_v31 = vadd.f32 %v3788_v34, %v3700_v8  ;;  %3738 = vmatmul.bf16.gmra.mxu0 %v11915_v14 }
 0x523   : > { %3827 = vmatmul.bf16.gmra.mxu1 %v11916_v9  ;;  %v11919_v9 = vld [vmem:[#allocation5_spill] sm:$0xff] }
 0x524   : > { %3916 = vmatmul.bf16.gmra.mxu2 %v11917_v20  ;;  %5521 = vst [vmem:[%s8610_s6 + $0x2b0] sm:$0xff] %v3789_v31 }
 0x525   : > { %4005 = vmatmul.bf16.gmra.mxu3 %v11918_v19 }
 0x527   : > { %v3877_v23 = vpop.f32.mrf.mxu2  ;;  %v3701_v59 = vpop.f32.mrf.mxu0 }
 0x528   : > { %v3878_v60 = vadd.f32 %v3877_v23, %v9765_v21  ;;  %v3966_v29 = vpop.f32.mrf.mxu3  ;;  %v3702_v58 = vadd.f32 %v3701_v59, %v9583_v25  ;;  %v3790_v12 = vpop.f32.mrf.mxu1  ;;  %v11920_v25 = vld [vmem:[#allocation6_spill] sm:$0xff] }
 0x52a   : > { %v9965_v5 = vadd.f32 %v3966_v29, %v3878_v60  ;;  %v3791_v30 = vadd.f32 %v3790_v12, %v3702_v58  ;;  %v11921_v60 = vld [vmem:[#allocation68_spill] sm:$0xff]  ;;  %v6416_v29 = vld [vmem:[%s11433_s1 + $0x430] sm:$0xf] }
 0x52b   : > { %v6608_v58 = vld [vmem:[%s11433_s1 + $0x5b0] sm:$0xf] }
 0x52c   : > { %5527 = vst [vmem:[%s8610_s6 + $0x2e0] sm:$0xff] %v3791_v30 }
 0x52f   : > { %v3879_v10 = vpop.f32.mrf.mxu2  ;;  %v3704_v31 = vpop.f32.mrf.mxu0 }
 0x530   : > { %v3880_v8 = vadd.f32 %v3879_v10, %v9765_v21  ;;  %v3968_v34 = vpop.f32.mrf.mxu3  ;;  %v3705_v19 = vadd.f32 %v3704_v31, %v9608_v22  ;;  %v3793_v20 = vpop.f32.mrf.mxu1  ;;  %v7172_v22 = vld [vmem:[%s11433_s1 + $0x444] sm:$0xf0] }
 0x531   : > { %v6417_v59 = vor.u32 %v7172_v22, %v6416_v29  ;;  %v7220_v10 = vld [vmem:[%s11433_s1 + $0x5c4] sm:$0xf0] }
 0x532   : > { %v9970_v43 = vadd.f32 %v3968_v34, %v3880_v8  ;;  %v3794_v23 = vadd.f32 %v3793_v20, %v3705_v19  ;;  %4019 = vmatmul.bf16.vlgmr.msrb.gmra.mxu0 %v11919_v9  ;;  %v6032_v20 = vld [vmem:[%s11433_s1 + $0x130] sm:$0xf]  ;;  %v7076_v19 = vld [vmem:[%s11433_s1 + $0x144] sm:$0xf0]  ;;  %v11924_v9 = vld [vmem:[#allocation10_spill] sm:$0xff] }
 0x533   : > { %4108 = vmatmul.bf16.vlgmr.msrb.gmra.mxu1 %v11920_v25  ;;  %v6033_v30 = vor.u32 %v7076_v19, %v6032_v20  ;;  %4546 = vmatpush.bf16.msra.mxu2 %v6417_v59  ;;  %v11922_v29 = vld [vmem:[#allocation96_spill] sm:$0xff]  ;;  %v6224_v20 = vld [vmem:[%s11433_s1 + $0x2b0] sm:$0xf] }
 0x534   : > { %4197 = vmatmul.bf16.vlgmr.msrb.gmra.mxu2 %v11882_v24  ;;  %5533 = vst [vmem:[%s8610_s6 + $0x310] sm:$0xff] %v3794_v23  ;;  %v6609_v23 = vor.u32 %v7220_v10, %v6608_v58  ;;  %v7124_v19 = vld [vmem:[%s11433_s1 + $0x2c4] sm:$0xf0] }
 0x535   : > { %4286 = vmatmul.bf16.vlgmr.msrb.gmra.mxu3 %v11921_v60  ;;  %4368 = vmatpush.bf16.msra.mxu0 %v6033_v30  ;;  %v6225_v25 = vor.u32 %v7124_v19, %v6224_v20 }
 0x536   : > { %4635 = vmatpush.bf16.msra.mxu3 %v6609_v23 }
 0x537   : > { %v3882_v12 = vpop.f32.mrf.mxu2  ;;  %v3706_v31 = vpop.f32.mrf.mxu0  ;;  %4457 = vmatpush.bf16.msra.mxu1 %v6225_v25  ;;  %v11926_v25 = vld [vmem:[#allocation70_spill] sm:$0xff] }
 0x538   : > { %v3883_v8 = vadd.f32 %v3882_v12, %v9765_v21  ;;  %v3971_v34 = vpop.f32.mrf.mxu3  ;;  %v3707_v22 = vadd.f32 %v3706_v31, %v11922_v29  ;;  %v3795_v60 = vpop.f32.mrf.mxu1  ;;  %v11923_v29 = vld [vmem:[#allocation9_spill] sm:$0xff] }
 0x53a   : > { %v9997_v24 = vadd.f32 %v3971_v34, %v3883_v8  ;;  %v3796_v12 = vadd.f32 %v3795_v60, %v3707_v22  ;;  %v11925_v60 = vld [vmem:[#allocation69_spill] sm:$0xff] }
 0x53c   : > { %5539 = vst [vmem:[%s8610_s6 + $0x340] sm:$0xff] %v3796_v12 }
 0x53f   : > { %v3884_v59 = vpop.f32.mrf.mxu2  ;;  %v3709_v10 = vpop.f32.mrf.mxu0 }
 0x540   : > { %v3885_v58 = vadd.f32 %v3884_v59, %v9765_v21  ;;  %v3973_v30 = vpop.f32.mrf.mxu3  ;;  %v3710_v8 = vadd.f32 %v3709_v10, %v9624_v57  ;;  %v3798_v34 = vpop.f32.mrf.mxu1 }
 0x542   : > { %v10008_v31 = vadd.f32 %v3973_v30, %v3885_v58  ;;  %v3799_v23 = vadd.f32 %v3798_v34, %v3710_v8  ;;  %4024 = vmatmul.bf16.gmra.mxu0 %v11923_v29  ;;  %v11927_v29 = vld [vmem:[#allocation13_spill] sm:$0xff] }
 0x543   : > { %4113 = vmatmul.bf16.gmra.mxu1 %v11924_v9 }
 0x544   : > { %4202 = vmatmul.bf16.gmra.mxu2 %v11925_v60  ;;  %5545 = vst [vmem:[%s8610_s6 + $0x370] sm:$0xff] %v3799_v23 }
 0x545   : > { %4291 = vmatmul.bf16.gmra.mxu3 %v11926_v25 }
 0x547   : > { %v3887_v22 = vpop.f32.mrf.mxu2  ;;  %v3711_v12 = vpop.f32.mrf.mxu0 }
 0x548   : > { %v3888_v20 = vadd.f32 %v3887_v22, %v9765_v21  ;;  %v3976_v19 = vpop.f32.mrf.mxu3  ;;  %v3712_v57 = vadd.f32 %v3711_v12, %v9627_v46  ;;  %v3800_v59 = vpop.f32.mrf.mxu1  ;;  %v11928_v46 = vld [vmem:[#allocation14_spill] sm:$0xff] }
 0x54a   : > { %v10017_v58 = vadd.f32 %v3976_v19, %v3888_v20  ;;  %v3801_v30 = vadd.f32 %v3800_v59, %v3712_v57  ;;  %v11929_v20 = vld [vmem:[#allocation72_spill] sm:$0xff]  ;;  %v6392_v19 = vld [vmem:[%s11433_s1 + $0x400] sm:$0xf] }
 0x54b   : > { %v6584_v57 = vld [vmem:[%s11433_s1 + $0x580] sm:$0xf] }
 0x54c   : > { %5551 = vst [vmem:[%s8610_s6 + $0x3a0] sm:$0xff] %v3801_v30 }
 0x54f   : > { %v3889_v10 = vpop.f32.mrf.mxu2  ;;  %v3714_v23 = vpop.f32.mrf.mxu0 }
 0x550   : > { %v3890_v8 = vadd.f32 %v3889_v10, %v9765_v21  ;;  %v3978_v34 = vpop.f32.mrf.mxu3  ;;  %v3715_v25 = vadd.f32 %v3714_v23, %v9652_v16  ;;  %v3803_v60 = vpop.f32.mrf.mxu1  ;;  %v7166_v16 = vld [vmem:[%s11433_s1 + $0x414] sm:$0xf0] }
 0x551   : > { %v6393_v12 = vor.u32 %v7166_v16, %v6392_v19  ;;  %v7214_v10 = vld [vmem:[%s11433_s1 + $0x594] sm:$0xf0]  ;;  %v11930_v19 = vld [vmem:[#allocation97_spill] sm:$0xff] }
 0x552   : > { %v10022_v9 = vadd.f32 %v3978_v34, %v3890_v8  ;;  %v3804_v22 = vadd.f32 %v3803_v60, %v3715_v25  ;;  %4029 = vmatmul.bf16.gmra.mxu0 %v11927_v29  ;;  %v6008_v60 = vld [vmem:[%s11433_s1 + $0x100] sm:$0xf]  ;;  %v7070_v25 = vld [vmem:[%s11433_s1 + $0x114] sm:$0xf0] }
 0x553   : > { %4118 = vmatmul.bf16.gmra.mxu1 %v11928_v46  ;;  %v6009_v30 = vor.u32 %v7070_v25, %v6008_v60  ;;  %4547 = vmatpush.bf16.msra.mxu2 %v6393_v12  ;;  %v6200_v60 = vld [vmem:[%s11433_s1 + $0x280] sm:$0xf]  ;;  %v7118_v25 = vld [vmem:[%s11433_s1 + $0x294] sm:$0xf0] }
 0x554   : > { %4207 = vmatmul.bf16.gmra.mxu2 %v11887_v32  ;;  %5557 = vst [vmem:[%s8610_s6 + $0x3d0] sm:$0xff] %v3804_v22  ;;  %v6585_v22 = vor.u32 %v7214_v10, %v6584_v57  ;;  %v6201_v46 = vor.u32 %v7118_v25, %v6200_v60  ;;  %v11932_v29 = vld [vmem:[#allocation18_spill] sm:$0xff] }
 0x555   : > { %4296 = vmatmul.bf16.gmra.mxu3 %v11929_v20  ;;  %4369 = vmatpush.bf16.msra.mxu0 %v6009_v30 }
 0x556   : > { %4636 = vmatpush.bf16.msra.mxu3 %v6585_v22  ;;  %4458 = vmatpush.bf16.msra.mxu1 %v6201_v46  ;;  %v11934_v46 = vld [vmem:[#allocation74_spill] sm:$0xff] }
 0x557   : > { %v3892_v59 = vpop.f32.mrf.mxu2  ;;  %v3716_v23 = vpop.f32.mrf.mxu0 }
 0x558   : > { %v3893_v8 = vadd.f32 %v3892_v59, %v9765_v21  ;;  %v3981_v34 = vpop.f32.mrf.mxu3  ;;  %v3717_v16 = vadd.f32 %v3716_v23, %v11930_v19  ;;  %v3805_v20 = vpop.f32.mrf.mxu1  ;;  %v11931_v19 = vld [vmem:[#allocation17_spill] sm:$0xff] }
 0x55a   : > { %v10049_v32 = vadd.f32 %v3981_v34, %v3893_v8  ;;  %v3806_v59 = vadd.f32 %v3805_v20, %v3717_v16  ;;  %v11933_v20 = vld [vmem:[#allocation73_spill] sm:$0xff] }
 0x55c   : > { %5563 = vst [vmem:[%s8610_s6 + $0x400] sm:$0xff] %v3806_v59 }
 0x55f   : > { %v3894_v12 = vpop.f32.mrf.mxu2  ;;  %v3719_v10 = vpop.f32.mrf.mxu0 }
 0x560   : > { %v3895_v57 = vadd.f32 %v3894_v12, %v9765_v21  ;;  %v3983_v30 = vpop.f32.mrf.mxu3  ;;  %v3720_v8 = vadd.f32 %v3719_v10, %v9668_v63  ;;  %v3808_v34 = vpop.f32.mrf.mxu1 }
 0x562   : > { %v10060_v23 = vadd.f32 %v3983_v30, %v3895_v57  ;;  %v3809_v22 = vadd.f32 %v3808_v34, %v3720_v8  ;;  %4034 = vmatmul.bf16.gmra.mxu0 %v11931_v19  ;;  %v11935_v19 = vld [vmem:[#allocation21_spill] sm:$0xff] }
 0x563   : > { %4123 = vmatmul.bf16.gmra.mxu1 %v11932_v29 }
 0x564   : > { %4212 = vmatmul.bf16.gmra.mxu2 %v11933_v20  ;;  %5569 = vst [vmem:[%s8610_s6 + $0x430] sm:$0xff] %v3809_v22 }
 0x565   : > { %4301 = vmatmul.bf16.gmra.mxu3 %v11934_v46 }
 0x567   : > { %v3897_v16 = vpop.f32.mrf.mxu2  ;;  %v3721_v59 = vpop.f32.mrf.mxu0 }
 0x568   : > { %v3898_v60 = vadd.f32 %v3897_v16, %v9765_v21  ;;  %v3986_v25 = vpop.f32.mrf.mxu3  ;;  %v3722_v63 = vadd.f32 %v3721_v59, %v9671_v2  ;;  %v3810_v12 = vpop.f32.mrf.mxu1  ;;  %v11936_v2 = vld [vmem:[#allocation22_spill] sm:$0xff] }
 0x56a   : > { %v10069_v57 = vadd.f32 %v3986_v25, %v3898_v60  ;;  %v3811_v30 = vadd.f32 %v3810_v12, %v3722_v63  ;;  %v11937_v60 = vld [vmem:[#allocation76_spill] sm:$0xff]  ;;  %v6368_v25 = vld [vmem:[%s11433_s1 + $0x3d0] sm:$0xf] }
 0x56b   : > { %v6560_v63 = vld [vmem:[%s11433_s1 + $0x550] sm:$0xf] }
 0x56c   : > { %5575 = vst [vmem:[%s8610_s6 + $0x460] sm:$0xff] %v3811_v30 }
 0x56f   : > { %v3899_v10 = vpop.f32.mrf.mxu2  ;;  %v3724_v22 = vpop.f32.mrf.mxu0 }
 0x570   : > { %v3900_v8 = vadd.f32 %v3899_v10, %v9765_v21  ;;  %v3988_v34 = vpop.f32.mrf.mxu3  ;;  %v3725_v46 = vadd.f32 %v3724_v22, %v9696_v36  ;;  %v3813_v20 = vpop.f32.mrf.mxu1  ;;  %v7160_v36 = vld [vmem:[%s11433_s1 + $0x3e4] sm:$0xf0] }
 0x571   : > { %v6369_v59 = vor.u32 %v7160_v36, %v6368_v25  ;;  %v7208_v10 = vld [vmem:[%s11433_s1 + $0x564] sm:$0xf0]  ;;  %v11938_v25 = vld [vmem:[#allocation98_spill] sm:$0xff] }
 0x572   : > { %v10074_v29 = vadd.f32 %v3988_v34, %v3900_v8  ;;  %v3814_v16 = vadd.f32 %v3813_v20, %v3725_v46  ;;  %4039 = vmatmul.bf16.gmra.mxu0 %v11935_v19  ;;  %v5984_v20 = vld [vmem:[%s11433_s1 + $0xd0] sm:$0xf]  ;;  %v7064_v46 = vld [vmem:[%s11433_s1 + $0xe4] sm:$0xf0]  ;;  %v11940_v19 = vld [vmem:[#allocation26_spill] sm:$0xff] }
 0x573   : > { %4128 = vmatmul.bf16.gmra.mxu1 %v11936_v2  ;;  %v5985_v30 = vor.u32 %v7064_v46, %v5984_v20  ;;  %4548 = vmatpush.bf16.msra.mxu2 %v6369_v59  ;;  %v6176_v20 = vld [vmem:[%s11433_s1 + $0x250] sm:$0xf]  ;;  %v7112_v46 = vld [vmem:[%s11433_s1 + $0x264] sm:$0xf0] }
 0x574   : > { %4217 = vmatmul.bf16.gmra.mxu2 %v11892_v40  ;;  %5581 = vst [vmem:[%s8610_s6 + $0x490] sm:$0xff] %v3814_v16  ;;  %v6561_v16 = vor.u32 %v7208_v10, %v6560_v63  ;;  %v6177_v2 = vor.u32 %v7112_v46, %v6176_v20 }
 0x575   : > { %4306 = vmatmul.bf16.gmra.mxu3 %v11937_v60  ;;  %4370 = vmatpush.bf16.msra.mxu0 %v5985_v30 }
 0x576   : > { %4637 = vmatpush.bf16.msra.mxu3 %v6561_v16  ;;  %4459 = vmatpush.bf16.msra.mxu1 %v6177_v2  ;;  %v11942_v2 = vld [vmem:[#allocation78_spill] sm:$0xff] }
 0x577   : > { %v3902_v12 = vpop.f32.mrf.mxu2  ;;  %v3726_v22 = vpop.f32.mrf.mxu0 }
 0x578   : > { %v3903_v8 = vadd.f32 %v3902_v12, %v9765_v21  ;;  %v3991_v34 = vpop.f32.mrf.mxu3  ;;  %v3727_v36 = vadd.f32 %v3726_v22, %v11938_v25  ;;  %v3815_v60 = vpop.f32.mrf.mxu1  ;;  %v11939_v25 = vld [vmem:[#allocation25_spill] sm:$0xff] }
 0x57a   : > { %v10101_v40 = vadd.f32 %v3991_v34, %v3903_v8  ;;  %v3816_v12 = vadd.f32 %v3815_v60, %v3727_v36  ;;  %v11941_v60 = vld [vmem:[#allocation77_spill] sm:$0xff] }
 0x57c   : > { %5587 = vst [vmem:[%s8610_s6 + $0x4c0] sm:$0xff] %v3816_v12 }
 0x57f   : > { %v3904_v59 = vpop.f32.mrf.mxu2  ;;  %v3729_v10 = vpop.f32.mrf.mxu0 }
 0x580   : > { %v3905_v63 = vadd.f32 %v3904_v59, %v9765_v21  ;;  %v3993_v30 = vpop.f32.mrf.mxu3  ;;  %v3730_v8 = vadd.f32 %v3729_v10, %v9712_v13  ;;  %v3818_v34 = vpop.f32.mrf.mxu1 }
 0x582   : > { %v10112_v22 = vadd.f32 %v3993_v30, %v3905_v63  ;;  %v3819_v16 = vadd.f32 %v3818_v34, %v3730_v8  ;;  %4044 = vmatmul.bf16.gmra.mxu0 %v11939_v25  ;;  %v11943_v25 = vld [vmem:[#allocation29_spill] sm:$0xff] }
 0x583   : > { %4133 = vmatmul.bf16.gmra.mxu1 %v11940_v19 }
 0x584   : > { %4222 = vmatmul.bf16.gmra.mxu2 %v11941_v60  ;;  %5593 = vst [vmem:[%s8610_s6 + $0x4f0] sm:$0xff] %v3819_v16 }
 0x585   : > { %4311 = vmatmul.bf16.gmra.mxu3 %v11942_v2 }
 0x587   : > { %v3907_v36 = vpop.f32.mrf.mxu2  ;;  %v3731_v12 = vpop.f32.mrf.mxu0 }
 0x588   : > { %v3908_v20 = vadd.f32 %v3907_v36, %v9765_v21  ;;  %v3996_v46 = vpop.f32.mrf.mxu3  ;;  %v3732_v13 = vadd.f32 %v3731_v12, %v9715_v7  ;;  %v3820_v59 = vpop.f32.mrf.mxu1  ;;  %v11944_v7 = vld [vmem:[#allocation30_spill] sm:$0xff] }
 0x58a   : > { %v10121_v63 = vadd.f32 %v3996_v46, %v3908_v20  ;;  %v3821_v30 = vadd.f32 %v3820_v59, %v3732_v13  ;;  %v11945_v20 = vld [vmem:[#allocation80_spill] sm:$0xff]  ;;  %v6344_v46 = vld [vmem:[%s11433_s1 + $0x3a0] sm:$0xf] }
 0x58b   : > { %v6536_v13 = vld [vmem:[%s11433_s1 + $0x520] sm:$0xf] }
 0x58c   : > { %5599 = vst [vmem:[%s8610_s6 + $0x520] sm:$0xff] %v3821_v30 }
 0x58f   : > { %v3909_v10 = vpop.f32.mrf.mxu2  ;;  %v3734_v16 = vpop.f32.mrf.mxu0 }
 0x590   : > { %v3910_v8 = vadd.f32 %v3909_v10, %v9765_v21  ;;  %v3998_v34 = vpop.f32.mrf.mxu3  ;;  %v3735_v2 = vadd.f32 %v3734_v16, %v9740_v27  ;;  %v3823_v60 = vpop.f32.mrf.mxu1  ;;  %v7154_v27 = vld [vmem:[%s11433_s1 + $0x3b4] sm:$0xf0] }
 0x591   : > { %v6345_v12 = vor.u32 %v7154_v27, %v6344_v46  ;;  %v7202_v10 = vld [vmem:[%s11433_s1 + $0x534] sm:$0xf0] }
 0x592   : > { %v10126_v19 = vadd.f32 %v3998_v34, %v3910_v8  ;;  %v3824_v36 = vadd.f32 %v3823_v60, %v3735_v2  ;;  %4049 = vmatmul.bf16.gmra.mxu0 %v11943_v25  ;;  %v5960_v60 = vld [vmem:[%s11433_s1 + $0xa0] sm:$0xf]  ;;  %v7058_v2 = vld [vmem:[%s11433_s1 + $0xb4] sm:$0xf0] }
 0x593   : > { %4138 = vmatmul.bf16.gmra.mxu1 %v11944_v7  ;;  %v5961_v30 = vor.u32 %v7058_v2, %v5960_v60  ;;  %4549 = vmatpush.bf16.msra.mxu2 %v6345_v12  ;;  %v6152_v60 = vld [vmem:[%s11433_s1 + $0x220] sm:$0xf]  ;;  %v7106_v2 = vld [vmem:[%s11433_s1 + $0x234] sm:$0xf0] }
 0x594   : > { %4227 = vmatmul.bf16.gmra.mxu2 %v11897_v49  ;;  %5605 = vst [vmem:[%s8610_s6 + $0x550] sm:$0xff] %v3824_v36  ;;  %v6537_v36 = vor.u32 %v7202_v10, %v6536_v13  ;;  %v6153_v12 = vor.u32 %v7106_v2, %v6152_v60 }
 0x595   : > { %4316 = vmatmul.bf16.gmra.mxu3 %v11945_v20  ;;  %4371 = vmatpush.bf16.msra.mxu0 %v5961_v30 }
 0x596   : > { %4638 = vmatpush.bf16.msra.mxu3 %v6537_v36  ;;  %4460 = vmatpush.bf16.msra.mxu1 %v6153_v12  ;;  %v11947_v36 = vld [vmem:[#allocation33_spill] sm:$0xff] }
 0x597   : > { %v3912_v59 = vpop.f32.mrf.mxu2  ;;  %v3736_v16 = vpop.f32.mrf.mxu0 }
 0x598   : > { %v3913_v8 = vadd.f32 %v3912_v59, %v9765_v21  ;;  %v4001_v34 = vpop.f32.mrf.mxu3  ;;  %v3737_v46 = vadd.f32 %v3736_v16, %v9749_v33  ;;  %v3825_v27 = vpop.f32.mrf.mxu1 }
 0x59a   : > { %v10153_v20 = vadd.f32 %v4001_v34, %v3913_v8  ;;  %v3826_v49 = vadd.f32 %v3825_v27, %v3737_v46  ;;  %v11948_v46 = vld [vmem:[#allocation34_spill] sm:$0xff]  ;;  %v11949_v27 = vld [vmem:[#allocation81_spill] sm:$0xff] }
 0x59c   : > { %5611 = vst [vmem:[%s8610_s6 + $0x580] sm:$0xff] %v3826_v49  ;;  %v11950_v49 = vld [vmem:[#allocation82_spill] sm:$0xff] }
 0x59f   : > { %v3914_v13 = vpop.f32.mrf.mxu2  ;;  %v3739_v30 = vpop.f32.mrf.mxu0 }
 0x5a0   : > { %v3915_v33 = vadd.f32 %v3914_v13, %v9765_v21  ;;  %v4003_v59 = vpop.f32.mrf.mxu3  ;;  %v3740_v10 = vadd.f32 %v3739_v30, %v9756_v61  ;;  %v3828_v8 = vpop.f32.mrf.mxu1 }
 0x5a2   : > { %v10164_v34 = vadd.f32 %v4003_v59, %v3915_v33  ;;  %v3829_v16 = vadd.f32 %v3828_v8, %v3740_v10  ;;  %4054 = vmatmul.bf16.gmra.mxu0 %v11947_v36 }
 0x5a3   : > { %4143 = vmatmul.bf16.gmra.mxu1 %v11948_v46 }
 0x5a4   : > { %11946 = vst [vmem:[#allocation83_spill] sm:$0xff] %v10164_v34  ;;  %4232 = vmatmul.bf16.gmra.mxu2 %v11949_v27  ;;  %v11952_v34 = vld [vmem:[#allocation38_spill] sm:$0xff] }
 0x5a5   : > { %5617 = vst [vmem:[%s8610_s6 + $0x5b0] sm:$0xff] %v3829_v16  ;;  %4321 = vmatmul.bf16.gmra.mxu3 %v11950_v49 }
 0x5a7   : > { %v3917_v60 = vpop.f32.mrf.mxu2  ;;  %v3741_v13 = vpop.f32.mrf.mxu0 }
 0x5a8   : > { %v3918_v2 = vadd.f32 %v3917_v60, %v9765_v21  ;;  %v4006_v12 = vpop.f32.mrf.mxu3  ;;  %v3742_v61 = vadd.f32 %v3741_v13, %v9759_v0  ;;  %v3830_v30 = vpop.f32.mrf.mxu1  ;;  %v11951_v60 = vld [vmem:[#allocation37_spill] sm:$0xff]  ;;  %v7196_v13 = vld [vmem:[%s11433_s1 + $0x504] sm:$0xf0] }
 0x5a9   : > { %v6320_v0 = vld [vmem:[%s11433_s1 + $0x370] sm:$0xf] }
 0x5aa   : > { %v10173_v33 = vadd.f32 %v4006_v12, %v3918_v2  ;;  %v3831_v59 = vadd.f32 %v3830_v30, %v3742_v61  ;;  %v7052_v2 = vld [vmem:[%s11433_s1 + $0x84] sm:$0xf0]  ;;  %v6512_v12 = vld [vmem:[%s11433_s1 + $0x4f0] sm:$0xf] }
 0x5ac   : > { %5623 = vst [vmem:[%s8610_s6 + $0x5e0] sm:$0xff] %v3831_v59  ;;  %v6513_v59 = vor.u32 %v7196_v13, %v6512_v12 }
 0x5ae   : > { %4639 = vmatpush.bf16.msra.mxu3 %v6513_v59 }
 0x5af   : > { %v3919_v10 = vpop.f32.mrf.mxu2  ;;  %v4020_v27 = vpop.f32.mrf.mxu0 }
 0x5b0   : > { %v3920_v8 = vadd.f32 %v3919_v10, %v9765_v21  ;;  %v4008_v46 = vpop.f32.mrf.mxu3  ;;  %v4109_v16 = vpop.f32.mrf.mxu1  ;;  %v4021_v49 = vadd.f32 %v4020_v27, %v9789_v28  ;;  %v7148_v21 = vld [vmem:[%s11433_s1 + $0x384] sm:$0xf0]  ;;  %v5936_v28 = vld [vmem:[%s11433_s1 + $0x70] sm:$0xf] }
 0x5b1   : > { %v6321_v27 = vor.u32 %v7148_v21, %v6320_v0  ;;  %v5937_v30 = vor.u32 %v7052_v2, %v5936_v28  ;;  %v7100_v28 = vld [vmem:[%s11433_s1 + $0x204] sm:$0xf0] }
 0x5b2   : > { %v10177_v36 = vadd.f32 %v4008_v46, %v3920_v8  ;;  %4059 = vmatmul.bf16.gmra.mxu0 %v11951_v60  ;;  %v4110_v46 = vadd.f32 %v4109_v16, %v4021_v49 }
 0x5b3   : > { %4148 = vmatmul.bf16.gmra.mxu1 %v11952_v34  ;;  %4550 = vmatpush.bf16.msra.mxu2 %v6321_v27 }
 0x5b4   : > { %4237 = vmatmul.bf16.gmra.mxu2 %v11901_v56  ;;  %4372 = vmatpush.bf16.msra.mxu0 %v5937_v30 }
 0x5b5   : > { %4326 = vmatmul.bf16.gmra.mxu3 %v11902_v18  ;;  %v6128_v18 = vld [vmem:[%s11433_s1 + $0x1f0] sm:$0xf] }
 0x5b7   : > { %v4198_v61 = vpop.f32.mrf.mxu2  ;;  %v4022_v49 = vpop.f32.mrf.mxu0 }
 0x5b8   : > { %v4199_v10 = vadd.f32 %v4198_v61, %v4110_v46  ;;  %v4287_v8 = vpop.f32.mrf.mxu3  ;;  %v4111_v16 = vpop.f32.mrf.mxu1  ;;  %v4023_v21 = vadd.f32 %v4022_v49, %v9800_v48  ;;  %v6129_v46 = vor.u32 %v7100_v28, %v6128_v18 }
 0x5ba   : > { %v4288_v0 = vadd.f32 %v4287_v8, %v4199_v10  ;;  %v4112_v2 = vadd.f32 %v4111_v16, %v4023_v21  ;;  %4461 = vmatpush.bf16.msra.mxu1 %v6129_v46  ;;  %v11953_v10 = vld [vmem:[#allocation41_spill] sm:$0xff]  ;;  %v11954_v8 = vld [vmem:[#allocation42_spill] sm:$0xff] }
 0x5bc   : > { %5438 = vst [vmem:[%s8610_s6 + $0x18] sm:$0xff] %v4288_v0 }
 0x5bf   : > { %v4200_v12 = vpop.f32.mrf.mxu2  ;;  %v4025_v61 = vpop.f32.mrf.mxu0 }
 0x5c0   : > { %v4201_v27 = vadd.f32 %v4200_v12, %v4112_v2  ;;  %v4289_v13 = vpop.f32.mrf.mxu3  ;;  %v4114_v30 = vpop.f32.mrf.mxu1  ;;  %v4026_v48 = vadd.f32 %v4025_v61, %v9809_v45 }
 0x5c2   : > { %v4290_v59 = vadd.f32 %v4289_v13, %v4201_v27  ;;  %4064 = vmatmul.bf16.gmra.mxu0 %v11953_v10  ;;  %v4115_v18 = vadd.f32 %v4114_v30, %v4026_v48  ;;  %v11955_v30 = vld [vmem:[#allocation45_spill] sm:$0xff]  ;;  %v11956_v48 = vld [vmem:[#allocation46_spill] sm:$0xff] }
 0x5c3   : > { %4153 = vmatmul.bf16.gmra.mxu1 %v11954_v8 }
 0x5c4   : > { %5444 = vst [vmem:[%s8610_s6 + $0x48] sm:$0xff] %v4290_v59  ;;  %4242 = vmatmul.bf16.gmra.mxu2 %v11903_v15 }
 0x5c5   : > { %4331 = vmatmul.bf16.gmra.mxu3 %v11904_v55 }
 0x5c7   : > { %v4203_v49 = vpop.f32.mrf.mxu2  ;;  %v4027_v21 = vpop.f32.mrf.mxu0 }
 0x5c8   : > { %v4204_v16 = vadd.f32 %v4203_v49, %v4115_v18  ;;  %v4292_v0 = vpop.f32.mrf.mxu3  ;;  %v4116_v28 = vpop.f32.mrf.mxu1  ;;  %v4028_v2 = vadd.f32 %v4027_v21, %v9814_v52  ;;  %v6296_v52 = vld [vmem:[%s11433_s1 + $0x340] sm:$0xf]  ;;  %v7142_v18 = vld [vmem:[%s11433_s1 + $0x354] sm:$0xf0] }
 0x5c9   : > { %v7190_v21 = vld [vmem:[%s11433_s1 + $0x4d4] sm:$0xf0] }
 0x5ca   : > { %v4293_v46 = vadd.f32 %v4292_v0, %v4204_v16  ;;  %v4117_v45 = vadd.f32 %v4116_v28, %v4028_v2  ;;  %v7046_v16 = vld [vmem:[%s11433_s1 + $0x54] sm:$0xf0]  ;;  %v6488_v0 = vld [vmem:[%s11433_s1 + $0x4c0] sm:$0xf] }
 0x5cb   : > { %v6489_v2 = vor.u32 %v7190_v21, %v6488_v0 }
 0x5cc   : > { %5450 = vst [vmem:[%s8610_s6 + $0x78] sm:$0xff] %v4293_v46 }
 0x5cd   : > { %4640 = vmatpush.bf16.msra.mxu3 %v6489_v2  ;;  %v11958_v2 = vld [vmem:[#allocation50_spill] sm:$0xff] }
 0x5cf   : > { %v4205_v12 = vpop.f32.mrf.mxu2  ;;  %v4030_v61 = vpop.f32.mrf.mxu0 }
 0x5d0   : > { %v4206_v27 = vadd.f32 %v4205_v12, %v4117_v45  ;;  %v4294_v13 = vpop.f32.mrf.mxu3  ;;  %v4119_v59 = vpop.f32.mrf.mxu1  ;;  %v4031_v55 = vadd.f32 %v4030_v61, %v9841_v62  ;;  %v5912_v62 = vld [vmem:[%s11433_s1 + $0x40] sm:$0xf] }
 0x5d1   : > { %v5913_v46 = vor.u32 %v7046_v16, %v5912_v62 }
 0x5d2   : > { %v4295_v15 = vadd.f32 %v4294_v13, %v4206_v27  ;;  %4069 = vmatmul.bf16.gmra.mxu0 %v11955_v30  ;;  %v4120_v49 = vadd.f32 %v4119_v59, %v4031_v55  ;;  %v6104_v59 = vld [vmem:[%s11433_s1 + $0x1c0] sm:$0xf] }
 0x5d3   : > { %4158 = vmatmul.bf16.gmra.mxu1 %v11956_v48  ;;  %4373 = vmatpush.bf16.msra.mxu0 %v5913_v46  ;;  %v11957_v46 = vld [vmem:[#allocation49_spill] sm:$0xff] }
 0x5d4   : > { %5456 = vst [vmem:[%s8610_s6 + $0xa8] sm:$0xff] %v4295_v15  ;;  %4247 = vmatmul.bf16.gmra.mxu2 %v8669_v50  ;;  %v6297_v15 = vor.u32 %v7142_v18, %v6296_v52  ;;  %v7094_v52 = vld [vmem:[%s11433_s1 + $0x1d4] sm:$0xf0] }
 0x5d5   : > { %4336 = vmatmul.bf16.gmra.mxu3 %v8672_v4  ;;  %v6105_v18 = vor.u32 %v7094_v52, %v6104_v59 }
 0x5d6   : > { %4551 = vmatpush.bf16.msra.mxu2 %v6297_v15 }
 0x5d7   : > { %v4208_v28 = vpop.f32.mrf.mxu2  ;;  %v4032_v55 = vpop.f32.mrf.mxu0  ;;  %4462 = vmatpush.bf16.msra.mxu1 %v6105_v18 }
 0x5d8   : > { %v4209_v45 = vadd.f32 %v4208_v28, %v4120_v49  ;;  %v4297_v12 = vpop.f32.mrf.mxu3  ;;  %v4121_v27 = vpop.f32.mrf.mxu1  ;;  %v4033_v61 = vadd.f32 %v4032_v55, %v9852_v54 }
 0x5da   : > { %v4298_v13 = vadd.f32 %v4297_v12, %v4209_v45  ;;  %v4122_v62 = vadd.f32 %v4121_v27, %v4033_v61 }
 0x5dc   : > { %5462 = vst [vmem:[%s8610_s6 + $0xd8] sm:$0xff] %v4298_v13 }
 0x5df   : > { %v4210_v49 = vpop.f32.mrf.mxu2  ;;  %v4035_v0 = vpop.f32.mrf.mxu0 }
 0x5e0   : > { %v4211_v15 = vadd.f32 %v4210_v49, %v4122_v62  ;;  %v4299_v16 = vpop.f32.mrf.mxu3  ;;  %v4124_v21 = vpop.f32.mrf.mxu1  ;;  %v4036_v54 = vadd.f32 %v4035_v0, %v9861_v47 }
 0x5e2   : > { %v4300_v28 = vadd.f32 %v4299_v16, %v4211_v15  ;;  %4074 = vmatmul.bf16.gmra.mxu0 %v11957_v46  ;;  %v4125_v45 = vadd.f32 %v4124_v21, %v4036_v54  ;;  %v11959_v21 = vld [vmem:[#allocation53_spill] sm:$0xff]  ;;  %v11960_v54 = vld [vmem:[#allocation54_spill] sm:$0xff] }
 0x5e3   : > { %4163 = vmatmul.bf16.gmra.mxu1 %v11958_v2 }
 0x5e4   : > { %5468 = vst [vmem:[%s8610_s6 + $0x108] sm:$0xff] %v4300_v28  ;;  %4252 = vmatmul.bf16.gmra.mxu2 %v8715_v3 }
 0x5e5   : > { %4341 = vmatmul.bf16.gmra.mxu3 %v8718_v38 }
 0x5e7   : > { %v4213_v12 = vpop.f32.mrf.mxu2  ;;  %v4037_v13 = vpop.f32.mrf.mxu0 }
 0x5e8   : > { %v4214_v55 = vadd.f32 %v4213_v12, %v4125_v45  ;;  %v4302_v27 = vpop.f32.mrf.mxu3  ;;  %v4126_v61 = vpop.f32.mrf.mxu1  ;;  %v4038_v52 = vadd.f32 %v4037_v13, %v9866_v44  ;;  %v6272_v44 = vld [vmem:[%s11433_s1 + $0x310] sm:$0xf]  ;;  %v7136_v45 = vld [vmem:[%s11433_s1 + $0x324] sm:$0xf0] }
 0x5e9   : > { %v6464_v13 = vld [vmem:[%s11433_s1 + $0x490] sm:$0xf] }
 0x5ea   : > { %v4303_v59 = vadd.f32 %v4302_v27, %v4214_v55  ;;  %v4127_v47 = vadd.f32 %v4126_v61, %v4038_v52  ;;  %v6273_v55 = vor.u32 %v7136_v45, %v6272_v44  ;;  %v7040_v27 = vld [vmem:[%s11433_s1 + $0x24] sm:$0xf0] }
 0x5eb   : > { %v7184_v61 = vld [vmem:[%s11433_s1 + $0x4a4] sm:$0xf0] }
 0x5ec   : > { %5474 = vst [vmem:[%s8610_s6 + $0x138] sm:$0xff] %v4303_v59  ;;  %4552 = vmatpush.bf16.msra.mxu2 %v6273_v55  ;;  %v7088_v44 = vld [vmem:[%s11433_s1 + $0x1a4] sm:$0xf0] }
 0x5ef   : > { %v4215_v18 = vpop.f32.mrf.mxu2  ;;  %v4040_v15 = vpop.f32.mrf.mxu0 }
 0x5f0   : > { %v4216_v62 = vadd.f32 %v4215_v18, %v4127_v47  ;;  %v4304_v49 = vpop.f32.mrf.mxu3  ;;  %v4129_v16 = vpop.f32.mrf.mxu1  ;;  %v4041_v28 = vadd.f32 %v4040_v15, %v9893_v35  ;;  %v5888_v35 = vld [vmem:[%s11433_s1 + $0x10] sm:$0xf]  ;;  %v6465_v47 = vor.u32 %v7184_v61, %v6464_v13 }
 0x5f1   : > { %v5889_v52 = vor.u32 %v7040_v27, %v5888_v35 }
 0x5f2   : > { %v4305_v0 = vadd.f32 %v4304_v49, %v4216_v62  ;;  %4079 = vmatmul.bf16.gmra.mxu0 %v11959_v21  ;;  %v4130_v12 = vadd.f32 %v4129_v16, %v4041_v28  ;;  %4641 = vmatpush.bf16.msra.mxu3 %v6465_v47  ;;  %v6080_v28 = vld [vmem:[%s11433_s1 + $0x190] sm:$0xf]  ;;  %v11962_v47 = vld [vmem:[#allocation58_spill] sm:$0xff] }
 0x5f3   : > { %4168 = vmatmul.bf16.gmra.mxu1 %v11960_v54  ;;  %4374 = vmatpush.bf16.msra.mxu0 %v5889_v52  ;;  %v6081_v45 = vor.u32 %v7088_v44, %v6080_v28  ;;  %v11961_v52 = vld [vmem:[#allocation57_spill] sm:$0xff] }
 0x5f4   : > { %5480 = vst [vmem:[%s8610_s6 + $0x168] sm:$0xff] %v4305_v0  ;;  %4257 = vmatmul.bf16.gmra.mxu2 %v8737_v39 }
 0x5f5   : > { %4346 = vmatmul.bf16.gmra.mxu3 %v8740_v11  ;;  %4463 = vmatpush.bf16.msra.mxu1 %v6081_v45  ;;  %v12007_v11 = vld [vmem:[#allocation51_spill] sm:$0xff] }
 0x5f7   : > { %v4218_v59 = vpop.f32.mrf.mxu2  ;;  %v4042_v49 = vpop.f32.mrf.mxu0 }
 0x5f8   : > { %v4219_v18 = vadd.f32 %v4218_v59, %v4130_v12  ;;  %v4307_v62 = vpop.f32.mrf.mxu3  ;;  %v4131_v15 = vpop.f32.mrf.mxu1  ;;  %v4043_v0 = vadd.f32 %v4042_v49, %v9904_v17 }
 0x5fa   : > { %v4308_v16 = vadd.f32 %v4307_v62, %v4219_v18  ;;  %v4132_v35 = vadd.f32 %v4131_v15, %v4043_v0 }
 0x5fc   : > { %5486 = vst [vmem:[%s8610_s6 + $0x198] sm:$0xff] %v4308_v16 }
 0x5ff   : > { %v4220_v12 = vpop.f32.mrf.mxu2  ;;  %v4045_v13 = vpop.f32.mrf.mxu0 }
 0x600   : > { %v4221_v55 = vadd.f32 %v4220_v12, %v4132_v35  ;;  %v4309_v27 = vpop.f32.mrf.mxu3  ;;  %v4134_v61 = vpop.f32.mrf.mxu1  ;;  %v4046_v17 = vadd.f32 %v4045_v13, %v9913_v51 }
 0x602   : > { %v4310_v59 = vadd.f32 %v4309_v27, %v4221_v55  ;;  %4084 = vmatmul.bf16.gmra.mxu0 %v11961_v52  ;;  %v4135_v18 = vadd.f32 %v4134_v61, %v4046_v17  ;;  %v11963_v61 = vld [vmem:[#allocation61_spill] sm:$0xff]  ;;  %v11964_v17 = vld [vmem:[#allocation62_spill] sm:$0xff] }
 0x603   : > { %4173 = vmatmul.bf16.gmra.mxu1 %v11962_v47 }
 0x604   : > { %5492 = vst [vmem:[%s8610_s6 + $0x1c8] sm:$0xff] %v4310_v59  ;;  %4262 = vmatmul.bf16.gmra.mxu2 %v11907_v1 }
 0x605   : > { %4351 = vmatmul.bf16.gmra.mxu3 %v11908_v6 }
 0x607   : > { %v4223_v62 = vpop.f32.mrf.mxu2  ;;  %v4047_v16 = vpop.f32.mrf.mxu0 }
 0x608   : > { %v4224_v49 = vadd.f32 %v4223_v62, %v4135_v18  ;;  %v4312_v15 = vpop.f32.mrf.mxu3  ;;  %v4136_v0 = vpop.f32.mrf.mxu1  ;;  %v4048_v44 = vadd.f32 %v4047_v16, %v9918_v42  ;;  %v7079_v42 = vld [vmem:[%s11433_s1 + $0x164] sm:$0xf]  ;;  %v6058_v18 = vld [vmem:[%s11433_s1 + $0x178] sm:$0xf0] }
 0x609   : > { %v7127_v16 = vld [vmem:[%s11433_s1 + $0x2e4] sm:$0xf] }
 0x60a   : > { %v4313_v28 = vadd.f32 %v4312_v15, %v4224_v49  ;;  %v4137_v51 = vadd.f32 %v4136_v0, %v4048_v44  ;;  %v6061_v49 = vor.u32 %v7079_v42, %v6058_v18  ;;  %v7274_v15 = vld [vmem:[%s11433_s1 + $0x774] sm:$0xf0]  ;;  %v6250_v0 = vld [vmem:[%s11433_s1 + $0x2f8] sm:$0xf0] }
 0x60b   : > { %v7322_v42 = vld [vmem:[%s11433_s1 + $0x8f4] sm:$0xf0] }
 0x60c   : > { %5498 = vst [vmem:[%s8610_s6 + $0x1f8] sm:$0xff] %v4313_v28  ;;  %4901 = vmatpush.bf16.msrb.mxu2 %v6061_v49 }
 0x60f   : > { %v4225_v45 = vpop.f32.mrf.mxu2  ;;  %v4050_v55 = vpop.f32.mrf.mxu0 }
 0x610   : > { %v4226_v35 = vadd.f32 %v4225_v45, %v4137_v51  ;;  %v4314_v12 = vpop.f32.mrf.mxu3  ;;  %v4139_v27 = vpop.f32.mrf.mxu1  ;;  %v4051_v59 = vadd.f32 %v4050_v55, %v9945_v26  ;;  %v6824_v26 = vld [vmem:[%s11433_s1 + $0x760] sm:$0xf]  ;;  %v6253_v51 = vor.u32 %v7127_v16, %v6250_v0 }
 0x611   : > { %v6825_v44 = vor.u32 %v7274_v15, %v6824_v26 }
 0x612   : > { %v4315_v13 = vadd.f32 %v4314_v12, %v4226_v35  ;;  %4089 = vmatmul.bf16.gmra.mxu0 %v11963_v61  ;;  %v4140_v62 = vadd.f32 %v4139_v27, %v4051_v59  ;;  %4990 = vmatpush.bf16.msrb.mxu3 %v6253_v51  ;;  %v7016_v59 = vld [vmem:[%s11433_s1 + $0x8e0] sm:$0xf]  ;;  %v11966_v51 = vld [vmem:[#allocation66_spill] sm:$0xff] }
 0x613   : > { %4178 = vmatmul.bf16.gmra.mxu1 %v11964_v17  ;;  %4723 = vmatpush.bf16.msrb.mxu0 %v6825_v44  ;;  %v7017_v18 = vor.u32 %v7322_v42, %v7016_v59  ;;  %v11965_v44 = vld [vmem:[#allocation65_spill] sm:$0xff] }
 0x614   : > { %5504 = vst [vmem:[%s8610_s6 + $0x228] sm:$0xff] %v4315_v13  ;;  %4267 = vmatmul.bf16.gmra.mxu2 %v11911_v41  ;;  %v12006_v41 = vld [vmem:[#allocation48_spill] sm:$0xff] }
 0x615   : > { %4356 = vmatmul.bf16.gmra.mxu3 %v11912_v37  ;;  %4812 = vmatpush.bf16.msrb.mxu1 %v7017_v18  ;;  %v12003_v37 = vld [vmem:[#allocation43_spill] sm:$0xff] }
 0x617   : > { %v4228_v28 = vpop.f32.mrf.mxu2  ;;  %v4052_v12 = vpop.f32.mrf.mxu0 }
 0x618   : > { %v4229_v45 = vadd.f32 %v4228_v28, %v4140_v62  ;;  %v4317_v35 = vpop.f32.mrf.mxu3  ;;  %v4141_v55 = vpop.f32.mrf.mxu1  ;;  %v4053_v13 = vadd.f32 %v4052_v12, %v9956_v53 }
 0x61a   : > { %v4318_v27 = vadd.f32 %v4317_v35, %v4229_v45  ;;  %v4142_v26 = vadd.f32 %v4141_v55, %v4053_v13  ;;  %v11967_v45 = vld [vmem:[#allocation93_spill] sm:$0xff] }
 0x61c   : > { %5510 = vst [vmem:[%s8610_s6 + $0x258] sm:$0xff] %v4318_v27 }
 0x61f   : > { %v4230_v62 = vpop.f32.mrf.mxu2  ;;  %v4055_v16 = vpop.f32.mrf.mxu0 }
 0x620   : > { %v4231_v49 = vadd.f32 %v4230_v62, %v4142_v26  ;;  %v4319_v15 = vpop.f32.mrf.mxu3  ;;  %v4144_v0 = vpop.f32.mrf.mxu1  ;;  %v4056_v53 = vadd.f32 %v4055_v16, %v9965_v5 }
 0x622   : > { %v4320_v28 = vadd.f32 %v4319_v15, %v4231_v49  ;;  %4094 = vmatmul.bf16.gmra.mxu0 %v11965_v44  ;;  %v4145_v35 = vadd.f32 %v4144_v0, %v4056_v53  ;;  %v11968_v0 = vld [vmem:[#allocation3_spill] sm:$0xff]  ;;  %v11969_v53 = vld [vmem:[#allocation4_spill] sm:$0xff] }
 0x623   : > { %4183 = vmatmul.bf16.gmra.mxu1 %v11966_v51 }
 0x624   : > { %5516 = vst [vmem:[%s8610_s6 + $0x288] sm:$0xff] %v4320_v28  ;;  %4272 = vmatmul.bf16.gmra.mxu2 %v11915_v14 }
 0x625   : > { %4361 = vmatmul.bf16.gmra.mxu3 %v11967_v45 }
 0x627   : > { %v4233_v12 = vpop.f32.mrf.mxu2  ;;  %v4057_v13 = vpop.f32.mrf.mxu0 }
 0x628   : > { %v4234_v55 = vadd.f32 %v4233_v12, %v4145_v35  ;;  %v4322_v27 = vpop.f32.mrf.mxu3  ;;  %v4146_v59 = vpop.f32.mrf.mxu1  ;;  %v4058_v18 = vadd.f32 %v4057_v13, %v9970_v43  ;;  %v11970_v35 = vld [vmem:[#allocation5_spill] sm:$0xff]  ;;  %v11971_v12 = vld [vmem:[#allocation6_spill] sm:$0xff] }
 0x629   : > { %v7073_v43 = vld [vmem:[%s11433_s1 + $0x134] sm:$0xf] }
 0x62a   : > { %v4323_v42 = vadd.f32 %v4322_v27, %v4234_v55  ;;  %v4147_v5 = vadd.f32 %v4146_v59, %v4058_v18  ;;  %v6034_v55 = vld [vmem:[%s11433_s1 + $0x148] sm:$0xf0]  ;;  %v7268_v59 = vld [vmem:[%s11433_s1 + $0x744] sm:$0xf0] }
 0x62b   : > { %v6037_v13 = vor.u32 %v7073_v43, %v6034_v55  ;;  %v6226_v18 = vld [vmem:[%s11433_s1 + $0x2c8] sm:$0xf0]  ;;  %v6992_v55 = vld [vmem:[%s11433_s1 + $0x8b0] sm:$0xf] }
 0x62c   : > { %5522 = vst [vmem:[%s8610_s6 + $0x2b8] sm:$0xff] %v4323_v42  ;;  %v7121_v42 = vld [vmem:[%s11433_s1 + $0x2b4] sm:$0xf] }
 0x62d   : > { %4902 = vmatpush.bf16.msrb.mxu2 %v6037_v13 }
 0x62f   : > { %v4235_v26 = vpop.f32.mrf.mxu2  ;;  %v4060_v15 = vpop.f32.mrf.mxu0 }
 0x630   : > { %v4236_v62 = vadd.f32 %v4235_v26, %v4147_v5  ;;  %v4324_v49 = vpop.f32.mrf.mxu3  ;;  %v4149_v16 = vpop.f32.mrf.mxu1  ;;  %v4061_v45 = vadd.f32 %v4060_v15, %v9997_v24  ;;  %v6800_v24 = vld [vmem:[%s11433_s1 + $0x730] sm:$0xf] }
 0x631   : > { %v6801_v26 = vor.u32 %v7268_v59, %v6800_v24  ;;  %v7316_v24 = vld [vmem:[%s11433_s1 + $0x8c4] sm:$0xf0] }
 0x632   : > { %v4325_v28 = vadd.f32 %v4324_v49, %v4236_v62  ;;  %4375 = vmatmul.bf16.vlgmr.msra.gmra.mxu0 %v11968_v0  ;;  %v4150_v27 = vadd.f32 %v4149_v16, %v4061_v45  ;;  %v6229_v62 = vor.u32 %v7121_v42, %v6226_v18 }
 0x633   : > { %4464 = vmatmul.bf16.vlgmr.msra.gmra.mxu1 %v11969_v53  ;;  %4724 = vmatpush.bf16.msrb.mxu0 %v6801_v26 }
 0x634   : > { %5528 = vst [vmem:[%s8610_s6 + $0x2e8] sm:$0xff] %v4325_v28  ;;  %4553 = vmatmul.bf16.vlgmr.msra.gmra.mxu2 %v11970_v35  ;;  %4991 = vmatpush.bf16.msrb.mxu3 %v6229_v62 }
 0x635   : > { %4642 = vmatmul.bf16.vlgmr.msra.gmra.mxu3 %v11971_v12 }
 0x637   : > { %v4238_v5 = vpop.f32.mrf.mxu2  ;;  %v4062_v45 = vpop.f32.mrf.mxu0 }
 0x638   : > { %v4239_v49 = vadd.f32 %v4238_v5, %v4150_v27  ;;  %v4327_v15 = vpop.f32.mrf.mxu3  ;;  %v4151_v16 = vpop.f32.mrf.mxu1  ;;  %v4063_v43 = vadd.f32 %v4062_v45, %v10008_v31  ;;  %v6993_v27 = vor.u32 %v7316_v24, %v6992_v55  ;;  %v11974_v45 = vld [vmem:[#allocation9_spill] sm:$0xff] }
 0x63a   : > { %v4328_v28 = vadd.f32 %v4327_v15, %v4239_v49  ;;  %v4152_v59 = vadd.f32 %v4151_v16, %v4063_v43  ;;  %4813 = vmatpush.bf16.msrb.mxu1 %v6993_v27  ;;  %v11972_v49 = vld [vmem:[#allocation7_spill] sm:$0xff]  ;;  %v11973_v15 = vld [vmem:[#allocation8_spill] sm:$0xff] }
 0x63c   : > { %5534 = vst [vmem:[%s8610_s6 + $0x318] sm:$0xff] %v4328_v28  ;;  %v11975_v28 = vld [vmem:[#allocation10_spill] sm:$0xff] }
 0x63f   : > { %v4240_v42 = vpop.f32.mrf.mxu2  ;;  %v4065_v5 = vpop.f32.mrf.mxu0 }
 0x640   : > { %v4241_v13 = vadd.f32 %v4240_v42, %v4152_v59  ;;  %v4329_v18 = vpop.f32.mrf.mxu3  ;;  %v4154_v26 = vpop.f32.mrf.mxu1  ;;  %v4066_v31 = vadd.f32 %v4065_v5, %v10017_v58 }
 0x642   : > { %v4330_v62 = vadd.f32 %v4329_v18, %v4241_v13  ;;  %4380 = vmatmul.bf16.gmra.mxu0 %v11972_v49  ;;  %v4155_v16 = vadd.f32 %v4154_v26, %v4066_v31  ;;  %v11976_v26 = vld [vmem:[#allocation11_spill] sm:$0xff]  ;;  %v11977_v31 = vld [vmem:[#allocation12_spill] sm:$0xff] }
 0x643   : > { %4469 = vmatmul.bf16.gmra.mxu1 %v11973_v15 }
 0x644   : > { %5540 = vst [vmem:[%s8610_s6 + $0x348] sm:$0xff] %v4330_v62  ;;  %4558 = vmatmul.bf16.gmra.mxu2 %v11974_v45 }
 0x645   : > { %4647 = vmatmul.bf16.gmra.mxu3 %v11975_v28 }
 0x647   : > { %v4243_v43 = vpop.f32.mrf.mxu2  ;;  %v4067_v27 = vpop.f32.mrf.mxu0 }
 0x648   : > { %v4244_v55 = vadd.f32 %v4243_v43, %v4155_v16  ;;  %v4332_v24 = vpop.f32.mrf.mxu3  ;;  %v4156_v59 = vpop.f32.mrf.mxu1  ;;  %v4068_v13 = vadd.f32 %v4067_v27, %v10022_v9  ;;  %v11978_v16 = vld [vmem:[#allocation13_spill] sm:$0xff]  ;;  %v11979_v43 = vld [vmem:[#allocation14_spill] sm:$0xff]  ;;  %v7067_v9 = vld [vmem:[%s11433_s1 + $0x104] sm:$0xf] }
 0x649   : > { %v7115_v27 = vld [vmem:[%s11433_s1 + $0x284] sm:$0xf] }
 0x64a   : > { %v4333_v42 = vadd.f32 %v4332_v24, %v4244_v55  ;;  %v4157_v58 = vadd.f32 %v4156_v59, %v4068_v13  ;;  %v6010_v55 = vld [vmem:[%s11433_s1 + $0x118] sm:$0xf0]  ;;  %v7262_v24 = vld [vmem:[%s11433_s1 + $0x714] sm:$0xf0] }
 0x64b   : > { %v6202_v59 = vld [vmem:[%s11433_s1 + $0x298] sm:$0xf0] }
 0x64c   : > { %5546 = vst [vmem:[%s8610_s6 + $0x378] sm:$0xff] %v4333_v42 }
 0x64f   : > { %v4245_v18 = vpop.f32.mrf.mxu2  ;;  %v4070_v12 = vpop.f32.mrf.mxu0 }
 0x650   : > { %v4246_v5 = vadd.f32 %v4245_v18, %v4157_v58  ;;  %v4334_v62 = vpop.f32.mrf.mxu3  ;;  %v4159_v35 = vpop.f32.mrf.mxu1  ;;  %v4071_v28 = vadd.f32 %v4070_v12, %v10049_v32  ;;  %v6776_v32 = vld [vmem:[%s11433_s1 + $0x700] sm:$0xf]  ;;  %v6205_v58 = vor.u32 %v7115_v27, %v6202_v59 }
 0x651   : > { %v6777_v13 = vor.u32 %v7262_v24, %v6776_v32  ;;  %v7310_v32 = vld [vmem:[%s11433_s1 + $0x894] sm:$0xf0] }
 0x652   : > { %v4335_v45 = vadd.f32 %v4334_v62, %v4246_v5  ;;  %4385 = vmatmul.bf16.gmra.mxu0 %v11976_v26  ;;  %v4160_v12 = vadd.f32 %v4159_v35, %v4071_v28  ;;  %4992 = vmatpush.bf16.msrb.mxu3 %v6205_v58 }
 0x653   : > { %4474 = vmatmul.bf16.gmra.mxu1 %v11977_v31  ;;  %4725 = vmatpush.bf16.msrb.mxu0 %v6777_v13 }
 0x654   : > { %5552 = vst [vmem:[%s8610_s6 + $0x3a8] sm:$0xff] %v4335_v45  ;;  %4563 = vmatmul.bf16.gmra.mxu2 %v11978_v16  ;;  %v6013_v45 = vor.u32 %v7067_v9, %v6010_v55  ;;  %v6968_v55 = vld [vmem:[%s11433_s1 + $0x880] sm:$0xf] }
 0x655   : > { %4652 = vmatmul.bf16.gmra.mxu3 %v11979_v43 }
 0x656   : > { %4903 = vmatpush.bf16.msrb.mxu2 %v6013_v45 }
 0x657   : > { %v4248_v42 = vpop.f32.mrf.mxu2  ;;  %v4072_v35 = vpop.f32.mrf.mxu0 }
 0x658   : > { %v4249_v18 = vadd.f32 %v4248_v42, %v4160_v12  ;;  %v4337_v5 = vpop.f32.mrf.mxu3  ;;  %v4161_v28 = vpop.f32.mrf.mxu1  ;;  %v4073_v9 = vadd.f32 %v4072_v35, %v10060_v23  ;;  %v6969_v12 = vor.u32 %v7310_v32, %v6968_v55  ;;  %v11982_v35 = vld [vmem:[#allocation17_spill] sm:$0xff] }
 0x65a   : > { %v4338_v62 = vadd.f32 %v4337_v5, %v4249_v18  ;;  %v4162_v24 = vadd.f32 %v4161_v28, %v4073_v9  ;;  %4814 = vmatpush.bf16.msrb.mxu1 %v6969_v12  ;;  %v11980_v18 = vld [vmem:[#allocation15_spill] sm:$0xff]  ;;  %v11981_v5 = vld [vmem:[#allocation16_spill] sm:$0xff] }
 0x65c   : > { %5558 = vst [vmem:[%s8610_s6 + $0x3d8] sm:$0xff] %v4338_v62  ;;  %v11983_v62 = vld [vmem:[#allocation18_spill] sm:$0xff] }
 0x65f   : > { %v4250_v27 = vpop.f32.mrf.mxu2  ;;  %v4075_v42 = vpop.f32.mrf.mxu0 }
 0x660   : > { %v4251_v45 = vadd.f32 %v4250_v27, %v4162_v24  ;;  %v4339_v59 = vpop.f32.mrf.mxu3  ;;  %v4164_v13 = vpop.f32.mrf.mxu1  ;;  %v4076_v23 = vadd.f32 %v4075_v42, %v10069_v57 }
 0x662   : > { %v4340_v58 = vadd.f32 %v4339_v59, %v4251_v45  ;;  %4390 = vmatmul.bf16.gmra.mxu0 %v11980_v18  ;;  %v4165_v28 = vadd.f32 %v4164_v13, %v4076_v23  ;;  %v11984_v13 = vld [vmem:[#allocation19_spill] sm:$0xff]  ;;  %v11985_v23 = vld [vmem:[#allocation20_spill] sm:$0xff] }
 0x663   : > { %4479 = vmatmul.bf16.gmra.mxu1 %v11981_v5 }
 0x664   : > { %5564 = vst [vmem:[%s8610_s6 + $0x408] sm:$0xff] %v4340_v58  ;;  %4568 = vmatmul.bf16.gmra.mxu2 %v11982_v35 }
 0x665   : > { %4657 = vmatmul.bf16.gmra.mxu3 %v11983_v62 }
 0x667   : > { %v4253_v9 = vpop.f32.mrf.mxu2  ;;  %v4077_v12 = vpop.f32.mrf.mxu0 }
 0x668   : > { %v4254_v55 = vadd.f32 %v4253_v9, %v4165_v28  ;;  %v4342_v32 = vpop.f32.mrf.mxu3  ;;  %v4166_v24 = vpop.f32.mrf.mxu1  ;;  %v4078_v45 = vadd.f32 %v4077_v12, %v10074_v29  ;;  %v11986_v28 = vld [vmem:[#allocation21_spill] sm:$0xff]  ;;  %v11987_v9 = vld [vmem:[#allocation22_spill] sm:$0xff] }
 0x669   : > { %v7061_v29 = vld [vmem:[%s11433_s1 + $0xd4] sm:$0xf] }
 0x66a   : > { %v4343_v27 = vadd.f32 %v4342_v32, %v4254_v55  ;;  %v4167_v57 = vadd.f32 %v4166_v24, %v4078_v45  ;;  %v5986_v55 = vld [vmem:[%s11433_s1 + $0xe8] sm:$0xf0]  ;;  %v7256_v32 = vld [vmem:[%s11433_s1 + $0x6e4] sm:$0xf0]  ;;  %v7109_v12 = vld [vmem:[%s11433_s1 + $0x254] sm:$0xf] }
 0x66b   : > { %v6178_v24 = vld [vmem:[%s11433_s1 + $0x268] sm:$0xf0] }
 0x66c   : > { %5570 = vst [vmem:[%s8610_s6 + $0x438] sm:$0xff] %v4343_v27 }
 0x66f   : > { %v4255_v59 = vpop.f32.mrf.mxu2  ;;  %v4080_v43 = vpop.f32.mrf.mxu0 }
 0x670   : > { %v4256_v42 = vadd.f32 %v4255_v59, %v4167_v57  ;;  %v4344_v58 = vpop.f32.mrf.mxu3  ;;  %v4169_v16 = vpop.f32.mrf.mxu1  ;;  %v4081_v62 = vadd.f32 %v4080_v43, %v10101_v40  ;;  %v6752_v40 = vld [vmem:[%s11433_s1 + $0x6d0] sm:$0xf]  ;;  %v6181_v57 = vor.u32 %v7109_v12, %v6178_v24 }
 0x671   : > { %v6753_v45 = vor.u32 %v7256_v32, %v6752_v40  ;;  %v7304_v40 = vld [vmem:[%s11433_s1 + $0x864] sm:$0xf0] }
 0x672   : > { %v4345_v35 = vadd.f32 %v4344_v58, %v4256_v42  ;;  %4395 = vmatmul.bf16.gmra.mxu0 %v11984_v13  ;;  %v4170_v43 = vadd.f32 %v4169_v16, %v4081_v62  ;;  %4993 = vmatpush.bf16.msrb.mxu3 %v6181_v57 }
 0x673   : > { %4484 = vmatmul.bf16.gmra.mxu1 %v11985_v23  ;;  %4726 = vmatpush.bf16.msrb.mxu0 %v6753_v45 }
 0x674   : > { %5576 = vst [vmem:[%s8610_s6 + $0x468] sm:$0xff] %v4345_v35  ;;  %4573 = vmatmul.bf16.gmra.mxu2 %v11986_v28  ;;  %v5989_v35 = vor.u32 %v7061_v29, %v5986_v55  ;;  %v6944_v55 = vld [vmem:[%s11433_s1 + $0x850] sm:$0xf] }
 0x675   : > { %4662 = vmatmul.bf16.gmra.mxu3 %v11987_v9 }
 0x676   : > { %4904 = vmatpush.bf16.msrb.mxu2 %v5989_v35 }
 0x677   : > { %v4258_v27 = vpop.f32.mrf.mxu2  ;;  %v4082_v16 = vpop.f32.mrf.mxu0 }
 0x678   : > { %v4259_v59 = vadd.f32 %v4258_v27, %v4170_v43  ;;  %v4347_v42 = vpop.f32.mrf.mxu3  ;;  %v4171_v62 = vpop.f32.mrf.mxu1  ;;  %v4083_v29 = vadd.f32 %v4082_v16, %v10112_v22  ;;  %v6945_v43 = vor.u32 %v7304_v40, %v6944_v55  ;;  %v11990_v16 = vld [vmem:[#allocation25_spill] sm:$0xff] }
 0x67a   : > { %v4348_v58 = vadd.f32 %v4347_v42, %v4259_v59  ;;  %v4172_v32 = vadd.f32 %v4171_v62, %v4083_v29  ;;  %4815 = vmatpush.bf16.msrb.mxu1 %v6945_v43  ;;  %v11988_v59 = vld [vmem:[#allocation23_spill] sm:$0xff]  ;;  %v11989_v42 = vld [vmem:[#allocation24_spill] sm:$0xff] }
 0x67c   : > { %5582 = vst [vmem:[%s8610_s6 + $0x498] sm:$0xff] %v4348_v58  ;;  %v11991_v58 = vld [vmem:[#allocation26_spill] sm:$0xff] }
 0x67f   : > { %v4260_v12 = vpop.f32.mrf.mxu2  ;;  %v4085_v27 = vpop.f32.mrf.mxu0 }
 0x680   : > { %v4261_v35 = vadd.f32 %v4260_v12, %v4172_v32  ;;  %v4349_v24 = vpop.f32.mrf.mxu3  ;;  %v4174_v45 = vpop.f32.mrf.mxu1  ;;  %v4086_v22 = vadd.f32 %v4085_v27, %v10121_v63 }
 0x682   : > { %v4350_v57 = vadd.f32 %v4349_v24, %v4261_v35  ;;  %4400 = vmatmul.bf16.gmra.mxu0 %v11988_v59  ;;  %v4175_v62 = vadd.f32 %v4174_v45, %v4086_v22  ;;  %v11992_v45 = vld [vmem:[#allocation27_spill] sm:$0xff]  ;;  %v11993_v22 = vld [vmem:[#allocation28_spill] sm:$0xff] }
 0x683   : > { %4489 = vmatmul.bf16.gmra.mxu1 %v11989_v42 }
 0x684   : > { %5588 = vst [vmem:[%s8610_s6 + $0x4c8] sm:$0xff] %v4350_v57  ;;  %4578 = vmatmul.bf16.gmra.mxu2 %v11990_v16 }
 0x685   : > { %4667 = vmatmul.bf16.gmra.mxu3 %v11991_v58 }
 0x687   : > { %v4263_v29 = vpop.f32.mrf.mxu2  ;;  %v4087_v43 = vpop.f32.mrf.mxu0 }
 0x688   : > { %v4264_v55 = vadd.f32 %v4263_v29, %v4175_v62  ;;  %v4352_v40 = vpop.f32.mrf.mxu3  ;;  %v4176_v32 = vpop.f32.mrf.mxu1  ;;  %v4088_v35 = vadd.f32 %v4087_v43, %v10126_v19  ;;  %v7055_v19 = vld [vmem:[%s11433_s1 + $0xa4] sm:$0xf]  ;;  %v5962_v62 = vld [vmem:[%s11433_s1 + $0xb8] sm:$0xf0]  ;;  %v7250_v29 = vld [vmem:[%s11433_s1 + $0x6b4] sm:$0xf0] }
 0x68a   : > { %v4353_v12 = vadd.f32 %v4352_v40, %v4264_v55  ;;  %v4177_v63 = vadd.f32 %v4176_v32, %v4088_v35  ;;  %v7103_v55 = vld [vmem:[%s11433_s1 + $0x224] sm:$0xf]  ;;  %v6154_v40 = vld [vmem:[%s11433_s1 + $0x238] sm:$0xf0] }
 0x68c   : > { %5594 = vst [vmem:[%s8610_s6 + $0x4f8] sm:$0xff] %v4353_v12  ;;  %v6157_v12 = vor.u32 %v7103_v55, %v6154_v40 }
 0x68e   : > { %4994 = vmatpush.bf16.msrb.mxu3 %v6157_v12 }
 0x68f   : > { %v4265_v24 = vpop.f32.mrf.mxu2  ;;  %v4090_v9 = vpop.f32.mrf.mxu0 }
 0x690   : > { %v4266_v27 = vadd.f32 %v4265_v24, %v4177_v63  ;;  %v4354_v57 = vpop.f32.mrf.mxu3  ;;  %v4179_v28 = vpop.f32.mrf.mxu1  ;;  %v4091_v58 = vadd.f32 %v4090_v9, %v10153_v20  ;;  %v6728_v20 = vld [vmem:[%s11433_s1 + $0x6a0] sm:$0xf] }
 0x691   : > { %v6729_v32 = vor.u32 %v7250_v29, %v6728_v20 }
 0x692   : > { %v4355_v16 = vadd.f32 %v4354_v57, %v4266_v27  ;;  %4405 = vmatmul.bf16.gmra.mxu0 %v11992_v45  ;;  %v4180_v9 = vadd.f32 %v4179_v28, %v4091_v58  ;;  %v11994_v27 = vld [vmem:[#allocation83_spill] sm:$0xff] }
 0x693   : > { %4494 = vmatmul.bf16.gmra.mxu1 %v11993_v22  ;;  %4727 = vmatpush.bf16.msrb.mxu0 %v6729_v32 }
 0x694   : > { %5600 = vst [vmem:[%s8610_s6 + $0x528] sm:$0xff] %v4355_v16  ;;  %4583 = vmatmul.bf16.gmra.mxu2 %v11943_v25  ;;  %v5965_v16 = vor.u32 %v7055_v19, %v5962_v62  ;;  %v6920_v19 = vld [vmem:[%s11433_s1 + $0x820] sm:$0xf]  ;;  %v7298_v62 = vld [vmem:[%s11433_s1 + $0x834] sm:$0xf0] }
 0x695   : > { %4672 = vmatmul.bf16.gmra.mxu3 %v11944_v7  ;;  %v6921_v20 = vor.u32 %v7298_v62, %v6920_v19  ;;  %v12002_v7 = vld [vmem:[#allocation40_spill] sm:$0xff] }
 0x696   : > { %4905 = vmatpush.bf16.msrb.mxu2 %v5965_v16 }
 0x697   : > { %v4268_v43 = vpop.f32.mrf.mxu2  ;;  %v4092_v28 = vpop.f32.mrf.mxu0  ;;  %4816 = vmatpush.bf16.msrb.mxu1 %v6921_v20 }
 0x698   : > { %v4269_v35 = vadd.f32 %v4268_v43, %v4180_v9  ;;  %v4357_v63 = vpop.f32.mrf.mxu3  ;;  %v4181_v58 = vpop.f32.mrf.mxu1  ;;  %v4093_v57 = vadd.f32 %v4092_v28, %v11994_v27  ;;  %v11997_v28 = vld [vmem:[#allocation33_spill] sm:$0xff]  ;;  %v11998_v27 = vld [vmem:[#allocation34_spill] sm:$0xff] }
 0x69a   : > { %v4358_v24 = vadd.f32 %v4357_v63, %v4269_v35  ;;  %v4182_v9 = vadd.f32 %v4181_v58, %v4093_v57  ;;  %v11995_v35 = vld [vmem:[#allocation31_spill] sm:$0xff]  ;;  %v11996_v63 = vld [vmem:[#allocation32_spill] sm:$0xff] }
 0x69c   : > { %5606 = vst [vmem:[%s8610_s6 + $0x558] sm:$0xff] %v4358_v24 }
 0x69f   : > { %v4270_v16 = vpop.f32.mrf.mxu2  ;;  %v4095_v40 = vpop.f32.mrf.mxu0 }
 0x6a0   : > { %v4271_v29 = vadd.f32 %v4270_v16, %v4182_v9  ;;  %v4359_v55 = vpop.f32.mrf.mxu3  ;;  %v4184_v43 = vpop.f32.mrf.mxu1  ;;  %v4096_v12 = vadd.f32 %v4095_v40, %v10173_v33  ;;  %v10501_v33 = vld [vmem:[%s11434_s2] sm:$0x3f] }
 0x6a2   : > { %v4360_v32 = vadd.f32 %v4359_v55, %v4271_v29  ;;  %4410 = vmatmul.bf16.gmra.mxu0 %v11995_v35  ;;  %v4185_v24 = vadd.f32 %v4184_v43, %v4096_v12  ;;  %v10504_v29 = vperm.slane %v10501_v33, 4 }
 0x6a3   : > { %4499 = vmatmul.bf16.gmra.mxu1 %v11996_v63 }
 0x6a4   : > { %5612 = vst [vmem:[%s8610_s6 + $0x588] sm:$0xff] %v4360_v32  ;;  %4588 = vmatmul.bf16.gmra.mxu2 %v11997_v28  ;;  %v6896_v28 = vld [vmem:[%s11433_s1 + $0x7f0] sm:$0xf] }
 0x6a5   : > { %4677 = vmatmul.bf16.gmra.mxu3 %v11998_v27 }
 0x6a7   : > { %v4273_v58 = vpop.f32.mrf.mxu2  ;;  %v4097_v62 = vpop.f32.mrf.mxu0 }
 0x6a8   : > { %v4274_v57 = vadd.f32 %v4273_v58, %v4185_v24  ;;  %v4362_v19 = vpop.f32.mrf.mxu3  ;;  %v4186_v20 = vpop.f32.mrf.mxu1  ;;  %v4098_v16 = vadd.f32 %v4097_v62, %v10177_v36  ;;  %v11999_v36 = vld [vmem:[#allocation35_spill] sm:$0xff]  ;;  %v12000_v62 = vld [vmem:[#allocation36_spill] sm:$0xff] }
 0x6aa   : > { %v4363_v9 = vadd.f32 %v4362_v19, %v4274_v57  ;;  %v4187_v55 = vadd.f32 %v4186_v20, %v4098_v16  ;;  %v7049_v20 = vld [vmem:[%s11433_s1 + $0x74] sm:$0xf]  ;;  %v6704_v16 = vld [vmem:[%s11433_s1 + $0x670] sm:$0xf] }
 0x6ac   : > { %5618 = vst [vmem:[%s8610_s6 + $0x5b8] sm:$0xff] %v4363_v9  ;;  %v5938_v9 = vld [vmem:[%s11433_s1 + $0x88] sm:$0xf0] }
 0x6af   : > { %v4275_v40 = vpop.f32.mrf.mxu2  ;;  %v4376_v12 = vpop.f32.mrf.mxu0 }
 0x6b0   : > { %v4276_v43 = vadd.f32 %v4275_v40, %v4187_v55  ;;  %v4364_v32 = vpop.f32.mrf.mxu3  ;;  %v4377_v24 = vadd.f32 %v4376_v12, %v10504_v29  ;;  %v4465_v58 = vpop.f32.mrf.mxu1  ;;  %v5941_v55 = vor.u32 %v7049_v20, %v5938_v9  ;;  %v7244_v40 = vld [vmem:[%s11433_s1 + $0x684] sm:$0xf0] }
 0x6b2   : > { %v4365_v57 = vadd.f32 %v4364_v32, %v4276_v43  ;;  %v4466_v19 = vadd.f32 %v4465_v58, %v4377_v24  ;;  %4415 = vmatmul.bf16.gmra.mxu0 %v11999_v36  ;;  %v7097_v43 = vld [vmem:[%s11433_s1 + $0x1f4] sm:$0xf]  ;;  %v6130_v32 = vld [vmem:[%s11433_s1 + $0x208] sm:$0xf0]  ;;  %v6705_v24 = vor.u32 %v7244_v40, %v6704_v16  ;;  %4906 = vmatpush.bf16.msrb.mxu2 %v5941_v55  ;;  %v7292_v16 = vld [vmem:[%s11433_s1 + $0x804] sm:$0xf0] }
 0x6b3   : > { %4504 = vmatmul.bf16.gmra.mxu1 %v12000_v62  ;;  %v6133_v58 = vor.u32 %v7097_v43, %v6130_v32 }
 0x6b4   : > { %5624 = vst [vmem:[%s8610_s6 + $0x5e8] sm:$0xff] %v4365_v57  ;;  %4593 = vmatmul.bf16.gmra.mxu2 %v11951_v60  ;;  %4728 = vmatpush.bf16.msrb.mxu0 %v6705_v24 }
 0x6b5   : > { %4682 = vmatmul.bf16.gmra.mxu3 %v11952_v34 }
 0x6b6   : > { %4995 = vmatpush.bf16.msrb.mxu3 %v6133_v58 }
 0x6b7   : > { %v4554_v12 = vpop.f32.mrf.mxu2  ;;  %v4378_v60 = vpop.f32.mrf.mxu0 }
 0x6b8   : > { %v4555_v57 = vadd.f32 %v4554_v12, %v4466_v19  ;;  %v4643_v34 = vpop.f32.mrf.mxu3  ;;  %v4379_v20 = vadd.f32 %v4378_v60, %v10504_v29  ;;  %v4467_v9 = vpop.f32.mrf.mxu1  ;;  %v6897_v19 = vor.u32 %v7292_v16, %v6896_v28 }
 0x6ba   : > { %v10531_v27 = vadd.f32 %v4643_v34, %v4555_v57  ;;  %v4468_v40 = vadd.f32 %v4467_v9, %v4379_v20  ;;  %4817 = vmatpush.bf16.msrb.mxu1 %v6897_v19  ;;  %v12001_v57 = vld [vmem:[#allocation39_spill] sm:$0xff] }
 0x6bf   : > { %v4556_v43 = vpop.f32.mrf.mxu2  ;;  %v4381_v60 = vpop.f32.mrf.mxu0 }
 0x6c0   : > { %v4557_v55 = vadd.f32 %v4556_v43, %v4468_v40  ;;  %v4645_v32 = vpop.f32.mrf.mxu3  ;;  %v4382_v12 = vadd.f32 %v4381_v60, %v10504_v29  ;;  %v4470_v24 = vpop.f32.mrf.mxu1 }
 0x6c2   : > { %v10540_v34 = vadd.f32 %v4645_v32, %v4557_v55  ;;  %v4471_v58 = vadd.f32 %v4470_v24, %v4382_v12  ;;  %4420 = vmatmul.bf16.gmra.mxu0 %v12001_v57 }
 0x6c3   : > { %4509 = vmatmul.bf16.gmra.mxu1 %v12002_v7 }
 0x6c4   : > { %4598 = vmatmul.bf16.gmra.mxu2 %v11953_v10 }
 0x6c5   : > { %4687 = vmatmul.bf16.gmra.mxu3 %v11954_v8 }
 0x6c7   : > { %v4559_v28 = vpop.f32.mrf.mxu2  ;;  %v4383_v16 = vpop.f32.mrf.mxu0 }
 0x6c8   : > { %v4560_v20 = vadd.f32 %v4559_v28, %v4471_v58  ;;  %v4648_v9 = vpop.f32.mrf.mxu3  ;;  %v4384_v40 = vadd.f32 %v4383_v16, %v10504_v29  ;;  %v4472_v19 = vpop.f32.mrf.mxu1  ;;  %v12004_v58 = vld [vmem:[#allocation44_spill] sm:$0xff]  ;;  %v7043_v28 = vld [vmem:[%s11433_s1 + $0x44] sm:$0xf] }
 0x6c9   : > { %v7091_v16 = vld [vmem:[%s11433_s1 + $0x1c4] sm:$0xf] }
 0x6ca   : > { %v10547_v43 = vadd.f32 %v4648_v9, %v4560_v20  ;;  %v4473_v55 = vadd.f32 %v4472_v19, %v4384_v40  ;;  %v5914_v20 = vld [vmem:[%s11433_s1 + $0x58] sm:$0xf0]  ;;  %v7238_v9 = vld [vmem:[%s11433_s1 + $0x654] sm:$0xf0] }
 0x6cb   : > { %v6106_v40 = vld [vmem:[%s11433_s1 + $0x1d8] sm:$0xf0] }
 0x6cf   : > { %v4561_v32 = vpop.f32.mrf.mxu2  ;;  %v4386_v24 = vpop.f32.mrf.mxu0 }
 0x6d0   : > { %v4562_v60 = vadd.f32 %v4561_v32, %v4473_v55  ;;  %v4650_v12 = vpop.f32.mrf.mxu3  ;;  %v4387_v25 = vadd.f32 %v4386_v24, %v10504_v29  ;;  %v4475_v14 = vpop.f32.mrf.mxu1  ;;  %v6109_v32 = vor.u32 %v7091_v16, %v6106_v40 }
 0x6d2   : > { %v10550_v10 = vadd.f32 %v4650_v12, %v4562_v60  ;;  %v4476_v8 = vadd.f32 %v4475_v14, %v4387_v25  ;;  %4425 = vmatmul.bf16.gmra.mxu0 %v12003_v37  ;;  %v6680_v14 = vld [vmem:[%s11433_s1 + $0x640] sm:$0xf]  ;;  %v5917_v25 = vor.u32 %v7043_v28, %v5914_v20  ;;  %4996 = vmatpush.bf16.msrb.mxu3 %v6109_v32 }
 0x6d3   : > { %4514 = vmatmul.bf16.gmra.mxu1 %v12004_v58  ;;  %v6681_v55 = vor.u32 %v7238_v9, %v6680_v14  ;;  %v7286_v14 = vld [vmem:[%s11433_s1 + $0x7d4] sm:$0xf0] }
 0x6d4   : > { %4603 = vmatmul.bf16.gmra.mxu2 %v11955_v30  ;;  %v6872_v30 = vld [vmem:[%s11433_s1 + $0x7c0] sm:$0xf] }
 0x6d5   : > { %4692 = vmatmul.bf16.gmra.mxu3 %v11956_v48  ;;  %4907 = vmatpush.bf16.msrb.mxu2 %v5917_v25 }
 0x6d6   : > { %4729 = vmatpush.bf16.msrb.mxu0 %v6681_v55 }
 0x6d7   : > { %v4564_v19 = vpop.f32.mrf.mxu2  ;;  %v4388_v24 = vpop.f32.mrf.mxu0 }
 0x6d8   : > { %v4565_v60 = vadd.f32 %v4564_v19, %v4476_v8  ;;  %v4653_v12 = vpop.f32.mrf.mxu3  ;;  %v4389_v28 = vadd.f32 %v4388_v24, %v10504_v29  ;;  %v4477_v20 = vpop.f32.mrf.mxu1  ;;  %v6873_v8 = vor.u32 %v7286_v14, %v6872_v30  ;;  %v12005_v24 = vld [vmem:[#allocation47_spill] sm:$0xff] }
 0x6da   : > { %v10575_v48 = vadd.f32 %v4653_v12, %v4565_v60  ;;  %v4478_v9 = vadd.f32 %v4477_v20, %v4389_v28  ;;  %4818 = vmatpush.bf16.msrb.mxu1 %v6873_v8 }
 0x6df   : > { %v4566_v16 = vpop.f32.mrf.mxu2  ;;  %v4391_v19 = vpop.f32.mrf.mxu0 }
 0x6e0   : > { %v4567_v25 = vadd.f32 %v4566_v16, %v4478_v9  ;;  %v4655_v40 = vpop.f32.mrf.mxu3  ;;  %v4392_v55 = vadd.f32 %v4391_v19, %v10504_v29  ;;  %v4480_v32 = vpop.f32.mrf.mxu1 }
 0x6e2   : > { %v10584_v60 = vadd.f32 %v4655_v40, %v4567_v25  ;;  %v4481_v12 = vadd.f32 %v4480_v32, %v4392_v55  ;;  %4430 = vmatmul.bf16.gmra.mxu0 %v12005_v24 }
 0x6e3   : > { %4519 = vmatmul.bf16.gmra.mxu1 %v12006_v41 }
 0x6e4   : > { %4608 = vmatmul.bf16.gmra.mxu2 %v11957_v46 }
 0x6e5   : > { %4697 = vmatmul.bf16.gmra.mxu3 %v11958_v2 }
 0x6e7   : > { %v4569_v30 = vpop.f32.mrf.mxu2  ;;  %v4393_v14 = vpop.f32.mrf.mxu0 }
 0x6e8   : > { %v4570_v28 = vadd.f32 %v4569_v30, %v4481_v12  ;;  %v4658_v20 = vpop.f32.mrf.mxu3  ;;  %v4394_v9 = vadd.f32 %v4393_v14, %v10504_v29  ;;  %v4482_v8 = vpop.f32.mrf.mxu1  ;;  %v12008_v12 = vld [vmem:[#allocation52_spill] sm:$0xff]  ;;  %v7037_v30 = vld [vmem:[%s11433_s1 + $0x14] sm:$0xf] }
 0x6e9   : > { %v7085_v14 = vld [vmem:[%s11433_s1 + $0x194] sm:$0xf] }
 0x6ea   : > { %v10591_v16 = vadd.f32 %v4658_v20, %v4570_v28  ;;  %v4483_v25 = vadd.f32 %v4482_v8, %v4394_v9  ;;  %v5890_v28 = vld [vmem:[%s11433_s1 + $0x28] sm:$0xf0]  ;;  %v7232_v20 = vld [vmem:[%s11433_s1 + $0x624] sm:$0xf0] }
 0x6eb   : > { %v6082_v9 = vld [vmem:[%s11433_s1 + $0x1a8] sm:$0xf0] }
 0x6ef   : > { %v4571_v40 = vpop.f32.mrf.mxu2  ;;  %v4396_v32 = vpop.f32.mrf.mxu0 }
 0x6f0   : > { %v4572_v19 = vadd.f32 %v4571_v40, %v4483_v25  ;;  %v4660_v55 = vpop.f32.mrf.mxu3  ;;  %v4397_v6 = vadd.f32 %v4396_v32, %v10504_v29  ;;  %v4485_v1 = vpop.f32.mrf.mxu1  ;;  %v6085_v40 = vor.u32 %v7085_v14, %v6082_v9 }
 0x6f2   : > { %v10594_v46 = vadd.f32 %v4660_v55, %v4572_v19  ;;  %v4486_v2 = vadd.f32 %v4485_v1, %v4397_v6  ;;  %4435 = vmatmul.bf16.gmra.mxu0 %v12007_v11  ;;  %v6656_v6 = vld [vmem:[%s11433_s1 + $0x610] sm:$0xf]  ;;  %v5893_v1 = vor.u32 %v7037_v30, %v5890_v28  ;;  %4997 = vmatpush.bf16.msrb.mxu3 %v6085_v40 }
 0x6f3   : > { %4524 = vmatmul.bf16.gmra.mxu1 %v12008_v12  ;;  %v6657_v25 = vor.u32 %v7232_v20, %v6656_v6  ;;  %v7280_v6 = vld [vmem:[%s11433_s1 + $0x7a4] sm:$0xf0] }
 0x6f4   : > { %4613 = vmatmul.bf16.gmra.mxu2 %v11959_v21  ;;  %v6848_v21 = vld [vmem:[%s11433_s1 + $0x790] sm:$0xf]  ;;  %v12011_v12 = vld [vmem:[#allocation56_spill] sm:$0xff] }
 0x6f5   : > { %4702 = vmatmul.bf16.gmra.mxu3 %v11960_v54  ;;  %4908 = vmatpush.bf16.msrb.mxu2 %v5893_v1 }
 0x6f6   : > { %4730 = vmatpush.bf16.msrb.mxu0 %v6657_v25 }
 0x6f7   : > { %v4574_v8 = vpop.f32.mrf.mxu2  ;;  %v4398_v32 = vpop.f32.mrf.mxu0 }
 0x6f8   : > { %v4575_v19 = vadd.f32 %v4574_v8, %v4486_v2  ;;  %v4663_v55 = vpop.f32.mrf.mxu3  ;;  %v4399_v30 = vadd.f32 %v4398_v32, %v10504_v29  ;;  %v4487_v28 = vpop.f32.mrf.mxu1  ;;  %v6849_v2 = vor.u32 %v7280_v6, %v6848_v21  ;;  %v12010_v32 = vld [vmem:[#allocation55_spill] sm:$0xff] }
 0x6fa   : > { %v10619_v54 = vadd.f32 %v4663_v55, %v4575_v19  ;;  %v4488_v20 = vadd.f32 %v4487_v28, %v4399_v30  ;;  %4819 = vmatpush.bf16.msrb.mxu1 %v6849_v2 }
 0x6ff   : > { %v4576_v14 = vpop.f32.mrf.mxu2  ;;  %v4401_v8 = vpop.f32.mrf.mxu0 }
 0x700   : > { %v4577_v1 = vadd.f32 %v4576_v14, %v4488_v20  ;;  %v4665_v9 = vpop.f32.mrf.mxu3  ;;  %v4402_v25 = vadd.f32 %v4401_v8, %v10504_v29  ;;  %v4490_v40 = vpop.f32.mrf.mxu1 }
 0x702   : > { %v10628_v19 = vadd.f32 %v4665_v9, %v4577_v1  ;;  %v4491_v55 = vadd.f32 %v4490_v40, %v4402_v25  ;;  %4440 = vmatmul.bf16.gmra.mxu0 %v12010_v32 }
 0x703   : > { %4529 = vmatmul.bf16.gmra.mxu1 %v12011_v12 }
 0x704   : > { %12009 = vst [vmem:[#allocation94_spill] sm:$0xff] %v10628_v19  ;;  %4618 = vmatmul.bf16.gmra.mxu2 %v11961_v52  ;;  %v12012_v19 = vld [vmem:[#allocation59_spill] sm:$0xff] }
 0x705   : > { %4707 = vmatmul.bf16.gmra.mxu3 %v11962_v47 }
 0x707   : > { %v4579_v21 = vpop.f32.mrf.mxu2  ;;  %v4403_v6 = vpop.f32.mrf.mxu0 }
 0x708   : > { %v4580_v30 = vadd.f32 %v4579_v21, %v4491_v55  ;;  %v4668_v28 = vpop.f32.mrf.mxu3  ;;  %v4404_v20 = vadd.f32 %v4403_v6, %v10504_v29  ;;  %v4492_v2 = vpop.f32.mrf.mxu1  ;;  %v12013_v55 = vld [vmem:[#allocation60_spill] sm:$0xff]  ;;  %v7271_v21 = vld [vmem:[%s11433_s1 + $0x764] sm:$0xf] }
 0x709   : > { %v7319_v6 = vld [vmem:[%s11433_s1 + $0x8e4] sm:$0xf] }
 0x70a   : > { %v10635_v14 = vadd.f32 %v4668_v28, %v4580_v30  ;;  %v4493_v1 = vadd.f32 %v4492_v2, %v4404_v20  ;;  %v6826_v30 = vld [vmem:[%s11433_s1 + $0x778] sm:$0xf0] }
 0x70b   : > { %v6442_v28 = vld [vmem:[%s11433_s1 + $0x478] sm:$0xf0] }
 0x70c   : > { %v7018_v20 = vld [vmem:[%s11433_s1 + $0x8f8] sm:$0xf0] }
 0x70f   : > { %v4581_v9 = vpop.f32.mrf.mxu2  ;;  %v4406_v40 = vpop.f32.mrf.mxu0 }
 0x710   : > { %v4582_v8 = vadd.f32 %v4581_v9, %v4493_v1  ;;  %v4670_v25 = vpop.f32.mrf.mxu3  ;;  %v4407_v12 = vadd.f32 %v4406_v40, %v10504_v29  ;;  %v4495_v32 = vpop.f32.mrf.mxu1  ;;  %v7021_v9 = vor.u32 %v7319_v6, %v7018_v20 }
 0x712   : > { %v10638_v52 = vadd.f32 %v4670_v25, %v4582_v8  ;;  %v4496_v47 = vadd.f32 %v4495_v32, %v4407_v12  ;;  %4445 = vmatmul.bf16.gmra.mxu0 %v12012_v19  ;;  %v7175_v12 = vld [vmem:[%s11433_s1 + $0x464] sm:$0xf]  ;;  %v6829_v32 = vor.u32 %v7271_v21, %v6826_v30  ;;  %5346 = vmatpush.bf16.msra.mxu3 %v7021_v9 }
 0x713   : > { %4534 = vmatmul.bf16.gmra.mxu1 %v12013_v55  ;;  %v6445_v1 = vor.u32 %v7175_v12, %v6442_v28  ;;  %v6634_v12 = vld [vmem:[%s11433_s1 + $0x5f8] sm:$0xf0]  ;;  %v12016_v55 = vld [vmem:[#allocation64_spill] sm:$0xff] }
 0x714   : > { %4623 = vmatmul.bf16.gmra.mxu2 %v11963_v61  ;;  %v7223_v61 = vld [vmem:[%s11433_s1 + $0x5e4] sm:$0xf] }
 0x715   : > { %4712 = vmatmul.bf16.gmra.mxu3 %v11964_v17  ;;  %5257 = vmatpush.bf16.msra.mxu2 %v6829_v32 }
 0x716   : > { %5079 = vmatpush.bf16.msra.mxu0 %v6445_v1 }
 0x717   : > { %v4584_v2 = vpop.f32.mrf.mxu2  ;;  %v4408_v40 = vpop.f32.mrf.mxu0 }
 0x718   : > { %v4585_v8 = vadd.f32 %v4584_v2, %v4496_v47  ;;  %v4673_v25 = vpop.f32.mrf.mxu3  ;;  %v4409_v21 = vadd.f32 %v4408_v40, %v10504_v29  ;;  %v4497_v30 = vpop.f32.mrf.mxu1  ;;  %v6637_v47 = vor.u32 %v7223_v61, %v6634_v12  ;;  %v12015_v40 = vld [vmem:[#allocation63_spill] sm:$0xff] }
 0x71a   : > { %v10663_v17 = vadd.f32 %v4673_v25, %v4585_v8  ;;  %v4498_v28 = vadd.f32 %v4497_v30, %v4409_v21  ;;  %5168 = vmatpush.bf16.msra.mxu1 %v6637_v47 }
 0x71f   : > { %v4586_v6 = vpop.f32.mrf.mxu2  ;;  %v4411_v2 = vpop.f32.mrf.mxu0 }
 0x720   : > { %v4587_v32 = vadd.f32 %v4586_v6, %v4498_v28  ;;  %v4675_v20 = vpop.f32.mrf.mxu3  ;;  %v4412_v1 = vadd.f32 %v4411_v2, %v10504_v29  ;;  %v4500_v9 = vpop.f32.mrf.mxu1 }
 0x722   : > { %v10672_v8 = vadd.f32 %v4675_v20, %v4587_v32  ;;  %v4501_v25 = vadd.f32 %v4500_v9, %v4412_v1  ;;  %4450 = vmatmul.bf16.gmra.mxu0 %v12015_v40 }
 0x723   : > { %4539 = vmatmul.bf16.gmra.mxu1 %v12016_v55 }
 0x724   : > { %12014 = vst [vmem:[#allocation95_spill] sm:$0xff] %v10672_v8  ;;  %4628 = vmatmul.bf16.gmra.mxu2 %v11965_v44  ;;  %v12017_v8 = vld [vmem:[#allocation67_spill] sm:$0xff] }
 0x725   : > { %4717 = vmatmul.bf16.gmra.mxu3 %v11966_v51 }
 0x727   : > { %v4589_v61 = vpop.f32.mrf.mxu2  ;;  %v4413_v12 = vpop.f32.mrf.mxu0 }
 0x728   : > { %v4590_v21 = vadd.f32 %v4589_v61, %v4501_v25  ;;  %v4678_v30 = vpop.f32.mrf.mxu3  ;;  %v4414_v28 = vadd.f32 %v4413_v12, %v10504_v29  ;;  %v4502_v47 = vpop.f32.mrf.mxu1  ;;  %v12018_v25 = vld [vmem:[#allocation68_spill] sm:$0xff]  ;;  %v7265_v61 = vld [vmem:[%s11433_s1 + $0x734] sm:$0xf] }
 0x72a   : > { %v10679_v6 = vadd.f32 %v4678_v30, %v4590_v21  ;;  %v4503_v32 = vadd.f32 %v4502_v47, %v4414_v28  ;;  %v6802_v21 = vld [vmem:[%s11433_s1 + $0x748] sm:$0xf0] }
 0x72b   : > { %v6418_v30 = vld [vmem:[%s11433_s1 + $0x448] sm:$0xf0] }
 0x72f   : > { %v4591_v20 = vpop.f32.mrf.mxu2  ;;  %v4416_v9 = vpop.f32.mrf.mxu0 }
 0x730   : > { %v4592_v2 = vadd.f32 %v4591_v20, %v4503_v32  ;;  %v4680_v1 = vpop.f32.mrf.mxu3  ;;  %v4417_v55 = vadd.f32 %v4416_v9, %v10504_v29  ;;  %v4505_v40 = vpop.f32.mrf.mxu1 }
 0x732   : > { %v10682_v44 = vadd.f32 %v4680_v1, %v4592_v2  ;;  %v4506_v51 = vadd.f32 %v4505_v40, %v4417_v55  ;;  %4731 = vmatmul.bf16.vlgmr.msrb.gmra.mxu0 %v12017_v8  ;;  %v7169_v55 = vld [vmem:[%s11433_s1 + $0x434] sm:$0xf]  ;;  %v6805_v40 = vor.u32 %v7265_v61, %v6802_v21 }
 0x733   : > { %4820 = vmatmul.bf16.vlgmr.msrb.gmra.mxu1 %v12018_v25  ;;  %v6421_v28 = vor.u32 %v7169_v55, %v6418_v30  ;;  %v7217_v21 = vld [vmem:[%s11433_s1 + $0x5b4] sm:$0xf]  ;;  %v6610_v55 = vld [vmem:[%s11433_s1 + $0x5c8] sm:$0xf0]  ;;  %v12021_v25 = vld [vmem:[#allocation70_spill] sm:$0xff] }
 0x734   : > { %4909 = vmatmul.bf16.vlgmr.msrb.gmra.mxu2 %v11968_v0  ;;  %v7313_v0 = vld [vmem:[%s11433_s1 + $0x8b4] sm:$0xf] }
 0x735   : > { %4998 = vmatmul.bf16.vlgmr.msrb.gmra.mxu3 %v11969_v53  ;;  %v6994_v53 = vld [vmem:[%s11433_s1 + $0x8c8] sm:$0xf0]  ;;  %5258 = vmatpush.bf16.msra.mxu2 %v6805_v40 }
 0x736   : > { %v6997_v47 = vor.u32 %v7313_v0, %v6994_v53  ;;  %5080 = vmatpush.bf16.msra.mxu0 %v6421_v28 }
 0x737   : > { %v4594_v12 = vpop.f32.mrf.mxu2  ;;  %v4418_v2 = vpop.f32.mrf.mxu0 }
 0x738   : > { %v4595_v32 = vadd.f32 %v4594_v12, %v4506_v51  ;;  %v4683_v20 = vpop.f32.mrf.mxu3  ;;  %v4419_v1 = vadd.f32 %v4418_v2, %v10504_v29  ;;  %v4507_v9 = vpop.f32.mrf.mxu1  ;;  %5347 = vmatpush.bf16.msra.mxu3 %v6997_v47  ;;  %v6613_v51 = vor.u32 %v7217_v21, %v6610_v55  ;;  %v12020_v2 = vld [vmem:[#allocation69_spill] sm:$0xff] }
 0x73a   : > { %v10707_v61 = vadd.f32 %v4683_v20, %v4595_v32  ;;  %v4508_v30 = vadd.f32 %v4507_v9, %v4419_v1  ;;  %5169 = vmatpush.bf16.msra.mxu1 %v6613_v51 }
 0x73f   : > { %v4596_v0 = vpop.f32.mrf.mxu2  ;;  %v4421_v12 = vpop.f32.mrf.mxu0 }
 0x740   : > { %v4597_v40 = vadd.f32 %v4596_v0, %v4508_v30  ;;  %v4685_v53 = vpop.f32.mrf.mxu3  ;;  %v4422_v28 = vadd.f32 %v4421_v12, %v10504_v29  ;;  %v4510_v47 = vpop.f32.mrf.mxu1 }
 0x742   : > { %v10716_v32 = vadd.f32 %v4685_v53, %v4597_v40  ;;  %v4511_v20 = vadd.f32 %v4510_v47, %v4422_v28  ;;  %4736 = vmatmul.bf16.gmra.mxu0 %v12020_v2 }
 0x743   : > { %4825 = vmatmul.bf16.gmra.mxu1 %v12021_v25 }
 0x744   : > { %12019 = vst [vmem:[#allocation96_spill] sm:$0xff] %v10716_v32  ;;  %4914 = vmatmul.bf16.gmra.mxu2 %v11972_v49  ;;  %v12022_v32 = vld [vmem:[#allocation71_spill] sm:$0xff] }
 0x745   : > { %5003 = vmatmul.bf16.gmra.mxu3 %v11973_v15 }
 0x747   : > { %v4599_v1 = vpop.f32.mrf.mxu2  ;;  %v4423_v55 = vpop.f32.mrf.mxu0 }
 0x748   : > { %v4600_v9 = vadd.f32 %v4599_v1, %v4511_v20  ;;  %v4688_v21 = vpop.f32.mrf.mxu3  ;;  %v4424_v30 = vadd.f32 %v4423_v55, %v10504_v29  ;;  %v4512_v51 = vpop.f32.mrf.mxu1  ;;  %v12023_v20 = vld [vmem:[#allocation72_spill] sm:$0xff]  ;;  %v7259_v1 = vld [vmem:[%s11433_s1 + $0x704] sm:$0xf] }
 0x74a   : > { %v10723_v0 = vadd.f32 %v4688_v21, %v4600_v9  ;;  %v4513_v40 = vadd.f32 %v4512_v51, %v4424_v30  ;;  %v6778_v9 = vld [vmem:[%s11433_s1 + $0x718] sm:$0xf0] }
 0x74b   : > { %v6394_v21 = vld [vmem:[%s11433_s1 + $0x418] sm:$0xf0] }
 0x74f   : > { %v4601_v53 = vpop.f32.mrf.mxu2  ;;  %v4426_v47 = vpop.f32.mrf.mxu0 }
 0x750   : > { %v4602_v12 = vadd.f32 %v4601_v53, %v4513_v40  ;;  %v4690_v28 = vpop.f32.mrf.mxu3  ;;  %v4427_v25 = vadd.f32 %v4426_v47, %v10504_v29  ;;  %v4515_v2 = vpop.f32.mrf.mxu1 }
 0x752   : > { %v10726_v49 = vadd.f32 %v4690_v28, %v4602_v12  ;;  %v4516_v15 = vadd.f32 %v4515_v2, %v4427_v25  ;;  %4741 = vmatmul.bf16.gmra.mxu0 %v12022_v32  ;;  %v7163_v25 = vld [vmem:[%s11433_s1 + $0x404] sm:$0xf]  ;;  %v6781_v2 = vor.u32 %v7259_v1, %v6778_v9 }
 0x753   : > { %4830 = vmatmul.bf16.gmra.mxu1 %v12023_v20  ;;  %v6397_v30 = vor.u32 %v7163_v25, %v6394_v21  ;;  %v7211_v9 = vld [vmem:[%s11433_s1 + $0x584] sm:$0xf]  ;;  %v6586_v25 = vld [vmem:[%s11433_s1 + $0x598] sm:$0xf0] }
 0x754   : > { %4919 = vmatmul.bf16.gmra.mxu2 %v11976_v26  ;;  %v7307_v26 = vld [vmem:[%s11433_s1 + $0x884] sm:$0xf]  ;;  %v12026_v20 = vld [vmem:[#allocation74_spill] sm:$0xff] }
 0x755   : > { %5008 = vmatmul.bf16.gmra.mxu3 %v11977_v31  ;;  %v6970_v31 = vld [vmem:[%s11433_s1 + $0x898] sm:$0xf0]  ;;  %5259 = vmatpush.bf16.msra.mxu2 %v6781_v2 }
 0x756   : > { %v6973_v51 = vor.u32 %v7307_v26, %v6970_v31  ;;  %5081 = vmatpush.bf16.msra.mxu0 %v6397_v30 }
 0x757   : > { %v4604_v55 = vpop.f32.mrf.mxu2  ;;  %v4428_v12 = vpop.f32.mrf.mxu0 }
 0x758   : > { %v4605_v40 = vadd.f32 %v4604_v55, %v4516_v15  ;;  %v4693_v53 = vpop.f32.mrf.mxu3  ;;  %v4429_v28 = vadd.f32 %v4428_v12, %v10504_v29  ;;  %v4517_v47 = vpop.f32.mrf.mxu1  ;;  %5348 = vmatpush.bf16.msra.mxu3 %v6973_v51  ;;  %v6589_v15 = vor.u32 %v7211_v9, %v6586_v25  ;;  %v12025_v12 = vld [vmem:[#allocation73_spill] sm:$0xff] }
 0x75a   : > { %v10751_v1 = vadd.f32 %v4693_v53, %v4605_v40  ;;  %v4518_v21 = vadd.f32 %v4517_v47, %v4429_v28  ;;  %5170 = vmatpush.bf16.msra.mxu1 %v6589_v15 }
 0x75f   : > { %v4606_v26 = vpop.f32.mrf.mxu2  ;;  %v4431_v55 = vpop.f32.mrf.mxu0 }
 0x760   : > { %v4607_v2 = vadd.f32 %v4606_v26, %v4518_v21  ;;  %v4695_v31 = vpop.f32.mrf.mxu3  ;;  %v4432_v30 = vadd.f32 %v4431_v55, %v10504_v29  ;;  %v4520_v51 = vpop.f32.mrf.mxu1 }
 0x762   : > { %v10760_v40 = vadd.f32 %v4695_v31, %v4607_v2  ;;  %v4521_v53 = vadd.f32 %v4520_v51, %v4432_v30  ;;  %4746 = vmatmul.bf16.gmra.mxu0 %v12025_v12 }
 0x763   : > { %4835 = vmatmul.bf16.gmra.mxu1 %v12026_v20 }
 0x764   : > { %12024 = vst [vmem:[#allocation97_spill] sm:$0xff] %v10760_v40  ;;  %4924 = vmatmul.bf16.gmra.mxu2 %v11980_v18  ;;  %v12027_v40 = vld [vmem:[#allocation75_spill] sm:$0xff] }
 0x765   : > { %5013 = vmatmul.bf16.gmra.mxu3 %v11981_v5 }
 0x767   : > { %v4609_v28 = vpop.f32.mrf.mxu2  ;;  %v4433_v25 = vpop.f32.mrf.mxu0 }
 0x768   : > { %v4610_v47 = vadd.f32 %v4609_v28, %v4521_v53  ;;  %v4698_v9 = vpop.f32.mrf.mxu3  ;;  %v4434_v21 = vadd.f32 %v4433_v25, %v10504_v29  ;;  %v4522_v15 = vpop.f32.mrf.mxu1  ;;  %v12028_v53 = vld [vmem:[#allocation76_spill] sm:$0xff]  ;;  %v7253_v28 = vld [vmem:[%s11433_s1 + $0x6d4] sm:$0xf] }
 0x76a   : > { %v10767_v26 = vadd.f32 %v4698_v9, %v4610_v47  ;;  %v4523_v2 = vadd.f32 %v4522_v15, %v4434_v21  ;;  %v6754_v47 = vld [vmem:[%s11433_s1 + $0x6e8] sm:$0xf0] }
 0x76b   : > { %v6370_v9 = vld [vmem:[%s11433_s1 + $0x3e8] sm:$0xf0] }
 0x76f   : > { %v4611_v31 = vpop.f32.mrf.mxu2  ;;  %v4436_v51 = vpop.f32.mrf.mxu0 }
 0x770   : > { %v4612_v55 = vadd.f32 %v4611_v31, %v4523_v2  ;;  %v4700_v30 = vpop.f32.mrf.mxu3  ;;  %v4437_v20 = vadd.f32 %v4436_v51, %v10504_v29  ;;  %v4525_v12 = vpop.f32.mrf.mxu1 }
 0x772   : > { %v10770_v18 = vadd.f32 %v4700_v30, %v4612_v55  ;;  %v4526_v5 = vadd.f32 %v4525_v12, %v4437_v20  ;;  %4751 = vmatmul.bf16.gmra.mxu0 %v12027_v40  ;;  %v7157_v20 = vld [vmem:[%s11433_s1 + $0x3d4] sm:$0xf]  ;;  %v6757_v12 = vor.u32 %v7253_v28, %v6754_v47 }
 0x773   : > { %4840 = vmatmul.bf16.gmra.mxu1 %v12028_v53  ;;  %v6373_v21 = vor.u32 %v7157_v20, %v6370_v9  ;;  %v7205_v47 = vld [vmem:[%s11433_s1 + $0x554] sm:$0xf]  ;;  %v6562_v20 = vld [vmem:[%s11433_s1 + $0x568] sm:$0xf0]  ;;  %v12031_v53 = vld [vmem:[#allocation78_spill] sm:$0xff] }
 0x774   : > { %4929 = vmatmul.bf16.gmra.mxu2 %v11984_v13  ;;  %v7301_v13 = vld [vmem:[%s11433_s1 + $0x854] sm:$0xf] }
 0x775   : > { %5018 = vmatmul.bf16.gmra.mxu3 %v11985_v23  ;;  %v6946_v23 = vld [vmem:[%s11433_s1 + $0x868] sm:$0xf0]  ;;  %5260 = vmatpush.bf16.msra.mxu2 %v6757_v12 }
 0x776   : > { %v6949_v15 = vor.u32 %v7301_v13, %v6946_v23  ;;  %5082 = vmatpush.bf16.msra.mxu0 %v6373_v21 }
 0x777   : > { %v4614_v25 = vpop.f32.mrf.mxu2  ;;  %v4438_v55 = vpop.f32.mrf.mxu0 }
 0x778   : > { %v4615_v2 = vadd.f32 %v4614_v25, %v4526_v5  ;;  %v4703_v31 = vpop.f32.mrf.mxu3  ;;  %v4439_v30 = vadd.f32 %v4438_v55, %v10504_v29  ;;  %v4527_v51 = vpop.f32.mrf.mxu1  ;;  %5349 = vmatpush.bf16.msra.mxu3 %v6949_v15  ;;  %v6565_v5 = vor.u32 %v7205_v47, %v6562_v20  ;;  %v12030_v55 = vld [vmem:[#allocation77_spill] sm:$0xff] }
 0x77a   : > { %v10795_v28 = vadd.f32 %v4703_v31, %v4615_v2  ;;  %v4528_v9 = vadd.f32 %v4527_v51, %v4439_v30  ;;  %5171 = vmatpush.bf16.msra.mxu1 %v6565_v5 }
 0x77f   : > { %v4616_v13 = vpop.f32.mrf.mxu2  ;;  %v4441_v25 = vpop.f32.mrf.mxu0 }
 0x780   : > { %v4617_v12 = vadd.f32 %v4616_v13, %v4528_v9  ;;  %v4705_v23 = vpop.f32.mrf.mxu3  ;;  %v4442_v21 = vadd.f32 %v4441_v25, %v10504_v29  ;;  %v4530_v15 = vpop.f32.mrf.mxu1 }
 0x782   : > { %v10804_v2 = vadd.f32 %v4705_v23, %v4617_v12  ;;  %v4531_v31 = vadd.f32 %v4530_v15, %v4442_v21  ;;  %4756 = vmatmul.bf16.gmra.mxu0 %v12030_v55 }
 0x783   : > { %4845 = vmatmul.bf16.gmra.mxu1 %v12031_v53 }
 0x784   : > { %12029 = vst [vmem:[#allocation98_spill] sm:$0xff] %v10804_v2  ;;  %4934 = vmatmul.bf16.gmra.mxu2 %v11988_v59  ;;  %v12032_v2 = vld [vmem:[#allocation79_spill] sm:$0xff] }
 0x785   : > { %5023 = vmatmul.bf16.gmra.mxu3 %v11989_v42 }
 0x787   : > { %v4619_v30 = vpop.f32.mrf.mxu2  ;;  %v4443_v20 = vpop.f32.mrf.mxu0 }
 0x788   : > { %v4620_v51 = vadd.f32 %v4619_v30, %v4531_v31  ;;  %v4708_v47 = vpop.f32.mrf.mxu3  ;;  %v4444_v9 = vadd.f32 %v4443_v20, %v10504_v29  ;;  %v4532_v5 = vpop.f32.mrf.mxu1  ;;  %v12033_v31 = vld [vmem:[#allocation80_spill] sm:$0xff]  ;;  %v7247_v30 = vld [vmem:[%s11433_s1 + $0x6a4] sm:$0xf] }
 0x78a   : > { %v10811_v13 = vadd.f32 %v4708_v47, %v4620_v51  ;;  %v4533_v12 = vadd.f32 %v4532_v5, %v4444_v9  ;;  %v6730_v51 = vld [vmem:[%s11433_s1 + $0x6b8] sm:$0xf0] }
 0x78b   : > { %v6346_v47 = vld [vmem:[%s11433_s1 + $0x3b8] sm:$0xf0] }
 0x78f   : > { %v4621_v23 = vpop.f32.mrf.mxu2  ;;  %v4446_v15 = vpop.f32.mrf.mxu0 }
 0x790   : > { %v4622_v25 = vadd.f32 %v4621_v23, %v4533_v12  ;;  %v4710_v21 = vpop.f32.mrf.mxu3  ;;  %v4447_v53 = vadd.f32 %v4446_v15, %v10504_v29  ;;  %v4535_v55 = vpop.f32.mrf.mxu1 }
 0x792   : > { %v10814_v59 = vadd.f32 %v4710_v21, %v4622_v25  ;;  %v4536_v42 = vadd.f32 %v4535_v55, %v4447_v53  ;;  %4761 = vmatmul.bf16.gmra.mxu0 %v12032_v2  ;;  %v7151_v53 = vld [vmem:[%s11433_s1 + $0x3a4] sm:$0xf]  ;;  %v6733_v55 = vor.u32 %v7247_v30, %v6730_v51 }
 0x793   : > { %4850 = vmatmul.bf16.gmra.mxu1 %v12033_v31  ;;  %v6349_v9 = vor.u32 %v7151_v53, %v6346_v47  ;;  %v7199_v51 = vld [vmem:[%s11433_s1 + $0x524] sm:$0xf]  ;;  %v6538_v53 = vld [vmem:[%s11433_s1 + $0x538] sm:$0xf0] }
 0x794   : > { %4939 = vmatmul.bf16.gmra.mxu2 %v11992_v45  ;;  %v7295_v45 = vld [vmem:[%s11433_s1 + $0x824] sm:$0xf]  ;;  %v12035_v31 = vld [vmem:[#allocation82_spill] sm:$0xff] }
 0x795   : > { %5028 = vmatmul.bf16.gmra.mxu3 %v11993_v22  ;;  %v6922_v22 = vld [vmem:[%s11433_s1 + $0x838] sm:$0xf0]  ;;  %5261 = vmatpush.bf16.msra.mxu2 %v6733_v55 }
 0x796   : > { %v6925_v5 = vor.u32 %v7295_v45, %v6922_v22  ;;  %5083 = vmatpush.bf16.msra.mxu0 %v6349_v9 }
 0x797   : > { %v4624_v20 = vpop.f32.mrf.mxu2  ;;  %v4448_v25 = vpop.f32.mrf.mxu0 }
 0x798   : > { %v4625_v12 = vadd.f32 %v4624_v20, %v4536_v42  ;;  %v4713_v23 = vpop.f32.mrf.mxu3  ;;  %v4449_v21 = vadd.f32 %v4448_v25, %v10504_v29  ;;  %v4537_v15 = vpop.f32.mrf.mxu1  ;;  %5350 = vmatpush.bf16.msra.mxu3 %v6925_v5  ;;  %v6541_v42 = vor.u32 %v7199_v51, %v6538_v53  ;;  %v12034_v25 = vld [vmem:[#allocation81_spill] sm:$0xff] }
 0x79a   : > { %v10839_v30 = vadd.f32 %v4713_v23, %v4625_v12  ;;  %v4538_v47 = vadd.f32 %v4537_v15, %v4449_v21  ;;  %5172 = vmatpush.bf16.msra.mxu1 %v6541_v42 }
 0x79f   : > { %v4626_v45 = vpop.f32.mrf.mxu2  ;;  %v4451_v20 = vpop.f32.mrf.mxu0 }
 0x7a0   : > { %v4627_v55 = vadd.f32 %v4626_v45, %v4538_v47  ;;  %v4715_v22 = vpop.f32.mrf.mxu3  ;;  %v4452_v9 = vadd.f32 %v4451_v20, %v10504_v29  ;;  %v4540_v5 = vpop.f32.mrf.mxu1 }
 0x7a2   : > { %v10848_v12 = vadd.f32 %v4715_v22, %v4627_v55  ;;  %v4541_v23 = vadd.f32 %v4540_v5, %v4452_v9  ;;  %4766 = vmatmul.bf16.gmra.mxu0 %v12034_v25 }
 0x7a3   : > { %4855 = vmatmul.bf16.gmra.mxu1 %v12035_v31 }
 0x7a4   : > { %4944 = vmatmul.bf16.gmra.mxu2 %v11995_v35 }
 0x7a5   : > { %5033 = vmatmul.bf16.gmra.mxu3 %v11996_v63 }
 0x7a7   : > { %v4629_v21 = vpop.f32.mrf.mxu2  ;;  %v4453_v53 = vpop.f32.mrf.mxu0 }
 0x7a8   : > { %v4630_v15 = vadd.f32 %v4629_v21, %v4541_v23  ;;  %v4718_v51 = vpop.f32.mrf.mxu3  ;;  %v4454_v47 = vadd.f32 %v4453_v53, %v10504_v29  ;;  %v4542_v42 = vpop.f32.mrf.mxu1  ;;  %v12036_v23 = vld [vmem:[#allocation84_spill] sm:$0xff]  ;;  %v10864_v29 = vperm.slane %v10501_v33, 5 }
 0x7a9   : > { %v6322_v33 = vld [vmem:[%s11433_s1 + $0x388] sm:$0xf0] }
 0x7aa   : > { %v10855_v45 = vadd.f32 %v4718_v51, %v4630_v15  ;;  %v4543_v55 = vadd.f32 %v4542_v42, %v4454_v47  ;;  %v7145_v15 = vld [vmem:[%s11433_s1 + $0x374] sm:$0xf]  ;;  %v6898_v53 = vld [vmem:[%s11433_s1 + $0x808] sm:$0xf0] }
 0x7ab   : > { %v6325_v51 = vor.u32 %v7145_v15, %v6322_v33 }
 0x7ad   : > { %5084 = vmatpush.bf16.msra.mxu0 %v6325_v51 }
 0x7af   : > { %v4631_v22 = vpop.f32.mrf.mxu2  ;;  %v4732_v5 = vpop.f32.mrf.mxu0 }
 0x7b0   : > { %v4632_v20 = vadd.f32 %v4631_v22, %v4543_v55  ;;  %v4720_v9 = vpop.f32.mrf.mxu3  ;;  %v4733_v31 = vadd.f32 %v4732_v5, %v10531_v27  ;;  %v4821_v35 = vpop.f32.mrf.mxu1  ;;  %v7241_v27 = vld [vmem:[%s11433_s1 + $0x674] sm:$0xf] }
 0x7b2   : > { %v10858_v25 = vadd.f32 %v4720_v9, %v4632_v20  ;;  %v4822_v63 = vadd.f32 %v4821_v35, %v4733_v31  ;;  %4771 = vmatmul.bf16.gmra.mxu0 %v11901_v56  ;;  %v6706_v31 = vld [vmem:[%s11433_s1 + $0x688] sm:$0xf0]  ;;  %v7193_v35 = vld [vmem:[%s11433_s1 + $0x4f4] sm:$0xf] }
 0x7b3   : > { %4860 = vmatmul.bf16.gmra.mxu1 %v12036_v23  ;;  %v6709_v21 = vor.u32 %v7241_v27, %v6706_v31 }
 0x7b4   : > { %4949 = vmatmul.bf16.gmra.mxu2 %v11999_v36  ;;  %5439 = vst [vmem:[%s8610_s6 + $0x20] sm:$0xff] %v4822_v63  ;;  %v7289_v36 = vld [vmem:[%s11433_s1 + $0x7f4] sm:$0xf]  ;;  %v6514_v63 = vld [vmem:[%s11433_s1 + $0x508] sm:$0xf0] }
 0x7b5   : > { %5038 = vmatmul.bf16.gmra.mxu3 %v12000_v62  ;;  %5262 = vmatpush.bf16.msra.mxu2 %v6709_v21  ;;  %v6901_v22 = vor.u32 %v7289_v36, %v6898_v53  ;;  %v6517_v31 = vor.u32 %v7193_v35, %v6514_v63 }
 0x7b7   : > { %v4910_v62 = vpop.f32.mrf.mxu2  ;;  %v4734_v55 = vpop.f32.mrf.mxu0  ;;  %5351 = vmatpush.bf16.msra.mxu3 %v6901_v22  ;;  %5173 = vmatpush.bf16.msra.mxu1 %v6517_v31 }
 0x7b8   : > { %v4911_v47 = vadd.f32 %v4910_v62, %v10864_v29  ;;  %v4999_v42 = vpop.f32.mrf.mxu3  ;;  %v4735_v20 = vadd.f32 %v4734_v55, %v10540_v34  ;;  %v4823_v9 = vpop.f32.mrf.mxu1 }
 0x7ba   : > { %v10888_v5 = vadd.f32 %v4999_v42, %v4911_v47  ;;  %v4824_v27 = vadd.f32 %v4823_v9, %v4735_v20  ;;  %v12037_v47 = vld [vmem:[#allocation85_spill] sm:$0xff]  ;;  %v12038_v42 = vld [vmem:[#allocation86_spill] sm:$0xff] }
 0x7bc   : > { %5445 = vst [vmem:[%s8610_s6 + $0x50] sm:$0xff] %v4824_v27 }
 0x7bf   : > { %v4912_v21 = vpop.f32.mrf.mxu2  ;;  %v4737_v33 = vpop.f32.mrf.mxu0 }
 0x7c0   : > { %v4913_v34 = vadd.f32 %v4912_v21, %v10864_v29  ;;  %v5001_v15 = vpop.f32.mrf.mxu3  ;;  %v4738_v36 = vadd.f32 %v4737_v33, %v10547_v43  ;;  %v4826_v62 = vpop.f32.mrf.mxu1 }
 0x7c2   : > { %v10899_v51 = vadd.f32 %v5001_v15, %v4913_v34  ;;  %v4827_v53 = vadd.f32 %v4826_v62, %v4738_v36  ;;  %4776 = vmatmul.bf16.gmra.mxu0 %v12037_v47 }
 0x7c3   : > { %4865 = vmatmul.bf16.gmra.mxu1 %v12038_v42 }
 0x7c4   : > { %4954 = vmatmul.bf16.gmra.mxu2 %v12001_v57  ;;  %5451 = vst [vmem:[%s8610_s6 + $0x80] sm:$0xff] %v4827_v53  ;;  %v7139_v53 = vld [vmem:[%s11433_s1 + $0x344] sm:$0xf] }
 0x7c5   : > { %5043 = vmatmul.bf16.gmra.mxu3 %v12002_v7 }
 0x7c7   : > { %v4915_v55 = vpop.f32.mrf.mxu2  ;;  %v4739_v9 = vpop.f32.mrf.mxu0 }
 0x7c8   : > { %v4916_v22 = vadd.f32 %v4915_v55, %v10864_v29  ;;  %v5004_v20 = vpop.f32.mrf.mxu3  ;;  %v4740_v43 = vadd.f32 %v4739_v9, %v10550_v10  ;;  %v4828_v35 = vpop.f32.mrf.mxu1  ;;  %v7235_v10 = vld [vmem:[%s11433_s1 + $0x644] sm:$0xf] }
 0x7ca   : > { %v10908_v63 = vadd.f32 %v5004_v20, %v4916_v22  ;;  %v4829_v27 = vadd.f32 %v4828_v35, %v4740_v43  ;;  %v6874_v20 = vld [vmem:[%s11433_s1 + $0x7d8] sm:$0xf0] }
 0x7cc   : > { %5457 = vst [vmem:[%s8610_s6 + $0xb0] sm:$0xff] %v4829_v27 }
 0x7cf   : > { %v4917_v31 = vpop.f32.mrf.mxu2  ;;  %v4742_v34 = vpop.f32.mrf.mxu0 }
 0x7d0   : > { %v4918_v21 = vadd.f32 %v4917_v31, %v10864_v29  ;;  %v5006_v57 = vpop.f32.mrf.mxu3  ;;  %v4743_v7 = vadd.f32 %v4742_v34, %v10575_v48  ;;  %v4831_v15 = vpop.f32.mrf.mxu1  ;;  %v6682_v48 = vld [vmem:[%s11433_s1 + $0x658] sm:$0xf0]  ;;  %v7187_v34 = vld [vmem:[%s11433_s1 + $0x4c4] sm:$0xf] }
 0x7d1   : > { %v6685_v62 = vor.u32 %v7235_v10, %v6682_v48 }
 0x7d2   : > { %v10913_v33 = vadd.f32 %v5006_v57, %v4918_v21  ;;  %v4832_v36 = vadd.f32 %v4831_v15, %v4743_v7  ;;  %4781 = vmatmul.bf16.gmra.mxu0 %v8669_v50  ;;  %v6490_v7 = vld [vmem:[%s11433_s1 + $0x4d8] sm:$0xf0] }
 0x7d3   : > { %4870 = vmatmul.bf16.gmra.mxu1 %v8672_v4  ;;  %5263 = vmatpush.bf16.msra.mxu2 %v6685_v62 }
 0x7d4   : > { %4959 = vmatmul.bf16.gmra.mxu2 %v12003_v37  ;;  %5463 = vst [vmem:[%s8610_s6 + $0xe0] sm:$0xff] %v4832_v36  ;;  %v6298_v37 = vld [vmem:[%s11433_s1 + $0x358] sm:$0xf0]  ;;  %v6493_v36 = vor.u32 %v7187_v34, %v6490_v7 }
 0x7d5   : > { %5048 = vmatmul.bf16.gmra.mxu3 %v12004_v58  ;;  %v7283_v58 = vld [vmem:[%s11433_s1 + $0x7c4] sm:$0xf]  ;;  %v6301_v22 = vor.u32 %v7139_v53, %v6298_v37 }
 0x7d6   : > { %v6877_v27 = vor.u32 %v7283_v58, %v6874_v20  ;;  %5174 = vmatpush.bf16.msra.mxu1 %v6493_v36 }
 0x7d7   : > { %v4920_v55 = vpop.f32.mrf.mxu2  ;;  %v4744_v35 = vpop.f32.mrf.mxu0  ;;  %5085 = vmatpush.bf16.msra.mxu0 %v6301_v22 }
 0x7d8   : > { %v4921_v9 = vadd.f32 %v4920_v55, %v10864_v29  ;;  %v5009_v43 = vpop.f32.mrf.mxu3  ;;  %v4745_v31 = vadd.f32 %v4744_v35, %v10584_v60  ;;  %v4833_v21 = vpop.f32.mrf.mxu1  ;;  %5352 = vmatpush.bf16.msra.mxu3 %v6877_v27 }
 0x7da   : > { %v10940_v57 = vadd.f32 %v5009_v43, %v4921_v9  ;;  %v4834_v15 = vadd.f32 %v4833_v21, %v4745_v31 }
 0x7dc   : > { %5469 = vst [vmem:[%s8610_s6 + $0x110] sm:$0xff] %v4834_v15 }
 0x7df   : > { %v4922_v10 = vpop.f32.mrf.mxu2  ;;  %v4747_v62 = vpop.f32.mrf.mxu0 }
 0x7e0   : > { %v4923_v60 = vadd.f32 %v4922_v10, %v10864_v29  ;;  %v5011_v48 = vpop.f32.mrf.mxu3  ;;  %v4748_v53 = vadd.f32 %v4747_v62, %v10591_v16  ;;  %v4836_v37 = vpop.f32.mrf.mxu1 }
 0x7e2   : > { %v10951_v58 = vadd.f32 %v5011_v48, %v4923_v60  ;;  %v4837_v55 = vadd.f32 %v4836_v37, %v4748_v53  ;;  %4786 = vmatmul.bf16.gmra.mxu0 %v8715_v3  ;;  %v12040_v60 = vld [vmem:[#allocation52_spill] sm:$0xff]  ;;  %v7229_v48 = vld [vmem:[%s11433_s1 + $0x614] sm:$0xf] }
 0x7e3   : > { %4875 = vmatmul.bf16.gmra.mxu1 %v8718_v38  ;;  %v7133_v53 = vld [vmem:[%s11433_s1 + $0x314] sm:$0xf] }
 0x7e4   : > { %4964 = vmatmul.bf16.gmra.mxu2 %v12005_v24  ;;  %5475 = vst [vmem:[%s8610_s6 + $0x140] sm:$0xff] %v4837_v55  ;;  %v7277_v37 = vld [vmem:[%s11433_s1 + $0x794] sm:$0xf] }
 0x7e5   : > { %5053 = vmatmul.bf16.gmra.mxu3 %v12006_v41 }
 0x7e7   : > { %v4925_v22 = vpop.f32.mrf.mxu2  ;;  %v4749_v43 = vpop.f32.mrf.mxu0 }
 0x7e8   : > { %v4926_v20 = vadd.f32 %v4925_v22, %v10864_v29  ;;  %v5014_v9 = vpop.f32.mrf.mxu3  ;;  %v4750_v16 = vadd.f32 %v4749_v43, %v10594_v46  ;;  %v4838_v35 = vpop.f32.mrf.mxu1  ;;  %v12039_v46 = vld [vmem:[#allocation87_spill] sm:$0xff] }
 0x7ea   : > { %v10960_v27 = vadd.f32 %v5014_v9, %v4926_v20  ;;  %v4839_v31 = vadd.f32 %v4838_v35, %v4750_v16  ;;  %v6850_v20 = vld [vmem:[%s11433_s1 + $0x7a8] sm:$0xf0] }
 0x7eb   : > { %v6853_v35 = vor.u32 %v7277_v37, %v6850_v20  ;;  %v12043_v20 = vld [vmem:[#allocation89_spill] sm:$0xff] }
 0x7ec   : > { %5481 = vst [vmem:[%s8610_s6 + $0x170] sm:$0xff] %v4839_v31  ;;  %v12041_v31 = vld [vmem:[#allocation94_spill] sm:$0xff] }
 0x7ed   : > { %5353 = vmatpush.bf16.msra.mxu3 %v6853_v35 }
 0x7ef   : > { %v4927_v21 = vpop.f32.mrf.mxu2  ;;  %v4752_v7 = vpop.f32.mrf.mxu0 }
 0x7f0   : > { %v4928_v34 = vadd.f32 %v4927_v21, %v10864_v29  ;;  %v5016_v24 = vpop.f32.mrf.mxu3  ;;  %v4753_v41 = vadd.f32 %v4752_v7, %v10619_v54  ;;  %v4841_v15 = vpop.f32.mrf.mxu1  ;;  %v6658_v54 = vld [vmem:[%s11433_s1 + $0x628] sm:$0xf0]  ;;  %v7181_v7 = vld [vmem:[%s11433_s1 + $0x494] sm:$0xf] }
 0x7f1   : > { %v6661_v62 = vor.u32 %v7229_v48, %v6658_v54 }
 0x7f2   : > { %v10965_v36 = vadd.f32 %v5016_v24, %v4928_v34  ;;  %v4842_v10 = vadd.f32 %v4841_v15, %v4753_v41  ;;  %4791 = vmatmul.bf16.gmra.mxu0 %v8737_v39  ;;  %v6466_v41 = vld [vmem:[%s11433_s1 + $0x4a8] sm:$0xf0] }
 0x7f3   : > { %4880 = vmatmul.bf16.gmra.mxu1 %v12039_v46  ;;  %5264 = vmatpush.bf16.msra.mxu2 %v6661_v62 }
 0x7f4   : > { %4969 = vmatmul.bf16.gmra.mxu2 %v12007_v11  ;;  %5487 = vst [vmem:[%s8610_s6 + $0x1a0] sm:$0xff] %v4842_v10  ;;  %v6274_v11 = vld [vmem:[%s11433_s1 + $0x328] sm:$0xf0]  ;;  %v6469_v10 = vor.u32 %v7181_v7, %v6466_v41 }
 0x7f5   : > { %5058 = vmatmul.bf16.gmra.mxu3 %v12040_v60  ;;  %v6277_v22 = vor.u32 %v7133_v53, %v6274_v11 }
 0x7f6   : > { %5175 = vmatpush.bf16.msra.mxu1 %v6469_v10 }
 0x7f7   : > { %v4930_v55 = vpop.f32.mrf.mxu2  ;;  %v4754_v16 = vpop.f32.mrf.mxu0  ;;  %5086 = vmatpush.bf16.msra.mxu0 %v6277_v22  ;;  %v12042_v22 = vld [vmem:[#allocation88_spill] sm:$0xff] }
 0x7f8   : > { %v4931_v9 = vadd.f32 %v4930_v55, %v10864_v29  ;;  %v5019_v43 = vpop.f32.mrf.mxu3  ;;  %v4755_v21 = vadd.f32 %v4754_v16, %v12041_v31  ;;  %v4843_v34 = vpop.f32.mrf.mxu1 }
 0x7fa   : > { %v10992_v24 = vadd.f32 %v5019_v43, %v4931_v9  ;;  %v4844_v15 = vadd.f32 %v4843_v34, %v4755_v21  ;;  %v12044_v9 = vld [vmem:[#allocation55_spill] sm:$0xff]  ;;  %v12045_v43 = vld [vmem:[#allocation56_spill] sm:$0xff] }
 0x7fc   : > { %5493 = vst [vmem:[%s8610_s6 + $0x1d0] sm:$0xff] %v4844_v15 }
 0x7ff   : > { %v4932_v60 = vpop.f32.mrf.mxu2  ;;  %v4757_v62 = vpop.f32.mrf.mxu0 }
 0x800   : > { %v4933_v48 = vadd.f32 %v4932_v60, %v10864_v29  ;;  %v5021_v54 = vpop.f32.mrf.mxu3  ;;  %v4758_v53 = vadd.f32 %v4757_v62, %v10635_v14  ;;  %v4846_v11 = vpop.f32.mrf.mxu1 }
 0x802   : > { %v11003_v37 = vadd.f32 %v5021_v54, %v4933_v48  ;;  %v4847_v55 = vadd.f32 %v4846_v11, %v4758_v53  ;;  %4796 = vmatmul.bf16.gmra.mxu0 %v12042_v22 }
 0x803   : > { %4885 = vmatmul.bf16.gmra.mxu1 %v12043_v20 }
 0x804   : > { %4974 = vmatmul.bf16.gmra.mxu2 %v12044_v9  ;;  %5499 = vst [vmem:[%s8610_s6 + $0x200] sm:$0xff] %v4847_v55  ;;  %v12046_v55 = vld [vmem:[#allocation90_spill] sm:$0xff]  ;;  %v12048_v9 = vld [vmem:[#allocation60_spill] sm:$0xff] }
 0x805   : > { %5063 = vmatmul.bf16.gmra.mxu3 %v12045_v43 }
 0x807   : > { %v4935_v16 = vpop.f32.mrf.mxu2  ;;  %v4759_v21 = vpop.f32.mrf.mxu0 }
 0x808   : > { %v4936_v35 = vadd.f32 %v4935_v16, %v10864_v29  ;;  %v5024_v31 = vpop.f32.mrf.mxu3  ;;  %v4760_v14 = vadd.f32 %v4759_v21, %v10638_v52  ;;  %v4848_v34 = vpop.f32.mrf.mxu1  ;;  %v12047_v52 = vld [vmem:[#allocation91_spill] sm:$0xff] }
 0x80a   : > { %v11012_v7 = vadd.f32 %v5024_v31, %v4936_v35  ;;  %v4849_v41 = vadd.f32 %v4848_v34, %v4760_v14 }
 0x80c   : > { %5505 = vst [vmem:[%s8610_s6 + $0x230] sm:$0xff] %v4849_v41 }
 0x80f   : > { %v4937_v15 = vpop.f32.mrf.mxu2  ;;  %v4762_v48 = vpop.f32.mrf.mxu0 }
 0x810   : > { %v4938_v10 = vadd.f32 %v4937_v15, %v10864_v29  ;;  %v5026_v60 = vpop.f32.mrf.mxu3  ;;  %v4763_v54 = vadd.f32 %v4762_v48, %v10663_v17  ;;  %v4851_v62 = vpop.f32.mrf.mxu1  ;;  %v12049_v17 = vld [vmem:[#allocation95_spill] sm:$0xff] }
 0x812   : > { %v11017_v53 = vadd.f32 %v5026_v60, %v4938_v10  ;;  %v4852_v11 = vadd.f32 %v4851_v62, %v4763_v54  ;;  %4801 = vmatmul.bf16.gmra.mxu0 %v12046_v55 }
 0x813   : > { %4890 = vmatmul.bf16.gmra.mxu1 %v12047_v52 }
 0x814   : > { %4979 = vmatmul.bf16.gmra.mxu2 %v12012_v19  ;;  %5511 = vst [vmem:[%s8610_s6 + $0x260] sm:$0xff] %v4852_v11 }
 0x815   : > { %5068 = vmatmul.bf16.gmra.mxu3 %v12048_v9  ;;  %v12050_v9 = vld [vmem:[#allocation92_spill] sm:$0xff] }
 0x817   : > { %v4940_v43 = vpop.f32.mrf.mxu2  ;;  %v4764_v31 = vpop.f32.mrf.mxu0 }
 0x818   : > { %v4941_v16 = vadd.f32 %v4940_v43, %v10864_v29  ;;  %v5029_v35 = vpop.f32.mrf.mxu3  ;;  %v4765_v21 = vadd.f32 %v4764_v31, %v12049_v17  ;;  %v4853_v14 = vpop.f32.mrf.mxu1  ;;  %v12051_v43 = vld [vmem:[#allocation93_spill] sm:$0xff] }
 0x81a   : > { %v11026_v34 = vadd.f32 %v5029_v35, %v4941_v16  ;;  %v4854_v41 = vadd.f32 %v4853_v14, %v4765_v21  ;;  %v12052_v16 = vld [vmem:[#allocation63_spill] sm:$0xff]  ;;  %v12053_v35 = vld [vmem:[#allocation64_spill] sm:$0xff] }
 0x81c   : > { %5517 = vst [vmem:[%s8610_s6 + $0x290] sm:$0xff] %v4854_v41 }
 0x81f   : > { %v4942_v15 = vpop.f32.mrf.mxu2  ;;  %v4767_v60 = vpop.f32.mrf.mxu0 }
 0x820   : > { %v4943_v10 = vadd.f32 %v4942_v15, %v10864_v29  ;;  %v5031_v19 = vpop.f32.mrf.mxu3  ;;  %v4768_v48 = vadd.f32 %v4767_v60, %v10679_v6  ;;  %v4856_v54 = vpop.f32.mrf.mxu1 }
 0x822   : > { %v11031_v62 = vadd.f32 %v5031_v19, %v4943_v10  ;;  %v4857_v11 = vadd.f32 %v4856_v54, %v4768_v48  ;;  %4806 = vmatmul.bf16.gmra.mxu0 %v12050_v9 }
 0x823   : > { %4895 = vmatmul.bf16.gmra.mxu1 %v12051_v43  ;;  %v12054_v43 = vld [vmem:[#allocation5_spill] sm:$0xff] }
 0x824   : > { %4984 = vmatmul.bf16.gmra.mxu2 %v12052_v16  ;;  %5523 = vst [vmem:[%s8610_s6 + $0x2c0] sm:$0xff] %v4857_v11 }
 0x825   : > { %5073 = vmatmul.bf16.gmra.mxu3 %v12053_v35 }
 0x827   : > { %v4945_v31 = vpop.f32.mrf.mxu2  ;;  %v4769_v14 = vpop.f32.mrf.mxu0 }
 0x828   : > { %v4946_v17 = vadd.f32 %v4945_v31, %v10864_v29  ;;  %v5034_v21 = vpop.f32.mrf.mxu3  ;;  %v4770_v6 = vadd.f32 %v4769_v14, %v10682_v44  ;;  %v4858_v41 = vpop.f32.mrf.mxu1  ;;  %v12055_v44 = vld [vmem:[#allocation6_spill] sm:$0xff] }
 0x82a   : > { %v11040_v15 = vadd.f32 %v5034_v21, %v4946_v17  ;;  %v4859_v10 = vadd.f32 %v4858_v41, %v4770_v6  ;;  %v12056_v17 = vld [vmem:[#allocation68_spill] sm:$0xff] }
 0x82c   : > { %5529 = vst [vmem:[%s8610_s6 + $0x2f0] sm:$0xff] %v4859_v10 }
 0x82f   : > { %v4947_v19 = vpop.f32.mrf.mxu2  ;;  %v4772_v54 = vpop.f32.mrf.mxu0 }
 0x830   : > { %v4948_v60 = vadd.f32 %v4947_v19, %v10864_v29  ;;  %v5036_v48 = vpop.f32.mrf.mxu3  ;;  %v4773_v11 = vadd.f32 %v4772_v54, %v10707_v61  ;;  %v4861_v16 = vpop.f32.mrf.mxu1  ;;  %v12057_v61 = vld [vmem:[#allocation96_spill] sm:$0xff] }
 0x832   : > { %v11045_v35 = vadd.f32 %v5036_v48, %v4948_v60  ;;  %v4862_v31 = vadd.f32 %v4861_v16, %v4773_v11  ;;  %5087 = vmatmul.bf16.vlgmr.msra.gmra.mxu0 %v12054_v43 }
 0x833   : > { %5176 = vmatmul.bf16.vlgmr.msra.gmra.mxu1 %v12055_v44 }
 0x834   : > { %5265 = vmatmul.bf16.vlgmr.msra.gmra.mxu2 %v12017_v8  ;;  %5535 = vst [vmem:[%s8610_s6 + $0x320] sm:$0xff] %v4862_v31 }
 0x835   : > { %5354 = vmatmul.bf16.vlgmr.msra.gmra.mxu3 %v12056_v17 }
 0x837   : > { %v4950_v21 = vpop.f32.mrf.mxu2  ;;  %v4774_v41 = vpop.f32.mrf.mxu0 }
 0x838   : > { %v4951_v14 = vadd.f32 %v4950_v21, %v10864_v29  ;;  %v5039_v6 = vpop.f32.mrf.mxu3  ;;  %v4775_v10 = vadd.f32 %v4774_v41, %v12057_v61  ;;  %v4863_v19 = vpop.f32.mrf.mxu1  ;;  %v12058_v21 = vld [vmem:[#allocation9_spill] sm:$0xff]  ;;  %v12059_v41 = vld [vmem:[#allocation10_spill] sm:$0xff] }
 0x83a   : > { %v11054_v60 = vadd.f32 %v5039_v6, %v4951_v14  ;;  %v4864_v48 = vadd.f32 %v4863_v19, %v4775_v10  ;;  %v12060_v14 = vld [vmem:[#allocation69_spill] sm:$0xff]  ;;  %v12061_v6 = vld [vmem:[#allocation70_spill] sm:$0xff] }
 0x83c   : > { %5541 = vst [vmem:[%s8610_s6 + $0x350] sm:$0xff] %v4864_v48 }
 0x83f   : > { %v4952_v43 = vpop.f32.mrf.mxu2  ;;  %v4777_v11 = vpop.f32.mrf.mxu0 }
 0x840   : > { %v4953_v54 = vadd.f32 %v4952_v43, %v10864_v29  ;;  %v5041_v8 = vpop.f32.mrf.mxu3  ;;  %v4778_v16 = vadd.f32 %v4777_v11, %v10723_v0  ;;  %v4866_v31 = vpop.f32.mrf.mxu1 }
 0x842   : > { %v11059_v44 = vadd.f32 %v5041_v8, %v4953_v54  ;;  %v4867_v17 = vadd.f32 %v4866_v31, %v4778_v16  ;;  %5092 = vmatmul.bf16.gmra.mxu0 %v12058_v21 }
 0x843   : > { %5181 = vmatmul.bf16.gmra.mxu1 %v12059_v41 }
 0x844   : > { %5270 = vmatmul.bf16.gmra.mxu2 %v12060_v14  ;;  %5547 = vst [vmem:[%s8610_s6 + $0x380] sm:$0xff] %v4867_v17 }
 0x845   : > { %5359 = vmatmul.bf16.gmra.mxu3 %v12061_v6 }
 0x847   : > { %v4955_v61 = vpop.f32.mrf.mxu2  ;;  %v4779_v48 = vpop.f32.mrf.mxu0 }
 0x848   : > { %v4956_v10 = vadd.f32 %v4955_v61, %v10864_v29  ;;  %v5044_v19 = vpop.f32.mrf.mxu3  ;;  %v4780_v0 = vadd.f32 %v4779_v48, %v10726_v49  ;;  %v4868_v43 = vpop.f32.mrf.mxu1  ;;  %v12062_v61 = vld [vmem:[#allocation13_spill] sm:$0xff]  ;;  %v12063_v49 = vld [vmem:[#allocation14_spill] sm:$0xff] }
 0x84a   : > { %v11068_v54 = vadd.f32 %v5044_v19, %v4956_v10  ;;  %v4869_v8 = vadd.f32 %v4868_v43, %v4780_v0  ;;  %v12064_v10 = vld [vmem:[#allocation72_spill] sm:$0xff] }
 0x84c   : > { %5553 = vst [vmem:[%s8610_s6 + $0x3b0] sm:$0xff] %v4869_v8 }
 0x84f   : > { %v4957_v11 = vpop.f32.mrf.mxu2  ;;  %v4782_v17 = vpop.f32.mrf.mxu0 }
 0x850   : > { %v4958_v16 = vadd.f32 %v4957_v11, %v10864_v29  ;;  %v5046_v31 = vpop.f32.mrf.mxu3  ;;  %v4783_v21 = vadd.f32 %v4782_v17, %v10751_v1  ;;  %v4871_v41 = vpop.f32.mrf.mxu1  ;;  %v12065_v1 = vld [vmem:[#allocation97_spill] sm:$0xff] }
 0x852   : > { %v11073_v14 = vadd.f32 %v5046_v31, %v4958_v16  ;;  %v4872_v6 = vadd.f32 %v4871_v41, %v4783_v21  ;;  %5097 = vmatmul.bf16.gmra.mxu0 %v12062_v61 }
 0x853   : > { %5186 = vmatmul.bf16.gmra.mxu1 %v12063_v49 }
 0x854   : > { %5275 = vmatmul.bf16.gmra.mxu2 %v12022_v32  ;;  %5559 = vst [vmem:[%s8610_s6 + $0x3e0] sm:$0xff] %v4872_v6 }
 0x855   : > { %5364 = vmatmul.bf16.gmra.mxu3 %v12064_v10 }
 0x857   : > { %v4960_v19 = vpop.f32.mrf.mxu2  ;;  %v4784_v43 = vpop.f32.mrf.mxu0 }
 0x858   : > { %v4961_v48 = vadd.f32 %v4960_v19, %v10864_v29  ;;  %v5049_v0 = vpop.f32.mrf.mxu3  ;;  %v4785_v8 = vadd.f32 %v4784_v43, %v12065_v1  ;;  %v4873_v11 = vpop.f32.mrf.mxu1  ;;  %v12066_v19 = vld [vmem:[#allocation17_spill] sm:$0xff]  ;;  %v12067_v43 = vld [vmem:[#allocation18_spill] sm:$0xff] }
 0x85a   : > { %v11082_v16 = vadd.f32 %v5049_v0, %v4961_v48  ;;  %v4874_v31 = vadd.f32 %v4873_v11, %v4785_v8  ;;  %v12068_v48 = vld [vmem:[#allocation73_spill] sm:$0xff]  ;;  %v12069_v0 = vld [vmem:[#allocation74_spill] sm:$0xff] }
 0x85c   : > { %5565 = vst [vmem:[%s8610_s6 + $0x410] sm:$0xff] %v4874_v31 }
 0x85f   : > { %v4962_v17 = vpop.f32.mrf.mxu2  ;;  %v4787_v41 = vpop.f32.mrf.mxu0 }
 0x860   : > { %v4963_v21 = vadd.f32 %v4962_v17, %v10864_v29  ;;  %v5051_v32 = vpop.f32.mrf.mxu3  ;;  %v4788_v6 = vadd.f32 %v4787_v41, %v10767_v26  ;;  %v4876_v61 = vpop.f32.mrf.mxu1 }
 0x862   : > { %v11087_v49 = vadd.f32 %v5051_v32, %v4963_v21  ;;  %v4877_v10 = vadd.f32 %v4876_v61, %v4788_v6  ;;  %5102 = vmatmul.bf16.gmra.mxu0 %v12066_v19 }
 0x863   : > { %5191 = vmatmul.bf16.gmra.mxu1 %v12067_v43 }
 0x864   : > { %5280 = vmatmul.bf16.gmra.mxu2 %v12068_v48  ;;  %5571 = vst [vmem:[%s8610_s6 + $0x440] sm:$0xff] %v4877_v10 }
 0x865   : > { %5369 = vmatmul.bf16.gmra.mxu3 %v12069_v0 }
 0x867   : > { %v4965_v1 = vpop.f32.mrf.mxu2  ;;  %v4789_v31 = vpop.f32.mrf.mxu0 }
 0x868   : > { %v4966_v8 = vadd.f32 %v4965_v1, %v10864_v29  ;;  %v5054_v11 = vpop.f32.mrf.mxu3  ;;  %v4790_v26 = vadd.f32 %v4789_v31, %v10770_v18  ;;  %v4878_v17 = vpop.f32.mrf.mxu1  ;;  %v12070_v1 = vld [vmem:[#allocation21_spill] sm:$0xff]  ;;  %v12071_v18 = vld [vmem:[#allocation22_spill] sm:$0xff] }
 0x86a   : > { %v11096_v21 = vadd.f32 %v5054_v11, %v4966_v8  ;;  %v4879_v32 = vadd.f32 %v4878_v17, %v4790_v26  ;;  %v12072_v8 = vld [vmem:[#allocation76_spill] sm:$0xff] }
 0x86c   : > { %5577 = vst [vmem:[%s8610_s6 + $0x470] sm:$0xff] %v4879_v32 }
 0x86f   : > { %v4967_v41 = vpop.f32.mrf.mxu2  ;;  %v4792_v10 = vpop.f32.mrf.mxu0 }
 0x870   : > { %v4968_v6 = vadd.f32 %v4967_v41, %v10864_v29  ;;  %v5056_v61 = vpop.f32.mrf.mxu3  ;;  %v4793_v19 = vadd.f32 %v4792_v10, %v10795_v28  ;;  %v4881_v43 = vpop.f32.mrf.mxu1  ;;  %v12073_v28 = vld [vmem:[#allocation98_spill] sm:$0xff] }
 0x872   : > { %v11101_v48 = vadd.f32 %v5056_v61, %v4968_v6  ;;  %v4882_v0 = vadd.f32 %v4881_v43, %v4793_v19  ;;  %5107 = vmatmul.bf16.gmra.mxu0 %v12070_v1 }
 0x873   : > { %5196 = vmatmul.bf16.gmra.mxu1 %v12071_v18 }
 0x874   : > { %5285 = vmatmul.bf16.gmra.mxu2 %v12027_v40  ;;  %5583 = vst [vmem:[%s8610_s6 + $0x4a0] sm:$0xff] %v4882_v0 }
 0x875   : > { %5374 = vmatmul.bf16.gmra.mxu3 %v12072_v8 }
 0x877   : > { %v4970_v11 = vpop.f32.mrf.mxu2  ;;  %v4794_v17 = vpop.f32.mrf.mxu0 }
 0x878   : > { %v4971_v31 = vadd.f32 %v4970_v11, %v10864_v29  ;;  %v5059_v26 = vpop.f32.mrf.mxu3  ;;  %v4795_v32 = vadd.f32 %v4794_v17, %v12073_v28  ;;  %v4883_v41 = vpop.f32.mrf.mxu1  ;;  %v12074_v11 = vld [vmem:[#allocation25_spill] sm:$0xff]  ;;  %v12075_v17 = vld [vmem:[#allocation26_spill] sm:$0xff] }
 0x87a   : > { %v11110_v6 = vadd.f32 %v5059_v26, %v4971_v31  ;;  %v4884_v61 = vadd.f32 %v4883_v41, %v4795_v32  ;;  %v12076_v31 = vld [vmem:[#allocation77_spill] sm:$0xff]  ;;  %v12077_v26 = vld [vmem:[#allocation78_spill] sm:$0xff] }
 0x87c   : > { %5589 = vst [vmem:[%s8610_s6 + $0x4d0] sm:$0xff] %v4884_v61 }
 0x87f   : > { %v4972_v10 = vpop.f32.mrf.mxu2  ;;  %v4797_v43 = vpop.f32.mrf.mxu0 }
 0x880   : > { %v4973_v19 = vadd.f32 %v4972_v10, %v10864_v29  ;;  %v5061_v40 = vpop.f32.mrf.mxu3  ;;  %v4798_v0 = vadd.f32 %v4797_v43, %v10811_v13  ;;  %v4886_v1 = vpop.f32.mrf.mxu1 }
 0x882   : > { %v11115_v18 = vadd.f32 %v5061_v40, %v4973_v19  ;;  %v4887_v8 = vadd.f32 %v4886_v1, %v4798_v0  ;;  %5112 = vmatmul.bf16.gmra.mxu0 %v12074_v11 }
 0x883   : > { %5201 = vmatmul.bf16.gmra.mxu1 %v12075_v17 }
 0x884   : > { %5290 = vmatmul.bf16.gmra.mxu2 %v12076_v31  ;;  %5595 = vst [vmem:[%s8610_s6 + $0x500] sm:$0xff] %v4887_v8 }
 0x885   : > { %5379 = vmatmul.bf16.gmra.mxu3 %v12077_v26 }
 0x887   : > { %v4975_v28 = vpop.f32.mrf.mxu2  ;;  %v4799_v61 = vpop.f32.mrf.mxu0 }
 0x888   : > { %v4976_v32 = vadd.f32 %v4975_v28, %v10864_v29  ;;  %v5064_v41 = vpop.f32.mrf.mxu3  ;;  %v4800_v13 = vadd.f32 %v4799_v61, %v10814_v59  ;;  %v4888_v10 = vpop.f32.mrf.mxu1  ;;  %v12078_v28 = vld [vmem:[#allocation29_spill] sm:$0xff]  ;;  %v12079_v59 = vld [vmem:[#allocation30_spill] sm:$0xff] }
 0x88a   : > { %v11124_v19 = vadd.f32 %v5064_v41, %v4976_v32  ;;  %v4889_v40 = vadd.f32 %v4888_v10, %v4800_v13  ;;  %v12080_v32 = vld [vmem:[#allocation80_spill] sm:$0xff] }
 0x88c   : > { %5601 = vst [vmem:[%s8610_s6 + $0x530] sm:$0xff] %v4889_v40 }
 0x88f   : > { %v4977_v43 = vpop.f32.mrf.mxu2  ;;  %v4802_v8 = vpop.f32.mrf.mxu0 }
 0x890   : > { %v4978_v0 = vadd.f32 %v4977_v43, %v10864_v29  ;;  %v5066_v1 = vpop.f32.mrf.mxu3  ;;  %v4803_v11 = vadd.f32 %v4802_v8, %v10839_v30  ;;  %v4891_v17 = vpop.f32.mrf.mxu1 }
 0x892   : > { %v11129_v31 = vadd.f32 %v5066_v1, %v4978_v0  ;;  %v4892_v26 = vadd.f32 %v4891_v17, %v4803_v11  ;;  %5117 = vmatmul.bf16.gmra.mxu0 %v12078_v28 }
 0x893   : > { %5206 = vmatmul.bf16.gmra.mxu1 %v12079_v59 }
 0x894   : > { %5295 = vmatmul.bf16.gmra.mxu2 %v12032_v2  ;;  %5607 = vst [vmem:[%s8610_s6 + $0x560] sm:$0xff] %v4892_v26 }
 0x895   : > { %5384 = vmatmul.bf16.gmra.mxu3 %v12080_v32  ;;  %v12081_v32 = vld [vmem:[#allocation33_spill] sm:$0xff] }
 0x897   : > { %v4980_v41 = vpop.f32.mrf.mxu2  ;;  %v4804_v10 = vpop.f32.mrf.mxu0 }
 0x898   : > { %v4981_v61 = vadd.f32 %v4980_v41, %v10864_v29  ;;  %v5069_v13 = vpop.f32.mrf.mxu3  ;;  %v4805_v30 = vadd.f32 %v4804_v10, %v10848_v12  ;;  %v4893_v40 = vpop.f32.mrf.mxu1  ;;  %v12082_v12 = vld [vmem:[#allocation34_spill] sm:$0xff]  ;;  %v12083_v41 = vld [vmem:[#allocation81_spill] sm:$0xff] }
 0x89a   : > { %v11138_v43 = vadd.f32 %v5069_v13, %v4981_v61  ;;  %v4894_v0 = vadd.f32 %v4893_v40, %v4805_v30  ;;  %v12084_v61 = vld [vmem:[#allocation82_spill] sm:$0xff] }
 0x89c   : > { %5613 = vst [vmem:[%s8610_s6 + $0x590] sm:$0xff] %v4894_v0 }
 0x89f   : > { %v4982_v1 = vpop.f32.mrf.mxu2  ;;  %v4807_v11 = vpop.f32.mrf.mxu0 }
 0x8a0   : > { %v4983_v8 = vadd.f32 %v4982_v1, %v10864_v29  ;;  %v5071_v2 = vpop.f32.mrf.mxu3  ;;  %v4808_v17 = vadd.f32 %v4807_v11, %v10855_v45  ;;  %v4896_v26 = vpop.f32.mrf.mxu1 }
 0x8a2   : > { %v11143_v28 = vadd.f32 %v5071_v2, %v4983_v8  ;;  %v4897_v59 = vadd.f32 %v4896_v26, %v4808_v17  ;;  %5122 = vmatmul.bf16.gmra.mxu0 %v12081_v32 }
 0x8a3   : > { %5211 = vmatmul.bf16.gmra.mxu1 %v12082_v12 }
 0x8a4   : > { %5300 = vmatmul.bf16.gmra.mxu2 %v12083_v41  ;;  %5619 = vst [vmem:[%s8610_s6 + $0x5c0] sm:$0xff] %v4897_v59  ;;  %v12085_v41 = vld [vmem:[#allocation37_spill] sm:$0xff] }
 0x8a5   : > { %5389 = vmatmul.bf16.gmra.mxu3 %v12084_v61  ;;  %v12086_v61 = vld [vmem:[#allocation38_spill] sm:$0xff] }
 0x8a7   : > { %v4985_v13 = vpop.f32.mrf.mxu2  ;;  %v4809_v40 = vpop.f32.mrf.mxu0 }
 0x8a8   : > { %v4986_v10 = vadd.f32 %v4985_v13, %v10864_v29  ;;  %v5074_v30 = vpop.f32.mrf.mxu3  ;;  %v4810_v45 = vadd.f32 %v4809_v40, %v10858_v25  ;;  %v4898_v0 = vpop.f32.mrf.mxu1 }
 0x8aa   : > { %v11152_v1 = vadd.f32 %v5074_v30, %v4986_v10  ;;  %v4899_v8 = vadd.f32 %v4898_v0, %v4810_v45 }
 0x8ac   : > { %5625 = vst [vmem:[%s8610_s6 + $0x5f0] sm:$0xff] %v4899_v8 }
 0x8af   : > { %v4987_v2 = vpop.f32.mrf.mxu2  ;;  %v5088_v26 = vpop.f32.mrf.mxu0 }
 0x8b0   : > { %v4988_v11 = vadd.f32 %v4987_v2, %v10864_v29  ;;  %v5076_v17 = vpop.f32.mrf.mxu3  ;;  %v5177_v59 = vpop.f32.mrf.mxu1  ;;  %v5089_v12 = vadd.f32 %v5088_v26, %v10888_v5 }
 0x8b2   : > { %v11156_v32 = vadd.f32 %v5076_v17, %v4988_v11  ;;  %5127 = vmatmul.bf16.gmra.mxu0 %v12085_v41  ;;  %v5178_v25 = vadd.f32 %v5177_v59, %v5089_v12  ;;  %v12087_v59 = vld [vmem:[#allocation41_spill] sm:$0xff]  ;;  %v12088_v12 = vld [vmem:[#allocation42_spill] sm:$0xff] }
 0x8b3   : > { %5216 = vmatmul.bf16.gmra.mxu1 %v12086_v61 }
 0x8b4   : > { %5305 = vmatmul.bf16.gmra.mxu2 %v11901_v56 }
 0x8b5   : > { %5394 = vmatmul.bf16.gmra.mxu3 %v12036_v23 }
 0x8b7   : > { %v5266_v13 = vpop.f32.mrf.mxu2  ;;  %v5090_v30 = vpop.f32.mrf.mxu0 }
 0x8b8   : > { %v5267_v10 = vadd.f32 %v5266_v13, %v5178_v25  ;;  %v5355_v29 = vpop.f32.mrf.mxu3  ;;  %v5179_v40 = vpop.f32.mrf.mxu1  ;;  %v5091_v0 = vadd.f32 %v5090_v30, %v10899_v51 }
 0x8ba   : > { %v5356_v45 = vadd.f32 %v5355_v29, %v5267_v10  ;;  %v5180_v5 = vadd.f32 %v5179_v40, %v5091_v0 }
 0x8bc   : > { %5440 = vst [vmem:[%s8610_s6 + $0x28] sm:$0xff] %v5356_v45 }
 0x8bf   : > { %v5268_v8 = vpop.f32.mrf.mxu2  ;;  %v5093_v17 = vpop.f32.mrf.mxu0 }
 0x8c0   : > { %v5269_v2 = vadd.f32 %v5268_v8, %v5180_v5  ;;  %v5357_v11 = vpop.f32.mrf.mxu3  ;;  %v5182_v26 = vpop.f32.mrf.mxu1  ;;  %v5094_v23 = vadd.f32 %v5093_v17, %v10908_v63 }
 0x8c2   : > { %v5358_v56 = vadd.f32 %v5357_v11, %v5269_v2  ;;  %5132 = vmatmul.bf16.gmra.mxu0 %v12087_v59  ;;  %v5183_v51 = vadd.f32 %v5182_v26, %v5094_v23  ;;  %v12089_v2 = vld [vmem:[#allocation45_spill] sm:$0xff]  ;;  %v12090_v11 = vld [vmem:[#allocation46_spill] sm:$0xff] }
 0x8c3   : > { %5221 = vmatmul.bf16.gmra.mxu1 %v12088_v12 }
 0x8c4   : > { %5446 = vst [vmem:[%s8610_s6 + $0x58] sm:$0xff] %v5358_v56  ;;  %5310 = vmatmul.bf16.gmra.mxu2 %v12037_v47 }
 0x8c5   : > { %5399 = vmatmul.bf16.gmra.mxu3 %v12038_v42 }
 0x8c7   : > { %v5271_v41 = vpop.f32.mrf.mxu2  ;;  %v5095_v13 = vpop.f32.mrf.mxu0 }
 0x8c8   : > { %v5272_v61 = vadd.f32 %v5271_v41, %v5183_v51  ;;  %v5360_v25 = vpop.f32.mrf.mxu3  ;;  %v5184_v10 = vpop.f32.mrf.mxu1  ;;  %v5096_v30 = vadd.f32 %v5095_v13, %v10913_v33 }
 0x8ca   : > { %v5361_v29 = vadd.f32 %v5360_v25, %v5272_v61  ;;  %v5185_v63 = vadd.f32 %v5184_v10, %v5096_v30  ;;  %v12092_v30 = vld [vmem:[#allocation50_spill] sm:$0xff] }
 0x8cc   : > { %5452 = vst [vmem:[%s8610_s6 + $0x88] sm:$0xff] %v5361_v29  ;;  %v12091_v29 = vld [vmem:[#allocation49_spill] sm:$0xff] }
 0x8cf   : > { %v5273_v40 = vpop.f32.mrf.mxu2  ;;  %v5098_v5 = vpop.f32.mrf.mxu0 }
 0x8d0   : > { %v5274_v45 = vadd.f32 %v5273_v40, %v5185_v63  ;;  %v5362_v0 = vpop.f32.mrf.mxu3  ;;  %v5187_v8 = vpop.f32.mrf.mxu1  ;;  %v5099_v42 = vadd.f32 %v5098_v5, %v10940_v57 }
 0x8d2   : > { %v5363_v47 = vadd.f32 %v5362_v0, %v5274_v45  ;;  %5137 = vmatmul.bf16.gmra.mxu0 %v12089_v2  ;;  %v5188_v33 = vadd.f32 %v5187_v8, %v5099_v42 }
 0x8d3   : > { %5226 = vmatmul.bf16.gmra.mxu1 %v12090_v11 }
 0x8d4   : > { %5458 = vst [vmem:[%s8610_s6 + $0xb8] sm:$0xff] %v5363_v47  ;;  %5315 = vmatmul.bf16.gmra.mxu2 %v8669_v50 }
 0x8d5   : > { %5404 = vmatmul.bf16.gmra.mxu3 %v8672_v4 }
 0x8d7   : > { %v5276_v17 = vpop.f32.mrf.mxu2  ;;  %v5100_v23 = vpop.f32.mrf.mxu0 }
 0x8d8   : > { %v5277_v26 = vadd.f32 %v5276_v17, %v5188_v33  ;;  %v5365_v56 = vpop.f32.mrf.mxu3  ;;  %v5189_v59 = vpop.f32.mrf.mxu1  ;;  %v5101_v51 = vadd.f32 %v5100_v23, %v10951_v58 }
 0x8da   : > { %v5366_v12 = vadd.f32 %v5365_v56, %v5277_v26  ;;  %v5190_v57 = vadd.f32 %v5189_v59, %v5101_v51  ;;  %v12093_v26 = vld [vmem:[#allocation53_spill] sm:$0xff]  ;;  %v12094_v56 = vld [vmem:[#allocation54_spill] sm:$0xff] }
 0x8dc   : > { %5464 = vst [vmem:[%s8610_s6 + $0xe8] sm:$0xff] %v5366_v12 }
 0x8df   : > { %v5278_v41 = vpop.f32.mrf.mxu2  ;;  %v5103_v13 = vpop.f32.mrf.mxu0 }
 0x8e0   : > { %v5279_v61 = vadd.f32 %v5278_v41, %v5190_v57  ;;  %v5367_v25 = vpop.f32.mrf.mxu3  ;;  %v5192_v10 = vpop.f32.mrf.mxu1  ;;  %v5104_v4 = vadd.f32 %v5103_v13, %v10960_v27 }
 0x8e2   : > { %v5368_v50 = vadd.f32 %v5367_v25, %v5279_v61  ;;  %5142 = vmatmul.bf16.gmra.mxu0 %v12091_v29  ;;  %v5193_v58 = vadd.f32 %v5192_v10, %v5104_v4  ;;  %v12095_v29 = vld [vmem:[#allocation57_spill] sm:$0xff] }
 0x8e3   : > { %5231 = vmatmul.bf16.gmra.mxu1 %v12092_v30  ;;  %v12096_v30 = vld [vmem:[#allocation58_spill] sm:$0xff] }
 0x8e4   : > { %5470 = vst [vmem:[%s8610_s6 + $0x118] sm:$0xff] %v5368_v50  ;;  %5320 = vmatmul.bf16.gmra.mxu2 %v8715_v3 }
 0x8e5   : > { %5409 = vmatmul.bf16.gmra.mxu3 %v8718_v38 }
 0x8e7   : > { %v5281_v63 = vpop.f32.mrf.mxu2  ;;  %v5105_v0 = vpop.f32.mrf.mxu0 }
 0x8e8   : > { %v5282_v40 = vadd.f32 %v5281_v63, %v5193_v58  ;;  %v5370_v45 = vpop.f32.mrf.mxu3  ;;  %v5194_v5 = vpop.f32.mrf.mxu1  ;;  %v5106_v47 = vadd.f32 %v5105_v0, %v10965_v36 }
 0x8ea   : > { %v5371_v8 = vadd.f32 %v5370_v45, %v5282_v40  ;;  %v5195_v27 = vadd.f32 %v5194_v5, %v5106_v47 }
 0x8ec   : > { %5476 = vst [vmem:[%s8610_s6 + $0x148] sm:$0xff] %v5371_v8 }
 0x8ef   : > { %v5283_v42 = vpop.f32.mrf.mxu2  ;;  %v5108_v33 = vpop.f32.mrf.mxu0 }
 0x8f0   : > { %v5284_v2 = vadd.f32 %v5283_v42, %v5195_v27  ;;  %v5372_v11 = vpop.f32.mrf.mxu3  ;;  %v5197_v17 = vpop.f32.mrf.mxu1  ;;  %v5109_v38 = vadd.f32 %v5108_v33, %v10992_v24  ;;  %v12097_v33 = vld [vmem:[#allocation61_spill] sm:$0xff] }
 0x8f2   : > { %v5373_v3 = vadd.f32 %v5372_v11, %v5284_v2  ;;  %5147 = vmatmul.bf16.gmra.mxu0 %v12093_v26  ;;  %v5198_v36 = vadd.f32 %v5197_v17, %v5109_v38  ;;  %v12098_v17 = vld [vmem:[#allocation62_spill] sm:$0xff] }
 0x8f3   : > { %5236 = vmatmul.bf16.gmra.mxu1 %v12094_v56 }
 0x8f4   : > { %5482 = vst [vmem:[%s8610_s6 + $0x178] sm:$0xff] %v5373_v3  ;;  %5325 = vmatmul.bf16.gmra.mxu2 %v8737_v39 }
 0x8f5   : > { %5414 = vmatmul.bf16.gmra.mxu3 %v12039_v46 }
 0x8f7   : > { %v5286_v23 = vpop.f32.mrf.mxu2  ;;  %v5110_v51 = vpop.f32.mrf.mxu0 }
 0x8f8   : > { %v5287_v59 = vadd.f32 %v5286_v23, %v5198_v36  ;;  %v5375_v12 = vpop.f32.mrf.mxu3  ;;  %v5199_v57 = vpop.f32.mrf.mxu1  ;;  %v5111_v61 = vadd.f32 %v5110_v51, %v11003_v37 }
 0x8fa   : > { %v5376_v41 = vadd.f32 %v5375_v12, %v5287_v59  ;;  %v5200_v24 = vadd.f32 %v5199_v57, %v5111_v61 }
 0x8fc   : > { %5488 = vst [vmem:[%s8610_s6 + $0x1a8] sm:$0xff] %v5376_v41 }
 0x8ff   : > { %v5288_v25 = vpop.f32.mrf.mxu2  ;;  %v5113_v50 = vpop.f32.mrf.mxu0 }
 0x900   : > { %v5289_v13 = vadd.f32 %v5288_v25, %v5200_v24  ;;  %v5377_v10 = vpop.f32.mrf.mxu3  ;;  %v5202_v4 = vpop.f32.mrf.mxu1  ;;  %v5114_v46 = vadd.f32 %v5113_v50, %v11012_v7  ;;  %v12099_v24 = vld [vmem:[#allocation65_spill] sm:$0xff]  ;;  %v12100_v25 = vld [vmem:[#allocation66_spill] sm:$0xff] }
 0x902   : > { %v5378_v39 = vadd.f32 %v5377_v10, %v5289_v13  ;;  %5152 = vmatmul.bf16.gmra.mxu0 %v12095_v29  ;;  %v5203_v37 = vadd.f32 %v5202_v4, %v5114_v46  ;;  %v12101_v13 = vld [vmem:[#allocation93_spill] sm:$0xff] }
 0x903   : > { %5241 = vmatmul.bf16.gmra.mxu1 %v12096_v30 }
 0x904   : > { %5494 = vst [vmem:[%s8610_s6 + $0x1d8] sm:$0xff] %v5378_v39  ;;  %5330 = vmatmul.bf16.gmra.mxu2 %v12042_v22 }
 0x905   : > { %5419 = vmatmul.bf16.gmra.mxu3 %v12043_v20 }
 0x907   : > { %v5291_v58 = vpop.f32.mrf.mxu2  ;;  %v5115_v45 = vpop.f32.mrf.mxu0 }
 0x908   : > { %v5292_v63 = vadd.f32 %v5291_v58, %v5203_v37  ;;  %v5380_v40 = vpop.f32.mrf.mxu3  ;;  %v5204_v0 = vpop.f32.mrf.mxu1  ;;  %v5116_v8 = vadd.f32 %v5115_v45, %v11017_v53 }
 0x90a   : > { %v5381_v5 = vadd.f32 %v5380_v40, %v5292_v63  ;;  %v5205_v7 = vadd.f32 %v5204_v0, %v5116_v8 }
 0x90c   : > { %5500 = vst [vmem:[%s8610_s6 + $0x208] sm:$0xff] %v5381_v5 }
 0x90f   : > { %v5293_v47 = vpop.f32.mrf.mxu2  ;;  %v5118_v2 = vpop.f32.mrf.mxu0 }
 0x910   : > { %v5294_v27 = vadd.f32 %v5293_v47, %v5205_v7  ;;  %v5382_v42 = vpop.f32.mrf.mxu3  ;;  %v5207_v11 = vpop.f32.mrf.mxu1  ;;  %v5119_v20 = vadd.f32 %v5118_v2, %v11026_v34 }
 0x912   : > { %v5383_v22 = vadd.f32 %v5382_v42, %v5294_v27  ;;  %5157 = vmatmul.bf16.gmra.mxu0 %v12097_v33  ;;  %v5208_v53 = vadd.f32 %v5207_v11, %v5119_v20 }
 0x913   : > { %5246 = vmatmul.bf16.gmra.mxu1 %v12098_v17 }
 0x914   : > { %5506 = vst [vmem:[%s8610_s6 + $0x238] sm:$0xff] %v5383_v22  ;;  %5335 = vmatmul.bf16.gmra.mxu2 %v12046_v55 }
 0x915   : > { %5424 = vmatmul.bf16.gmra.mxu3 %v12047_v52 }
 0x917   : > { %v5296_v3 = vpop.f32.mrf.mxu2  ;;  %v5120_v56 = vpop.f32.mrf.mxu0 }
 0x918   : > { %v5297_v38 = vadd.f32 %v5296_v3, %v5208_v53  ;;  %v5385_v26 = vpop.f32.mrf.mxu3  ;;  %v5209_v36 = vpop.f32.mrf.mxu1  ;;  %v5121_v59 = vadd.f32 %v5120_v56, %v11031_v62 }
 0x91a   : > { %v5386_v23 = vadd.f32 %v5385_v26, %v5297_v38  ;;  %v5210_v34 = vadd.f32 %v5209_v36, %v5121_v59 }
 0x91c   : > { %5512 = vst [vmem:[%s8610_s6 + $0x268] sm:$0xff] %v5386_v23 }
 0x91f   : > { %v5298_v12 = vpop.f32.mrf.mxu2  ;;  %v5123_v41 = vpop.f32.mrf.mxu0 }
 0x920   : > { %v5299_v51 = vadd.f32 %v5298_v12, %v5210_v34  ;;  %v5387_v57 = vpop.f32.mrf.mxu3  ;;  %v5212_v61 = vpop.f32.mrf.mxu1  ;;  %v5124_v52 = vadd.f32 %v5123_v41, %v11040_v15 }
 0x922   : > { %v5388_v55 = vadd.f32 %v5387_v57, %v5299_v51  ;;  %5162 = vmatmul.bf16.gmra.mxu0 %v12099_v24  ;;  %v5213_v62 = vadd.f32 %v5212_v61, %v5124_v52 }
 0x923   : > { %5251 = vmatmul.bf16.gmra.mxu1 %v12100_v25 }
 0x924   : > { %5518 = vst [vmem:[%s8610_s6 + $0x298] sm:$0xff] %v5388_v55  ;;  %5340 = vmatmul.bf16.gmra.mxu2 %v12050_v9 }
 0x925   : > { %5429 = vmatmul.bf16.gmra.mxu3 %v12101_v13 }
 0x927   : > { %v5301_v10 = vpop.f32.mrf.mxu2  ;;  %v5125_v39 = vpop.f32.mrf.mxu0 }
 0x928   : > { %v5302_v50 = vadd.f32 %v5301_v10, %v5213_v62  ;;  %v5390_v4 = vpop.f32.mrf.mxu3  ;;  %v5214_v46 = vpop.f32.mrf.mxu1  ;;  %v5126_v30 = vadd.f32 %v5125_v39, %v11045_v35 }
 0x92a   : > { %v5391_v29 = vadd.f32 %v5390_v4, %v5302_v50  ;;  %v5215_v15 = vadd.f32 %v5214_v46, %v5126_v30 }
 0x92c   : > { %5524 = vst [vmem:[%s8610_s6 + $0x2c8] sm:$0xff] %v5391_v29 }
 0x92f   : > { %v5303_v37 = vpop.f32.mrf.mxu2  ;;  %v5128_v40 = vpop.f32.mrf.mxu0 }
 0x930   : > { %v5304_v58 = vadd.f32 %v5303_v37, %v5215_v15  ;;  %v5392_v63 = vpop.f32.mrf.mxu3  ;;  %v5217_v9 = vpop.f32.mrf.mxu1  ;;  %v5129_v0 = vadd.f32 %v5128_v40, %v11054_v60 }
 0x932   : > { %v5393_v45 = vadd.f32 %v5392_v63, %v5304_v58  ;;  %v5218_v5 = vadd.f32 %v5217_v9, %v5129_v0 }
 0x934   : > { %5530 = vst [vmem:[%s8610_s6 + $0x2f8] sm:$0xff] %v5393_v45 }
 0x937   : > { %v5306_v8 = vpop.f32.mrf.mxu2  ;;  %v5130_v27 = vpop.f32.mrf.mxu0 }
 0x938   : > { %v5307_v7 = vadd.f32 %v5306_v8, %v5218_v5  ;;  %v5395_v47 = vpop.f32.mrf.mxu3  ;;  %v5219_v42 = vpop.f32.mrf.mxu1  ;;  %v5131_v2 = vadd.f32 %v5130_v27, %v11059_v44 }
 0x93a   : > { %v5396_v35 = vadd.f32 %v5395_v47, %v5307_v7  ;;  %v5220_v11 = vadd.f32 %v5219_v42, %v5131_v2 }
 0x93c   : > { %5536 = vst [vmem:[%s8610_s6 + $0x328] sm:$0xff] %v5396_v35 }
 0x93f   : > { %v5308_v22 = vpop.f32.mrf.mxu2  ;;  %v5133_v17 = vpop.f32.mrf.mxu0 }
 0x940   : > { %v5309_v20 = vadd.f32 %v5308_v22, %v5220_v11  ;;  %v5397_v33 = vpop.f32.mrf.mxu3  ;;  %v5222_v53 = vpop.f32.mrf.mxu1  ;;  %v5134_v3 = vadd.f32 %v5133_v17, %v11068_v54 }
 0x942   : > { %v5398_v60 = vadd.f32 %v5397_v33, %v5309_v20  ;;  %v5223_v38 = vadd.f32 %v5222_v53, %v5134_v3 }
 0x944   : > { %5542 = vst [vmem:[%s8610_s6 + $0x358] sm:$0xff] %v5398_v60 }
 0x947   : > { %v5311_v26 = vpop.f32.mrf.mxu2  ;;  %v5135_v23 = vpop.f32.mrf.mxu0 }
 0x948   : > { %v5312_v56 = vadd.f32 %v5311_v26, %v5223_v38  ;;  %v5400_v36 = vpop.f32.mrf.mxu3  ;;  %v5224_v59 = vpop.f32.mrf.mxu1  ;;  %v5136_v34 = vadd.f32 %v5135_v23, %v11073_v14 }
 0x94a   : > { %v5401_v44 = vadd.f32 %v5400_v36, %v5312_v56  ;;  %v5225_v12 = vadd.f32 %v5224_v59, %v5136_v34 }
 0x94c   : > { %5548 = vst [vmem:[%s8610_s6 + $0x388] sm:$0xff] %v5401_v44 }
 0x94f   : > { %v5313_v51 = vpop.f32.mrf.mxu2  ;;  %v5138_v61 = vpop.f32.mrf.mxu0 }
 0x950   : > { %v5314_v57 = vadd.f32 %v5313_v51, %v5225_v12  ;;  %v5402_v41 = vpop.f32.mrf.mxu3  ;;  %v5227_v55 = vpop.f32.mrf.mxu1  ;;  %v5139_v52 = vadd.f32 %v5138_v61, %v11082_v16 }
 0x952   : > { %v5403_v54 = vadd.f32 %v5402_v41, %v5314_v57  ;;  %v5228_v24 = vadd.f32 %v5227_v55, %v5139_v52 }
 0x954   : > { %5554 = vst [vmem:[%s8610_s6 + $0x3b8] sm:$0xff] %v5403_v54 }
 0x957   : > { %v5316_v25 = vpop.f32.mrf.mxu2  ;;  %v5140_v10 = vpop.f32.mrf.mxu0 }
 0x958   : > { %v5317_v13 = vadd.f32 %v5316_v25, %v5228_v24  ;;  %v5405_v62 = vpop.f32.mrf.mxu3  ;;  %v5229_v50 = vpop.f32.mrf.mxu1  ;;  %v5141_v4 = vadd.f32 %v5140_v10, %v11087_v49 }
 0x95a   : > { %v5406_v14 = vadd.f32 %v5405_v62, %v5317_v13  ;;  %v5230_v39 = vadd.f32 %v5229_v50, %v5141_v4 }
 0x95c   : > { %5560 = vst [vmem:[%s8610_s6 + $0x3e8] sm:$0xff] %v5406_v14 }
 0x95f   : > { %v5318_v46 = vpop.f32.mrf.mxu2  ;;  %v5143_v15 = vpop.f32.mrf.mxu0 }
 0x960   : > { %v5319_v29 = vadd.f32 %v5318_v46, %v5230_v39  ;;  %v5407_v30 = vpop.f32.mrf.mxu3  ;;  %v5232_v37 = vpop.f32.mrf.mxu1  ;;  %v5144_v58 = vadd.f32 %v5143_v15, %v11096_v21 }
 0x962   : > { %v5408_v16 = vadd.f32 %v5407_v30, %v5319_v29  ;;  %v5233_v63 = vadd.f32 %v5232_v37, %v5144_v58 }
 0x964   : > { %5566 = vst [vmem:[%s8610_s6 + $0x418] sm:$0xff] %v5408_v16 }
 0x967   : > { %v5321_v40 = vpop.f32.mrf.mxu2  ;;  %v5145_v0 = vpop.f32.mrf.mxu0 }
 0x968   : > { %v5322_v9 = vadd.f32 %v5321_v40, %v5233_v63  ;;  %v5410_v45 = vpop.f32.mrf.mxu3  ;;  %v5234_v5 = vpop.f32.mrf.mxu1  ;;  %v5146_v8 = vadd.f32 %v5145_v0, %v11101_v48 }
 0x96a   : > { %v5411_v49 = vadd.f32 %v5410_v45, %v5322_v9  ;;  %v5235_v7 = vadd.f32 %v5234_v5, %v5146_v8 }
 0x96c   : > { %5572 = vst [vmem:[%s8610_s6 + $0x448] sm:$0xff] %v5411_v49 }
 0x96f   : > { %v5323_v47 = vpop.f32.mrf.mxu2  ;;  %v5148_v35 = vpop.f32.mrf.mxu0 }
 0x970   : > { %v5324_v27 = vadd.f32 %v5323_v47, %v5235_v7  ;;  %v5412_v42 = vpop.f32.mrf.mxu3  ;;  %v5237_v2 = vpop.f32.mrf.mxu1  ;;  %v5149_v11 = vadd.f32 %v5148_v35, %v11110_v6 }
 0x972   : > { %v5413_v21 = vadd.f32 %v5412_v42, %v5324_v27  ;;  %v5238_v22 = vadd.f32 %v5237_v2, %v5149_v11 }
 0x974   : > { %5578 = vst [vmem:[%s8610_s6 + $0x478] sm:$0xff] %v5413_v21 }
 0x977   : > { %v5326_v20 = vpop.f32.mrf.mxu2  ;;  %v5150_v53 = vpop.f32.mrf.mxu0 }
 0x978   : > { %v5327_v33 = vadd.f32 %v5326_v20, %v5238_v22  ;;  %v5415_v17 = vpop.f32.mrf.mxu3  ;;  %v5239_v60 = vpop.f32.mrf.mxu1  ;;  %v5151_v3 = vadd.f32 %v5150_v53, %v11115_v18 }
 0x97a   : > { %v5416_v48 = vadd.f32 %v5415_v17, %v5327_v33  ;;  %v5240_v38 = vadd.f32 %v5239_v60, %v5151_v3 }
 0x97c   : > { %5584 = vst [vmem:[%s8610_s6 + $0x4a8] sm:$0xff] %v5416_v48 }
 0x97f   : > { %v5328_v26 = vpop.f32.mrf.mxu2  ;;  %v5153_v23 = vpop.f32.mrf.mxu0 }
 0x980   : > { %v5329_v56 = vadd.f32 %v5328_v26, %v5240_v38  ;;  %v5417_v36 = vpop.f32.mrf.mxu3  ;;  %v5242_v59 = vpop.f32.mrf.mxu1  ;;  %v5154_v44 = vadd.f32 %v5153_v23, %v11124_v19 }
 0x982   : > { %v5418_v6 = vadd.f32 %v5417_v36, %v5329_v56  ;;  %v5243_v34 = vadd.f32 %v5242_v59, %v5154_v44 }
 0x984   : > { %5590 = vst [vmem:[%s8610_s6 + $0x4d8] sm:$0xff] %v5418_v6 }
 0x987   : > { %v5331_v12 = vpop.f32.mrf.mxu2  ;;  %v5155_v41 = vpop.f32.mrf.mxu0 }
 0x988   : > { %v5332_v51 = vadd.f32 %v5331_v12, %v5243_v34  ;;  %v5420_v57 = vpop.f32.mrf.mxu3  ;;  %v5244_v61 = vpop.f32.mrf.mxu1  ;;  %v5156_v55 = vadd.f32 %v5155_v41, %v11129_v31 }
 0x98a   : > { %v5421_v18 = vadd.f32 %v5420_v57, %v5332_v51  ;;  %v5245_v54 = vadd.f32 %v5244_v61, %v5156_v55 }
 0x98c   : > { %5596 = vst [vmem:[%s8610_s6 + $0x508] sm:$0xff] %v5421_v18 }
 0x98f   : > { %v5333_v52 = vpop.f32.mrf.mxu2  ;;  %v5158_v13 = vpop.f32.mrf.mxu0 }
 0x990   : > { %v5334_v24 = vadd.f32 %v5333_v52, %v5245_v54  ;;  %v5422_v25 = vpop.f32.mrf.mxu3  ;;  %v5247_v62 = vpop.f32.mrf.mxu1  ;;  %v5159_v10 = vadd.f32 %v5158_v13, %v11138_v43 }
 0x992   : > { %v5423_v19 = vadd.f32 %v5422_v25, %v5334_v24  ;;  %v5248_v50 = vadd.f32 %v5247_v62, %v5159_v10 }
 0x994   : > { %5602 = vst [vmem:[%s8610_s6 + $0x538] sm:$0xff] %v5423_v19 }
 0x997   : > { %v5336_v14 = vpop.f32.mrf.mxu2  ;;  %v5160_v46 = vpop.f32.mrf.mxu0 }
 0x998   : > { %v5337_v4 = vadd.f32 %v5336_v14, %v5248_v50  ;;  %v5425_v39 = vpop.f32.mrf.mxu3  ;;  %v5249_v29 = vpop.f32.mrf.mxu1  ;;  %v5161_v30 = vadd.f32 %v5160_v46, %v11143_v28 }
 0x99a   : > { %v5426_v31 = vadd.f32 %v5425_v39, %v5337_v4  ;;  %v5250_v15 = vadd.f32 %v5249_v29, %v5161_v30 }
 0x99c   : > { %5608 = vst [vmem:[%s8610_s6 + $0x568] sm:$0xff] %v5426_v31 }
 0x99f   : > { %v5338_v37 = vpop.f32.mrf.mxu2  ;;  %v5163_v63 = vpop.f32.mrf.mxu0 }
 0x9a0   : > { %v5339_v16 = vadd.f32 %v5338_v37, %v5250_v15  ;;  %v5427_v58 = vpop.f32.mrf.mxu3  ;;  %v5164_v43 = vadd.f32 %v5163_v63, %v11152_v1  ;;  %v5252_v9 = vpop.f32.mrf.mxu1 }
 0x9a2   : > { %v5428_v40 = vadd.f32 %v5427_v58, %v5339_v16  ;;  %v5253_v45 = vadd.f32 %v5252_v9, %v5164_v43 }
 0x9a4   : > { %5614 = vst [vmem:[%s8610_s6 + $0x598] sm:$0xff] %v5428_v40 }
 0x9a7   : > { %v5341_v0 = vpop.f32.mrf.mxu2  ;;  %v5165_v8 = vpop.f32.mrf.mxu0 }
 0x9a8   : > { %v5342_v5 = vadd.f32 %v5341_v0, %v5253_v45  ;;  %v5430_v49 = vpop.f32.mrf.mxu3  ;;  %v5166_v28 = vadd.f32 %v5165_v8, %v11156_v32  ;;  %v5254_v47 = vpop.f32.mrf.mxu1 }
 0x9aa   : > { %v5431_v7 = vadd.f32 %v5430_v49, %v5342_v5  ;;  %v5255_v27 = vadd.f32 %v5254_v47, %v5166_v28 }
 0x9ac   : > { %5620 = vst [vmem:[%s8610_s6 + $0x5c8] sm:$0xff] %v5431_v7 }
 0x9af   : > { %v5343_v42 = vpop.f32.mrf.mxu2 }
 0x9b0   : > { %v5344_v35 = vadd.f32 %v5343_v42, %v5255_v27  ;;  %v5432_v2 = vpop.f32.mrf.mxu3  ;;  %5633 = sbr.rel (!%p7557_p4) target bundleno = 2569 (0xa09), region = 36 }
 0x9b2   : > { %v5433_v21 = vadd.f32 %v5432_v2, %v5344_v35 }
 0x9b4   : > { %5626 = vst [vmem:[%s8610_s6 + $0x5f8] sm:$0xff] %v5433_v21 }
 0x9b5   : > { %s12114_s10 = smov (!%p5636_p8, %s5635_s10), 32 }
 0x9b6   : > { %s7024_s21 = smul.u32 48, %s12114_s10 }
 0x9b8   : > { %p7028_p9 = scmp.eq.s32.totalorder %s7024_s21, 0 }
 0x9b9   : > { %7418 = sdivrem.u32 (!%p7028_p9), %s12114_s10, 6 }
 0x9ba   : > { %5646 = sbr.rel (%p7028_p9) target bundleno = 2569 (0xa09), region = 40 }
 0x9c2   : > { %s11267_s20 = spop.drf %7418 }
 0x9c3   : > { %s7420_s22 = spop.drf %7418  ;;  %p7029_p10 = scmp.le.s32.totalorder %s11267_s20, 0 }
 0x9c4   : > { %s12102_s15 = smov (!%p7029_p10), %s11261_s14  ;;  %s12103_s24 = smov (!%p7029_p10), %s8610_s6 }
 0x9c5   : > { %5820 = sbr.rel (%p7029_p10) target bundleno = 2543 (0x9ef), region = 88  ;;  %s11276_s23 = smov (!%p7029_p10), 0  }
 0x9c6   : > { %s11278_s25 = smov (!%p7029_p10), 0  }
 0x9ca LB: >> { %v5660_v1 = vld [vmem:[%s7486_s24] sm:$0xff]  ;;  %v5662_v32 = vld [vmem:[%s7486_s24 + $0x30] sm:$0xff]  ;;  %s5732_s26 = sadd.s32 1, %s7490_s23  ;;  %v5672_v17 = vld [vmem:[%s7486_s24 + $0x8] sm:$0xff]  ;;  %s5654_s25 = sadd.s32 1, %s7494_s25   ;;  %s7494_s25 = sphi %s11278_s25, %s5654_s25   ;;  %s7490_s23 = sphi %s11276_s23, %s12106_s23   ;;  %s7486_s24 = sphi %s12103_s24, %s12105_s24   ;;  %s7482_s15 = sphi %s12102_s15, %s12104_s15  }
 0x9cb   : >> { %v5664_v11 = vld [vmem:[%s7486_s24 + $0x60] sm:$0xff]  ;;  %5661 = vst [vmem:[%s7482_s15] sm:$0xff] %v5660_v1  ;;  %v5666_v22 = vld [vmem:[%s7486_s24 + $0x90] sm:$0xff]  ;;  %p5733_p11 = scmp.ge.s32.totalorder %s5732_s26, %s11267_s20  ;;  %v5674_v53 = vld [vmem:[%s7486_s24 + $0x38] sm:$0xff]  ;;  %p5653_p12 = scmp.ge.s32.totalorder %s5654_s25, %s11267_s20 }
 0x9cc   : >> { %5663 = vst [vmem:[%s7482_s15 + $0x30] sm:$0xff] %v5662_v32  ;;  %v5668_v20 = vld [vmem:[%s7486_s24 + $0xc0] sm:$0xff]  ;;  %v5670_v33 = vld [vmem:[%s7486_s24 + $0xf0] sm:$0xff]  ;;  %v5676_v60 = vld [vmem:[%s7486_s24 + $0x68] sm:$0xff] }
 0x9cd   : >> { %5665 = vst [vmem:[%s7482_s15 + $0x60] sm:$0xff] %v5664_v11  ;;  %s12116_s26 = smov (%p5733_p11, %s5732_s26), 0  ;;  %v5678_v48 = vld [vmem:[%s7486_s24 + $0x98] sm:$0xff]  ;;  %v5680_v3 = vld [vmem:[%s7486_s24 + $0xc8] sm:$0xff]  ;;  %v5684_v26 = vld [vmem:[%s7486_s24 + $0x10] sm:$0xff] }
 0x9ce   : >> { %5667 = vst [vmem:[%s7482_s15 + $0x90] sm:$0xff] %v5666_v22  ;;  %s5735_s27 = smul.u32 288, %s12116_s26  ;;  %v5682_v38 = vld [vmem:[%s7486_s24 + $0xf8] sm:$0xff]  ;;  %v5686_v56 = vld [vmem:[%s7486_s24 + $0x40] sm:$0xff]  ;;  %v5688_v36 = vld [vmem:[%s7486_s24 + $0x70] sm:$0xff]  ;;  %s12106_s23 = smov %s12116_s26 }
 0x9cf   : >> { %5669 = vst [vmem:[%s7482_s15 + $0xc0] sm:$0xff] %v5668_v20  ;;  %v5690_v23 = vld [vmem:[%s7486_s24 + $0xa0] sm:$0xff]  ;;  %v5692_v59 = vld [vmem:[%s7486_s24 + $0xd0] sm:$0xff]  ;;  %v5696_v44 = vld [vmem:[%s7486_s24 + $0x18] sm:$0xff] }
 0x9d0   : >> { %5671 = vst [vmem:[%s7482_s15 + $0xf0] sm:$0xff] %v5670_v33  ;;  %s11312_s28 = scalar_lea.vmem %s8610_s6, %s5735_s27 [#allocation2]   ;;  %s11315_s29 = scalar_lea.vmem %s11261_s14, %s5735_s27   ;;  %v5694_v6 = vld [vmem:[%s7486_s24 + $0x100] sm:$0xff]  ;;  %v5698_v34 = vld [vmem:[%s7486_s24 + $0x48] sm:$0xff]  ;;  %v5700_v12 = vld [vmem:[%s7486_s24 + $0x78] sm:$0xff] }
 0x9d1   : >> { %5673 = vst [vmem:[%s7482_s15 + $0x8] sm:$0xff] %v5672_v17  ;;  %v5702_v51 = vld [vmem:[%s7486_s24 + $0xa8] sm:$0xff]  ;;  %v5704_v57 = vld [vmem:[%s7486_s24 + $0xd8] sm:$0xff]  ;;  %v5708_v61 = vld [vmem:[%s7486_s24 + $0x20] sm:$0xff] }
 0x9d2   : >> { %5675 = vst [vmem:[%s7482_s15 + $0x38] sm:$0xff] %v5674_v53  ;;  %v5706_v41 = vld [vmem:[%s7486_s24 + $0x108] sm:$0xff]  ;;  %v5710_v18 = vld [vmem:[%s7486_s24 + $0x50] sm:$0xff]  ;;  %v5712_v55 = vld [vmem:[%s7486_s24 + $0x80] sm:$0xff] }
 0x9d3   : >> { %5677 = vst [vmem:[%s7482_s15 + $0x68] sm:$0xff] %v5676_v60  ;;  %v5714_v54 = vld [vmem:[%s7486_s24 + $0xb0] sm:$0xff]  ;;  %v5716_v52 = vld [vmem:[%s7486_s24 + $0xe0] sm:$0xff]  ;;  %v5720_v25 = vld [vmem:[%s7486_s24 + $0x28] sm:$0xff] }
 0x9d4   : >> { %5679 = vst [vmem:[%s7482_s15 + $0x98] sm:$0xff] %v5678_v48  ;;  %v5718_v24 = vld [vmem:[%s7486_s24 + $0x110] sm:$0xff]  ;;  %v5722_v13 = vld [vmem:[%s7486_s24 + $0x58] sm:$0xff]  ;;  %v5724_v62 = vld [vmem:[%s7486_s24 + $0x88] sm:$0xff] }
 0x9d5   : >> { %5681 = vst [vmem:[%s7482_s15 + $0xc8] sm:$0xff] %v5680_v3  ;;  %v5726_v19 = vld [vmem:[%s7486_s24 + $0xb8] sm:$0xff]  ;;  %v5728_v10 = vld [vmem:[%s7486_s24 + $0xe8] sm:$0xff] }
 0x9d6   : >> { %5683 = vst [vmem:[%s7482_s15 + $0xf8] sm:$0xff] %v5682_v38  ;;  %v5730_v50 = vld [vmem:[%s7486_s24 + $0x118] sm:$0xff]  ;;  %s12105_s24 = smov %s11312_s28 }
 0x9d7   : >> { %5685 = vst [vmem:[%s7482_s15 + $0x10] sm:$0xff] %v5684_v26 }
 0x9d8   : >> { %5687 = vst [vmem:[%s7482_s15 + $0x40] sm:$0xff] %v5686_v56 }
 0x9d9   : >> { %5689 = vst [vmem:[%s7482_s15 + $0x70] sm:$0xff] %v5688_v36 }
 0x9da   : >> { %5691 = vst [vmem:[%s7482_s15 + $0xa0] sm:$0xff] %v5690_v23 }
 0x9db   : >> { %5693 = vst [vmem:[%s7482_s15 + $0xd0] sm:$0xff] %v5692_v59 }
 0x9dc   : >> { %5695 = vst [vmem:[%s7482_s15 + $0x100] sm:$0xff] %v5694_v6 }
 0x9dd   : >> { %5697 = vst [vmem:[%s7482_s15 + $0x18] sm:$0xff] %v5696_v44 }
 0x9de   : >> { %5699 = vst [vmem:[%s7482_s15 + $0x48] sm:$0xff] %v5698_v34 }
 0x9df   : >> { %5701 = vst [vmem:[%s7482_s15 + $0x78] sm:$0xff] %v5700_v12 }
 0x9e0   : >> { %5703 = vst [vmem:[%s7482_s15 + $0xa8] sm:$0xff] %v5702_v51 }
 0x9e1   : >> { %5705 = vst [vmem:[%s7482_s15 + $0xd8] sm:$0xff] %v5704_v57 }
 0x9e2   : >> { %5707 = vst [vmem:[%s7482_s15 + $0x108] sm:$0xff] %v5706_v41 }
 0x9e3   : >> { %5709 = vst [vmem:[%s7482_s15 + $0x20] sm:$0xff] %v5708_v61 }
 0x9e4   : >> { %5711 = vst [vmem:[%s7482_s15 + $0x50] sm:$0xff] %v5710_v18 }
 0x9e5   : >> { %5713 = vst [vmem:[%s7482_s15 + $0x80] sm:$0xff] %v5712_v55 }
 0x9e6   : >> { %5715 = vst [vmem:[%s7482_s15 + $0xb0] sm:$0xff] %v5714_v54 }
 0x9e7   : >> { %5717 = vst [vmem:[%s7482_s15 + $0xe0] sm:$0xff] %v5716_v52 }
 0x9e8   : >> { %5719 = vst [vmem:[%s7482_s15 + $0x110] sm:$0xff] %v5718_v24 }
 0x9e9   : >> { %5721 = vst [vmem:[%s7482_s15 + $0x28] sm:$0xff] %v5720_v25 }
 0x9ea   : >> { %5723 = vst [vmem:[%s7482_s15 + $0x58] sm:$0xff] %v5722_v13  ;;  %5656 = sbr.rel (!%p5653_p12) target bundleno = 2506 (0x9ca), region = 94 }
 0x9eb   : >> { %5725 = vst [vmem:[%s7482_s15 + $0x88] sm:$0xff] %v5724_v62 }
 0x9ec   : >> { %5727 = vst [vmem:[%s7482_s15 + $0xb8] sm:$0xff] %v5726_v19 }
 0x9ed   : >> { %5729 = vst [vmem:[%s7482_s15 + $0xe8] sm:$0xff] %v5728_v10 }
 0x9ee   : >> { %5731 = vst [vmem:[%s7482_s15 + $0x118] sm:$0xff] %v5730_v50  ;;  %s12104_s15 = smov %s11315_s29 }
 0x9ef PF: > { %7421 = sdivrem.u32 %s12114_s10, 6 }
 0x9f0   : > { %s7030_s30 = smul.u32 288, %s11267_s20 }
 0x9f2   : > { %s11388_s4 = scalar_lea.vmem %s8610_s6, %s7030_s30 [#allocation2]   ;;  %s11391_s12 = scalar_lea.vmem %s11261_s14, %s7030_s30  }
 0x9f8   : > { %s7422_s5 = spop.drf %7421 }
 0x9f9   : > { %s11393_s7 = spop.drf %7421 }
 0x9fa   : > { %p7032_p13 = scmp.le.s32.totalorder %s11393_s7, 0 }
 0x9fb   : > { %s12107_s8 = smov (!%p7032_p13), %s11391_s12  ;;  %s12108_s9 = smov (!%p7032_p13), %s11388_s4 }
 0x9fc   : > { %5834 = sbr.rel (%p7032_p13) target bundleno = 2569 (0xa09), region = 99  ;;  %s11402_s11 = smov (!%p7032_p13), 0  }
 0x9fd   : > { %s11404_s10 = smov (!%p7032_p13), 0  }
 0xa01 LB: >> { %v5755_v14 = vld [vmem:[%s7502_s9] sm:$0xff]  ;;  %v5757_v4 = vld [vmem:[%s7502_s9 + $0x8] sm:$0xff]  ;;  %v5759_v39 = vld [vmem:[%s7502_s9 + $0x10] sm:$0xff]  ;;  %s5767_s6 = sadd.s32 1, %s7506_s11  ;;  %s5749_s10 = sadd.s32 1, %s7510_s10   ;;  %s7510_s10 = sphi %s11404_s10, %s5749_s10   ;;  %s7506_s11 = sphi %s11402_s11, %s12109_s11   ;;  %s7502_s9 = sphi %s12108_s9, %s5772_s9   ;;  %s7498_s8 = sphi %s12107_s8, %s5773_s8  }
 0xa02   : >> { %5756 = vst [vmem:[%s7498_s8] sm:$0xff] %v5755_v14  ;;  %v5761_v46 = vld [vmem:[%s7502_s9 + $0x18] sm:$0xff]  ;;  %p5768_p0 = scmp.ge.s32.totalorder %s5767_s6, %s11393_s7  ;;  %v5763_v29 = vld [vmem:[%s7502_s9 + $0x20] sm:$0xff]  ;;  %v5765_v31 = vld [vmem:[%s7502_s9 + $0x28] sm:$0xff]  ;;  %p5748_p1 = scmp.ge.s32.totalorder %s5749_s10, %s11393_s7 }
 0xa03   : >> { %5758 = vst [vmem:[%s7498_s8 + $0x8] sm:$0xff] %v5757_v4 }
 0xa04   : >> { %5760 = vst [vmem:[%s7498_s8 + $0x10] sm:$0xff] %v5759_v39  ;;  %s12118_s6 = smov (%p5768_p0, %s5767_s6), 0  ;;  %5751 = sbr.rel (!%p5748_p1) target bundleno = 2561 (0xa01), region = 105 }
 0xa05   : >> { %5762 = vst [vmem:[%s7498_s8 + $0x18] sm:$0xff] %v5761_v46  ;;  %s5770_s17 = smul.u32 48, %s12118_s6  ;;  %s12109_s11 = smov %s12118_s6 }
 0xa06   : >> { %5764 = vst [vmem:[%s7498_s8 + $0x20] sm:$0xff] %v5763_v29 }
 0xa07   : >> { %5766 = vst [vmem:[%s7498_s8 + $0x28] sm:$0xff] %v5765_v31  ;;  %s5772_s9 = scalar_lea.vmem %s11388_s4, %s5770_s17 [#allocation2]   ;;  %s5773_s8 = scalar_lea.vmem %s11391_s12, %s5770_s17  }
 0xa09 PF: > { %p10_p2 = scmp.ge.s32.totalorder %s7547_s16, 4   ;;  %s12110_s12 = smov %s7474_s13 }
 0xa0a   : > { %s12111_s13 = smov %s7555_s19  ;;  %s12112_s14 = smov %s7547_s16 }
 0xa0b   :  { %12 = sbr.rel (!%p10_p2) target bundleno = 2 (0x2), region = 116 }

</bundles_post_ra>
